<compile_context>
chip_gen: v7x
topology: tpu7x:2x2x1
jax: 0.10.0
libtpu: 0.0.40
codegen_flags: <defaults>
</compile_context>

<pallas_src>
import functools

import jax
import jax.numpy as jnp
from jax.experimental import pallas as pl
from jax.experimental.pallas import tpu as pltpu

_LANE = 128
_VMEM_LIMIT = 48 * 1024 * 1024   # > 16-32 MiB scoped default, < v7x's 64 MiB physical VMEM


# ----------------------------------------------------------------------------
# Pallas kernels
# ----------------------------------------------------------------------------
def _conv3x3_kernel(*refs, th, w_img, h_img, cp_in, spade_mod, activation, has_res):
    """One (TH x W) output row-tile of a 3x3 SAME conv, via a single im2col matmul.

    If `spade_mod`, the conv input is first InstanceNorm-normalized (using the
    prefetched per-channel (mean, rsqrt(var+eps))), SPADE-modulated with gamma/beta
    and passed through LeakyReLU(0.2); halo pixels outside the image are masked to
    zero so the conv sees PyTorch-style zero padding of the modulated activation.
    """
    it = iter(refs)
    x_t_ref = next(it)            # (TH, W+2, Cp)  padded rows [i*TH, i*TH+TH)
    x_b_ref = next(it)            # (2,  W+2, Cp)  padded rows [i*TH+TH, i*TH+TH+2)
    if spade_mod:
        gb_t_ref = next(it)       # (TH, W+2, 2*Cp)  gamma|beta, same row windows
        gb_b_ref = next(it)       # (2,  W+2, 2*Cp)
        stats_ref = next(it)      # (2, Cp): row0 = mean, row1 = rsqrt(var+eps)
    w_ref = next(it)              # (9*Cp, CoutP) bf16
    b_ref = next(it)              # (1, CoutP) f32
    if has_res:
        res_ref = next(it)        # (TH, W, CoutP)
    o_ref = next(it)              # (TH, W, CoutP)

    xpad = jnp.concatenate([x_t_ref[...], x_b_ref[...]], axis=0).astype(jnp.float32)

    if spade_mod:
        i = pl.program_id(1)
        gb = jnp.concatenate([gb_t_ref[...], gb_b_ref[...]], axis=0).astype(jnp.float32)
        gamma = gb[:, :, :cp_in]
        beta = gb[:, :, cp_in:]
        stats = stats_ref[...]
        mean = stats[0:1, :].reshape(1, 1, cp_in)
        rstd = stats[1:2, :].reshape(1, 1, cp_in)
        h = (xpad - mean) * rstd * (1.0 + gamma) + beta          # SPADE modulation
        h = jnp.where(h >= 0.0, h, 0.2 * h)                      # leaky_relu(0.2)
        # Zero the halo pixels that lie outside the image (conv zero padding).
        rows = jax.lax.broadcasted_iota(jnp.int32, (th + 2, w_img + 2, 1), 0) + i * th
        cols = jax.lax.broadcasted_iota(jnp.int32, (th + 2, w_img + 2, 1), 1)
        inside = (rows >= 1) & (rows <= h_img) & (cols >= 1) & (cols <= w_img)
        h = jnp.where(inside, h, 0.0)
    else:
        h = xpad                                                 # already zero padded

    # im2col: one lane-dense (TH*W, 9*Cp) bf16 slab -> one MXU matmul (f32 accum).
    hb = h.astype(jnp.bfloat16)
    pieces = []
    for dh in range(3):
        for dw in range(3):
            pieces.append(hb[dh:dh + th, dw:dw + w_img, :].reshape(th * w_img, cp_in))
    patch = jnp.concatenate(pieces, axis=-1)                     # (TH*W, 9*Cp)

    acc = jnp.dot(patch, w_ref[...], preferred_element_type=jnp.float32)
    acc = acc + b_ref[...].astype(jnp.float32)                   # bias epilogue
    if activation == "relu":
        acc = jnp.maximum(acc, 0.0)

    out = acc.reshape(th, w_img, -1)
    if has_res:
        out = out + res_ref[...].astype(jnp.float32)             # fused residual add
    o_ref[...] = out.astype(o_ref.dtype)


def _moments_kernel(x_ref, stats_ref, *, inv_hw, eps):
    """InstanceNorm2d(affine=False) moments, accumulated over the H row-tile axis.

    Output (2, Cp) per image: row0 = mean, row1 = rsqrt(var + eps) (biased var).
    """
    i = pl.program_id(1)

    @pl.when(i == 0)
    def _init():
        stats_ref[...] = jnp.zeros_like(stats_ref)

    x = x_ref[...].astype(jnp.float32)                           # (TH, W, Cp)
    s1 = jnp.sum(x, axis=(0, 1))[None, :]                        # (1, Cp)
    s2 = jnp.sum(x * x, axis=(0, 1))[None, :]
    stats_ref[...] = stats_ref[...] + jnp.concatenate([s1, s2], axis=0)

    @pl.when(i == pl.num_programs(1) - 1)
    def _finalize():
        acc = stats_ref[...]
        mean = acc[0:1, :] * inv_hw
        var = acc[1:2, :] * inv_hw - mean * mean
        stats_ref[...] = jnp.concatenate([mean, jax.lax.rsqrt(var + eps)], axis=0)


# ----------------------------------------------------------------------------
# Pallas wrappers
# ----------------------------------------------------------------------------
def conv3x3(x_p, w, b, *, th, activation="none", spade=None, residual=None,
            out_dtype=jnp.float32):
    """3x3 SAME conv on a spatially(+1 halo)- and channel(to 128)-padded NHWC input.

    x_p: (N, H+2, W+2, Cp); w: (9*Cp, CoutP) bf16; b: (1, CoutP) f32.
    spade:   optional (stats (N,2,Cp) f32, gb_p (N,H+2,W+2,2*Cp)) -> fuse
             InstanceNorm + SPADE modulation + LeakyReLU(0.2) on the conv input.
    residual: optional (N, H, W, CoutP) added to the conv output.
    """
    N, Hp, Wp, Cp = x_p.shape
    H, W = Hp - 2, Wp - 2
    CoutP = w.shape[-1]
    assert H % th == 0 and th % 2 == 0, "H must be divisible by an even row tile"
    nt = H // th

    # Overlapping (TH+2)-row halo window = TH-row block + 2-row block (both Blocked).
    top_map = lambda n, i: (n, i, 0, 0)                       # rows [i*TH, i*TH+TH)
    bot_map = lambda n, i: (n, (i + 1) * (th // 2), 0, 0)     # rows [i*TH+TH, i*TH+TH+2)

    in_specs = [pl.BlockSpec((None, th, Wp, Cp), top_map),
                pl.BlockSpec((None, 2, Wp, Cp), bot_map)]
    args = [x_p, x_p]
    if spade is not None:
        stats, gb_p = spade
        C2 = gb_p.shape[-1]
        assert C2 == 2 * Cp
        in_specs += [pl.BlockSpec((None, th, Wp, C2), top_map),
                     pl.BlockSpec((None, 2, Wp, C2), bot_map),
                     pl.BlockSpec((None, 2, Cp), lambda n, i: (n, 0, 0))]
        args += [gb_p, gb_p, stats]
    in_specs += [pl.BlockSpec((9 * Cp, CoutP), lambda n, i: (0, 0)),
                 pl.BlockSpec((1, CoutP), lambda n, i: (0, 0))]
    args += [w, b]
    if residual is not None:
        in_specs.append(pl.BlockSpec((None, th, W, CoutP), lambda n, i: (n, i, 0, 0)))
        args.append(residual)

    kernel = functools.partial(
        _conv3x3_kernel, th=th, w_img=W, h_img=H, cp_in=Cp,
        spade_mod=spade is not None, activation=activation,
        has_res=residual is not None)

    return pl.pallas_call(
        kernel,
        out_shape=jax.ShapeDtypeStruct((N, H, W, CoutP), out_dtype),
        grid=(N, nt),
        in_specs=in_specs,
        out_specs=pl.BlockSpec((None, th, W, CoutP), lambda n, i: (n, i, 0, 0)),
        compiler_params=pltpu.CompilerParams(
            dimension_semantics=("parallel", "parallel"),
            vmem_limit_bytes=_VMEM_LIMIT),
    )(*args)


def instance_moments(x, *, th, eps=1e-5):
    """Per-image per-channel (mean, rsqrt(var+eps)) of an (N, H, W, Cp) tensor."""
    N, H, W, Cp = x.shape
    assert H % th == 0
    nt = H // th
    kernel = functools.partial(_moments_kernel, inv_hw=1.0 / float(H * W), eps=eps)
    return pl.pallas_call(
        kernel,
        out_shape=jax.ShapeDtypeStruct((N, 2, Cp), jnp.float32),
        grid=(N, nt),
        in_specs=[pl.BlockSpec((None, th, W, Cp), lambda n, i: (n, i, 0, 0))],
        out_specs=pl.BlockSpec((None, 2, Cp), lambda n, i: (n, 0, 0)),
        compiler_params=pltpu.CompilerParams(
            dimension_semantics=("parallel", "arbitrary"),
            vmem_limit_bytes=_VMEM_LIMIT),
    )(x)


# ----------------------------------------------------------------------------
# Packing / padding helpers (plain JAX glue, traced once under jit)
# ----------------------------------------------------------------------------
def _round_up(x, m):
    return (x + m - 1) // m * m


def _pick_th(h, cap=64):
    """Largest even divisor of H up to `cap` (bounds VMEM per grid step)."""
    th = None
    for t in range(2, min(h, cap) + 1, 2):
        if h % t == 0:
            th = t
    if th is None:
        # TODO(synk): odd H needs an Element-offset halo path; not needed here.
        raise ValueError(f"H={h} has no even row-tile divisor")
    return th


def _pad_ch(a, cp):
    c = a.shape[-1]
    if c == cp:
        return a
    return jnp.pad(a, ((0, 0),) * (a.ndim - 1) + ((0, cp - c),))


def _pad_sp(a):
    # TODO(synk): the +1 spatial halo is materialized with jnp.pad; an
    # Element-offset BlockSpec could stream the halo without this HBM copy.
    return jnp.pad(a, ((0, 0), (1, 1), (1, 1), (0, 0)))


def _pack_w(w, cin_p, cout_p):
    """(9, Cin, Cout) f32 -> zero-padded, lane-dense (9*Cin_p, Cout_p) bf16 MXU operand."""
    _, cin, cout = w.shape
    wp = jnp.zeros((9, cin_p, cout_p), jnp.float32).at[:, :cin, :cout].set(w)
    return wp.reshape(9 * cin_p, cout_p).astype(jnp.bfloat16)


def _pack_b(b, cout_p):
    return jnp.zeros((1, cout_p), jnp.float32).at[0, :b.shape[0]].set(b)


# ----------------------------------------------------------------------------
# Model glue
# ----------------------------------------------------------------------------
def nearest_resize_nchw(seg, H, W):
    """F.interpolate(mode='nearest'): src = floor(dst * in/out).  Plain-JAX gather."""
    _, _, Hs, Ws = seg.shape
    hi = (jnp.arange(H) * Hs // H).astype(jnp.int32)
    wi = (jnp.arange(W) * Ws // W).astype(jnp.int32)
    return seg[:, :, hi[:, None], wi[None, :]]


def spade_resnet_block(x_nchw, seg_nchw, params, *, th=None):
    """Forward of SPADEResnetBlock.  Inputs/outputs in PyTorch NCHW (f32)."""
    x = jnp.transpose(x_nchw, (0, 2, 3, 1)).astype(jnp.float32)   # NHWC
    N, H, W, C = x.shape
    if th is None:
        th = _pick_th(H)
    seg = jnp.transpose(nearest_resize_nchw(seg_nchw, H, W), (0, 2, 3, 1))
    P = seg.shape[-1]
    NH = params["norm_0"]["w_shared"].shape[-1]                   # nhidden (128)

    Cp = _round_up(C, _LANE)
    Pp = _round_up(P, _LANE)
    NHp = _round_up(NH, _LANE)

    x_cp = _pad_ch(x, Cp)                                         # channel-padded input
    seg_p = _pad_sp(_pad_ch(seg, Pp))                             # + spatial halo

    def spade_gamma_beta(sp):
        # mlp_shared conv + ReLU  -> actv (bf16, 128 lanes)
        w_sh = _pack_w(sp["w_shared"], Pp, NHp)
        b_sh = _pack_b(sp["b_shared"], NHp)
        actv = conv3x3(seg_p, w_sh, b_sh, th=th, activation="relu",
                       out_dtype=jnp.bfloat16)                    # (N,H,W,NHp)
        # gamma & beta convs fused: one kernel, concatenated Cout = 2*Cp.
        w_gb = jnp.concatenate([_pack_w(sp["w_gamma"], NHp, Cp),
                                _pack_w(sp["w_beta"], NHp, Cp)], axis=1)
        b_gb = jnp.concatenate([_pack_b(sp["b_gamma"], Cp),
                                _pack_b(sp["b_beta"], Cp)], axis=1)
        gb = conv3x3(_pad_sp(actv), w_gb, b_gb, th=th,
                     out_dtype=jnp.bfloat16)                      # (N,H,W,2*Cp)
        return _pad_sp(gb)                                        # (N,H+2,W+2,2*Cp)

    # dx = conv_0(leaky_relu(SPADE_0(x, seg)))   [norm+mod+act fused into the conv]
    gb0 = spade_gamma_beta(params["norm_0"])
    stats0 = instance_moments(x_cp, th=th)
    w0 = _pack_w(params["conv_0_w"], Cp, Cp)
    b0 = _pack_b(params["conv_0_b"], Cp)
    dx = conv3x3(_pad_sp(x_cp), w0, b0, th=th, spade=(stats0, gb0),
                 out_dtype=jnp.float32)

    # out = x + conv_1(leaky_relu(SPADE_1(dx, seg)))   [residual fused into the conv]
    gb1 = spade_gamma_beta(params["norm_1"])
    stats1 = instance_moments(dx, th=th)
    w1 = _pack_w(params["conv_1_w"], Cp, Cp)
    b1 = _pack_b(params["conv_1_b"], Cp)
    out = conv3x3(_pad_sp(dx), w1, b1, th=th, spade=(stats1, gb1),
                  residual=x_cp, out_dtype=jnp.float32)

    return jnp.transpose(out[..., :C], (0, 3, 1, 2))              # real channels, NCHW


# ----------------------------------------------------------------------------
# Deterministic synthetic parameters
# ----------------------------------------------------------------------------
def _conv_params(key, cin, cout, scale=0.1):
    kw, kb = jax.random.split(key)
    w = jax.random.normal(kw, (9, cin, cout), jnp.float32) * scale
    b = jax.random.normal(kb, (cout,), jnp.float32) * scale
    return w, b


def init_params(key, in_channel, parsing_channel, nhidden=128):
    keys = jax.random.split(key, 8)
    p = {}
    p["conv_0_w"], p["conv_0_b"] = _conv_params(keys[0], in_channel, in_channel)
    p["conv_1_w"], p["conv_1_b"] = _conv_params(keys[1], in_channel, in_channel)
    for i, name in enumerate(("norm_0", "norm_1")):
        base = 2 + 3 * i
        sp = {}
        sp["w_shared"], sp["b_shared"] = _conv_params(keys[base], parsing_channel, nhidden)
        sp["w_gamma"], sp["b_gamma"] = _conv_params(keys[base + 1], nhidden, in_channel)
        sp["w_beta"], sp["b_beta"] = _conv_params(keys[base + 2], nhidden, in_channel)
        p[name] = sp
    return p


# ----------------------------------------------------------------------------
# Pure-JAX reference.  It mirrors the kernels' precision choices (bf16 MXU
# operands with f32 accumulation, bf16 storage of actv/gamma/beta) so the
# comparison isolates kernel logic rather than quantization noise.
# ----------------------------------------------------------------------------
def _conv3x3_ref(x, w, b):
    w_hwio = w.reshape(3, 3, w.shape[1], w.shape[2]).astype(jnp.bfloat16)
    y = jax.lax.conv_general_dilated(
        x.astype(jnp.bfloat16), w_hwio, window_strides=(1, 1), padding="SAME",
        dimension_numbers=("NHWC", "HWIO", "NHWC"),
        preferred_element_type=jnp.float32)
    return y + b


def _spade_ref(x, seg, sp):
    mean = jnp.mean(x, axis=(1, 2), keepdims=True)
    var = jnp.mean((x - mean) ** 2, axis=(1, 2), keepdims=True)
    normed = (x - mean) * jax.lax.rsqrt(var + 1e-5)
    actv = jnp.maximum(_conv3x3_ref(seg, sp["w_shared"], sp["b_shared"]),
                       0.0).astype(jnp.bfloat16)
    gamma = _conv3x3_ref(actv, sp["w_gamma"], sp["b_gamma"]).astype(jnp.bfloat16).astype(jnp.float32)
    beta = _conv3x3_ref(actv, sp["w_beta"], sp["b_beta"]).astype(jnp.bfloat16).astype(jnp.float32)
    return normed * (1.0 + gamma) + beta


def reference(x_nchw, seg_nchw, p):
    x = jnp.transpose(x_nchw, (0, 2, 3, 1))
    seg = jnp.transpose(nearest_resize_nchw(seg_nchw, x.shape[1], x.shape[2]), (0, 2, 3, 1))
    lrelu = lambda t: jnp.where(t >= 0.0, t, 0.2 * t)
    dx = _conv3x3_ref(lrelu(_spade_ref(x, seg, p["norm_0"])), p["conv_0_w"], p["conv_0_b"])
    dx = _conv3x3_ref(lrelu(_spade_ref(dx, seg, p["norm_1"])), p["conv_1_w"], p["conv_1_b"])
    return jnp.transpose(x + dx, (0, 3, 1, 2))


# ----------------------------------------------------------------------------
if __name__ == "__main__":
    key = jax.random.PRNGKey(0)
    kx, ks, kp = jax.random.split(key, 3)

    N, in_channel, parsing_channel = 2, 4, 3
    H, W = 16, 16
    Hs, Ws = 8, 8    # segmap is lower-res -> exercises nearest interpolation

    x = jax.random.normal(kx, (N, in_channel, H, W), jnp.float32)
    seg = jax.random.normal(ks, (N, parsing_channel, Hs, Ws), jnp.float32)
    params = init_params(kp, in_channel, parsing_channel)

    # th=8 -> 2 row tiles per image: exercises the halo / row-tiling path.
    fwd = jax.jit(functools.partial(spade_resnet_block, th=8))
    out = jax.block_until_ready(fwd(x, seg, params))

    ref = reference(x, seg, params)
    assert out.shape == (N, in_channel, H, W)
    err = float(jnp.max(jnp.abs(out - ref)))
    assert err < 5e-3, f"mismatch vs matched-precision reference: {err}"

    print("KERNEL_OK")
</pallas_src>

<mosaic_0001>
module attributes {stable_mosaic.version = 11 : i64} {
  func.func @_conv3x3_kernel(%arg0: i32, %arg1: i32, %arg2: memref<1x8x18x128xf32, #tpu.memory_space<vmem>>, %arg3: memref<1x2x18x128xf32, #tpu.memory_space<vmem>>, %arg4: memref<1152x128xbf16, #tpu.memory_space<vmem>>, %arg5: memref<1x128xf32, #tpu.memory_space<vmem>>, %arg6: memref<1x8x16x128xbf16, #tpu.memory_space<vmem>>) attributes {dimension_semantics = [#tpu.dimension_semantics<parallel>, #tpu.dimension_semantics<parallel>], iteration_bounds = array<i64: 2, 2>, scalar_prefetch = 0 : i64, scratch_operands = 0 : i64, tpu.core_type = #tpu.core_type<tc>, window_params = [{transform_indices = @transform_0, window_bounds = array<i64: 1, 8, 18, 128>}, {transform_indices = @transform_1, window_bounds = array<i64: 1, 2, 18, 128>}, {pipeline_mode = #tpu.pipeline_mode<synchronous>, transform_indices = @transform_2, window_bounds = array<i64: 1152, 128>}, {pipeline_mode = #tpu.pipeline_mode<synchronous>, transform_indices = @transform_3, window_bounds = array<i64: 1, 128>}, {transform_indices = @transform_4, window_bounds = array<i64: 1, 8, 16, 128>}]} {
    %c0 = arith.constant 0 : index
    %c0_0 = arith.constant 0 : index
    %c0_1 = arith.constant 0 : index
    %c0_2 = arith.constant 0 : index
    %0 = vector.load %arg2[%c0, %c0_0, %c0_1, %c0_2] : memref<1x8x18x128xf32, #tpu.memory_space<vmem>>, vector<1x8x18x128xf32>
    %1 = vector.shape_cast %0 : vector<1x8x18x128xf32> to vector<8x18x128xf32>
    %c0_3 = arith.constant 0 : index
    %c0_4 = arith.constant 0 : index
    %c0_5 = arith.constant 0 : index
    %c0_6 = arith.constant 0 : index
    %2 = vector.load %arg3[%c0_3, %c0_4, %c0_5, %c0_6] : memref<1x2x18x128xf32, #tpu.memory_space<vmem>>, vector<1x2x18x128xf32>
    %3 = vector.shape_cast %2 : vector<1x2x18x128xf32> to vector<2x18x128xf32>
    %4 = tpu.concatenate %1, %3 in 0 : vector<8x18x128xf32>, vector<2x18x128xf32> -> vector<10x18x128xf32>
    %5 = arith.truncf %4 : vector<10x18x128xf32> to vector<10x18x128xbf16>
    %6 = vector.extract_strided_slice %5 {offsets = [0, 0, 0], sizes = [8, 16, 128], strides = [1, 1, 1]} : vector<10x18x128xbf16> to vector<8x16x128xbf16>
    %7 = vector.shape_cast %6 : vector<8x16x128xbf16> to vector<128x128xbf16>
    %8 = vector.extract_strided_slice %5 {offsets = [0, 1, 0], sizes = [8, 16, 128], strides = [1, 1, 1]} : vector<10x18x128xbf16> to vector<8x16x128xbf16>
    %9 = vector.shape_cast %8 : vector<8x16x128xbf16> to vector<128x128xbf16>
    %10 = vector.extract_strided_slice %5 {offsets = [0, 2, 0], sizes = [8, 16, 128], strides = [1, 1, 1]} : vector<10x18x128xbf16> to vector<8x16x128xbf16>
    %11 = vector.shape_cast %10 : vector<8x16x128xbf16> to vector<128x128xbf16>
    %12 = vector.extract_strided_slice %5 {offsets = [1, 0, 0], sizes = [8, 16, 128], strides = [1, 1, 1]} : vector<10x18x128xbf16> to vector<8x16x128xbf16>
    %13 = vector.shape_cast %12 : vector<8x16x128xbf16> to vector<128x128xbf16>
    %14 = vector.extract_strided_slice %5 {offsets = [1, 1, 0], sizes = [8, 16, 128], strides = [1, 1, 1]} : vector<10x18x128xbf16> to vector<8x16x128xbf16>
    %15 = vector.shape_cast %14 : vector<8x16x128xbf16> to vector<128x128xbf16>
    %16 = vector.extract_strided_slice %5 {offsets = [1, 2, 0], sizes = [8, 16, 128], strides = [1, 1, 1]} : vector<10x18x128xbf16> to vector<8x16x128xbf16>
    %17 = vector.shape_cast %16 : vector<8x16x128xbf16> to vector<128x128xbf16>
    %18 = vector.extract_strided_slice %5 {offsets = [2, 0, 0], sizes = [8, 16, 128], strides = [1, 1, 1]} : vector<10x18x128xbf16> to vector<8x16x128xbf16>
    %19 = vector.shape_cast %18 : vector<8x16x128xbf16> to vector<128x128xbf16>
    %20 = vector.extract_strided_slice %5 {offsets = [2, 1, 0], sizes = [8, 16, 128], strides = [1, 1, 1]} : vector<10x18x128xbf16> to vector<8x16x128xbf16>
    %21 = vector.shape_cast %20 : vector<8x16x128xbf16> to vector<128x128xbf16>
    %22 = vector.extract_strided_slice %5 {offsets = [2, 2, 0], sizes = [8, 16, 128], strides = [1, 1, 1]} : vector<10x18x128xbf16> to vector<8x16x128xbf16>
    %23 = vector.shape_cast %22 : vector<8x16x128xbf16> to vector<128x128xbf16>
    %24 = tpu.concatenate %7, %9, %11, %13, %15, %17, %19, %21, %23 in 1 : vector<128x128xbf16>, vector<128x128xbf16>, vector<128x128xbf16>, vector<128x128xbf16>, vector<128x128xbf16>, vector<128x128xbf16>, vector<128x128xbf16>, vector<128x128xbf16>, vector<128x128xbf16> -> vector<128x1152xbf16>
    %c0_7 = arith.constant 0 : index
    %c0_8 = arith.constant 0 : index
    %25 = vector.load %arg4[%c0_7, %c0_8] : memref<1152x128xbf16, #tpu.memory_space<vmem>>, vector<1152x128xbf16>
    %cst = arith.constant dense<0.000000e+00> : vector<128x128xf32>
    %26 = tpu.matmul %24, %25, %cst {dimension_numbers = #tpu.dot_dimension_numbers<[1], [0], [0], [1], [0, 0, 1, 1], [], []>} : vector<128x1152xbf16>, vector<1152x128xbf16>, vector<128x128xf32> -> vector<128x128xf32>
    %c0_9 = arith.constant 0 : index
    %c0_10 = arith.constant 0 : index
    %27 = vector.load %arg5[%c0_9, %c0_10] : memref<1x128xf32, #tpu.memory_space<vmem>>, vector<1x128xf32>
    %28 = vector.broadcast %27 : vector<1x128xf32> to vector<128x128xf32>
    %29 = arith.addf %26, %28 : vector<128x128xf32>
    %cst_11 = arith.constant 0.000000e+00 : f32
    %30 = vector.broadcast %cst_11 : f32 to vector<128x128xf32>
    %31 = arith.maximumf %29, %30 : vector<128x128xf32>
    %32 = vector.shape_cast %31 : vector<128x128xf32> to vector<8x16x128xf32>
    %33 = arith.truncf %32 : vector<8x16x128xf32> to vector<8x16x128xbf16>
    %c0_12 = arith.constant 0 : index
    %c0_13 = arith.constant 0 : index
    %c0_14 = arith.constant 0 : index
    %c0_15 = arith.constant 0 : index
    %34 = vector.load %arg6[%c0_12, %c0_13, %c0_14, %c0_15] : memref<1x8x16x128xbf16, #tpu.memory_space<vmem>>, vector<1x8x16x128xbf16>
    %35 = vector.shape_cast %34 : vector<1x8x16x128xbf16> to vector<8x16x128xbf16>
    %36 = vector.shape_cast %33 : vector<8x16x128xbf16> to vector<1x8x16x128xbf16>
    tpu.vector_store %arg6[%c0_12, %c0_13, %c0_14, %c0_15], %36 {strides = array<i32>} : memref<1x8x16x128xbf16, #tpu.memory_space<vmem>>, vector<1x8x16x128xbf16>,
    return
  }
  func.func @transform_0(%arg0: i32, %arg1: i32) -> (i32, i32, i32, i32) {
    %c0_i32 = arith.constant 0 : i32
    %c0_i32_0 = arith.constant 0 : i32
    %c0_i32_1 = arith.constant 0 : i32
    return %arg0, %arg1, %c0_i32, %c0_i32_0 : i32, i32, i32, i32
  }
  func.func @transform_1(%arg0: i32, %arg1: i32) -> (i32, i32, i32, i32) {
    %c1_i32 = arith.constant 1 : i32
    %0 = arith.addi %arg1, %c1_i32 : i32
    %c4_i32 = arith.constant 4 : i32
    %1 = arith.muli %0, %c4_i32 : i32
    %c0_i32 = arith.constant 0 : i32
    %c0_i32_0 = arith.constant 0 : i32
    %c0_i32_1 = arith.constant 0 : i32
    return %arg0, %1, %c0_i32, %c0_i32_0 : i32, i32, i32, i32
  }
  func.func @transform_2(%arg0: i32, %arg1: i32) -> (i32, i32) {
    %c0_i32 = arith.constant 0 : i32
    %c0_i32_0 = arith.constant 0 : i32
    %c0_i32_1 = arith.constant 0 : i32
    return %c0_i32, %c0_i32_0 : i32, i32
  }
  func.func @transform_3(%arg0: i32, %arg1: i32) -> (i32, i32) {
    %c0_i32 = arith.constant 0 : i32
    %c0_i32_0 = arith.constant 0 : i32
    %c0_i32_1 = arith.constant 0 : i32
    return %c0_i32, %c0_i32_0 : i32, i32
  }
  func.func @transform_4(%arg0: i32, %arg1: i32) -> (i32, i32, i32, i32) {
    %c0_i32 = arith.constant 0 : i32
    %c0_i32_0 = arith.constant 0 : i32
    %c0_i32_1 = arith.constant 0 : i32
    return %arg0, %arg1, %c0_i32, %c0_i32_0 : i32, i32, i32, i32
  }
}

module attributes {stable_mosaic.version = 11 : i64} {
  func.func @_conv3x3_kernel(%arg0: i32, %arg1: i32, %arg2: memref<1x8x18x128xbf16, #tpu.memory_space<vmem>>, %arg3: memref<1x2x18x128xbf16, #tpu.memory_space<vmem>>, %arg4: memref<1152x256xbf16, #tpu.memory_space<vmem>>, %arg5: memref<1x256xf32, #tpu.memory_space<vmem>>, %arg6: memref<1x8x16x256xbf16, #tpu.memory_space<vmem>>) attributes {dimension_semantics = [#tpu.dimension_semantics<parallel>, #tpu.dimension_semantics<parallel>], iteration_bounds = array<i64: 2, 2>, scalar_prefetch = 0 : i64, scratch_operands = 0 : i64, tpu.core_type = #tpu.core_type<tc>, window_params = [{transform_indices = @transform_0, window_bounds = array<i64: 1, 8, 18, 128>}, {transform_indices = @transform_1, window_bounds = array<i64: 1, 2, 18, 128>}, {pipeline_mode = #tpu.pipeline_mode<synchronous>, transform_indices = @transform_2, window_bounds = array<i64: 1152, 256>}, {pipeline_mode = #tpu.pipeline_mode<synchronous>, transform_indices = @transform_3, window_bounds = array<i64: 1, 256>}, {transform_indices = @transform_4, window_bounds = array<i64: 1, 8, 16, 256>}]} {
    %c0 = arith.constant 0 : index
    %c0_0 = arith.constant 0 : index
    %c0_1 = arith.constant 0 : index
    %c0_2 = arith.constant 0 : index
    %0 = vector.load %arg2[%c0, %c0_0, %c0_1, %c0_2] : memref<1x8x18x128xbf16, #tpu.memory_space<vmem>>, vector<1x8x18x128xbf16>
    %1 = vector.shape_cast %0 : vector<1x8x18x128xbf16> to vector<8x18x128xbf16>
    %c0_3 = arith.constant 0 : index
    %c0_4 = arith.constant 0 : index
    %c0_5 = arith.constant 0 : index
    %c0_6 = arith.constant 0 : index
    %2 = vector.load %arg3[%c0_3, %c0_4, %c0_5, %c0_6] : memref<1x2x18x128xbf16, #tpu.memory_space<vmem>>, vector<1x2x18x128xbf16>
    %3 = vector.shape_cast %2 : vector<1x2x18x128xbf16> to vector<2x18x128xbf16>
    %4 = tpu.concatenate %1, %3 in 0 : vector<8x18x128xbf16>, vector<2x18x128xbf16> -> vector<10x18x128xbf16>
    %5 = arith.extf %4 : vector<10x18x128xbf16> to vector<10x18x128xf32>
    %6 = arith.truncf %5 : vector<10x18x128xf32> to vector<10x18x128xbf16>
    %7 = vector.extract_strided_slice %6 {offsets = [0, 0, 0], sizes = [8, 16, 128], strides = [1, 1, 1]} : vector<10x18x128xbf16> to vector<8x16x128xbf16>
    %8 = vector.shape_cast %7 : vector<8x16x128xbf16> to vector<128x128xbf16>
    %9 = vector.extract_strided_slice %6 {offsets = [0, 1, 0], sizes = [8, 16, 128], strides = [1, 1, 1]} : vector<10x18x128xbf16> to vector<8x16x128xbf16>
    %10 = vector.shape_cast %9 : vector<8x16x128xbf16> to vector<128x128xbf16>
    %11 = vector.extract_strided_slice %6 {offsets = [0, 2, 0], sizes = [8, 16, 128], strides = [1, 1, 1]} : vector<10x18x128xbf16> to vector<8x16x128xbf16>
    %12 = vector.shape_cast %11 : vector<8x16x128xbf16> to vector<128x128xbf16>
    %13 = vector.extract_strided_slice %6 {offsets = [1, 0, 0], sizes = [8, 16, 128], strides = [1, 1, 1]} : vector<10x18x128xbf16> to vector<8x16x128xbf16>
    %14 = vector.shape_cast %13 : vector<8x16x128xbf16> to vector<128x128xbf16>
    %15 = vector.extract_strided_slice %6 {offsets = [1, 1, 0], sizes = [8, 16, 128], strides = [1, 1, 1]} : vector<10x18x128xbf16> to vector<8x16x128xbf16>
    %16 = vector.shape_cast %15 : vector<8x16x128xbf16> to vector<128x128xbf16>
    %17 = vector.extract_strided_slice %6 {offsets = [1, 2, 0], sizes = [8, 16, 128], strides = [1, 1, 1]} : vector<10x18x128xbf16> to vector<8x16x128xbf16>
    %18 = vector.shape_cast %17 : vector<8x16x128xbf16> to vector<128x128xbf16>
    %19 = vector.extract_strided_slice %6 {offsets = [2, 0, 0], sizes = [8, 16, 128], strides = [1, 1, 1]} : vector<10x18x128xbf16> to vector<8x16x128xbf16>
    %20 = vector.shape_cast %19 : vector<8x16x128xbf16> to vector<128x128xbf16>
    %21 = vector.extract_strided_slice %6 {offsets = [2, 1, 0], sizes = [8, 16, 128], strides = [1, 1, 1]} : vector<10x18x128xbf16> to vector<8x16x128xbf16>
    %22 = vector.shape_cast %21 : vector<8x16x128xbf16> to vector<128x128xbf16>
    %23 = vector.extract_strided_slice %6 {offsets = [2, 2, 0], sizes = [8, 16, 128], strides = [1, 1, 1]} : vector<10x18x128xbf16> to vector<8x16x128xbf16>
    %24 = vector.shape_cast %23 : vector<8x16x128xbf16> to vector<128x128xbf16>
    %25 = tpu.concatenate %8, %10, %12, %14, %16, %18, %20, %22, %24 in 1 : vector<128x128xbf16>, vector<128x128xbf16>, vector<128x128xbf16>, vector<128x128xbf16>, vector<128x128xbf16>, vector<128x128xbf16>, vector<128x128xbf16>, vector<128x128xbf16>, vector<128x128xbf16> -> vector<128x1152xbf16>
    %c0_7 = arith.constant 0 : index
    %c0_8 = arith.constant 0 : index
    %26 = vector.load %arg4[%c0_7, %c0_8] : memref<1152x256xbf16, #tpu.memory_space<vmem>>, vector<1152x256xbf16>
    %cst = arith.constant dense<0.000000e+00> : vector<128x256xf32>
    %27 = tpu.matmul %25, %26, %cst {dimension_numbers = #tpu.dot_dimension_numbers<[1], [0], [0], [1], [0, 0, 1, 1], [], []>} : vector<128x1152xbf16>, vector<1152x256xbf16>, vector<128x256xf32> -> vector<128x256xf32>
    %c0_9 = arith.constant 0 : index
    %c0_10 = arith.constant 0 : index
    %28 = vector.load %arg5[%c0_9, %c0_10] : memref<1x256xf32, #tpu.memory_space<vmem>>, vector<1x256xf32>
    %29 = vector.broadcast %28 : vector<1x256xf32> to vector<128x256xf32>
    %30 = arith.addf %27, %29 : vector<128x256xf32>
    %31 = vector.shape_cast %30 : vector<128x256xf32> to vector<8x16x256xf32>
    %32 = arith.truncf %31 : vector<8x16x256xf32> to vector<8x16x256xbf16>
    %c0_11 = arith.constant 0 : index
    %c0_12 = arith.constant 0 : index
    %c0_13 = arith.constant 0 : index
    %c0_14 = arith.constant 0 : index
    %33 = vector.load %arg6[%c0_11, %c0_12, %c0_13, %c0_14] : memref<1x8x16x256xbf16, #tpu.memory_space<vmem>>, vector<1x8x16x256xbf16>
    %34 = vector.shape_cast %33 : vector<1x8x16x256xbf16> to vector<8x16x256xbf16>
    %35 = vector.shape_cast %32 : vector<8x16x256xbf16> to vector<1x8x16x256xbf16>
    tpu.vector_store %arg6[%c0_11, %c0_12, %c0_13, %c0_14], %35 {strides = array<i32>} : memref<1x8x16x256xbf16, #tpu.memory_space<vmem>>, vector<1x8x16x256xbf16>,
    return
  }
  func.func @transform_0(%arg0: i32, %arg1: i32) -> (i32, i32, i32, i32) {
    %c0_i32 = arith.constant 0 : i32
    %c0_i32_0 = arith.constant 0 : i32
    %c0_i32_1 = arith.constant 0 : i32
    return %arg0, %arg1, %c0_i32, %c0_i32_0 : i32, i32, i32, i32
  }
  func.func @transform_1(%arg0: i32, %arg1: i32) -> (i32, i32, i32, i32) {
    %c1_i32 = arith.constant 1 : i32
    %0 = arith.addi %arg1, %c1_i32 : i32
    %c4_i32 = arith.constant 4 : i32
    %1 = arith.muli %0, %c4_i32 : i32
    %c0_i32 = arith.constant 0 : i32
    %c0_i32_0 = arith.constant 0 : i32
    %c0_i32_1 = arith.constant 0 : i32
    return %arg0, %1, %c0_i32, %c0_i32_0 : i32, i32, i32, i32
  }
  func.func @transform_2(%arg0: i32, %arg1: i32) -> (i32, i32) {
    %c0_i32 = arith.constant 0 : i32
    %c0_i32_0 = arith.constant 0 : i32
    %c0_i32_1 = arith.constant 0 : i32
    return %c0_i32, %c0_i32_0 : i32, i32
  }
  func.func @transform_3(%arg0: i32, %arg1: i32) -> (i32, i32) {
    %c0_i32 = arith.constant 0 : i32
    %c0_i32_0 = arith.constant 0 : i32
    %c0_i32_1 = arith.constant 0 : i32
    return %c0_i32, %c0_i32_0 : i32, i32
  }
  func.func @transform_4(%arg0: i32, %arg1: i32) -> (i32, i32, i32, i32) {
    %c0_i32 = arith.constant 0 : i32
    %c0_i32_0 = arith.constant 0 : i32
    %c0_i32_1 = arith.constant 0 : i32
    return %arg0, %arg1, %c0_i32, %c0_i32_0 : i32, i32, i32, i32
  }
}

module attributes {stable_mosaic.version = 11 : i64} {
  func.func @_moments_kernel(%arg0: i32, %arg1: i32, %arg2: memref<1x8x16x128xf32, #tpu.memory_space<vmem>>, %arg3: memref<1x2x128xf32, #tpu.memory_space<vmem>>) attributes {dimension_semantics = [#tpu.dimension_semantics<parallel>, #tpu.dimension_semantics<arbitrary>], iteration_bounds = array<i64: 2, 2>, scalar_prefetch = 0 : i64, scratch_operands = 0 : i64, tpu.core_type = #tpu.core_type<tc>, window_params = [{transform_indices = @transform_0, window_bounds = array<i64: 1, 8, 16, 128>}, {transform_indices = @transform_1, window_bounds = array<i64: 1, 2, 128>}]} {
    %c0_i32 = arith.constant 0 : i32
    %0 = arith.cmpi eq, %arg1, %c0_i32 : i32
    %1 = arith.extui %0 : i1 to i32
    %c0_i32_0 = arith.constant 0 : i32
    %2 = arith.cmpi ne, %1, %c0_i32_0 : i32
    scf.if %2 {
      %cst_12 = arith.constant 0.000000e+00 : f32
      %20 = vector.broadcast %cst_12 : f32 to vector<2x128xf32>
      %c0_13 = arith.constant 0 : index
      %c0_14 = arith.constant 0 : index
      %c0_15 = arith.constant 0 : index
      %21 = vector.load %arg3[%c0_13, %c0_14, %c0_15] : memref<1x2x128xf32, #tpu.memory_space<vmem>>, vector<1x2x128xf32>
      %22 = vector.shape_cast %21 : vector<1x2x128xf32> to vector<2x128xf32>
      %23 = vector.shape_cast %20 : vector<2x128xf32> to vector<1x2x128xf32>
      tpu.vector_store %arg3[%c0_13, %c0_14, %c0_15], %23 {strides = array<i32>} : memref<1x2x128xf32, #tpu.memory_space<vmem>>, vector<1x2x128xf32>,
    } else {
    }
    %c0 = arith.constant 0 : index
    %c0_1 = arith.constant 0 : index
    %c0_2 = arith.constant 0 : index
    %c0_3 = arith.constant 0 : index
    %3 = vector.load %arg2[%c0, %c0_1, %c0_2, %c0_3] : memref<1x8x16x128xf32, #tpu.memory_space<vmem>>, vector<1x8x16x128xf32>
    %4 = vector.shape_cast %3 : vector<1x8x16x128xf32> to vector<8x16x128xf32>
    %cst = arith.constant dense<0.000000e+00> : vector<128xf32>
    %5 = vector.multi_reduction <add>, %4, %cst [0, 1] : vector<8x16x128xf32> to vector<128xf32>
    %6 = vector.shape_cast %5 : vector<128xf32> to vector<1x128xf32>
    %7 = arith.mulf %4, %4 : vector<8x16x128xf32>
    %cst_4 = arith.constant dense<0.000000e+00> : vector<128xf32>
    %8 = vector.multi_reduction <add>, %7, %cst_4 [0, 1] : vector<8x16x128xf32> to vector<128xf32>
    %9 = vector.shape_cast %8 : vector<128xf32> to vector<1x128xf32>
    %c0_5 = arith.constant 0 : index
    %c0_6 = arith.constant 0 : index
    %c0_7 = arith.constant 0 : index
    %10 = vector.load %arg3[%c0_5, %c0_6, %c0_7] : memref<1x2x128xf32, #tpu.memory_space<vmem>>, vector<1x2x128xf32>
    %11 = vector.shape_cast %10 : vector<1x2x128xf32> to vector<2x128xf32>
    %12 = tpu.concatenate %6, %9 in 0 : vector<1x128xf32>, vector<1x128xf32> -> vector<2x128xf32>
    %13 = arith.addf %11, %12 : vector<2x128xf32>
    %c0_8 = arith.constant 0 : index
    %c0_9 = arith.constant 0 : index
    %c0_10 = arith.constant 0 : index
    %14 = vector.load %arg3[%c0_8, %c0_9, %c0_10] : memref<1x2x128xf32, #tpu.memory_space<vmem>>, vector<1x2x128xf32>
    %15 = vector.shape_cast %14 : vector<1x2x128xf32> to vector<2x128xf32>
    %16 = vector.shape_cast %13 : vector<2x128xf32> to vector<1x2x128xf32>
    tpu.vector_store %arg3[%c0_8, %c0_9, %c0_10], %16 {strides = array<i32>} : memref<1x2x128xf32, #tpu.memory_space<vmem>>, vector<1x2x128xf32>,
    %c1_i32 = arith.constant 1 : i32
    %17 = arith.cmpi eq, %arg1, %c1_i32 : i32
    %18 = arith.extui %17 : i1 to i32
    %c0_i32_11 = arith.constant 0 : i32
    %19 = arith.cmpi ne, %18, %c0_i32_11 : i32
    scf.if %19 {
      %c0_12 = arith.constant 0 : index
      %c0_13 = arith.constant 0 : index
      %c0_14 = arith.constant 0 : index
      %20 = vector.load %arg3[%c0_12, %c0_13, %c0_14] : memref<1x2x128xf32, #tpu.memory_space<vmem>>, vector<1x2x128xf32>
      %21 = vector.shape_cast %20 : vector<1x2x128xf32> to vector<2x128xf32>
      %22 = vector.extract_strided_slice %21 {offsets = [0, 0], sizes = [1, 128], strides = [1, 1]} : vector<2x128xf32> to vector<1x128xf32>
      %cst_15 = arith.constant 3.906250e-03 : f32
      %23 = vector.broadcast %cst_15 : f32 to vector<1x128xf32>
      %24 = arith.mulf %22, %23 : vector<1x128xf32>
      %25 = vector.extract_strided_slice %21 {offsets = [1, 0], sizes = [1, 128], strides = [1, 1]} : vector<2x128xf32> to vector<1x128xf32>
      %cst_16 = arith.constant 3.906250e-03 : f32
      %26 = vector.broadcast %cst_16 : f32 to vector<1x128xf32>
      %27 = arith.mulf %25, %26 : vector<1x128xf32>
      %28 = arith.mulf %24, %24 : vector<1x128xf32>
      %29 = arith.subf %27, %28 : vector<1x128xf32>
      %cst_17 = arith.constant 9.99999974E-6 : f32
      %30 = vector.broadcast %cst_17 : f32 to vector<1x128xf32>
      %31 = arith.addf %29, %30 : vector<1x128xf32>
      %32 = math.rsqrt %31 : vector<1x128xf32>
      %33 = tpu.concatenate %24, %32 in 0 : vector<1x128xf32>, vector<1x128xf32> -> vector<2x128xf32>
      %c0_18 = arith.constant 0 : index
      %c0_19 = arith.constant 0 : index
      %c0_20 = arith.constant 0 : index
      %34 = vector.load %arg3[%c0_18, %c0_19, %c0_20] : memref<1x2x128xf32, #tpu.memory_space<vmem>>, vector<1x2x128xf32>
      %35 = vector.shape_cast %34 : vector<1x2x128xf32> to vector<2x128xf32>
      %36 = vector.shape_cast %33 : vector<2x128xf32> to vector<1x2x128xf32>
      tpu.vector_store %arg3[%c0_18, %c0_19, %c0_20], %36 {strides = array<i32>} : memref<1x2x128xf32, #tpu.memory_space<vmem>>, vector<1x2x128xf32>,
    } else {
    }
    return
  }
  func.func @transform_0(%arg0: i32, %arg1: i32) -> (i32, i32, i32, i32) {
    %c0_i32 = arith.constant 0 : i32
    %c0_i32_0 = arith.constant 0 : i32
    %c0_i32_1 = arith.constant 0 : i32
    return %arg0, %arg1, %c0_i32, %c0_i32_0 : i32, i32, i32, i32
  }
  func.func @transform_1(%arg0: i32, %arg1: i32) -> (i32, i32, i32) {
    %c0_i32 = arith.constant 0 : i32
    %c0_i32_0 = arith.constant 0 : i32
    %c0_i32_1 = arith.constant 0 : i32
    return %arg0, %c0_i32, %c0_i32_0 : i32, i32, i32
  }
}

module attributes {stable_mosaic.version = 11 : i64} {
  func.func @_conv3x3_kernel(%arg0: i32, %arg1: i32, %arg2: memref<1x8x18x128xf32, #tpu.memory_space<vmem>>, %arg3: memref<1x2x18x128xf32, #tpu.memory_space<vmem>>, %arg4: memref<1x8x18x256xbf16, #tpu.memory_space<vmem>>, %arg5: memref<1x2x18x256xbf16, #tpu.memory_space<vmem>>, %arg6: memref<1x2x128xf32, #tpu.memory_space<vmem>>, %arg7: memref<1152x128xbf16, #tpu.memory_space<vmem>>, %arg8: memref<1x128xf32, #tpu.memory_space<vmem>>, %arg9: memref<1x8x16x128xf32, #tpu.memory_space<vmem>>) attributes {dimension_semantics = [#tpu.dimension_semantics<parallel>, #tpu.dimension_semantics<parallel>], iteration_bounds = array<i64: 2, 2>, scalar_prefetch = 0 : i64, scratch_operands = 0 : i64, tpu.core_type = #tpu.core_type<tc>, window_params = [{transform_indices = @transform_0, window_bounds = array<i64: 1, 8, 18, 128>}, {transform_indices = @transform_1, window_bounds = array<i64: 1, 2, 18, 128>}, {transform_indices = @transform_2, window_bounds = array<i64: 1, 8, 18, 256>}, {transform_indices = @transform_3, window_bounds = array<i64: 1, 2, 18, 256>}, {transform_indices = @transform_4, window_bounds = array<i64: 1, 2, 128>}, {pipeline_mode = #tpu.pipeline_mode<synchronous>, transform_indices = @transform_5, window_bounds = array<i64: 1152, 128>}, {pipeline_mode = #tpu.pipeline_mode<synchronous>, transform_indices = @transform_6, window_bounds = array<i64: 1, 128>}, {transform_indices = @transform_7, window_bounds = array<i64: 1, 8, 16, 128>}]} {
    %c0 = arith.constant 0 : index
    %c0_0 = arith.constant 0 : index
    %c0_1 = arith.constant 0 : index
    %c0_2 = arith.constant 0 : index
    %0 = vector.load %arg2[%c0, %c0_0, %c0_1, %c0_2] : memref<1x8x18x128xf32, #tpu.memory_space<vmem>>, vector<1x8x18x128xf32>
    %1 = vector.shape_cast %0 : vector<1x8x18x128xf32> to vector<8x18x128xf32>
    %c0_3 = arith.constant 0 : index
    %c0_4 = arith.constant 0 : index
    %c0_5 = arith.constant 0 : index
    %c0_6 = arith.constant 0 : index
    %2 = vector.load %arg3[%c0_3, %c0_4, %c0_5, %c0_6] : memref<1x2x18x128xf32, #tpu.memory_space<vmem>>, vector<1x2x18x128xf32>
    %3 = vector.shape_cast %2 : vector<1x2x18x128xf32> to vector<2x18x128xf32>
    %4 = tpu.concatenate %1, %3 in 0 : vector<8x18x128xf32>, vector<2x18x128xf32> -> vector<10x18x128xf32>
    %c0_7 = arith.constant 0 : index
    %c0_8 = arith.constant 0 : index
    %c0_9 = arith.constant 0 : index
    %c0_10 = arith.constant 0 : index
    %5 = vector.load %arg4[%c0_7, %c0_8, %c0_9, %c0_10] : memref<1x8x18x256xbf16, #tpu.memory_space<vmem>>, vector<1x8x18x256xbf16>
    %6 = vector.shape_cast %5 : vector<1x8x18x256xbf16> to vector<8x18x256xbf16>
    %c0_11 = arith.constant 0 : index
    %c0_12 = arith.constant 0 : index
    %c0_13 = arith.constant 0 : index
    %c0_14 = arith.constant 0 : index
    %7 = vector.load %arg5[%c0_11, %c0_12, %c0_13, %c0_14] : memref<1x2x18x256xbf16, #tpu.memory_space<vmem>>, vector<1x2x18x256xbf16>
    %8 = vector.shape_cast %7 : vector<1x2x18x256xbf16> to vector<2x18x256xbf16>
    %9 = tpu.concatenate %6, %8 in 0 : vector<8x18x256xbf16>, vector<2x18x256xbf16> -> vector<10x18x256xbf16>
    %10 = arith.extf %9 : vector<10x18x256xbf16> to vector<10x18x256xf32>
    %11 = vector.extract_strided_slice %10 {offsets = [0, 0, 0], sizes = [10, 18, 128], strides = [1, 1, 1]} : vector<10x18x256xf32> to vector<10x18x128xf32>
    %12 = vector.extract_strided_slice %10 {offsets = [0, 0, 128], sizes = [10, 18, 128], strides = [1, 1, 1]} : vector<10x18x256xf32> to vector<10x18x128xf32>
    %c0_15 = arith.constant 0 : index
    %c0_16 = arith.constant 0 : index
    %c0_17 = arith.constant 0 : index
    %13 = vector.load %arg6[%c0_15, %c0_16, %c0_17] : memref<1x2x128xf32, #tpu.memory_space<vmem>>, vector<1x2x128xf32>
    %14 = vector.shape_cast %13 : vector<1x2x128xf32> to vector<2x128xf32>
    %15 = vector.extract_strided_slice %14 {offsets = [0, 0], sizes = [1, 128], strides = [1, 1]} : vector<2x128xf32> to vector<1x128xf32>
    %16 = vector.shape_cast %15 : vector<1x128xf32> to vector<1x1x128xf32>
    %17 = vector.extract_strided_slice %14 {offsets = [1, 0], sizes = [1, 128], strides = [1, 1]} : vector<2x128xf32> to vector<1x128xf32>
    %18 = vector.shape_cast %17 : vector<1x128xf32> to vector<1x1x128xf32>
    %19 = vector.broadcast %16 : vector<1x1x128xf32> to vector<10x18x128xf32>
    %20 = arith.subf %4, %19 : vector<10x18x128xf32>
    %21 = vector.broadcast %18 : vector<1x1x128xf32> to vector<10x18x128xf32>
    %22 = arith.mulf %20, %21 : vector<10x18x128xf32>
    %cst = arith.constant 1.000000e+00 : f32
    %23 = vector.broadcast %cst : f32 to vector<10x18x128xf32>
    %24 = arith.addf %23, %11 : vector<10x18x128xf32>
    %25 = arith.mulf %22, %24 : vector<10x18x128xf32>
    %26 = arith.addf %25, %12 : vector<10x18x128xf32>
    %cst_18 = arith.constant 0.000000e+00 : f32
    %27 = vector.broadcast %cst_18 : f32 to vector<10x18x128xf32>
    %28 = arith.cmpf oge, %26, %27 : vector<10x18x128xf32>
    %cst_19 = arith.constant 2.000000e-01 : f32
    %29 = vector.broadcast %cst_19 : f32 to vector<10x18x128xf32>
    %30 = arith.mulf %29, %26 : vector<10x18x128xf32>
    %31 = arith.select %28, %26, %30 : vector<10x18x128xi1>, vector<10x18x128xf32>
    %32 = tpu.iota {dimensions = array<i32: 0>} : vector<10x18x1xi32>
    %c8_i32 = arith.constant 8 : i32
    %33 = arith.muli %arg1, %c8_i32 : i32
    %34 = vector.broadcast %33 : i32 to vector<10x18x1xi32>
    %35 = arith.addi %32, %34 : vector<10x18x1xi32>
    %36 = tpu.iota {dimensions = array<i32: 1>} : vector<10x18x1xi32>
    %c1_i32 = arith.constant 1 : i32
    %37 = vector.broadcast %c1_i32 : i32 to vector<10x18x1xi32>
    %38 = arith.cmpi sge, %35, %37 : vector<10x18x1xi32>
    %c16_i32 = arith.constant 16 : i32
    %39 = vector.broadcast %c16_i32 : i32 to vector<10x18x1xi32>
    %40 = arith.cmpi sle, %35, %39 : vector<10x18x1xi32>
    %41 = arith.andi %38, %40 : vector<10x18x1xi1>
    %c1_i32_20 = arith.constant 1 : i32
    %42 = vector.broadcast %c1_i32_20 : i32 to vector<10x18x1xi32>
    %43 = arith.cmpi sge, %36, %42 : vector<10x18x1xi32>
    %44 = arith.andi %41, %43 : vector<10x18x1xi1>
    %c16_i32_21 = arith.constant 16 : i32
    %45 = vector.broadcast %c16_i32_21 : i32 to vector<10x18x1xi32>
    %46 = arith.cmpi sle, %36, %45 : vector<10x18x1xi32>
    %47 = arith.andi %44, %46 : vector<10x18x1xi1>
    %cst_22 = arith.constant 0.000000e+00 : f32
    %48 = vector.shape_cast %47 : vector<10x18x1xi1> to vector<10x18x1xi1>
    %49 = vector.broadcast %48 : vector<10x18x1xi1> to vector<10x18x128xi1>
    %50 = vector.broadcast %cst_22 : f32 to vector<10x18x128xf32>
    %51 = arith.select %49, %31, %50 : vector<10x18x128xi1>, vector<10x18x128xf32>
    %52 = arith.truncf %51 : vector<10x18x128xf32> to vector<10x18x128xbf16>
    %53 = vector.extract_strided_slice %52 {offsets = [0, 0, 0], sizes = [8, 16, 128], strides = [1, 1, 1]} : vector<10x18x128xbf16> to vector<8x16x128xbf16>
    %54 = vector.shape_cast %53 : vector<8x16x128xbf16> to vector<128x128xbf16>
    %55 = vector.extract_strided_slice %52 {offsets = [0, 1, 0], sizes = [8, 16, 128], strides = [1, 1, 1]} : vector<10x18x128xbf16> to vector<8x16x128xbf16>
    %56 = vector.shape_cast %55 : vector<8x16x128xbf16> to vector<128x128xbf16>
    %57 = vector.extract_strided_slice %52 {offsets = [0, 2, 0], sizes = [8, 16, 128], strides = [1, 1, 1]} : vector<10x18x128xbf16> to vector<8x16x128xbf16>
    %58 = vector.shape_cast %57 : vector<8x16x128xbf16> to vector<128x128xbf16>
    %59 = vector.extract_strided_slice %52 {offsets = [1, 0, 0], sizes = [8, 16, 128], strides = [1, 1, 1]} : vector<10x18x128xbf16> to vector<8x16x128xbf16>
    %60 = vector.shape_cast %59 : vector<8x16x128xbf16> to vector<128x128xbf16>
    %61 = vector.extract_strided_slice %52 {offsets = [1, 1, 0], sizes = [8, 16, 128], strides = [1, 1, 1]} : vector<10x18x128xbf16> to vector<8x16x128xbf16>
    %62 = vector.shape_cast %61 : vector<8x16x128xbf16> to vector<128x128xbf16>
    %63 = vector.extract_strided_slice %52 {offsets = [1, 2, 0], sizes = [8, 16, 128], strides = [1, 1, 1]} : vector<10x18x128xbf16> to vector<8x16x128xbf16>
    %64 = vector.shape_cast %63 : vector<8x16x128xbf16> to vector<128x128xbf16>
    %65 = vector.extract_strided_slice %52 {offsets = [2, 0, 0], sizes = [8, 16, 128], strides = [1, 1, 1]} : vector<10x18x128xbf16> to vector<8x16x128xbf16>
    %66 = vector.shape_cast %65 : vector<8x16x128xbf16> to vector<128x128xbf16>
    %67 = vector.extract_strided_slice %52 {offsets = [2, 1, 0], sizes = [8, 16, 128], strides = [1, 1, 1]} : vector<10x18x128xbf16> to vector<8x16x128xbf16>
    %68 = vector.shape_cast %67 : vector<8x16x128xbf16> to vector<128x128xbf16>
    %69 = vector.extract_strided_slice %52 {offsets = [2, 2, 0], sizes = [8, 16, 128], strides = [1, 1, 1]} : vector<10x18x128xbf16> to vector<8x16x128xbf16>
    %70 = vector.shape_cast %69 : vector<8x16x128xbf16> to vector<128x128xbf16>
    %71 = tpu.concatenate %54, %56, %58, %60, %62, %64, %66, %68, %70 in 1 : vector<128x128xbf16>, vector<128x128xbf16>, vector<128x128xbf16>, vector<128x128xbf16>, vector<128x128xbf16>, vector<128x128xbf16>, vector<128x128xbf16>, vector<128x128xbf16>, vector<128x128xbf16> -> vector<128x1152xbf16>
    %c0_23 = arith.constant 0 : index
    %c0_24 = arith.constant 0 : index
    %72 = vector.load %arg7[%c0_23, %c0_24] : memref<1152x128xbf16, #tpu.memory_space<vmem>>, vector<1152x128xbf16>
    %cst_25 = arith.constant dense<0.000000e+00> : vector<128x128xf32>
    %73 = tpu.matmul %71, %72, %cst_25 {dimension_numbers = #tpu.dot_dimension_numbers<[1], [0], [0], [1], [0, 0, 1, 1], [], []>} : vector<128x1152xbf16>, vector<1152x128xbf16>, vector<128x128xf32> -> vector<128x128xf32>
    %c0_26 = arith.constant 0 : index
    %c0_27 = arith.constant 0 : index
    %74 = vector.load %arg8[%c0_26, %c0_27] : memref<1x128xf32, #tpu.memory_space<vmem>>, vector<1x128xf32>
    %75 = vector.broadcast %74 : vector<1x128xf32> to vector<128x128xf32>
    %76 = arith.addf %73, %75 : vector<128x128xf32>
    %77 = vector.shape_cast %76 : vector<128x128xf32> to vector<8x16x128xf32>
    %c0_28 = arith.constant 0 : index
    %c0_29 = arith.constant 0 : index
    %c0_30 = arith.constant 0 : index
    %c0_31 = arith.constant 0 : index
    %78 = vector.load %arg9[%c0_28, %c0_29, %c0_30, %c0_31] : memref<1x8x16x128xf32, #tpu.memory_space<vmem>>, vector<1x8x16x128xf32>
    %79 = vector.shape_cast %78 : vector<1x8x16x128xf32> to vector<8x16x128xf32>
    %80 = vector.shape_cast %77 : vector<8x16x128xf32> to vector<1x8x16x128xf32>
    tpu.vector_store %arg9[%c0_28, %c0_29, %c0_30, %c0_31], %80 {strides = array<i32>} : memref<1x8x16x128xf32, #tpu.memory_space<vmem>>, vector<1x8x16x128xf32>,
    return
  }
  func.func @transform_0(%arg0: i32, %arg1: i32) -> (i32, i32, i32, i32) {
    %c0_i32 = arith.constant 0 : i32
    %c0_i32_0 = arith.constant 0 : i32
    %c0_i32_1 = arith.constant 0 : i32
    return %arg0, %arg1, %c0_i32, %c0_i32_0 : i32, i32, i32, i32
  }
  func.func @transform_1(%arg0: i32, %arg1: i32) -> (i32, i32, i32, i32) {
    %c1_i32 = arith.constant 1 : i32
    %0 = arith.addi %arg1, %c1_i32 : i32
    %c4_i32 = arith.constant 4 : i32
    %1 = arith.muli %0, %c4_i32 : i32
    %c0_i32 = arith.constant 0 : i32
    %c0_i32_0 = arith.constant 0 : i32
    %c0_i32_1 = arith.constant 0 : i32
    return %arg0, %1, %c0_i32, %c0_i32_0 : i32, i32, i32, i32
  }
  func.func @transform_2(%arg0: i32, %arg1: i32) -> (i32, i32, i32, i32) {
    %c0_i32 = arith.constant 0 : i32
    %c0_i32_0 = arith.constant 0 : i32
    %c0_i32_1 = arith.constant 0 : i32
    return %arg0, %arg1, %c0_i32, %c0_i32_0 : i32, i32, i32, i32
  }
  func.func @transform_3(%arg0: i32, %arg1: i32) -> (i32, i32, i32, i32) {
    %c1_i32 = arith.constant 1 : i32
    %0 = arith.addi %arg1, %c1_i32 : i32
    %c4_i32 = arith.constant 4 : i32
    %1 = arith.muli %0, %c4_i32 : i32
    %c0_i32 = arith.constant 0 : i32
    %c0_i32_0 = arith.constant 0 : i32
    %c0_i32_1 = arith.constant 0 : i32
    return %arg0, %1, %c0_i32, %c0_i32_0 : i32, i32, i32, i32
  }
  func.func @transform_4(%arg0: i32, %arg1: i32) -> (i32, i32, i32) {
    %c0_i32 = arith.constant 0 : i32
    %c0_i32_0 = arith.constant 0 : i32
    %c0_i32_1 = arith.constant 0 : i32
    return %arg0, %c0_i32, %c0_i32_0 : i32, i32, i32
  }
  func.func @transform_5(%arg0: i32, %arg1: i32) -> (i32, i32) {
    %c0_i32 = arith.constant 0 : i32
    %c0_i32_0 = arith.constant 0 : i32
    %c0_i32_1 = arith.constant 0 : i32
    return %c0_i32, %c0_i32_0 : i32, i32
  }
  func.func @transform_6(%arg0: i32, %arg1: i32) -> (i32, i32) {
    %c0_i32 = arith.constant 0 : i32
    %c0_i32_0 = arith.constant 0 : i32
    %c0_i32_1 = arith.constant 0 : i32
    return %c0_i32, %c0_i32_0 : i32, i32
  }
  func.func @transform_7(%arg0: i32, %arg1: i32) -> (i32, i32, i32, i32) {
    %c0_i32 = arith.constant 0 : i32
    %c0_i32_0 = arith.constant 0 : i32
    %c0_i32_1 = arith.constant 0 : i32
    return %arg0, %arg1, %c0_i32, %c0_i32_0 : i32, i32, i32, i32
  }
}

module attributes {stable_mosaic.version = 11 : i64} {
  func.func @_conv3x3_kernel(%arg0: i32, %arg1: i32, %arg2: memref<1x8x18x128xf32, #tpu.memory_space<vmem>>, %arg3: memref<1x2x18x128xf32, #tpu.memory_space<vmem>>, %arg4: memref<1x8x18x256xbf16, #tpu.memory_space<vmem>>, %arg5: memref<1x2x18x256xbf16, #tpu.memory_space<vmem>>, %arg6: memref<1x2x128xf32, #tpu.memory_space<vmem>>, %arg7: memref<1152x128xbf16, #tpu.memory_space<vmem>>, %arg8: memref<1x128xf32, #tpu.memory_space<vmem>>, %arg9: memref<1x8x16x128xf32, #tpu.memory_space<vmem>>, %arg10: memref<1x8x16x128xf32, #tpu.memory_space<vmem>>) attributes {dimension_semantics = [#tpu.dimension_semantics<parallel>, #tpu.dimension_semantics<parallel>], iteration_bounds = array<i64: 2, 2>, scalar_prefetch = 0 : i64, scratch_operands = 0 : i64, tpu.core_type = #tpu.core_type<tc>, window_params = [{transform_indices = @transform_0, window_bounds = array<i64: 1, 8, 18, 128>}, {transform_indices = @transform_1, window_bounds = array<i64: 1, 2, 18, 128>}, {transform_indices = @transform_2, window_bounds = array<i64: 1, 8, 18, 256>}, {transform_indices = @transform_3, window_bounds = array<i64: 1, 2, 18, 256>}, {transform_indices = @transform_4, window_bounds = array<i64: 1, 2, 128>}, {pipeline_mode = #tpu.pipeline_mode<synchronous>, transform_indices = @transform_5, window_bounds = array<i64: 1152, 128>}, {pipeline_mode = #tpu.pipeline_mode<synchronous>, transform_indices = @transform_6, window_bounds = array<i64: 1, 128>}, {transform_indices = @transform_7, window_bounds = array<i64: 1, 8, 16, 128>}, {transform_indices = @transform_8, window_bounds = array<i64: 1, 8, 16, 128>}]} {
    %c0 = arith.constant 0 : index
    %c0_0 = arith.constant 0 : index
    %c0_1 = arith.constant 0 : index
    %c0_2 = arith.constant 0 : index
    %0 = vector.load %arg2[%c0, %c0_0, %c0_1, %c0_2] : memref<1x8x18x128xf32, #tpu.memory_space<vmem>>, vector<1x8x18x128xf32>
    %1 = vector.shape_cast %0 : vector<1x8x18x128xf32> to vector<8x18x128xf32>
    %c0_3 = arith.constant 0 : index
    %c0_4 = arith.constant 0 : index
    %c0_5 = arith.constant 0 : index
    %c0_6 = arith.constant 0 : index
    %2 = vector.load %arg3[%c0_3, %c0_4, %c0_5, %c0_6] : memref<1x2x18x128xf32, #tpu.memory_space<vmem>>, vector<1x2x18x128xf32>
    %3 = vector.shape_cast %2 : vector<1x2x18x128xf32> to vector<2x18x128xf32>
    %4 = tpu.concatenate %1, %3 in 0 : vector<8x18x128xf32>, vector<2x18x128xf32> -> vector<10x18x128xf32>
    %c0_7 = arith.constant 0 : index
    %c0_8 = arith.constant 0 : index
    %c0_9 = arith.constant 0 : index
    %c0_10 = arith.constant 0 : index
    %5 = vector.load %arg4[%c0_7, %c0_8, %c0_9, %c0_10] : memref<1x8x18x256xbf16, #tpu.memory_space<vmem>>, vector<1x8x18x256xbf16>
    %6 = vector.shape_cast %5 : vector<1x8x18x256xbf16> to vector<8x18x256xbf16>
    %c0_11 = arith.constant 0 : index
    %c0_12 = arith.constant 0 : index
    %c0_13 = arith.constant 0 : index
    %c0_14 = arith.constant 0 : index
    %7 = vector.load %arg5[%c0_11, %c0_12, %c0_13, %c0_14] : memref<1x2x18x256xbf16, #tpu.memory_space<vmem>>, vector<1x2x18x256xbf16>
    %8 = vector.shape_cast %7 : vector<1x2x18x256xbf16> to vector<2x18x256xbf16>
    %9 = tpu.concatenate %6, %8 in 0 : vector<8x18x256xbf16>, vector<2x18x256xbf16> -> vector<10x18x256xbf16>
    %10 = arith.extf %9 : vector<10x18x256xbf16> to vector<10x18x256xf32>
    %11 = vector.extract_strided_slice %10 {offsets = [0, 0, 0], sizes = [10, 18, 128], strides = [1, 1, 1]} : vector<10x18x256xf32> to vector<10x18x128xf32>
    %12 = vector.extract_strided_slice %10 {offsets = [0, 0, 128], sizes = [10, 18, 128], strides = [1, 1, 1]} : vector<10x18x256xf32> to vector<10x18x128xf32>
    %c0_15 = arith.constant 0 : index
    %c0_16 = arith.constant 0 : index
    %c0_17 = arith.constant 0 : index
    %13 = vector.load %arg6[%c0_15, %c0_16, %c0_17] : memref<1x2x128xf32, #tpu.memory_space<vmem>>, vector<1x2x128xf32>
    %14 = vector.shape_cast %13 : vector<1x2x128xf32> to vector<2x128xf32>
    %15 = vector.extract_strided_slice %14 {offsets = [0, 0], sizes = [1, 128], strides = [1, 1]} : vector<2x128xf32> to vector<1x128xf32>
    %16 = vector.shape_cast %15 : vector<1x128xf32> to vector<1x1x128xf32>
    %17 = vector.extract_strided_slice %14 {offsets = [1, 0], sizes = [1, 128], strides = [1, 1]} : vector<2x128xf32> to vector<1x128xf32>
    %18 = vector.shape_cast %17 : vector<1x128xf32> to vector<1x1x128xf32>
    %19 = vector.broadcast %16 : vector<1x1x128xf32> to vector<10x18x128xf32>
    %20 = arith.subf %4, %19 : vector<10x18x128xf32>
    %21 = vector.broadcast %18 : vector<1x1x128xf32> to vector<10x18x128xf32>
    %22 = arith.mulf %20, %21 : vector<10x18x128xf32>
    %cst = arith.constant 1.000000e+00 : f32
    %23 = vector.broadcast %cst : f32 to vector<10x18x128xf32>
    %24 = arith.addf %23, %11 : vector<10x18x128xf32>
    %25 = arith.mulf %22, %24 : vector<10x18x128xf32>
    %26 = arith.addf %25, %12 : vector<10x18x128xf32>
    %cst_18 = arith.constant 0.000000e+00 : f32
    %27 = vector.broadcast %cst_18 : f32 to vector<10x18x128xf32>
    %28 = arith.cmpf oge, %26, %27 : vector<10x18x128xf32>
    %cst_19 = arith.constant 2.000000e-01 : f32
    %29 = vector.broadcast %cst_19 : f32 to vector<10x18x128xf32>
    %30 = arith.mulf %29, %26 : vector<10x18x128xf32>
    %31 = arith.select %28, %26, %30 : vector<10x18x128xi1>, vector<10x18x128xf32>
    %32 = tpu.iota {dimensions = array<i32: 0>} : vector<10x18x1xi32>
    %c8_i32 = arith.constant 8 : i32
    %33 = arith.muli %arg1, %c8_i32 : i32
    %34 = vector.broadcast %33 : i32 to vector<10x18x1xi32>
    %35 = arith.addi %32, %34 : vector<10x18x1xi32>
    %36 = tpu.iota {dimensions = array<i32: 1>} : vector<10x18x1xi32>
    %c1_i32 = arith.constant 1 : i32
    %37 = vector.broadcast %c1_i32 : i32 to vector<10x18x1xi32>
    %38 = arith.cmpi sge, %35, %37 : vector<10x18x1xi32>
    %c16_i32 = arith.constant 16 : i32
    %39 = vector.broadcast %c16_i32 : i32 to vector<10x18x1xi32>
    %40 = arith.cmpi sle, %35, %39 : vector<10x18x1xi32>
    %41 = arith.andi %38, %40 : vector<10x18x1xi1>
    %c1_i32_20 = arith.constant 1 : i32
    %42 = vector.broadcast %c1_i32_20 : i32 to vector<10x18x1xi32>
    %43 = arith.cmpi sge, %36, %42 : vector<10x18x1xi32>
    %44 = arith.andi %41, %43 : vector<10x18x1xi1>
    %c16_i32_21 = arith.constant 16 : i32
    %45 = vector.broadcast %c16_i32_21 : i32 to vector<10x18x1xi32>
    %46 = arith.cmpi sle, %36, %45 : vector<10x18x1xi32>
    %47 = arith.andi %44, %46 : vector<10x18x1xi1>
    %cst_22 = arith.constant 0.000000e+00 : f32
    %48 = vector.shape_cast %47 : vector<10x18x1xi1> to vector<10x18x1xi1>
    %49 = vector.broadcast %48 : vector<10x18x1xi1> to vector<10x18x128xi1>
    %50 = vector.broadcast %cst_22 : f32 to vector<10x18x128xf32>
    %51 = arith.select %49, %31, %50 : vector<10x18x128xi1>, vector<10x18x128xf32>
    %52 = arith.truncf %51 : vector<10x18x128xf32> to vector<10x18x128xbf16>
    %53 = vector.extract_strided_slice %52 {offsets = [0, 0, 0], sizes = [8, 16, 128], strides = [1, 1, 1]} : vector<10x18x128xbf16> to vector<8x16x128xbf16>
    %54 = vector.shape_cast %53 : vector<8x16x128xbf16> to vector<128x128xbf16>
    %55 = vector.extract_strided_slice %52 {offsets = [0, 1, 0], sizes = [8, 16, 128], strides = [1, 1, 1]} : vector<10x18x128xbf16> to vector<8x16x128xbf16>
    %56 = vector.shape_cast %55 : vector<8x16x128xbf16> to vector<128x128xbf16>
    %57 = vector.extract_strided_slice %52 {offsets = [0, 2, 0], sizes = [8, 16, 128], strides = [1, 1, 1]} : vector<10x18x128xbf16> to vector<8x16x128xbf16>
    %58 = vector.shape_cast %57 : vector<8x16x128xbf16> to vector<128x128xbf16>
    %59 = vector.extract_strided_slice %52 {offsets = [1, 0, 0], sizes = [8, 16, 128], strides = [1, 1, 1]} : vector<10x18x128xbf16> to vector<8x16x128xbf16>
    %60 = vector.shape_cast %59 : vector<8x16x128xbf16> to vector<128x128xbf16>
    %61 = vector.extract_strided_slice %52 {offsets = [1, 1, 0], sizes = [8, 16, 128], strides = [1, 1, 1]} : vector<10x18x128xbf16> to vector<8x16x128xbf16>
    %62 = vector.shape_cast %61 : vector<8x16x128xbf16> to vector<128x128xbf16>
    %63 = vector.extract_strided_slice %52 {offsets = [1, 2, 0], sizes = [8, 16, 128], strides = [1, 1, 1]} : vector<10x18x128xbf16> to vector<8x16x128xbf16>
    %64 = vector.shape_cast %63 : vector<8x16x128xbf16> to vector<128x128xbf16>
    %65 = vector.extract_strided_slice %52 {offsets = [2, 0, 0], sizes = [8, 16, 128], strides = [1, 1, 1]} : vector<10x18x128xbf16> to vector<8x16x128xbf16>
    %66 = vector.shape_cast %65 : vector<8x16x128xbf16> to vector<128x128xbf16>
    %67 = vector.extract_strided_slice %52 {offsets = [2, 1, 0], sizes = [8, 16, 128], strides = [1, 1, 1]} : vector<10x18x128xbf16> to vector<8x16x128xbf16>
    %68 = vector.shape_cast %67 : vector<8x16x128xbf16> to vector<128x128xbf16>
    %69 = vector.extract_strided_slice %52 {offsets = [2, 2, 0], sizes = [8, 16, 128], strides = [1, 1, 1]} : vector<10x18x128xbf16> to vector<8x16x128xbf16>
    %70 = vector.shape_cast %69 : vector<8x16x128xbf16> to vector<128x128xbf16>
    %71 = tpu.concatenate %54, %56, %58, %60, %62, %64, %66, %68, %70 in 1 : vector<128x128xbf16>, vector<128x128xbf16>, vector<128x128xbf16>, vector<128x128xbf16>, vector<128x128xbf16>, vector<128x128xbf16>, vector<128x128xbf16>, vector<128x128xbf16>, vector<128x128xbf16> -> vector<128x1152xbf16>
    %c0_23 = arith.constant 0 : index
    %c0_24 = arith.constant 0 : index
    %72 = vector.load %arg7[%c0_23, %c0_24] : memref<1152x128xbf16, #tpu.memory_space<vmem>>, vector<1152x128xbf16>
    %cst_25 = arith.constant dense<0.000000e+00> : vector<128x128xf32>
    %73 = tpu.matmul %71, %72, %cst_25 {dimension_numbers = #tpu.dot_dimension_numbers<[1], [0], [0], [1], [0, 0, 1, 1], [], []>} : vector<128x1152xbf16>, vector<1152x128xbf16>, vector<128x128xf32> -> vector<128x128xf32>
    %c0_26 = arith.constant 0 : index
    %c0_27 = arith.constant 0 : index
    %74 = vector.load %arg8[%c0_26, %c0_27] : memref<1x128xf32, #tpu.memory_space<vmem>>, vector<1x128xf32>
    %75 = vector.broadcast %74 : vector<1x128xf32> to vector<128x128xf32>
    %76 = arith.addf %73, %75 : vector<128x128xf32>
    %77 = vector.shape_cast %76 : vector<128x128xf32> to vector<8x16x128xf32>
    %c0_28 = arith.constant 0 : index
    %c0_29 = arith.constant 0 : index
    %c0_30 = arith.constant 0 : index
    %c0_31 = arith.constant 0 : index
    %78 = vector.load %arg9[%c0_28, %c0_29, %c0_30, %c0_31] : memref<1x8x16x128xf32, #tpu.memory_space<vmem>>, vector<1x8x16x128xf32>
    %79 = vector.shape_cast %78 : vector<1x8x16x128xf32> to vector<8x16x128xf32>
    %80 = arith.addf %77, %79 : vector<8x16x128xf32>
    %c0_32 = arith.constant 0 : index
    %c0_33 = arith.constant 0 : index
    %c0_34 = arith.constant 0 : index
    %c0_35 = arith.constant 0 : index
    %81 = vector.load %arg10[%c0_32, %c0_33, %c0_34, %c0_35] : memref<1x8x16x128xf32, #tpu.memory_space<vmem>>, vector<1x8x16x128xf32>
    %82 = vector.shape_cast %81 : vector<1x8x16x128xf32> to vector<8x16x128xf32>
    %83 = vector.shape_cast %80 : vector<8x16x128xf32> to vector<1x8x16x128xf32>
    tpu.vector_store %arg10[%c0_32, %c0_33, %c0_34, %c0_35], %83 {strides = array<i32>} : memref<1x8x16x128xf32, #tpu.memory_space<vmem>>, vector<1x8x16x128xf32>,
    return
  }
  func.func @transform_0(%arg0: i32, %arg1: i32) -> (i32, i32, i32, i32) {
    %c0_i32 = arith.constant 0 : i32
    %c0_i32_0 = arith.constant 0 : i32
    %c0_i32_1 = arith.constant 0 : i32
    return %arg0, %arg1, %c0_i32, %c0_i32_0 : i32, i32, i32, i32
  }
  func.func @transform_1(%arg0: i32, %arg1: i32) -> (i32, i32, i32, i32) {
    %c1_i32 = arith.constant 1 : i32
    %0 = arith.addi %arg1, %c1_i32 : i32
    %c4_i32 = arith.constant 4 : i32
    %1 = arith.muli %0, %c4_i32 : i32
    %c0_i32 = arith.constant 0 : i32
    %c0_i32_0 = arith.constant 0 : i32
    %c0_i32_1 = arith.constant 0 : i32
    return %arg0, %1, %c0_i32, %c0_i32_0 : i32, i32, i32, i32
  }
  func.func @transform_2(%arg0: i32, %arg1: i32) -> (i32, i32, i32, i32) {
    %c0_i32 = arith.constant 0 : i32
    %c0_i32_0 = arith.constant 0 : i32
    %c0_i32_1 = arith.constant 0 : i32
    return %arg0, %arg1, %c0_i32, %c0_i32_0 : i32, i32, i32, i32
  }
  func.func @transform_3(%arg0: i32, %arg1: i32) -> (i32, i32, i32, i32) {
    %c1_i32 = arith.constant 1 : i32
    %0 = arith.addi %arg1, %c1_i32 : i32
    %c4_i32 = arith.constant 4 : i32
    %1 = arith.muli %0, %c4_i32 : i32
    %c0_i32 = arith.constant 0 : i32
    %c0_i32_0 = arith.constant 0 : i32
    %c0_i32_1 = arith.constant 0 : i32
    return %arg0, %1, %c0_i32, %c0_i32_0 : i32, i32, i32, i32
  }
  func.func @transform_4(%arg0: i32, %arg1: i32) -> (i32, i32, i32) {
    %c0_i32 = arith.constant 0 : i32
    %c0_i32_0 = arith.constant 0 : i32
    %c0_i32_1 = arith.constant 0 : i32
    return %arg0, %c0_i32, %c0_i32_0 : i32, i32, i32
  }
  func.func @transform_5(%arg0: i32, %arg1: i32) -> (i32, i32) {
    %c0_i32 = arith.constant 0 : i32
    %c0_i32_0 = arith.constant 0 : i32
    %c0_i32_1 = arith.constant 0 : i32
    return %c0_i32, %c0_i32_0 : i32, i32
  }
  func.func @transform_6(%arg0: i32, %arg1: i32) -> (i32, i32) {
    %c0_i32 = arith.constant 0 : i32
    %c0_i32_0 = arith.constant 0 : i32
    %c0_i32_1 = arith.constant 0 : i32
    return %c0_i32, %c0_i32_0 : i32, i32
  }
  func.func @transform_7(%arg0: i32, %arg1: i32) -> (i32, i32, i32, i32) {
    %c0_i32 = arith.constant 0 : i32
    %c0_i32_0 = arith.constant 0 : i32
    %c0_i32_1 = arith.constant 0 : i32
    return %arg0, %arg1, %c0_i32, %c0_i32_0 : i32, i32, i32, i32
  }
  func.func @transform_8(%arg0: i32, %arg1: i32) -> (i32, i32, i32, i32) {
    %c0_i32 = arith.constant 0 : i32
    %c0_i32_0 = arith.constant 0 : i32
    %c0_i32_1 = arith.constant 0 : i32
    return %arg0, %arg1, %c0_i32, %c0_i32_0 : i32, i32, i32, i32
  }
}

</mosaic_0001>

<bundles_post_ra>
// kernel: spade_resnet_block.8
= control target key start
LH: loop header
LB: loop body
LE: loop exit
PB: predicated region body
PF: predicated region fallthrough
CT: control target
= control target key end

     0   :  { %s2526_s15 = smov 0   ;;  %s2528_s16 = smov 0   ;;  %s3118_s0 = inlined_call_operand.vmem [shape: f32[2,18,18,128], index: 0, kind: input, shape index: {}, may-alias: {0,1}]   ;;  %s3119_s1 = inlined_call_operand.vmem [shape: f32[2,18,18,128], index: 1, kind: input, shape index: {}, may-alias: {0,1}]   ;;  %s3120_s2 = inlined_call_operand.vmem [shape: bf16[1152,128], index: 2, kind: input, shape index: {}]   ;;  %s3121_s3 = inlined_call_operand.vmem [shape: f32[1,128], index: 3, kind: input, shape index: {}]   ;;  %s3122_s4 = inlined_call_operand.vmem [shape: bf16[2,16,16,128], index: 4, kind: output, shape index: {}]  }
   0x1   :  { %s2530_s17 = smov 0   ;;  %s2532_s18 = smov 0  }
   0x2   :  { %s2534_s19 = smov 0  }
   0x3 LB: > { %s23_s20 = sadd.s32 1, %s2491_s17  ;;  %s26_s21 = sadd.s32 1, %s2495_s18  ;;  %s2499_s19 = sphi %s2534_s19, %s14_s19   ;;  %s2495_s18 = sphi %s2532_s18, %s3127_s18   ;;  %s2491_s17 = sphi %s2530_s17, %s3126_s17   ;;  %s2487_s16 = sphi %s2528_s16, %s3125_s16   ;;  %s2483_s15 = sphi %s2526_s15, %s3124_s15  }
   0x4   : > { %p24_p0 = scmp.ge.s32.totalorder %s23_s20, 2  ;;  %p1853_p1 = scmp.ge.s32.totalorder %s2499_s19, 1 }
   0x5   : > { %p220_p2 = scmp.lt.s32.totalorder %s2499_s19, 5 }
   0x6   : > { %s3129_s20 = smov (%p24_p0, %s23_s20), 0  ;;  %s3131_s21 = smov (!%p24_p0, %s26_s21), %s2495_s18 }
   0x7   : > { %p221_p3 = pnand %p1853_p1, %p220_p2  ;;  %p28_p4 = scmp.ge.s32.totalorder %s3131_s21, 2 }
   0x8   : > { %v2389_v0 = vld [vmem:[%s3120_s2 + $0x40] sm:$0xff] (!%p221_p3)   ;;  %v2393_v4 = vld [vmem:[%s3120_s2 + $0x48] sm:$0xff] (!%p221_p3)   ;;  %v2397_v8 = vld [vmem:[%s3120_s2 + $0x50] sm:$0xff] (!%p221_p3)   ;;  %s2588_s14 = sshll.u32 (!%p221_p3), %s2483_s15, 3  ;;  %p279_p5 = scmp.lt.s32.totalorder (!%p221_p3), %s2487_s16, 1  ;;  %vm492_vm1 = vcmask (!%p221_p3), 1046528  }
   0x9   : > { %s3133_s21 = smov (%p28_p4, %s3131_s21), 0  ;;  %224 = sbr.rel (%p221_p3) target bundleno = 402 (0x192), region = 36 }
   0xa   : > { %v2390_v1 = vld [vmem:[%s3120_s2 + $0xc0] sm:$0xff] (!%p221_p3)   ;;  %2026 = vmatprep.subr.bf16.mxu0 (!%p221_p3), %v2389_v0  ;;  %v2394_v5 = vld [vmem:[%s3120_s2 + $0xc8] sm:$0xff] (!%p221_p3)   ;;  %v2398_v9 = vld [vmem:[%s3120_s2 + $0xd0] sm:$0xff] (!%p221_p3)   ;;  %p281_p6 = scmp.lt.s32.totalorder (!%p221_p3), %s2588_s14, 17  ;;  %vm371_vm0 = vsmask.f32 (!%p221_p3), 7424 }
   0xb   : > { %v2391_v2 = vld [vmem:[%s3120_s2] sm:$0xff] (!%p221_p3)   ;;  %2090 = vmatprep.subr.bf16.mxu1 (!%p221_p3), %v2390_v1  ;;  %v2395_v6 = vld [vmem:[%s3120_s2 + $0x8] sm:$0xff] (!%p221_p3)   ;;  %v2399_v10 = vld [vmem:[%s3120_s2 + $0x10] sm:$0xff] (!%p221_p3)   ;;  %s2018_s5 = sadd.s32 (!%p221_p3), 8, %s2588_s14  ;;  %p312_p8 = scmp.lt.s32.totalorder (!%p221_p3), %s2588_s14, 15 }
   0xc   : > { %v2392_v3 = vld [vmem:[%s3120_s2 + $0x80] sm:$0xff] (!%p221_p3)   ;;  %2027 = vmatpush3.bf16.msra.mxu0 (!%p221_p3), %v2391_v2  ;;  %v2396_v7 = vld [vmem:[%s3120_s2 + $0x88] sm:$0xff] (!%p221_p3)   ;;  %v2400_v11 = vld [vmem:[%s3120_s2 + $0x90] sm:$0xff] (!%p221_p3)   ;;  %p2808_p7 = scmp.lt.s32.totalorder (!%p221_p3), %s2018_s5, 17 }
   0xd   : > { %2091 = vmatpush3.bf16.msra.mxu1 (!%p221_p3), %v2392_v3  ;;  %2028 = vmatprep.subr.bf16.mxu0 (!%p221_p3), %v2393_v4  ;;  %v2401_v12 = vld [vmem:[%s3120_s2 + $0x58] sm:$0xff] (!%p221_p3)   ;;  %v2405_v16 = vld [vmem:[%s3120_s2 + $0x60] sm:$0xff] (!%p221_p3)   ;;  %v2409_v20 = vld [vmem:[%s3120_s2 + $0x68] sm:$0xff] (!%p221_p3)  }
   0xe   : > { %2092 = vmatprep.subr.bf16.mxu1 (!%p221_p3), %v2394_v5  ;;  %v2402_v13 = vld [vmem:[%s3120_s2 + $0xd8] sm:$0xff] (!%p221_p3)   ;;  %v2406_v17 = vld [vmem:[%s3120_s2 + $0xe0] sm:$0xff] (!%p221_p3)   ;;  %v2410_v21 = vld [vmem:[%s3120_s2 + $0xe8] sm:$0xff] (!%p221_p3)  }
   0xf   : > { %v2403_v14 = vld [vmem:[%s3120_s2 + $0x18] sm:$0xff] (!%p221_p3)   ;;  %v2407_v18 = vld [vmem:[%s3120_s2 + $0x20] sm:$0xff] (!%p221_p3)   ;;  %v2411_v22 = vld [vmem:[%s3120_s2 + $0x28] sm:$0xff] (!%p221_p3)  }
  0x10   : > { %2029 = vmatpush3.bf16.msra.mxu0 %v2395_v6  ;;  %s3135_s16 = smov (!%p279_p5, %s2487_s16), 1  ;;  %v2404_v15 = vld [vmem:[%s3120_s2 + $0x98] sm:$0xff]   ;;  %v2408_v19 = vld [vmem:[%s3120_s2 + $0xa0] sm:$0xff]   ;;  %v2412_v23 = vld [vmem:[%s3120_s2 + $0xa8] sm:$0xff]   ;;  %s3137_s5 = smov (!%p2808_p7, %s2018_s5), 17 }
  0x11   : > { %2093 = vmatpush3.bf16.msra.mxu1 %v2396_v7  ;;  %2030 = vmatprep.subr.bf16.mxu0 %v2397_v8  ;;  %s282_s9 = scalar_select %p281_p6, %s2588_s14, 17  ;;  %v2413_v24 = vld [vmem:[%s3120_s2 + $0x70] sm:$0xff]   ;;  %v2417_v28 = vld [vmem:[%s3120_s2 + $0x78] sm:$0xff]   ;;  %v2421_v40 = vld [vmem:[%s3120_s2 + $0x140] sm:$0xff]  }
  0x12   : > { %2094 = vmatprep.subr.bf16.mxu1 %v2398_v9  ;;  %s2347_s24 = smul.u32 54, %s3135_s16  ;;  %v2414_v25 = vld [vmem:[%s3120_s2 + $0xf0] sm:$0xff]   ;;  %v2418_v29 = vld [vmem:[%s3120_s2 + $0xf8] sm:$0xff]   ;;  %v2422_v46 = vld [vmem:[%s3120_s2 + $0x1c0] sm:$0xff]   ;;  %s3139_s14 = smov (!%p312_p8, %s2588_s14), 15 }
  0x13   : > { %s2346_s27 = smul.u32 3, %s282_s9  ;;  %v2415_v26 = vld [vmem:[%s3120_s2 + $0x30] sm:$0xff]   ;;  %v2419_v30 = vld [vmem:[%s3120_s2 + $0x38] sm:$0xff]   ;;  %v2424_v49 = vld [vmem:[%s3120_s2 + $0x180] sm:$0xff]   ;;  %s1860_s22 = sshll.u32 %s3139_s14, 1 }
  0x14   : > { %2031 = vmatpush3.bf16.msra.mxu0 %v2399_v10  ;;  %v2416_v27 = vld [vmem:[%s3120_s2 + $0xb0] sm:$0xff]   ;;  %v2420_v31 = vld [vmem:[%s3120_s2 + $0xb8] sm:$0xff]   ;;  %v2423_v51 = vld [vmem:[%s3120_s2 + $0x100] sm:$0xff]   ;;  %s2348_s15 = smul.u32 3, %s3137_s5  ;;  %s1861_s23 = sshll.u32 %s3135_s16, 5 }
  0x15   : > { %2095 = vmatpush3.bf16.msra.mxu1 %v2400_v11  ;;  %2032 = vmatprep.subr.bf16.mxu0 %v2401_v12  ;;  %s285_s9 = sadd.s32 %s2347_s24, %s2346_s27  ;;  %v2425_v1 = vld [vmem:[%s3120_s2 + $0x148] sm:$0xff]  }
  0x16   : > { %2096 = vmatprep.subr.bf16.mxu1 %v2402_v13  ;;  %s1855_s25 = sshll.u32 %s285_s9, 3  ;;  %v2426_v2 = vld [vmem:[%s3120_s2 + $0x1c8] sm:$0xff]   ;;  %s303_s30 = sadd.s32 %s2348_s15, %s2347_s24 }
  0x17   : > { %s2665_s7 = scalar_lea.vmem %s3118_s0, %s1855_s25  ;;  %v2427_v4 = vld [vmem:[%s3120_s2 + $0x108] sm:$0xff]   ;;  %s1858_s11 = sshll.u32 %s303_s30, 3 }
  0x18   : > { %2033 = vmatpush3.bf16.msra.mxu0 %v2403_v14  ;;  %v321_v32 = vld [vmem:[%s2665_s7] sm:$0xff]  ;;  %v322_v33 = vld [vmem:[%s2665_s7 + $0x8] sm:$0xff]  ;;  %v323_v34 = vld [vmem:[%s2665_s7 + $0x10] sm:$0x3]  ;;  %s2898_s25 = scalar_lea.vmem %s3119_s1, %s1858_s11 }
  0x19   : > { %2097 = vmatpush3.bf16.msra.mxu1 %v2404_v15  ;;  %2034 = vmatprep.subr.bf16.mxu0 %v2405_v16  ;;  %v351_v35 = vpack.c.bf16 %v322_v33, %v321_v32  ;;  %v352_v36 = vpack.c.bf16 %v323_v34, %v323_v34  ;;  %v324_v37 = vld [vmem:[%s2665_s7 + $0x18] sm:$0xff]  ;;  %v325_v38 = vld [vmem:[%s2665_s7 + $0x20] sm:$0xff]  ;;  %v326_v52 = vld [vmem:[%s2665_s7 + $0x28] sm:$0x3] }
  0x1a   : > { %2098 = vmatprep.subr.bf16.mxu1 %v2406_v17  ;;  %v2678_v39 = vpack.c.bf16 %v325_v38, %v324_v37  ;;  %v354_v56 = vpack.c.bf16 %v326_v52, %v326_v52  ;;  %v327_v57 = vld [vmem:[%s2665_s7 + $0x30] sm:$0xff]  ;;  %v328_v58 = vld [vmem:[%s2665_s7 + $0x38] sm:$0xff]  ;;  %v2428_v6 = vld [vmem:[%s3120_s2 + $0x188] sm:$0xff]  }
  0x1b   : > { %v373_v41 = vshrl.u32 %v351_v35, 16  ;;  %v375_v42 = vshll.u32 %v351_v35, 16  ;;  %v380_v43 = vshll.u32 %v352_v36, 16  ;;  %v493_v44 = vrot.slane %v351_v35, 1  ;;  %v329_v7 = vld [vmem:[%s2665_s7 + $0x40] sm:$0x3] }
  0x1c   : > { %2035 = vmatpush3.bf16.msra.mxu0 %v2407_v18  ;;  %1275 = vmatprep.mubr.bf16.mxu1 %v2678_v39  ;;  %v494_v45 = vrot.slane %v352_v36, 1  ;;  %v385_v53 = vshrl.u32 %v2678_v39, 16  ;;  %v387_v54 = vshll.u32 %v2678_v39, 16  ;;  %v2699_v60 = vpack.c.bf16 %v328_v58, %v327_v57  ;;  %v330_v12 = vld [vmem:[%s2665_s7 + $0x48] sm:$0xff]  ;;  %v331_v13 = vld [vmem:[%s2665_s7 + $0x50] sm:$0xff]  ;;  %v2433_v34 = vld [vmem:[%s3120_s2 + $0x158] sm:$0xff]  }
  0x1d   : > { %2099 = vmatpush3.bf16.msra.mxu1 %v2408_v19  ;;  %2036 = vmatprep.subr.bf16.mxu0 %v2409_v20  ;;  %v377_v47 = vrot.slane %v375_v42, 1  ;;  %v382_v48 = vrot.slane %v380_v43, 1  ;;  %v496_v61 = vrot.slane %v2678_v39, 1  ;;  %v392_v63 = vshll.u32 %v354_v56, 16  ;;  %v2429_v14 = vld [vmem:[%s3120_s2 + $0x150] sm:$0xff]   ;;  %v2434_v36 = vld [vmem:[%s3120_s2 + $0x1d8] sm:$0xff]  }
  0x1e   : > { %2100 = vmatprep.subr.bf16.mxu1 %v2410_v21  ;;  %v495_v50 = vsel %vm492_vm1, %v493_v44, %v494_v45  ;;  %v389_v59 = vrot.slane %v387_v54, 1  ;;  %v497_v0 = vrot.slane %v354_v56, 1  ;;  %v356_v9 = vpack.c.bf16 %v329_v7, %v329_v7  ;;  %v2430_v20 = vld [vmem:[%s3120_s2 + $0x1d0] sm:$0xff]   ;;  %v2436_v43 = vld [vmem:[%s3120_s2 + $0x198] sm:$0xff]   ;;  %v2438_v56 = vld [vmem:[%s3120_s2 + $0x1e0] sm:$0xff]  }
  0x1f   : > { %v378_v55 = vor.u32 %v377_v47, %v373_v41  ;;  %v394_v5 = vrot.slane %v392_v63, 1  ;;  %v397_v10 = vshrl.u32 %v2699_v60, 16  ;;  %v399_v11 = vshll.u32 %v2699_v60, 16  ;;  %v335_v44 = vld [vmem:[%s2665_s7 + $0x70] sm:$0x3]  ;;  %v2439_v57 = vld [vmem:[%s3120_s2 + $0x120] sm:$0xff]  }
  0x20   : > { %2037 = vmatpush3.bf16.msra.mxu0 %v2411_v22  ;;  %v390_v3 = vor.u32 %v389_v59, %v385_v53  ;;  %v2718_v8 = vsel %vm492_vm1, %v496_v61, %v497_v0  ;;  %v2730_v16 = vpack.c.bf16 %v331_v13, %v330_v12  ;;  %v404_v18 = vshll.u32 %v356_v9, 16  ;;  %v2431_v22 = vld [vmem:[%s3120_s2 + $0x110] sm:$0xff]   ;;  %v2440_v58 = vld [vmem:[%s3120_s2 + $0x1a0] sm:$0xff]   ;;  %v338_v59 = vld [vmem:[%s2665_s7 + $0x88] sm:$0x3] }
  0x21   : > { %2101 = vmatpush3.bf16.msra.mxu1 %v2412_v23  ;;  %2038 = vmatprep.subr.bf16.mxu0 %v2413_v24  ;;  %v383_v62 = vsel %vm371_vm0, %v378_v55, %v382_v48  ;;  %v401_v17 = vrot.slane %v399_v11, 1  ;;  %v499_v19 = vrot.slane %v2699_v60, 1  ;;  %v500_v21 = vrot.slane %v356_v9, 1  ;;  %v339_v63 = vld [vmem:[%s2665_s7 + $0x90] sm:$0xff]  ;;  %v340_v0 = vld [vmem:[%s2665_s7 + $0x98] sm:$0xff]  ;;  %v2444_v11 = vld [vmem:[%s3120_s2 + $0x1a8] sm:$0xff]  }
  0x22   : > { %2102 = vmatprep.subr.bf16.mxu1 %v2414_v25  ;;  %1178 = vmatprep.mubr.bf16.mxu0 %v383_v62  ;;  %v2728_v15 = vsel %vm371_vm0, %v390_v3, %v394_v5  ;;  %v406_v24 = vrot.slane %v404_v18, 1  ;;  %v2432_v25 = vld [vmem:[%s3120_s2 + $0x190] sm:$0xff]   ;;  %v502_v41 = vrot.slane %v2730_v16, 1  ;;  %v360_v48 = vpack.c.bf16 %v335_v44, %v335_v44  ;;  %v2442_v5 = vld [vmem:[%s3120_s2 + $0x1e8] sm:$0xff]   ;;  %v341_v18 = vld [vmem:[%s2665_s7 + $0xa0] sm:$0x3] }
  0x23   : > { %v402_v23 = vor.u32 %v401_v17, %v397_v10  ;;  %v2764_v37 = vsel %vm492_vm1, %v499_v19, %v500_v21  ;;  %v2823_v7 = vpack.c.bf16 %v340_v0, %v339_v63  ;;  %v2445_v19 = vld [vmem:[%s3120_s2 + $0x170] sm:$0xff]   ;;  %v2452_v44 = vld [vmem:[%s3120_s2 + $0x1b8] sm:$0xff]  }
  0x24   : > { %2039 = vmatpush3.bf16.msra.mxu0 %v2415_v26  ;;  %v332_v26 = vld [vmem:[%s2665_s7 + $0x58] sm:$0x3]  ;;  %v428_v54 = vshll.u32 %v360_v48, 16  ;;  %v506_v10 = vrot.slane %v360_v48, 1  ;;  %v2446_v21 = vld [vmem:[%s3120_s2 + $0x1f0] sm:$0xff]  }
  0x25   : > { %2103 = vmatpush3.bf16.msra.mxu1 %v2416_v27  ;;  %2040 = vmatprep.subr.bf16.mxu0 %v2417_v28  ;;  %v409_v27 = vshrl.u32 %v2730_v16, 16  ;;  %v411_v28 = vshll.u32 %v2730_v16, 16  ;;  %v358_v32 = vpack.c.bf16 %v332_v26, %v332_v26 }
  0x26   : > { %2104 = vmatprep.subr.bf16.mxu1 %v2418_v29  ;;  %v333_v29 = vld [vmem:[%s2665_s7 + $0x60] sm:$0xff]  ;;  %v430_v62 = vrot.slane %v428_v54, 1 }
  0x27   : > { %v416_v38 = vshll.u32 %v358_v32, 16  ;;  %v503_v47 = vrot.slane %v358_v32, 1  ;;  %v342_v32 = vld [vmem:[%s2665_s7 + $0xa8] sm:$0xff] }
  0x28   : > { %2041 = vmatpush3.bf16.msra.mxu0 %v2419_v30  ;;  %v334_v30 = vld [vmem:[%s2665_s7 + $0x68] sm:$0xff] }
  0x29   : > { %2105 = vmatpush3.bf16.msra.mxu1 %v2420_v31  ;;  %2154 = vmatprep.subr.bf16.mxu0 %v2421_v40  ;;  %v2751_v31 = vsel %vm371_vm0, %v402_v23, %v406_v24  ;;  %v2753_v33 = vpack.c.bf16 %v334_v30, %v333_v29  ;;  %v418_v42 = vrot.slane %v416_v38, 1  ;;  %v2802_v61 = vsel %vm492_vm1, %v502_v41, %v503_v47  ;;  %v2447_v24 = vld [vmem:[%s3120_s2 + $0x130] sm:$0xff]  }
  0x2a   : > { %2218 = vmatprep.subr.bf16.mxu1 %v2422_v46  ;;  %v336_v46 = vld [vmem:[%s2665_s7 + $0x78] sm:$0xff]  ;;  %v364_v23 = vpack.c.bf16 %v341_v18, %v341_v18  ;;  %v445_v30 = vshrl.u32 %v2823_v7, 16 }
  0x2b   : > { %1179 = vmatmul.mubr.bf16.vlgmr.msra.gmra.mrb[0].mxu0 %v351_v35  ;;  %v413_v35 = vrot.slane %v411_v28, 1  ;;  %v423_v45 = vshll.u32 %v2753_v33, 16  ;;  %v505_v9 = vrot.slane %v2753_v33, 1 }
  0x2c   : > { %1276 = vmatmul.mubr.bf16.vlgmr.msra.gmra.mrb[0].mxu1 %v495_v50  ;;  %2155 = vmatpush3.bf16.msra.mxu0 %v2423_v51  ;;  %v421_v50 = vshrl.u32 %v2753_v33, 16  ;;  %v2437_v51 = vld [vmem:[%s3120_s2 + $0x160] sm:$0xff]   ;;  %v452_v38 = vshll.u32 %v364_v23, 16 }
  0x2d   : > { %2219 = vmatpush3.bf16.msra.mxu1 %v2424_v49  ;;  %1283 = vmatprep.mubr.bf16.mxu1 %v2699_v60  ;;  %v414_v40 = vor.u32 %v413_v35, %v409_v27  ;;  %v337_v49 = vld [vmem:[%s2665_s7 + $0x80] sm:$0xff]  ;;  %v425_v53 = vrot.slane %v423_v45, 1  ;;  %v2448_v27 = vld [vmem:[%s3120_s2 + $0x1b0] sm:$0xff]  }
  0x2e   : > { %2220 = vmatprep.subr.bf16.mxu1 %v2426_v2  ;;  %2156 = vmatprep.subr.bf16.mxu0 %v2425_v1  ;;  %v2787_v55 = vpack.c.bf16 %v337_v49, %v336_v46  ;;  %v362_v2 = vpack.c.bf16 %v338_v59, %v338_v59  ;;  %v2453_v46 = vld [vmem:[%s3120_s2 + $0x200] sm:$0xff]   ;;  %v454_v48 = vrot.slane %v452_v38, 1 }
  0x2f   : > { %1186 = vmatprep.mubr.bf16.mxu0 %v2728_v15  ;;  %v2785_v52 = vsel %vm371_vm0, %v414_v40, %v418_v42  ;;  %v426_v1 = vor.u32 %v425_v53, %v421_v50  ;;  %v2450_v40 = vld [vmem:[%s3120_s2 + $0x1f8] sm:$0xff]   ;;  %v512_v53 = vrot.slane %v364_v23, 1  ;;  %v345_v59 = vld [vmem:[%s2898_s25] sm:$0xff] }
  0x30   : > { %2157 = vmatpush3.bf16.msra.mxu0 %v2427_v4  ;;  %v435_v3 = vshll.u32 %v2787_v55, 16  ;;  %v2441_v4 = vld [vmem:[%s3120_s2 + $0x168] sm:$0xff]   ;;  %v433_v13 = vshrl.u32 %v2787_v55, 16  ;;  %v440_v17 = vshll.u32 %v362_v2, 16  ;;  %v508_v28 = vrot.slane %v2787_v55, 1 }
  0x31   : > { %2221 = vmatpush3.bf16.msra.mxu1 %v2428_v6  ;;  %2158 = vmatprep.subr.bf16.mxu0 %v2429_v14  ;;  %v2443_v6 = vld [vmem:[%s3120_s2 + $0x128] sm:$0xff]   ;;  %v2837_v12 = vsel %vm371_vm0, %v426_v1, %v430_v62  ;;  %v509_v29 = vrot.slane %v362_v2, 1  ;;  %v344_v42 = vld [vmem:[%s2665_s7 + $0xb8] sm:$0x3] }
  0x32   : > { %2222 = vmatprep.subr.bf16.mxu1 %v2430_v20  ;;  %v437_v14 = vrot.slane %v435_v3, 1  ;;  %v447_v20 = vshll.u32 %v2823_v7, 16  ;;  %v442_v26 = vrot.slane %v440_v17, 1  ;;  %v366_v49 = vpack.c.bf16 %v344_v42, %v344_v42  ;;  %v346_v62 = vld [vmem:[%s2898_s25 + $0x8] sm:$0xff] }
  0x33   : > { %1187 = vmatmul.mubr.bf16.gmra.mrb[4].mxu0 %v2678_v39  ;;  %v2435_v39 = vld [vmem:[%s3120_s2 + $0x118] sm:$0xff]   ;;  %v2889_v45 = vsel %vm492_vm1, %v508_v28, %v509_v29  ;;  %v2914_v0 = vpack.c.bf16 %v346_v62, %v345_v59 }
  0x34   : > { %1284 = vmatmul.mubr.bf16.gmra.mrb[4].mxu1 %v2718_v8  ;;  %1194 = vmatprep.mubr.bf16.mxu0 %v2751_v31  ;;  %v449_v35 = vrot.slane %v447_v20, 1  ;;  %v350_v20 = vld [vmem:[%s2898_s25 + $0x28] sm:$0x3] }
  0x35   : > { %1291 = vmatprep.mubr.bf16.mxu1 %v2730_v16  ;;  %2223 = vmatpush3.bf16.msra.mxu1 %v2432_v25  ;;  %v438_v25 = vor.u32 %v437_v14, %v433_v13  ;;  %v348_v13 = vld [vmem:[%s2898_s25 + $0x18] sm:$0xff]  ;;  %v349_v14 = vld [vmem:[%s2898_s25 + $0x20] sm:$0xff]  ;;  %v526_v17 = vshrl.u32 %v2914_v0, 16 }
  0x36   : > { %2159 = vmatpush3.bf16.msra.mxu0 %v2431_v22  ;;  %2224 = vmatprep.subr.bf16.mxu1 %v2434_v36  ;;  %v2851_v22 = vsel %vm492_vm1, %v505_v9, %v506_v10  ;;  %v2449_v36 = vld [vmem:[%s3120_s2 + $0x178] sm:$0xff]   ;;  %v450_v47 = vor.u32 %v449_v35, %v445_v30  ;;  %v2454_v9 = vld [vmem:[%s3120_s2 + $0x208] sm:$0xff]   ;;  %v2455_v10 = vld [vmem:[%s3120_s2 + $0x210] sm:$0xff]   ;;  %v540_v30 = vrot.slane %v2914_v0, 1 }
  0x37   : > { %2160 = vmatprep.subr.bf16.mxu0 %v2433_v34  ;;  %v343_v34 = vld [vmem:[%s2665_s7 + $0xb0] sm:$0xff]  ;;  %v2875_v41 = vsel %vm371_vm0, %v438_v25, %v442_v26 }
  0x39   : > { %2225 = vmatpush3.bf16.msra.mxu1 %v2436_v43  ;;  %v2451_v43 = vld [vmem:[%s3120_s2 + $0x138] sm:$0xff]  }
  0x3a   : > { %2161 = vmatpush3.bf16.msra.mxu0 %v2435_v39  ;;  %2226 = vmatprep.subr.bf16.mxu1 %v2438_v56  ;;  %v2877_v39 = vpack.c.bf16 %v343_v34, %v342_v32  ;;  %v2905_v56 = vsel %vm371_vm0, %v450_v47, %v454_v48  ;;  %v2997_v47 = vld [vmem:[%s3121_s3] ss:$0 sm:$0xff] }
  0x3b   : > { %2162 = vmatprep.subr.bf16.mxu0 %v2437_v51  ;;  %1195 = vmatmul.mubr.bf16.gmra.mrb[8].mxu0 %v2699_v60  ;;  %v511_v51 = vrot.slane %v2823_v7, 1 }
  0x3c   : > { %1292 = vmatmul.mubr.bf16.gmra.mrb[8].mxu1 %v2764_v37  ;;  %1202 = vmatprep.mubr.bf16.mxu0 %v2785_v52  ;;  %v459_v50 = vshll.u32 %v2877_v39, 16  ;;  %v457_v54 = vshrl.u32 %v2877_v39, 16  ;;  %v514_v3 = vrot.slane %v2877_v39, 1 }
  0x3d   : > { %1299 = vmatprep.mubr.bf16.mxu1 %v2753_v33  ;;  %2227 = vmatpush3.bf16.msra.mxu1 %v2440_v58  ;;  %v464_v58 = vshll.u32 %v366_v49, 16  ;;  %v2912_v63 = vsel %vm492_vm1, %v511_v51, %v512_v53 }
  0x3e   : > { %2163 = vmatpush3.bf16.msra.mxu0 %v2439_v57  ;;  %2228 = vmatprep.subr.bf16.mxu1 %v2442_v5  ;;  %v461_v57 = vrot.slane %v459_v50, 1 }
  0x3f   : > { %2164 = vmatprep.subr.bf16.mxu0 %v2441_v4  ;;  %v466_v2 = vrot.slane %v464_v58, 1  ;;  %v515_v4 = vrot.slane %v366_v49, 1 }
  0x40   : > { %v462_v1 = vor.u32 %v461_v57, %v457_v54 }
  0x41   : > { %2229 = vmatpush3.bf16.msra.mxu1 %v2444_v11 }
  0x42   : > { %2165 = vmatpush3.bf16.msra.mxu0 %v2443_v6  ;;  %2230 = vmatprep.subr.bf16.mxu1 %v2446_v21  ;;  %v2920_v5 = vsel %vm371_vm0, %v462_v1, %v466_v2  ;;  %v2925_v6 = vsel %vm492_vm1, %v514_v3, %v515_v4 }
  0x43   : > { %1203 = vmatmul.mubr.bf16.gmra.mrb[12].mxu0 %v2730_v16  ;;  %2166 = vmatprep.subr.bf16.mxu0 %v2445_v19  ;;  %v369_v19 = vpack.c.bf16 %v349_v14, %v348_v13 }
  0x44   : > { %1300 = vmatmul.mubr.bf16.gmra.mrb[12].mxu1 %v2802_v61  ;;  %1210 = vmatprep.mubr.bf16.mxu0 %v2837_v12 }
  0x45   : > { %1307 = vmatprep.mubr.bf16.mxu1 %v2787_v55  ;;  %2231 = vmatpush3.bf16.msra.mxu1 %v2448_v27  ;;  %v545_v26 = vshrl.u32 %v369_v19, 16 }
  0x46   : > { %2167 = vmatpush3.bf16.msra.mxu0 %v2447_v24  ;;  %2232 = vmatprep.subr.bf16.mxu1 %v2450_v40  ;;  %v370_v24 = vpack.c.bf16 %v350_v20, %v350_v20 }
  0x47   : > { %2168 = vmatprep.subr.bf16.mxu0 %v2449_v36  ;;  %v559_v36 = vrot.slane %v369_v19, 1 }
  0x48   : > { %v552_v28 = vshll.u32 %v370_v24, 16  ;;  %v560_v38 = vrot.slane %v370_v24, 1 }
  0x49   : > { %2233 = vmatpush3.bf16.msra.mxu1 %v2452_v44 }
  0x4a   : > { %2169 = vmatpush3.bf16.msra.mxu0 %v2451_v43  ;;  %2330 = vmatprep.subr.bf16.mxu1 %v2453_v46  ;;  %v554_v29 = vrot.slane %v552_v28, 1  ;;  %v561_v40 = vsel %vm492_vm1, %v559_v36, %v560_v38 }
  0x4b   : > { %1211 = vmatmul.mubr.bf16.gmra.mrb[16].mxu0 %v2753_v33  ;;  %2298 = vmatprep.subr.bf16.mxu0 %v2453_v46 }
  0x4c   : > { %1308 = vmatmul.mubr.bf16.gmra.mrb[16].mxu1 %v2851_v22  ;;  %1218 = vmatprep.mubr.bf16.mxu0 %v2875_v41 }
  0x4d   : > { %1315 = vmatprep.mubr.bf16.mxu1 %v2823_v7 }
  0x53   : > { %1219 = vmatmul.mubr.bf16.gmra.mrb[20].mxu0 %v2787_v55 }
  0x54   : > { %1316 = vmatmul.mubr.bf16.gmra.mrb[20].mxu1 %v2889_v45  ;;  %1226 = vmatprep.mubr.bf16.mxu0 %v2905_v56 }
  0x55   : > { %1323 = vmatprep.mubr.bf16.mxu1 %v2877_v39 }
  0x5b   : > { %1227 = vmatmul.mubr.bf16.gmra.mrb[24].mxu0 %v2823_v7 }
  0x5c   : > { %1324 = vmatmul.mubr.bf16.gmra.mrb[24].mxu1 %v2912_v63  ;;  %1234 = vmatprep.mubr.bf16.mxu0 %v2920_v5 }
  0x5d   : > { %1331 = vmatprep.mubr.bf16.mxu1 %v2914_v0 }
  0x63   : > { %1235 = vmatmul.mubr.bf16.gmra.mrb[28].mxu0 %v2877_v39 }
  0x64   : > { %1332 = vmatmul.mubr.bf16.gmra.mrb[28].mxu1 %v2925_v6  ;;  %1372 = vmatprep.mubr.bf16.mxu0 %v2718_v8  ;;  %v2457_v8 = vld [vmem:[%s3120_s2 + $0x220] sm:$0xff]  }
  0x65   : > { %1469 = vmatprep.mubr.bf16.mxu1 %v2751_v31 }
  0x6b   : > { %1373 = vmatmul.mubr.bf16.vlgmr.msra.gmra.mrb[32].mxu0 %v2728_v15  ;;  %v2458_v15 = vld [vmem:[%s3120_s2 + $0x228] sm:$0xff]  }
  0x6c   : > { %1470 = vmatmul.mubr.bf16.vlgmr.msra.gmra.mrb[32].mxu1 %v2699_v60  ;;  %2299 = vmatpush3.bf16.msra.mxu0 %v2453_v46  ;;  %v2456_v60 = vld [vmem:[%s3120_s2 + $0x218] sm:$0xff]  }
  0x6d   : > { %2338 = vmatpush3.bf16.msra.mxu1 %v2453_v46  ;;  %1477 = vmatprep.mubr.bf16.mxu1 %v2785_v52 }
  0x6e   : > { %2331 = vmatprep.subr.bf16.mxu1 %v2454_v9  ;;  %1380 = vmatprep.mubr.bf16.mxu0 %v2764_v37 }
  0x6f   : > { %2300 = vmatprep.subr.bf16.mxu0 %v2454_v9 }
  0x70   : > { %2301 = vmatpush3.bf16.msra.mxu0 %v2454_v9 }
  0x71   : > { %2339 = vmatpush3.bf16.msra.mxu1 %v2454_v9  ;;  %2302 = vmatprep.subr.bf16.mxu0 %v2455_v10 }
  0x72   : > { %2332 = vmatprep.subr.bf16.mxu1 %v2455_v10 }
  0x73   : > { %1381 = vmatmul.mubr.bf16.gmra.mrb[36].mxu0 %v2751_v31  ;;  %v347_v31 = vld [vmem:[%s2898_s25 + $0x10] sm:$0x3]  ;;  %s316_s25 = sadd.s32 %s1861_s23, %s1860_s22 }
  0x74   : > { %1478 = vmatmul.mubr.bf16.gmra.mrb[36].mxu1 %v2730_v16  ;;  %1388 = vmatprep.mubr.bf16.mxu0 %v2802_v61  ;;  %v2459_v16 = vld [vmem:[%s3120_s2 + $0x230] sm:$0xff]   ;;  %v368_v11 = vpack.c.bf16 %v347_v31, %v347_v31  ;;  %s1862_s26 = sshll.u32 %s316_s25, 2 }
  0x75   : > { %1485 = vmatprep.mubr.bf16.mxu1 %v2837_v12  ;;  %2340 = vmatpush3.bf16.msra.mxu1 %v2455_v10  ;;  %s3087_s15 = scalar_lea.vmem %s3122_s4, %s1862_s26 }
  0x76   : > { %2333 = vmatprep.subr.bf16.mxu1 %v2456_v60  ;;  %2303 = vmatpush3.bf16.msra.mxu0 %v2455_v10  ;;  %v533_v18 = vshll.u32 %v368_v11, 16  ;;  %v541_v32 = vrot.slane %v368_v11, 1 }
  0x77   : > { %2304 = vmatprep.subr.bf16.mxu0 %v2456_v60 }
  0x78   : > { %v535_v23 = vrot.slane %v533_v18, 1  ;;  %v542_v35 = vsel %vm492_vm1, %v540_v30, %v541_v32 }
  0x79   : > { %2341 = vmatpush3.bf16.msra.mxu1 %v2456_v60 }
  0x7a   : > { %2334 = vmatprep.subr.bf16.mxu1 %v2457_v8  ;;  %2305 = vmatpush3.bf16.msra.mxu0 %v2456_v60 }
  0x7b   : > { %2306 = vmatprep.subr.bf16.mxu0 %v2457_v8  ;;  %1389 = vmatmul.mubr.bf16.gmra.mrb[40].mxu0 %v2785_v52  ;;  %v528_v52 = vshll.u32 %v2914_v0, 16 }
  0x7c   : > { %1486 = vmatmul.mubr.bf16.gmra.mrb[40].mxu1 %v2753_v33  ;;  %1396 = vmatprep.mubr.bf16.mxu0 %v2851_v22  ;;  %v2460_v33 = vld [vmem:[%s3120_s2 + $0x238] sm:$0xff]  }
  0x7d   : > { %1493 = vmatprep.mubr.bf16.mxu1 %v2875_v41  ;;  %2342 = vmatpush3.bf16.msra.mxu1 %v2457_v8 }
  0x7e   : > { %2335 = vmatprep.subr.bf16.mxu1 %v2458_v15  ;;  %2307 = vmatpush3.bf16.msra.mxu0 %v2457_v8 }
  0x7f   : > { %2308 = vmatprep.subr.bf16.mxu0 %v2458_v15 }
  0x81   : > { %2343 = vmatpush3.bf16.msra.mxu1 %v2458_v15 }
  0x82   : > { %2336 = vmatprep.subr.bf16.mxu1 %v2459_v16  ;;  %2309 = vmatpush3.bf16.msra.mxu0 %v2458_v15 }
  0x83   : > { %2310 = vmatprep.subr.bf16.mxu0 %v2459_v16  ;;  %1397 = vmatmul.mubr.bf16.gmra.mrb[44].mxu0 %v2837_v12  ;;  %v547_v12 = vshll.u32 %v369_v19, 16 }
  0x84   : > { %1494 = vmatmul.mubr.bf16.gmra.mrb[44].mxu1 %v2787_v55  ;;  %1404 = vmatprep.mubr.bf16.mxu0 %v2889_v45  ;;  %v530_v55 = vrot.slane %v528_v52, 1 }
  0x85   : > { %1501 = vmatprep.mubr.bf16.mxu1 %v2905_v56  ;;  %2344 = vmatpush3.bf16.msra.mxu1 %v2459_v16  ;;  %v549_v27 = vrot.slane %v547_v12, 1 }
  0x86   : > { %2337 = vmatprep.subr.bf16.mxu1 %v2460_v33  ;;  %2311 = vmatpush3.bf16.msra.mxu0 %v2459_v16  ;;  %v531_v21 = vor.u32 %v530_v55, %v526_v17 }
  0x87   : > { %2312 = vmatprep.subr.bf16.mxu0 %v2460_v33 }
  0x88   : > { %v536_v25 = vsel %vm371_vm0, %v531_v21, %v535_v23 }
  0x89   : > { %2345 = vmatpush3.bf16.msra.mxu1 %v2460_v33 }
  0x8a   : > { %2313 = vmatpush3.bf16.msra.mxu0 %v2460_v33 }
  0x8b   : > { %1405 = vmatmul.mubr.bf16.gmra.mrb[48].mxu0 %v2875_v41 }
  0x8c   : > { %1502 = vmatmul.mubr.bf16.gmra.mrb[48].mxu1 %v2823_v7  ;;  %1412 = vmatprep.mubr.bf16.mxu0 %v2912_v63  ;;  %v550_v7 = vor.u32 %v549_v27, %v545_v26 }
  0x8d   : > { %1509 = vmatprep.mubr.bf16.mxu1 %v2920_v5 }
  0x8e   : > { %v555_v34 = vsel %vm371_vm0, %v550_v7, %v554_v29 }
  0x93   : > { %1413 = vmatmul.mubr.bf16.gmra.mrb[52].mxu0 %v2905_v56 }
  0x94   : > { %1510 = vmatmul.mubr.bf16.gmra.mrb[52].mxu1 %v2877_v39  ;;  %1420 = vmatprep.mubr.bf16.mxu0 %v2925_v6 }
  0x95   : > { %1517 = vmatprep.mubr.bf16.mxu1 %v536_v25 }
  0x9b   : > { %1421 = vmatmul.mubr.bf16.gmra.mrb[56].mxu0 %v2920_v5 }
  0x9c   : > { %1518 = vmatmul.mubr.bf16.gmra.mrb[56].mxu1 %v2914_v0  ;;  %1428 = vmatprep.mubr.bf16.mxu0 %v542_v35 }
  0x9d   : > { %1525 = vmatprep.mubr.bf16.mxu1 %v555_v34 }
  0xa3   : > { %1429 = vmatmul.mubr.bf16.gmra.mrb[60].mxu0 %v536_v25 }
  0xa4   : > { %1526 = vmatmul.mubr.bf16.gmra.mrb[60].mxu1 %v369_v19  ;;  %2314 = vmatprep.mubr.bf16.mxu0 %v2764_v37 }
  0xa5   : > { %2322 = vmatprep.mubr.bf16.mxu1 %v2912_v63 }
  0xab   : > { %2315 = vmatmul.mubr.bf16.vlgmr.msra.gmra.mrb[64].mxu0 %v2802_v61 }
  0xac   : > { %2323 = vmatmul.mubr.bf16.vlgmr.msra.gmra.mrb[64].mxu1 %v2925_v6  ;;  %2318 = vmatprep.mubr.bf16.mxu0 %v2851_v22 }
  0xad   : > { %2326 = vmatprep.mubr.bf16.mxu1 %v542_v35 }
  0xb3   : > { %2319 = vmatmul.mubr.bf16.gmra.mrb[68].mxu0 %v2889_v45 }
  0xb4   : > { %2327 = vmatmul.mubr.bf16.gmra.mrb[68].mxu1 %v561_v40 }
  0xfe   : > { %v2042_v37 = vpop.f32.mrb[0].mxu0 }
  0xff   : > { %v2106_v41 = vpop.f32.mrb[0].mxu1  ;;  %v2043_v61 = vpop.f32.mrb[1].mxu0 }
 0x100   : > { %v2107_v39 = vpop.f32.mrb[1].mxu1  ;;  %v2044_v48 = vadd.f32 %v2043_v61, %v2042_v37  ;;  %v2045_v22 = vpop.f32.mrb[2].mxu0 }
 0x101   : > { %v2108_v42 = vadd.f32 %v2107_v39, %v2106_v41  ;;  %v2109_v43 = vpop.f32.mrb[2].mxu1  ;;  %v2046_v49 = vpop.f32.mrb[3].mxu0 }
 0x102   : > { %v2110_v44 = vpop.f32.mrb[3].mxu1  ;;  %v1181_v50 = vadd.f32 %v2044_v48, %v2997_v47  ;;  %v2047_v51 = vadd.f32 %v2046_v49, %v2045_v22 }
 0x103   : > { %v2111_v46 = vadd.f32 %v2110_v44, %v2109_v43 }
 0x104   : > { %v3000_v54 = vadd.f32 %v2108_v42, %v1181_v50  ;;  %v1184_v56 = vadd.f32 %v2047_v51, %v2997_v47 }
 0x106   : > { %v3003_v62 = vadd.f32 %v2111_v46, %v1184_v56  ;;  %v2048_v63 = vpop.f32.mrb[4].mxu0 }
 0x107   : > { %v2112_v45 = vpop.f32.mrb[4].mxu1  ;;  %v2049_v1 = vpop.f32.mrb[5].mxu0 }
 0x108   : > { %v2113_v53 = vpop.f32.mrb[5].mxu1  ;;  %v2050_v2 = vadd.f32 %v2049_v1, %v2048_v63  ;;  %v2051_v3 = vpop.f32.mrb[6].mxu0 }
 0x109   : > { %v2114_v57 = vadd.f32 %v2113_v53, %v2112_v45  ;;  %v2115_v58 = vpop.f32.mrb[6].mxu1  ;;  %v2052_v4 = vpop.f32.mrb[7].mxu0 }
 0x10a   : > { %v2116_v59 = vpop.f32.mrb[7].mxu1  ;;  %v1189_v5 = vadd.f32 %v2050_v2, %v2997_v47  ;;  %v2053_v6 = vadd.f32 %v2052_v4, %v2051_v3 }
 0x10b   : > { %v2117_v0 = vadd.f32 %v2116_v59, %v2115_v58 }
 0x10c   : > { %v3006_v60 = vadd.f32 %v2114_v57, %v1189_v5  ;;  %v1192_v8 = vadd.f32 %v2053_v6, %v2997_v47 }
 0x10e   : > { %v3009_v33 = vadd.f32 %v2117_v0, %v1192_v8  ;;  %v2054_v11 = vpop.f32.mrb[8].mxu0 }
 0x10f   : > { %v2118_v9 = vpop.f32.mrb[8].mxu1  ;;  %v2055_v13 = vpop.f32.mrb[9].mxu0 }
 0x110   : > { %v2119_v10 = vpop.f32.mrb[9].mxu1  ;;  %v2056_v14 = vadd.f32 %v2055_v13, %v2054_v11  ;;  %v2057_v17 = vpop.f32.mrb[10].mxu0 }
 0x111   : > { %v2120_v15 = vadd.f32 %v2119_v10, %v2118_v9  ;;  %v2121_v16 = vpop.f32.mrb[10].mxu1  ;;  %v2058_v55 = vpop.f32.mrb[11].mxu0 }
 0x112   : > { %v2122_v31 = vpop.f32.mrb[11].mxu1  ;;  %v1197_v18 = vadd.f32 %v2056_v14, %v2997_v47  ;;  %v2059_v19 = vadd.f32 %v2058_v55, %v2057_v17 }
 0x113   : > { %v2123_v52 = vadd.f32 %v2122_v31, %v2121_v16 }
 0x114   : > { %v3012_v23 = vadd.f32 %v2120_v15, %v1197_v18  ;;  %v1200_v24 = vadd.f32 %v2059_v19, %v2997_v47 }
 0x116   : > { %v3015_v27 = vadd.f32 %v2123_v52, %v1200_v24  ;;  %v2060_v28 = vpop.f32.mrb[12].mxu0 }
 0x117   : > { %v2124_v20 = vpop.f32.mrb[12].mxu1  ;;  %v2061_v29 = vpop.f32.mrb[13].mxu0 }
 0x118   : > { %v2125_v21 = vpop.f32.mrb[13].mxu1  ;;  %v2062_v30 = vadd.f32 %v2061_v29, %v2060_v28  ;;  %v2063_v32 = vpop.f32.mrb[14].mxu0 }
 0x119   : > { %v2126_v12 = vadd.f32 %v2125_v21, %v2124_v20  ;;  %v2127_v25 = vpop.f32.mrb[14].mxu1  ;;  %v2064_v34 = vpop.f32.mrb[15].mxu0 }
 0x11a   : > { %v2128_v26 = vpop.f32.mrb[15].mxu1  ;;  %v1205_v35 = vadd.f32 %v2062_v30, %v2997_v47  ;;  %v2065_v36 = vadd.f32 %v2064_v34, %v2063_v32 }
 0x11b   : > { %v2129_v7 = vadd.f32 %v2128_v26, %v2127_v25 }
 0x11c   : > { %v3018_v41 = vadd.f32 %v2126_v12, %v1205_v35  ;;  %v1208_v39 = vadd.f32 %v2065_v36, %v2997_v47 }
 0x11e   : > { %v3021_v37 = vadd.f32 %v2129_v7, %v1208_v39  ;;  %v2066_v46 = vpop.f32.mrb[16].mxu0 }
 0x11f   : > { %v2130_v38 = vpop.f32.mrb[16].mxu1  ;;  %v2067_v48 = vpop.f32.mrb[17].mxu0 }
 0x120   : > { %v2131_v40 = vpop.f32.mrb[17].mxu1  ;;  %v2068_v22 = vadd.f32 %v2067_v48, %v2066_v46  ;;  %v2069_v49 = vpop.f32.mrb[18].mxu0 }
 0x121   : > { %v2132_v42 = vadd.f32 %v2131_v40, %v2130_v38  ;;  %v2133_v43 = vpop.f32.mrb[18].mxu1  ;;  %v2070_v50 = vpop.f32.mrb[19].mxu0 }
 0x122   : > { %v2134_v44 = vpop.f32.mrb[19].mxu1  ;;  %v1213_v51 = vadd.f32 %v2068_v22, %v2997_v47  ;;  %v2071_v45 = vadd.f32 %v2070_v50, %v2069_v49 }
 0x123   : > { %v2135_v61 = vadd.f32 %v2134_v44, %v2133_v43 }
 0x124   : > { %v3024_v57 = vadd.f32 %v2132_v42, %v1213_v51  ;;  %v1216_v58 = vadd.f32 %v2071_v45, %v2997_v47 }
 0x126   : > { %v3027_v1 = vadd.f32 %v2135_v61, %v1216_v58  ;;  %v2072_v2 = vpop.f32.mrb[20].mxu0 }
 0x127   : > { %v2136_v53 = vpop.f32.mrb[20].mxu1  ;;  %v2073_v4 = vpop.f32.mrb[21].mxu0 }
 0x128   : > { %v2137_v56 = vpop.f32.mrb[21].mxu1  ;;  %v2074_v5 = vadd.f32 %v2073_v4, %v2072_v2  ;;  %v2075_v6 = vpop.f32.mrb[22].mxu0 }
 0x129   : > { %v2138_v59 = vadd.f32 %v2137_v56, %v2136_v53  ;;  %v2139_v63 = vpop.f32.mrb[22].mxu1  ;;  %v2076_v9 = vpop.f32.mrb[23].mxu0 }
 0x12a   : > { %v2140_v0 = vpop.f32.mrb[23].mxu1  ;;  %v1221_v10 = vadd.f32 %v2074_v5, %v2997_v47  ;;  %v2077_v8 = vadd.f32 %v2076_v9, %v2075_v6 }
 0x12b   : > { %v2141_v3 = vadd.f32 %v2140_v0, %v2139_v63 }
 0x12c   : > { %v3030_v31 = vadd.f32 %v2138_v59, %v1221_v10  ;;  %v1224_v11 = vadd.f32 %v2077_v8, %v2997_v47 }
 0x12e   : > { %v3033_v17 = vadd.f32 %v2141_v3, %v1224_v11  ;;  %v2078_v55 = vpop.f32.mrb[24].mxu0 }
 0x12f   : > { %v2142_v15 = vpop.f32.mrb[24].mxu1  ;;  %v2079_v19 = vpop.f32.mrb[25].mxu0 }
 0x130   : > { %v2143_v16 = vpop.f32.mrb[25].mxu1  ;;  %v2080_v20 = vadd.f32 %v2079_v19, %v2078_v55  ;;  %v2081_v21 = vpop.f32.mrb[26].mxu0 }
 0x131   : > { %v2144_v52 = vadd.f32 %v2143_v16, %v2142_v15  ;;  %v2145_v13 = vpop.f32.mrb[26].mxu1  ;;  %v2082_v24 = vpop.f32.mrb[27].mxu0 }
 0x132   : > { %v2146_v14 = vpop.f32.mrb[27].mxu1  ;;  %v1229_v12 = vadd.f32 %v2080_v20, %v2997_v47  ;;  %v2083_v25 = vadd.f32 %v2082_v24, %v2081_v21 }
 0x133   : > { %v2147_v18 = vadd.f32 %v2146_v14, %v2145_v13 }
 0x134   : > { %v3036_v7 = vadd.f32 %v2144_v52, %v1229_v12  ;;  %v1232_v29 = vadd.f32 %v2083_v25, %v2997_v47 }
 0x136   : > { %v3039_v35 = vadd.f32 %v2147_v18, %v1232_v29  ;;  %v2084_v36 = vpop.f32.mrb[28].mxu0 }
 0x137   : > { %v2148_v26 = vpop.f32.mrb[28].mxu1  ;;  %v2085_v40 = vpop.f32.mrb[29].mxu0 }
 0x138   : > { %v2149_v28 = vpop.f32.mrb[29].mxu1  ;;  %v2086_v39 = vadd.f32 %v2085_v40, %v2084_v36  ;;  %v2087_v42 = vpop.f32.mrb[30].mxu0 }
 0x139   : > { %v2150_v30 = vadd.f32 %v2149_v28, %v2148_v26  ;;  %v2151_v32 = vpop.f32.mrb[30].mxu1  ;;  %v2088_v43 = vpop.f32.mrb[31].mxu0 }
 0x13a   : > { %v2152_v34 = vpop.f32.mrb[31].mxu1  ;;  %v1237_v44 = vadd.f32 %v2086_v39, %v2997_v47  ;;  %v2089_v46 = vadd.f32 %v2088_v43, %v2087_v42 }
 0x13b   : > { %v2153_v38 = vadd.f32 %v2152_v34, %v2151_v32 }
 0x13c   : > { %v3042_v22 = vadd.f32 %v2150_v30, %v1237_v44  ;;  %v1240_v49 = vadd.f32 %v2089_v46, %v2997_v47 }
 0x13e   : > { %v3045_v53 = vadd.f32 %v2153_v38, %v1240_v49  ;;  %v2170_v56 = vpop.f32.mrb[32].mxu0 }
 0x13f   : > { %v2234_v61 = vpop.f32.mrb[32].mxu1  ;;  %v2171_v59 = vpop.f32.mrb[33].mxu0 }
 0x140   : > { %v2235_v48 = vpop.f32.mrb[33].mxu1  ;;  %v2172_v63 = vadd.f32 %v2171_v59, %v2170_v56  ;;  %v2173_v0 = vpop.f32.mrb[34].mxu0 }
 0x141   : > { %v2236_v50 = vadd.f32 %v2235_v48, %v2234_v61  ;;  %v2237_v51 = vpop.f32.mrb[34].mxu1  ;;  %v2174_v2 = vpop.f32.mrb[35].mxu0 }
 0x142   : > { %v2238_v45 = vpop.f32.mrb[35].mxu1  ;;  %v1375_v3 = vadd.f32 %v2172_v63, %v3000_v54  ;;  %v2175_v4 = vadd.f32 %v2174_v2, %v2173_v0 }
 0x143   : > { %v2239_v58 = vadd.f32 %v2238_v45, %v2237_v51 }
 0x144   : > { %v1378_v9 = vadd.f32 %v2175_v4, %v3003_v62  ;;  %v3049_v8 = vadd.f32 %v2236_v50, %v1375_v3 }
 0x146   : > { %v2176_v16 = vpop.f32.mrb[36].mxu0  ;;  %v3051_v52 = vadd.f32 %v2239_v58, %v1378_v9 }
 0x147   : > { %v2240_v5 = vpop.f32.mrb[36].mxu1  ;;  %v2177_v13 = vpop.f32.mrb[37].mxu0 }
 0x148   : > { %v2241_v6 = vpop.f32.mrb[37].mxu1  ;;  %v2178_v14 = vadd.f32 %v2177_v13, %v2176_v16  ;;  %v2179_v55 = vpop.f32.mrb[38].mxu0 }
 0x149   : > { %v2242_v10 = vadd.f32 %v2241_v6, %v2240_v5  ;;  %v2243_v47 = vpop.f32.mrb[38].mxu1  ;;  %v2180_v18 = vpop.f32.mrb[39].mxu0 }
 0x14a   : > { %v2244_v15 = vpop.f32.mrb[39].mxu1  ;;  %v1383_v54 = vadd.f32 %v2178_v14, %v3006_v60  ;;  %v2181_v19 = vadd.f32 %v2180_v18, %v2179_v55 }
 0x14b   : > { %v2245_v11 = vadd.f32 %v2244_v15, %v2243_v47 }
 0x14c   : > { %v1386_v62 = vadd.f32 %v2181_v19, %v3009_v33  ;;  %v3055_v25 = vadd.f32 %v2242_v10, %v1383_v54 }
 0x14e   : > { %v2182_v28 = vpop.f32.mrb[40].mxu0  ;;  %v3057_v30 = vadd.f32 %v2245_v11, %v1386_v62 }
 0x14f   : > { %v2246_v20 = vpop.f32.mrb[40].mxu1  ;;  %v2183_v32 = vpop.f32.mrb[41].mxu0 }
 0x150   : > { %v2247_v21 = vpop.f32.mrb[41].mxu1  ;;  %v2184_v34 = vadd.f32 %v2183_v32, %v2182_v28  ;;  %v2185_v36 = vpop.f32.mrb[42].mxu0 }
 0x151   : > { %v2248_v24 = vadd.f32 %v2247_v21, %v2246_v20  ;;  %v2249_v12 = vpop.f32.mrb[42].mxu1  ;;  %v2186_v38 = vpop.f32.mrb[43].mxu0 }
 0x152   : > { %v2250_v26 = vpop.f32.mrb[43].mxu1  ;;  %v1391_v60 = vadd.f32 %v2184_v34, %v3012_v23  ;;  %v2187_v40 = vadd.f32 %v2186_v38, %v2185_v36 }
 0x153   : > { %v2251_v29 = vadd.f32 %v2250_v26, %v2249_v12 }
 0x154   : > { %v1394_v33 = vadd.f32 %v2187_v40, %v3015_v27  ;;  %v3061_v46 = vadd.f32 %v2248_v24, %v1391_v60 }
 0x156   : > { %v2188_v48 = vpop.f32.mrb[44].mxu0  ;;  %v3063_v50 = vadd.f32 %v2251_v29, %v1394_v33 }
 0x157   : > { %v2252_v39 = vpop.f32.mrb[44].mxu1  ;;  %v2189_v51 = vpop.f32.mrb[45].mxu0 }
 0x158   : > { %v2253_v42 = vpop.f32.mrb[45].mxu1  ;;  %v2190_v45 = vadd.f32 %v2189_v51, %v2188_v48  ;;  %v2191_v56 = vpop.f32.mrb[46].mxu0 }
 0x159   : > { %v2254_v43 = vadd.f32 %v2253_v42, %v2252_v39  ;;  %v2255_v44 = vpop.f32.mrb[46].mxu1  ;;  %v2192_v58 = vpop.f32.mrb[47].mxu0 }
 0x15a   : > { %v2256_v61 = vpop.f32.mrb[47].mxu1  ;;  %v1399_v23 = vadd.f32 %v2190_v45, %v3018_v41  ;;  %v2193_v59 = vadd.f32 %v2192_v58, %v2191_v56 }
 0x15b   : > { %v2257_v49 = vadd.f32 %v2256_v61, %v2255_v44 }
 0x15c   : > { %v1402_v27 = vadd.f32 %v2193_v59, %v3021_v37  ;;  %v3067_v4 = vadd.f32 %v2254_v43, %v1399_v23 }
 0x15e   : > { %v2194_v6 = vpop.f32.mrb[48].mxu0  ;;  %v3069_v10 = vadd.f32 %v2257_v49, %v1402_v27 }
 0x15f   : > { %v2258_v63 = vpop.f32.mrb[48].mxu1  ;;  %v2195_v47 = vpop.f32.mrb[49].mxu0 }
 0x160   : > { %v2259_v0 = vpop.f32.mrb[49].mxu1  ;;  %v2196_v15 = vadd.f32 %v2195_v47, %v2194_v6  ;;  %v2197_v16 = vpop.f32.mrb[50].mxu0 }
 0x161   : > { %v2260_v2 = vadd.f32 %v2259_v0, %v2258_v63  ;;  %v2261_v3 = vpop.f32.mrb[50].mxu1  ;;  %v2198_v11 = vpop.f32.mrb[51].mxu0 }
 0x162   : > { %v2262_v5 = vpop.f32.mrb[51].mxu1  ;;  %v1407_v41 = vadd.f32 %v2196_v15, %v3024_v57  ;;  %v2199_v13 = vadd.f32 %v2198_v11, %v2197_v16 }
 0x163   : > { %v2263_v9 = vadd.f32 %v2262_v5, %v2261_v3 }
 0x164   : > { %v1410_v37 = vadd.f32 %v2199_v13, %v3027_v1  ;;  %v1504_v19 = vadd.f32 %v2260_v2, %v1407_v41 }
 0x166   : > { %v2200_v21 = vpop.f32.mrb[52].mxu0  ;;  %v1507_v24 = vadd.f32 %v2263_v9, %v1410_v37 }
 0x167   : > { %v2264_v14 = vpop.f32.mrb[52].mxu1  ;;  %v2201_v12 = vpop.f32.mrb[53].mxu0 }
 0x168   : > { %v2265_v55 = vpop.f32.mrb[53].mxu1  ;;  %v2202_v26 = vadd.f32 %v2201_v12, %v2200_v21  ;;  %v2203_v28 = vpop.f32.mrb[54].mxu0 }
 0x169   : > { %v2266_v18 = vadd.f32 %v2265_v55, %v2264_v14  ;;  %v2267_v54 = vpop.f32.mrb[54].mxu1  ;;  %v2204_v29 = vpop.f32.mrb[55].mxu0 }
 0x16a   : > { %v2268_v20 = vpop.f32.mrb[55].mxu1  ;;  %v1415_v32 = vadd.f32 %v2202_v26, %v3030_v31  ;;  %v2205_v57 = vadd.f32 %v2204_v29, %v2203_v28 }
 0x16b   : > { %v2269_v62 = vadd.f32 %v2268_v20, %v2267_v54 }
 0x16c   : > { %v1418_v38 = vadd.f32 %v2205_v57, %v3033_v17  ;;  %v1512_v40 = vadd.f32 %v2266_v18, %v1415_v32 }
 0x16e   : > { %v2206_v42 = vpop.f32.mrb[56].mxu0  ;;  %v1515_v43 = vadd.f32 %v2269_v62, %v1418_v38 }
 0x16f   : > { %v2270_v34 = vpop.f32.mrb[56].mxu1  ;;  %v2207_v44 = vpop.f32.mrb[57].mxu0 }
 0x170   : > { %v2271_v36 = vpop.f32.mrb[57].mxu1  ;;  %v2208_v61 = vadd.f32 %v2207_v44, %v2206_v42  ;;  %v2209_v48 = vpop.f32.mrb[58].mxu0 }
 0x171   : > { %v2272_v1 = vadd.f32 %v2271_v36, %v2270_v34  ;;  %v2273_v60 = vpop.f32.mrb[58].mxu1  ;;  %v2210_v49 = vpop.f32.mrb[59].mxu0 }
 0x172   : > { %v2274_v39 = vpop.f32.mrb[59].mxu1  ;;  %v1423_v31 = vadd.f32 %v2208_v61, %v3036_v7  ;;  %v2211_v51 = vadd.f32 %v2210_v49, %v2209_v48 }
 0x173   : > { %v2275_v33 = vadd.f32 %v2274_v39, %v2273_v60 }
 0x174   : > { %v1426_v17 = vadd.f32 %v2211_v51, %v3039_v35  ;;  %v1520_v59 = vadd.f32 %v2272_v1, %v1423_v31 }
 0x176   : > { %v2212_v0 = vpop.f32.mrb[60].mxu0  ;;  %v1523_v2 = vadd.f32 %v2275_v33, %v1426_v17 }
 0x177   : > { %v2276_v45 = vpop.f32.mrb[60].mxu1  ;;  %v2213_v3 = vpop.f32.mrb[61].mxu0 }
 0x178   : > { %v2277_v56 = vpop.f32.mrb[61].mxu1  ;;  %v2214_v5 = vadd.f32 %v2213_v3, %v2212_v0  ;;  %v2215_v6 = vpop.f32.mrb[62].mxu0 }
 0x179   : > { %v2278_v58 = vadd.f32 %v2277_v56, %v2276_v45  ;;  %v2279_v23 = vpop.f32.mrb[62].mxu1  ;;  %v2216_v9 = vpop.f32.mrb[63].mxu0 }
 0x17a   : > { %v2280_v63 = vpop.f32.mrb[63].mxu1  ;;  %v1431_v7 = vadd.f32 %v2214_v5, %v3042_v22  ;;  %v2217_v47 = vadd.f32 %v2216_v9, %v2215_v6 }
 0x17b   : > { %v2281_v27 = vadd.f32 %v2280_v63, %v2279_v23 }
 0x17c   : > { %v1434_v11 = vadd.f32 %v2217_v47, %v3045_v53  ;;  %v1528_v14 = vadd.f32 %v2278_v58, %v1431_v7 }
 0x17e   : > { %v2316_v18 = vpop.f32.mrb[64].mxu0  ;;  %v1531_v20 = vadd.f32 %v2281_v27, %v1434_v11 }
 0x17f   : > { %v2324_v15 = vpop.f32.mrb[64].mxu1  ;;  %v1577_v21 = vadd.f32 %v2316_v18, %v3055_v25  ;;  %v1568_v22 = vpop.f32.mrb[65].mxu0 }
 0x180   : > { %v1609_v16 = vadd.f32 %v2324_v15, %v1512_v40  ;;  %v1600_v35 = vpop.f32.mrb[65].mxu1  ;;  %v1569_v26 = vadd.f32 %v1568_v22, %v3049_v8  ;;  %v2317_v53 = vpop.f32.mrb[66].mxu0 }
 0x181   : > { %v1601_v41 = vadd.f32 %v1600_v35, %v1504_v19  ;;  %v2325_v13 = vpop.f32.mrb[66].mxu1  ;;  %v1571_v32 = vpop.f32.mrb[67].mxu0  ;;  %v1633_v36 = vmax.f32 %v1577_v21, 0.0 }
 0x182   : > { %v1612_v55 = vadd.f32 %v2325_v13, %v1515_v43  ;;  %v1603_v37 = vpop.f32.mrb[67].mxu1  ;;  %v1641_v62 = vmax.f32 %v1609_v16, 0.0  ;;  %v1572_v25 = vadd.f32 %v1571_v32, %v3051_v52  ;;  %v1631_v60 = vmax.f32 %v1569_v26, 0.0 }
 0x183   : > { %v1604_v54 = vadd.f32 %v1603_v37, %v1507_v24  ;;  %v1639_v28 = vmax.f32 %v1601_v41, 0.0  ;;  %v1580_v24 = vadd.f32 %v2317_v53, %v3057_v30 }
 0x184   : > { %v1642_v12 = vmax.f32 %v1612_v55, 0.0  ;;  %v1632_v40 = vmax.f32 %v1572_v25, 0.0 }
 0x185   : > { %v1640_v19 = vmax.f32 %v1604_v54, 0.0  ;;  %v1634_v8 = vmax.f32 %v1580_v24, 0.0 }
 0x186   : > { %v2005_v29 = vpack.c.bf16 %v1642_v12, %v1641_v62  ;;  %v1980_v44 = vpack.c.bf16 %v1632_v40, %v1631_v60  ;;  %v2320_v61 = vpop.f32.mrb[68].mxu0 }
 0x187   : > { %v2000_v57 = vpack.c.bf16 %v1640_v19, %v1639_v28  ;;  %v2328_v34 = vpop.f32.mrb[68].mxu1  ;;  %v1985_v33 = vpack.c.bf16 %v1634_v8, %v1633_v36  ;;  %v1593_v48 = vadd.f32 %v2320_v61, %v3067_v4  ;;  %v1584_v31 = vpop.f32.mrb[69].mxu0 }
 0x188   : > { %2023 = vst [vmem:[%s3087_s15 + $0x28] sm:$0xff] %v2005_v29   ;;  %v1625_v38 = vadd.f32 %v2328_v34, %v1528_v14  ;;  %v1616_v1 = vpop.f32.mrb[69].mxu1  ;;  %1981 = vst [vmem:[%s3087_s15] sm:$0xff] %v1980_v44   ;;  %v1585_v45 = vadd.f32 %v1584_v31, %v3061_v46  ;;  %v2321_v17 = vpop.f32.mrb[70].mxu0 }
 0x189   : > { %2022 = vst [vmem:[%s3087_s15 + $0x20] sm:$0xff] %v2000_v57   ;;  %v1617_v39 = vadd.f32 %v1616_v1, %v1520_v59  ;;  %v2329_v42 = vpop.f32.mrb[70].mxu1  ;;  %2019 = vst [vmem:[%s3087_s15 + $0x8] sm:$0xff] %v1985_v33   ;;  %v1596_v23 = vadd.f32 %v2321_v17, %v3069_v10  ;;  %v1587_v63 = vpop.f32.mrb[71].mxu0  ;;  %v1637_v27 = vmax.f32 %v1593_v48, 0.0 }
 0x18a   : > { %v1628_v30 = vadd.f32 %v2329_v42, %v1531_v20  ;;  %v1619_v43 = vpop.f32.mrb[71].mxu1  ;;  %v1645_v49 = vmax.f32 %v1625_v38, 0.0  ;;  %v1588_v0 = vadd.f32 %v1587_v63, %v3063_v50  ;;  %v1635_v3 = vmax.f32 %v1585_v45, 0.0 }
 0x18b   : > { %v1620_v52 = vadd.f32 %v1619_v43, %v1523_v2  ;;  %v1643_v56 = vmax.f32 %v1617_v39, 0.0  ;;  %v1638_v2 = vmax.f32 %v1596_v23, 0.0 }
 0x18c   : > { %v1646_v51 = vmax.f32 %v1628_v30, 0.0  ;;  %v1636_v5 = vmax.f32 %v1588_v0, 0.0 }
 0x18d   : > { %v1644_v58 = vmax.f32 %v1620_v52, 0.0  ;;  %v1995_v6 = vpack.c.bf16 %v1638_v2, %v1637_v27 }
 0x18e   : > { %v2015_v59 = vpack.c.bf16 %v1646_v51, %v1645_v49  ;;  %v1990_v46 = vpack.c.bf16 %v1636_v5, %v1635_v3 }
 0x18f   : > { %v2010_v4 = vpack.c.bf16 %v1644_v58, %v1643_v56  ;;  %2021 = vst [vmem:[%s3087_s15 + $0x18] sm:$0xff] %v1995_v6  }
 0x190   : > { %2025 = vst [vmem:[%s3087_s15 + $0x38] sm:$0xff] %v2015_v59   ;;  %2020 = vst [vmem:[%s3087_s15 + $0x10] sm:$0xff] %v1990_v46  }
 0x191   : > { %2024 = vst [vmem:[%s3087_s15 + $0x30] sm:$0xff] %v2010_v4  }
 0x192 PF: > { %s14_s19 = sadd.s32 1, %s2499_s19   ;;  %s3124_s15 = smov %s2491_s17 }
 0x193   : > { %p11_p9 = scmp.ge.s32.totalorder %s14_s19, 6   ;;  %s3125_s16 = smov %s2495_s18 }
 0x194   : > { %s3126_s17 = smov %s3129_s20  ;;  %s3127_s18 = smov %s3133_s21 }
 0x195   :  { %13 = sbr.rel (!%p11_p9) target bundleno = 3 (0x3), region = 69 }

// kernel: spade_resnet_block.10
= control target key start
LH: loop header
LB: loop body
LE: loop exit
PB: predicated region body
PF: predicated region fallthrough
CT: control target
= control target key end

     0   :  { %s426_s6 = smov 0   ;;  %s428_s7 = smov 0   ;;  %s509_s0 = inlined_call_operand.vmem [shape: f32[2,16,16,128], index: 0, kind: input, shape index: {}]   ;;  %s510_s1 = inlined_call_operand.vmem [shape: f32[2,2,128], index: 1, kind: output, shape index: {}]  }
   0x1   :  { %s430_s8 = smov 0   ;;  %s432_s9 = smov 0  }
   0x2   :  { %s434_s10 = smov 0  }
   0x3 LB: > { %s20_s11 = sadd.s32 1, %s405_s8  ;;  %s23_s12 = sadd.s32 1, %s409_s9  ;;  %s413_s10 = sphi %s434_s10, %s11_s10   ;;  %s409_s9 = sphi %s432_s9, %s514_s9   ;;  %s405_s8 = sphi %s430_s8, %s513_s8   ;;  %s401_s7 = sphi %s428_s7, %s512_s7   ;;  %s397_s6 = sphi %s426_s6, %s511_s6  }
   0x4   : > { %p21_p0 = scmp.ge.s32.totalorder %s20_s11, 2  ;;  %p322_p1 = scmp.ge.s32.totalorder %s413_s10, 1 }
   0x5   : > { %p107_p2 = scmp.lt.s32.totalorder %s413_s10, 5 }
   0x6   : > { %s516_s11 = smov (%p21_p0, %s20_s11), 0  ;;  %s518_s12 = smov (!%p21_p0, %s23_s12), %s409_s9 }
   0x7   : > { %p108_p3 = pnand %p322_p1, %p107_p2  ;;  %p25_p4 = scmp.ge.s32.totalorder %s518_s12, 2 }
   0x8   : > { %s323_s13 = sshll.u32 (!%p108_p3), %s397_s6, 3  ;;  %p132_p5 = scmp.lt.s32.totalorder (!%p108_p3), %s401_s7, 1 }
   0x9   : > { %s520_s12 = smov (%p25_p4, %s518_s12), 0  ;;  %111 = sbr.rel (%p108_p3) target bundleno = 105 (0x69), region = 24 }
   0xa   : > { %p134_p6 = scmp.lt.s32.totalorder (!%p108_p3), %s323_s13, 15  ;;  %p328_p7 = scmp.ne.s32.totalorder (!%p108_p3), %s397_s6, 0 }
  0x10   : > { %s522_s7 = smov (!%p132_p5, %s401_s7), 1  ;;  %s524_s13 = smov (!%p134_p6, %s323_s13), 15 }
  0x11   : > { %s325_s14 = sshll.u32 %s522_s7, 5  ;;  %s327_s15 = sshll.u32 %s522_s7, 1  ;;  %v415_v0 = vmov (!%p328_p7), 0.0  }
  0x12   : > { %s324_s16 = sshll.u32 %s524_s13, 1  ;;  %s462_s19 = scalar_lea.vmem %s510_s1, %s327_s15 }
  0x13   : > { %s138_s20 = sadd.s32 %s325_s14, %s324_s16  ;;  %149 = sbr.rel (%p328_p7) target bundleno = 26 (0x1a), region = 28  ;;  %150 = vst [vmem:[%s462_s19] sm:$0x3] (!%p328_p7), %v415_v0 }
  0x14   : > { %s326_s21 = sshll.u32 %s138_s20, 3 }
  0x15   : > { %s467_s24 = scalar_lea.vmem %s509_s0, %s326_s21 }
  0x1a PF: > { %v151_v1 = vld [vmem:[%s467_s24] sm:$0xff]  ;;  %v152_v2 = vld [vmem:[%s467_s24 + $0x8] sm:$0xff]  ;;  %v153_v3 = vld [vmem:[%s467_s24 + $0x10] sm:$0xff]  ;;  %vm226_vm0 = vcmask 1040384   ;;  %p329_p8 = scmp.ne.s32.totalorder %s397_s6, 1 }
  0x1b   : > { %v154_v4 = vld [vmem:[%s467_s24 + $0x18] sm:$0xff]  ;;  %v167_v5 = vadd.f32 %v152_v2, %v151_v1  ;;  %v188_v6 = vmul.f32 %v151_v1, %v151_v1  ;;  %v189_v7 = vmul.f32 %v152_v2, %v152_v2  ;;  %v190_v8 = vmul.f32 %v153_v3, %v153_v3  ;;  %v155_v9 = vld [vmem:[%s467_s24 + $0x20] sm:$0xff]  ;;  %v156_v13 = vld [vmem:[%s467_s24 + $0x28] sm:$0xff] }
  0x1c   : > { %v191_v11 = vmul.f32 %v154_v4, %v154_v4  ;;  %v192_v15 = vmul.f32 %v155_v9, %v155_v9  ;;  %v157_v17 = vld [vmem:[%s467_s24 + $0x30] sm:$0xff]  ;;  %v193_v19 = vmul.f32 %v156_v13, %v156_v13  ;;  %v158_v21 = vld [vmem:[%s467_s24 + $0x38] sm:$0xff]  ;;  %v159_v25 = vld [vmem:[%s467_s24 + $0x40] sm:$0xff] }
  0x1d   : > { %v168_v10 = vadd.f32 %v167_v5, %v153_v3  ;;  %v204_v12 = vadd.f32 %v189_v7, %v188_v6  ;;  %v194_v23 = vmul.f32 %v157_v17, %v157_v17  ;;  %v195_v27 = vmul.f32 %v158_v21, %v158_v21  ;;  %v160_v29 = vld [vmem:[%s467_s24 + $0x48] sm:$0xff]  ;;  %v161_v33 = vld [vmem:[%s467_s24 + $0x50] sm:$0xff]  ;;  %v162_v37 = vld [vmem:[%s467_s24 + $0x58] sm:$0xff] }
  0x1e   : > { %v196_v31 = vmul.f32 %v159_v25, %v159_v25  ;;  %v197_v35 = vmul.f32 %v160_v29, %v160_v29  ;;  %v198_v39 = vmul.f32 %v161_v33, %v161_v33  ;;  %v163_v41 = vld [vmem:[%s467_s24 + $0x60] sm:$0xff]  ;;  %v199_v43 = vmul.f32 %v162_v37, %v162_v37  ;;  %v164_v45 = vld [vmem:[%s467_s24 + $0x68] sm:$0xff]  ;;  %v165_v49 = vld [vmem:[%s467_s24 + $0x70] sm:$0xff] }
  0x1f   : > { %v169_v14 = vadd.f32 %v168_v10, %v154_v4  ;;  %v205_v16 = vadd.f32 %v204_v12, %v190_v8  ;;  %v200_v47 = vmul.f32 %v163_v41, %v163_v41  ;;  %v201_v51 = vmul.f32 %v164_v45, %v164_v45  ;;  %v166_v53 = vld [vmem:[%s467_s24 + $0x78] sm:$0xff] }
  0x20   : > { %v202_v55 = vmul.f32 %v165_v49, %v165_v49  ;;  %v203_v58 = vmul.f32 %v166_v53, %v166_v53 }
  0x21   : > { %v170_v18 = vadd.f32 %v169_v14, %v155_v9  ;;  %v206_v20 = vadd.f32 %v205_v16, %v191_v11  ;;  %v225_v11 = vld [vmem:[%s462_s19] sm:$0x3] }
  0x23   : > { %v171_v22 = vadd.f32 %v170_v18, %v156_v13  ;;  %v207_v24 = vadd.f32 %v206_v20, %v192_v15 }
  0x25   : > { %v172_v26 = vadd.f32 %v171_v22, %v157_v17  ;;  %v208_v28 = vadd.f32 %v207_v24, %v193_v19 }
  0x27   : > { %v173_v30 = vadd.f32 %v172_v26, %v158_v21  ;;  %v209_v32 = vadd.f32 %v208_v28, %v194_v23 }
  0x29   : > { %v174_v34 = vadd.f32 %v173_v30, %v159_v25  ;;  %v210_v36 = vadd.f32 %v209_v32, %v195_v27 }
  0x2b   : > { %v175_v38 = vadd.f32 %v174_v34, %v160_v29  ;;  %v211_v40 = vadd.f32 %v210_v36, %v196_v31 }
  0x2d   : > { %v176_v42 = vadd.f32 %v175_v38, %v161_v33  ;;  %v212_v44 = vadd.f32 %v211_v40, %v197_v35 }
  0x2f   : > { %v177_v46 = vadd.f32 %v176_v42, %v162_v37  ;;  %v213_v48 = vadd.f32 %v212_v44, %v198_v39 }
  0x31   : > { %v178_v50 = vadd.f32 %v177_v46, %v163_v41  ;;  %v214_v52 = vadd.f32 %v213_v48, %v199_v43 }
  0x33   : > { %v179_v54 = vadd.f32 %v178_v50, %v164_v45  ;;  %v215_v56 = vadd.f32 %v214_v52, %v200_v47 }
  0x35   : > { %v180_v57 = vadd.f32 %v179_v54, %v165_v49  ;;  %v216_v59 = vadd.f32 %v215_v56, %v201_v51 }
  0x37   : > { %v181_v60 = vadd.f32 %v180_v57, %v166_v53  ;;  %v217_v61 = vadd.f32 %v216_v59, %v202_v55 }
  0x39   : > { %v182_v62 = vrot.slane %v181_v60, 4  ;;  %v218_v63 = vadd.f32 %v217_v61, %v203_v58 }
  0x3b   : > { %v183_v0 = vadd.f32 %v182_v62, %v181_v60  ;;  %v219_v1 = vrot.slane %v218_v63, 4 }
  0x3d   : > { %v184_v2 = vrot.slane %v183_v0, 2  ;;  %v220_v3 = vadd.f32 %v219_v1, %v218_v63 }
  0x3f   : > { %v185_v4 = vadd.f32 %v184_v2, %v183_v0  ;;  %v221_v5 = vrot.slane %v220_v3, 2 }
  0x41   : > { %v186_v6 = vrot.slane %v185_v4, 1  ;;  %v222_v7 = vadd.f32 %v221_v5, %v220_v3 }
  0x43   : > { %v187_v8 = vadd.f32 %v186_v6, %v185_v4  ;;  %v223_v9 = vrot.slane %v222_v7, 1 }
  0x44   : > { %233 = sbr.rel (%p329_p8) target bundleno = 105 (0x69), region = 32 }
  0x45   : > { %v224_v10 = vadd.f32 %v223_v9, %v222_v7 }
  0x47   : > { %v227_v12 = vsel %vm226_vm0, %v187_v8, %v224_v10 }
  0x48   : > { %v228_v13 = vadd.f32 %v227_v12, %v225_v11 }
  0x4a   : > { %229 = vst [vmem:[%s462_s19] sm:$0x3] %v228_v13 }
  0x51   : > { %v234_v14 = vld [vmem:[%s462_s19] sm:$0x3] }
  0x52   : > { %v235_v15 = vmul.f32 0.00390625, %v234_v14 }
  0x54   : > { %v236_v16 = vmul.f32 %v235_v15, %v235_v15 }
  0x56   : > { %v238_v17 = vrot.slane %v236_v16, 7 }
  0x58   : > { %v240_v18 = vsub.f32 %v235_v15, %v238_v17 }
  0x5a   : > { %v241_v19 = vadd.f32 1e-05, %v240_v18 }
  0x5c   : > { %373 = vrsqrt.f32 %v241_v19 }
  0x66   : > { %v374_v20 = vpop.eup %373 }
  0x67   : > { %v243_v21 = vsel %vm226_vm0, %v235_v15, %v374_v20 }
  0x68   : > { %244 = vst [vmem:[%s462_s19] sm:$0x3] %v243_v21 }
  0x69 PF: > { %s11_s10 = sadd.s32 1, %s413_s10   ;;  %s511_s6 = smov %s405_s8 }
  0x6a   : > { %p8_p9 = scmp.ge.s32.totalorder %s11_s10, 6   ;;  %s512_s7 = smov %s409_s9 }
  0x6b   : > { %s513_s8 = smov %s516_s11  ;;  %s514_s9 = smov %s520_s12 }
  0x6c   :  { %10 = sbr.rel (!%p8_p9) target bundleno = 3 (0x3), region = 62 }

// kernel: spade_resnet_block.9
= control target key start
LH: loop header
LB: loop body
LE: loop exit
PB: predicated region body
PF: predicated region fallthrough
CT: control target
= control target key end

     0   :  { %s3261_s15 = smov 0   ;;  %s3263_s16 = smov 0   ;;  %s4465_s0 = inlined_call_operand.vmem [shape: bf16[2,18,18,128], index: 0, kind: input, shape index: {}, may-alias: {0,1}]   ;;  %s4466_s1 = inlined_call_operand.vmem [shape: bf16[2,18,18,128], index: 1, kind: input, shape index: {}, may-alias: {0,1}]   ;;  %s4467_s2 = inlined_call_operand.vmem [shape: bf16[1152,256], index: 2, kind: input, shape index: {}]   ;;  %s4468_s3 = inlined_call_operand.vmem [shape: f32[1,256], index: 3, kind: input, shape index: {}]   ;;  %s4469_s4 = inlined_call_operand.vmem [shape: bf16[2,16,16,256], index: 4, kind: output, shape index: {}]  }
   0x1   :  { %s3265_s17 = smov 0   ;;  %s3267_s18 = smov 0  }
   0x2   :  { %s3269_s19 = smov 0  }
   0x3 LB: > { %s23_s20 = sadd.s32 1, %s3225_s17  ;;  %s26_s21 = sadd.s32 1, %s3229_s18  ;;  %s3233_s19 = sphi %s3269_s19, %s14_s19   ;;  %s3229_s18 = sphi %s3267_s18, %s4509_s18   ;;  %s3225_s17 = sphi %s3265_s17, %s4508_s17   ;;  %s3221_s16 = sphi %s3263_s16, %s4507_s16   ;;  %s3217_s15 = sphi %s3261_s15, %s4506_s15  }
   0x4   : > { %p24_p0 = scmp.ge.s32.totalorder %s23_s20, 2  ;;  %p2496_p1 = scmp.ge.s32.totalorder %s3233_s19, 1 }
   0x5   : > { %p220_p2 = scmp.lt.s32.totalorder %s3233_s19, 5 }
   0x6   : > { %s4511_s20 = smov (%p24_p0, %s23_s20), 0  ;;  %s4513_s21 = smov (!%p24_p0, %s26_s21), %s3229_s18 }
   0x7   : > { %p221_p3 = pnand %p2496_p1, %p220_p2  ;;  %p28_p4 = scmp.ge.s32.totalorder %s4513_s21, 2 }
   0x9   : > { %s4515_s21 = smov (%p28_p4, %s4513_s21), 0  ;;  %224 = sbr.rel (%p221_p3) target bundleno = 455 (0x1c7), region = 36 }
  0x10   : > { %v2969_v0 = vld [vmem:[%s4467_s2 + $0x4] ss:$8 sps:$4 sm:$0xff]   ;;  %v2973_v2 = vld [vmem:[%s4467_s2] ss:$8 sps:$4 sm:$0xff]   ;;  %v2975_v4 = vld [vmem:[%s4467_s2 + $0x14] ss:$8 sps:$4 sm:$0xff]  }
  0x11   : > { %v2971_v1 = vld [vmem:[%s4467_s2 + $0x204] ss:$8 sps:$4 sm:$0xff]   ;;  %1693 = vmatprep.subr.bf16.mxu1 %v2969_v0  ;;  %v2974_v3 = vld [vmem:[%s4467_s2 + $0x200] ss:$8 sps:$4 sm:$0xff]   ;;  %v2977_v5 = vld [vmem:[%s4467_s2 + $0x214] ss:$8 sps:$4 sm:$0xff]  }
  0x12   : > { %1919 = vmatprep.subr.bf16.mxu0 %v2971_v1  ;;  %1694 = vmatpush1.bf16.msra.mxu1 %v2973_v2  ;;  %v2979_v6 = vld [vmem:[%s4467_s2 + $0x10] ss:$8 sps:$4 sm:$0xff]   ;;  %v2981_v8 = vld [vmem:[%s4467_s2 + $0x24] ss:$8 sps:$4 sm:$0xff]   ;;  %v2985_v10 = vld [vmem:[%s4467_s2 + $0x20] ss:$8 sps:$4 sm:$0xff]  }
  0x13   : > { %1920 = vmatpush1.bf16.msra.mxu0 %v2974_v3  ;;  %1695 = vmatprep.subr.bf16.mxu1 %v2975_v4  ;;  %v2980_v7 = vld [vmem:[%s4467_s2 + $0x210] ss:$8 sps:$4 sm:$0xff]   ;;  %v2983_v9 = vld [vmem:[%s4467_s2 + $0x224] ss:$8 sps:$4 sm:$0xff]   ;;  %v2986_v11 = vld [vmem:[%s4467_s2 + $0x220] ss:$8 sps:$4 sm:$0xff]  }
  0x14   : > { %1921 = vmatprep.subr.bf16.mxu0 %v2977_v5  ;;  %v2987_v12 = vld [vmem:[%s4467_s2 + $0x34] ss:$8 sps:$4 sm:$0xff]   ;;  %v2991_v14 = vld [vmem:[%s4467_s2 + $0x30] ss:$8 sps:$4 sm:$0xff]   ;;  %v2993_v16 = vld [vmem:[%s4467_s2 + $0x44] ss:$8 sps:$4 sm:$0xff]  }
  0x15   : > { %v2989_v13 = vld [vmem:[%s4467_s2 + $0x234] ss:$8 sps:$4 sm:$0xff]   ;;  %v2992_v15 = vld [vmem:[%s4467_s2 + $0x230] ss:$8 sps:$4 sm:$0xff]   ;;  %v2995_v17 = vld [vmem:[%s4467_s2 + $0x244] ss:$8 sps:$4 sm:$0xff]  }
  0x16   : > { %1696 = vmatpush1.bf16.msra.mxu1 %v2979_v6  ;;  %v2997_v18 = vld [vmem:[%s4467_s2 + $0x40] ss:$8 sps:$4 sm:$0xff]   ;;  %v2999_v20 = vld [vmem:[%s4467_s2 + $0x54] ss:$8 sps:$4 sm:$0xff]   ;;  %s3362_s28 = sshll.u32 %s3217_s15, 3  ;;  %p279_p5 = scmp.lt.s32.totalorder %s3221_s16, 1 }
  0x17   : > { %1922 = vmatpush1.bf16.msra.mxu0 %v2980_v7  ;;  %1697 = vmatprep.subr.bf16.mxu1 %v2981_v8  ;;  %v2998_v19 = vld [vmem:[%s4467_s2 + $0x240] ss:$8 sps:$4 sm:$0xff]   ;;  %v3001_v21 = vld [vmem:[%s4467_s2 + $0x254] ss:$8 sps:$4 sm:$0xff]   ;;  %v3003_v22 = vld [vmem:[%s4467_s2 + $0x50] ss:$8 sps:$4 sm:$0xff]  }
  0x18   : > { %1923 = vmatprep.subr.bf16.mxu0 %v2983_v9  ;;  %v3004_v23 = vld [vmem:[%s4467_s2 + $0x250] ss:$8 sps:$4 sm:$0xff]   ;;  %v3005_v24 = vld [vmem:[%s4467_s2 + $0x64] ss:$8 sps:$4 sm:$0xff]   ;;  %p281_p6 = scmp.lt.s32.totalorder %s3362_s28, 17  ;;  %s4517_s16 = smov (!%p279_p5, %s3221_s16), 1 }
  0x19   : > { %v3007_v25 = vld [vmem:[%s4467_s2 + $0x264] ss:$8 sps:$4 sm:$0xff]   ;;  %v3009_v26 = vld [vmem:[%s4467_s2 + $0x60] ss:$8 sps:$4 sm:$0xff]   ;;  %v3011_v28 = vld [vmem:[%s4467_s2 + $0x74] ss:$8 sps:$4 sm:$0xff]  }
  0x1a   : > { %1698 = vmatpush1.bf16.msra.mxu1 %v2985_v10  ;;  %v3010_v27 = vld [vmem:[%s4467_s2 + $0x260] ss:$8 sps:$4 sm:$0xff]   ;;  %v3013_v29 = vld [vmem:[%s4467_s2 + $0x274] ss:$8 sps:$4 sm:$0xff]   ;;  %s282_s25 = scalar_select %p281_p6, %s3362_s28, 17  ;;  %vm570_vm0 = vcmask 1042432  }
  0x1b   : > { %1924 = vmatpush1.bf16.msra.mxu0 %v2986_v11  ;;  %1699 = vmatprep.subr.bf16.mxu1 %v2987_v12  ;;  %v3015_v30 = vld [vmem:[%s4467_s2 + $0x70] ss:$8 sps:$4 sm:$0xff]   ;;  %v3017_v32 = vld [vmem:[%s4467_s2 + $0x84] ss:$8 sps:$4 sm:$0xff]   ;;  %s2926_s7 = smul.u32 54, %s4517_s16  ;;  %vm571_vm1 = vcmask 1046532  }
  0x1c   : > { %1925 = vmatprep.subr.bf16.mxu0 %v2989_v13  ;;  %v3016_v31 = vld [vmem:[%s4467_s2 + $0x270] ss:$8 sps:$4 sm:$0xff]   ;;  %v3019_v33 = vld [vmem:[%s4467_s2 + $0x284] ss:$8 sps:$4 sm:$0xff]   ;;  %s2925_s9 = smul.u32 3, %s282_s25  ;;  %vm3488_vm4 = vmor %vm570_vm0, %vm571_vm1  ;;  %s2732_s24 = sadd.s32 8, %s3362_s28 }
  0x1d   : > { %v3021_v34 = vld [vmem:[%s4467_s2 + $0x80] ss:$8 sps:$4 sm:$0xff]   ;;  %v3023_v36 = vld [vmem:[%s4467_s2 + $0x94] ss:$8 sps:$4 sm:$0xff]   ;;  %v3027_v38 = vld [vmem:[%s4467_s2 + $0x90] ss:$8 sps:$4 sm:$0xff]  }
  0x1e   : > { %1700 = vmatpush1.bf16.msra.mxu1 %v2991_v14  ;;  %v3022_v35 = vld [vmem:[%s4467_s2 + $0x280] ss:$8 sps:$4 sm:$0xff]   ;;  %v3025_v37 = vld [vmem:[%s4467_s2 + $0x294] ss:$8 sps:$4 sm:$0xff]   ;;  %s285_s25 = sadd.s32 %s2926_s7, %s2925_s9  ;;  %v3028_v39 = vld [vmem:[%s4467_s2 + $0x290] ss:$8 sps:$4 sm:$0xff]  }
  0x1f   : > { %1926 = vmatpush1.bf16.msra.mxu0 %v2992_v15  ;;  %1701 = vmatprep.subr.bf16.mxu1 %v2993_v16  ;;  %v3029_v40 = vld [vmem:[%s4467_s2 + $0xa4] ss:$8 sps:$4 sm:$0xff]   ;;  %s2498_s8 = sshll.u32 %s285_s25, 2  ;;  %v3033_v42 = vld [vmem:[%s4467_s2 + $0xa0] ss:$8 sps:$4 sm:$0xff]   ;;  %p3737_p7 = scmp.lt.s32.totalorder %s2732_s24, 17 }
  0x20   : > { %1927 = vmatprep.subr.bf16.mxu0 %v2995_v17  ;;  %v3031_v41 = vld [vmem:[%s4467_s2 + $0x2a4] ss:$8 sps:$4 sm:$0xff]   ;;  %v3034_v43 = vld [vmem:[%s4467_s2 + $0x2a0] ss:$8 sps:$4 sm:$0xff]   ;;  %s3442_s23 = scalar_lea.vmem %s4465_s0, %s2498_s8  ;;  %v3035_v44 = vld [vmem:[%s4467_s2 + $0xb4] ss:$8 sps:$4 sm:$0xff]  }
  0x21   : > { %vm351_vm2 = vsmask.f32 3328  ;;  %v3037_v45 = vld [vmem:[%s4467_s2 + $0x2b4] ss:$8 sps:$4 sm:$0xff]   ;;  %vm352_vm3 = vsmask.f32 7440 }
  0x22   : > { %1702 = vmatpush1.bf16.msra.mxu1 %v2997_v18  ;;  %v3039_v46 = vld [vmem:[%s4467_s2 + $0xb0] ss:$8 sps:$4 sm:$0xff]   ;;  %v3457_v48 = vld [vmem:[%s3442_s23] sm:$0xf]  ;;  %v3041_v49 = vld [vmem:[%s4467_s2 + $0xc4] ss:$8 sps:$4 sm:$0xff]  }
  0x23   : > { %1928 = vmatpush1.bf16.msra.mxu0 %v2998_v19  ;;  %1703 = vmatprep.subr.bf16.mxu1 %v2999_v20  ;;  %v3040_v47 = vld [vmem:[%s4467_s2 + $0x2b0] ss:$8 sps:$4 sm:$0xff]   ;;  %v3043_v50 = vld [vmem:[%s4467_s2 + $0x2c4] ss:$8 sps:$4 sm:$0xff]   ;;  %v323_v52 = vld [vmem:[%s3442_s23 + $0x8] sm:$0x1] }
  0x24   : > { %1929 = vmatprep.subr.bf16.mxu0 %v3001_v21  ;;  %v3466_v51 = vld [vmem:[%s3442_s23 + $0x4] sm:$0xf]  ;;  %v355_v53 = vshrl.u32 %v3457_v48, 16  ;;  %v358_v54 = vshll.u32 %v3457_v48, 16  ;;  %v374_v57 = vshll.u32 %v323_v52, 16  ;;  %v578_v62 = vrot.slane %v323_v52, 5  ;;  %vm3501_vm5 = vmor %vm351_vm2, %vm352_vm3 }
  0x25   : > { %v364_v55 = vshll.u32 %v3466_v51, 16  ;;  %v368_v56 = vshrl.u32 %v3466_v51, 16  ;;  %v3474_v58 = vld [vmem:[%s3442_s23 + $0xc] sm:$0xf]  ;;  %v575_v61 = vrot.slane %v3466_v51, 5  ;;  %v2506_v8 = vrot.slane %v3457_v48, 9 }
  0x26   : > { %1704 = vmatpush1.bf16.msra.mxu1 %v3003_v22  ;;  %v357_v59 = vrot.slane %v355_v53, 4  ;;  %v360_v60 = vrot.slane %v358_v54, 5  ;;  %v3478_v63 = vld [vmem:[%s3442_s23 + $0x10] sm:$0xf]  ;;  %v3045_v0 = vld [vmem:[%s4467_s2 + $0xc0] ss:$8 sps:$4 sm:$0xff]  }
  0x27   : > { %1930 = vmatpush1.bf16.msra.mxu0 %v3004_v23  ;;  %1705 = vmatprep.subr.bf16.mxu1 %v3005_v24  ;;  %v3046_v1 = vld [vmem:[%s4467_s2 + $0x2c0] ss:$8 sps:$4 sm:$0xff]   ;;  %v366_v2 = vrot.slane %v364_v55, 5  ;;  %v370_v3 = vrot.slane %v368_v56, 4  ;;  %v326_v5 = vld [vmem:[%s3442_s23 + $0x14] sm:$0x1] }
  0x28   : > { %1931 = vmatprep.subr.bf16.mxu0 %v3007_v25  ;;  %v2507_v6 = vrot.slane %v3474_v58, 9  ;;  %v361_v7 = vor.u32 %v360_v60, %v357_v59  ;;  %v577_v9 = vrot.slane %v575_v61, 4  ;;  %v582_v10 = vrot.slane %v3478_v63, 5  ;;  %v3047_v11 = vld [vmem:[%s4467_s2 + $0xd4] ss:$8 sps:$4 sm:$0xff]   ;;  %s4519_s24 = smov (!%p3737_p7, %s2732_s24), 17 }
  0x29   : > { %v371_v13 = vor.u32 %v370_v3, %v366_v2  ;;  %v376_v14 = vrot.slane %v374_v57, 5  ;;  %v585_v15 = vrot.slane %v326_v5, 5  ;;  %v379_v16 = vshrl.u32 %v3474_v58, 16  ;;  %v3049_v17 = vld [vmem:[%s4467_s2 + $0x2d4] ss:$8 sps:$4 sm:$0xff]   ;;  %s2927_s22 = smul.u32 3, %s4519_s24 }
  0x2a   : > { %1706 = vmatpush1.bf16.msra.mxu1 %v3009_v26  ;;  %v362_v18 = vrot.slane %v361_v7, 4  ;;  %v3511_v19 = vsel %vm3488_vm4, %v577_v9, %v578_v62  ;;  %v583_v20 = vsel %vm3488_vm4, %v2507_v6, %v582_v10  ;;  %v584_v21 = vrot.slane %v582_v10, 4  ;;  %v3051_v26 = vld [vmem:[%s4467_s2 + $0xd0] ss:$8 sps:$4 sm:$0xff]   ;;  %v3061_v54 = vld [vmem:[%s4467_s2 + $0x2f4] ss:$8 sps:$4 sm:$0xff]  }
  0x2b   : > { %1932 = vmatpush1.bf16.msra.mxu0 %v3010_v27  ;;  %1707 = vmatprep.subr.bf16.mxu1 %v3011_v28  ;;  %v372_v22 = vrot.slane %v371_v13, 4  ;;  %v381_v23 = vrot.slane %v379_v16, 4  ;;  %v382_v24 = vshll.u32 %v3474_v58, 16  ;;  %v388_v25 = vshll.u32 %v3478_v63, 16  ;;  %v3063_v6 = vld [vmem:[%s4467_s2 + $0xf0] ss:$8 sps:$4 sm:$0xff]   ;;  %s3884_s15 = sadd.s32 %s2927_s22, %s2926_s7 }
  0x2c   : > { %1933 = vmatprep.subr.bf16.mxu0 %v3013_v29  ;;  %v367_v27 = vsel %vm3501_vm5, %v362_v18, %v366_v2  ;;  %v398_v28 = vshll.u32 %v326_v5, 16  ;;  %v586_v29 = vsel %vm3488_vm4, %v584_v21, %v585_v15  ;;  %v3068_v13 = vld [vmem:[%s4467_s2 + $0x104] ss:$8 sps:$4 sm:$0xff]   ;;  %v2516_v18 = vcombine.low %v3457_v48, %v3466_v51  ;;  %v3074_v48 = vld [vmem:[%s4467_s2 + $0x114] ss:$8 sps:$4 sm:$0xff]   ;;  %s2501_s22 = sshll.u32 %s3884_s15, 2 }
  0x2d   : > { %v3588_v15 = vld [vmem:[%s4467_s2 + $0x304] ss:$8 sps:$4 sm:$0xff]   ;;  %s3944_s29 = scalar_lea.vmem %s4466_s1, %s2501_s22  ;;  %p312_p8 = scmp.lt.s32.totalorder %s3362_s28, 15 }
  0x2e   : > { %1708 = vmatpush1.bf16.msra.mxu1 %v3015_v30  ;;  %v392_v30 = vshrl.u32 %v3478_v63, 16  ;;  %v400_v52 = vrot.slane %v398_v28, 5  ;;  %s2504_s25 = sshll.u32 %s4517_s16, 6 }
  0x2f   : > { %1934 = vmatpush1.bf16.msra.mxu0 %v3016_v31  ;;  %1709 = vmatprep.subr.bf16.mxu1 %v3017_v32  ;;  %v3052_v31 = vld [vmem:[%s4467_s2 + $0x2d0] ss:$8 sps:$4 sm:$0xff]   ;;  %v377_v32 = vsel %vm3501_vm5, %v372_v22, %v376_v14  ;;  %v3602_v22 = vld [vmem:[%s4467_s2 + $0x300] ss:$8 sps:$4 sm:$0xff]   ;;  %s4521_s28 = smov (!%p312_p8, %s3362_s28), 15 }
  0x30   : > { %1935 = vmatprep.subr.bf16.mxu0 %v3019_v33  ;;  %v3530_v33 = vcombine.low %v583_v20, %v586_v29  ;;  %v3066_v20 = vld [vmem:[%s4467_s2 + $0x100] ss:$8 sps:$4 sm:$0xff]   ;;  %s2503_s22 = sshll.u32 %s4521_s28, 2 }
  0x31   : > { %s316_s26 = sadd.s32 %s2504_s25, %s2503_s22 }
  0x32   : > { %1710 = vmatpush1.bf16.msra.mxu1 %v3021_v34  ;;  %v384_v34 = vrot.slane %v382_v24, 5  ;;  %1951 = vmatprep.mubr.bf16.mxu0 %v3530_v33 }
  0x33   : > { %1936 = vmatpush1.bf16.msra.mxu0 %v3022_v35  ;;  %1711 = vmatprep.subr.bf16.mxu1 %v3023_v36  ;;  %v390_v35 = vrot.slane %v388_v25, 5  ;;  %v3053_v36 = vld [vmem:[%s4467_s2 + $0xe4] ss:$8 sps:$4 sm:$0xff]   ;;  %v3609_v25 = vld [vmem:[%s3442_s23 + $0x28] sm:$0xf] }
  0x34   : > { %1937 = vmatprep.subr.bf16.mxu0 %v3025_v37  ;;  %v3055_v37 = vld [vmem:[%s4467_s2 + $0x2e4] ss:$8 sps:$4 sm:$0xff]   ;;  %v596_v29 = vrot.slane %v3609_v25, 5 }
  0x36   : > { %1712 = vmatpush1.bf16.msra.mxu1 %v3027_v38  ;;  %v2524_v38 = vcombine.low %v367_v27, %v377_v32 }
  0x37   : > { %1938 = vmatpush1.bf16.msra.mxu0 %v3028_v39  ;;  %1713 = vmatprep.subr.bf16.mxu1 %v3029_v40  ;;  %v394_v39 = vrot.slane %v392_v30, 4  ;;  %v3540_v40 = vsel %vm3488_vm4, %v2506_v8, %v575_v61  ;;  %v3619_v30 = vld [vmem:[%s4467_s2 + $0x314] ss:$8 sps:$4 sm:$0xff]  }
  0x38   : > { %1939 = vmatprep.subr.bf16.mxu0 %v3031_v41  ;;  %v3057_v41 = vld [vmem:[%s4467_s2 + $0xe0] ss:$8 sps:$4 sm:$0xff]   ;;  %1725 = vmatprep.mubr.bf16.mxu1 %v2524_v38  ;;  %v440_v38 = vshrl.u32 %v3609_v25, 16 }
  0x3a   : > { %1714 = vmatpush1.bf16.msra.mxu1 %v3033_v42  ;;  %v3058_v42 = vld [vmem:[%s4467_s2 + $0x2e0] ss:$8 sps:$4 sm:$0xff]  }
  0x3b   : > { %1940 = vmatpush1.bf16.msra.mxu0 %v3034_v43  ;;  %1715 = vmatprep.subr.bf16.mxu1 %v3035_v44  ;;  %v385_v43 = vor.u32 %v384_v34, %v381_v23  ;;  %v3550_v44 = vld [vmem:[%s3442_s23 + $0x18] sm:$0xf]  ;;  %v436_v34 = vshll.u32 %v3609_v25, 16 }
  0x3c   : > { %1941 = vmatprep.subr.bf16.mxu0 %v3037_v45  ;;  %v3553_v45 = vld [vmem:[%s3442_s23 + $0x1c] sm:$0xf]  ;;  %v403_v56 = vshrl.u32 %v3550_v44, 16  ;;  %v406_v57 = vshll.u32 %v3550_v44, 16  ;;  %v2508_v61 = vrot.slane %v3550_v44, 9 }
  0x3d   : > { %v589_v53 = vrot.slane %v3553_v45, 5  ;;  %v386_v55 = vrot.slane %v385_v43, 4  ;;  %v412_v59 = vshll.u32 %v3553_v45, 16  ;;  %v3629_v43 = vrot.slane %v436_v34, 5  ;;  %v3094_v34 = vld [vmem:[%s4467_s2 + $0x144] ss:$8 sps:$4 sm:$0xff]  }
  0x3e   : > { %1716 = vmatpush1.bf16.msra.mxu1 %v3039_v46  ;;  %v329_v46 = vld [vmem:[%s3442_s23 + $0x20] sm:$0x1]  ;;  %v405_v2 = vrot.slane %v403_v56, 4  ;;  %v408_v3 = vrot.slane %v406_v57, 5  ;;  %v3651_v57 = vcombine.low %v3474_v58, %v3478_v63 }
  0x3f   : > { %1942 = vmatpush1.bf16.msra.mxu0 %v3040_v47  ;;  %1717 = vmatprep.subr.bf16.mxu1 %v3041_v49  ;;  %v3059_v49 = vld [vmem:[%s4467_s2 + $0xf4] ss:$8 sps:$4 sm:$0xff]   ;;  %v592_v62 = vrot.slane %v329_v46, 5  ;;  %v3570_v5 = vrot.slane %v412_v59, 5  ;;  %v391_v7 = vsel %vm3501_vm5, %v386_v55, %v390_v35  ;;  %v422_v10 = vshll.u32 %v329_v46, 16 }
  0x40   : > { %1943 = vmatprep.subr.bf16.mxu0 %v3043_v50  ;;  %v395_v50 = vor.u32 %v394_v39, %v390_v35  ;;  %v409_v14 = vor.u32 %v408_v3, %v405_v2  ;;  %v590_v23 = vsel %vm3488_vm4, %v2508_v61, %v589_v53  ;;  %v598_v39 = vrot.slane %v596_v29, 4  ;;  %v3072_v46 = vld [vmem:[%s4467_s2 + $0x110] ss:$8 sps:$4 sm:$0xff]   ;;  %v3081_v55 = vld [vmem:[%s4467_s2 + $0x124] ss:$8 sps:$4 sm:$0xff]  }
  0x41   : > { %v424_v28 = vrot.slane %v422_v10, 5  ;;  %v3656_v59 = vld [vmem:[%s4467_s2 + $0x324] ss:$8 sps:$4 sm:$0xff]   ;;  %v3660_v61 = vld [vmem:[%s3442_s23 + $0x30] sm:$0xf] }
  0x42   : > { %1718 = vmatpush1.bf16.msra.mxu1 %v3045_v0  ;;  %v396_v60 = vrot.slane %v395_v50, 4  ;;  %v416_v0 = vshrl.u32 %v3553_v45, 16  ;;  %v410_v51 = vrot.slane %v409_v14, 4  ;;  %v3671_v58 = vld [vmem:[%s4467_s2 + $0x320] ss:$8 sps:$4 sm:$0xff]  }
  0x43   : > { %1944 = vmatpush1.bf16.msra.mxu0 %v3046_v1  ;;  %1719 = vmatprep.subr.bf16.mxu1 %v3047_v11  ;;  %v591_v1 = vrot.slane %v589_v53, 4  ;;  %v3064_v11 = vld [vmem:[%s4467_s2 + $0x2f0] ss:$8 sps:$4 sm:$0xff]   ;;  %v442_v53 = vrot.slane %v440_v38, 4  ;;  %v3678_v2 = vld [vmem:[%s3442_s23 + $0x34] sm:$0xf] }
  0x44   : > { %1945 = vmatprep.subr.bf16.mxu0 %v3049_v17  ;;  %v401_v8 = vsel %vm3501_vm5, %v396_v60, %v400_v52  ;;  %v418_v9 = vrot.slane %v416_v0, 4  ;;  %v3592_v17 = vld [vmem:[%s3442_s23 + $0x24] sm:$0xf]  ;;  %v415_v50 = vsel %vm3501_vm5, %v410_v51, %v3570_v5  ;;  %v335_v3 = vld [vmem:[%s3442_s23 + $0x38] sm:$0x1]  ;;  %v460_v14 = vshll.u32 %v3678_v2, 16 }
  0x45   : > { %v2525_v21 = vcombine.low %v391_v7, %v401_v8  ;;  %v593_v24 = vsel %vm3488_vm4, %v591_v1, %v592_v62  ;;  %v430_v32 = vshll.u32 %v3592_v17, 16  ;;  %v443_v60 = vor.u32 %v442_v53, %v3629_v43  ;;  %v3079_v62 = vld [vmem:[%s4467_s2 + $0x120] ss:$8 sps:$4 sm:$0xff]   ;;  %v3689_v10 = vld [vmem:[%s4467_s2 + $0x334] ss:$8 sps:$4 sm:$0xff]  }
  0x46   : > { %1720 = vmatpush1.bf16.msra.mxu1 %v3051_v26  ;;  %v419_v16 = vor.u32 %v418_v9, %v3570_v5  ;;  %v332_v26 = vld [vmem:[%s3442_s23 + $0x2c] sm:$0x1]  ;;  %v3625_v35 = vcombine.low %v590_v23, %v593_v24  ;;  %v3087_v5 = vld [vmem:[%s4467_s2 + $0x134] ss:$8 sps:$4 sm:$0xff]   ;;  %v603_v9 = vrot.slane %v3678_v2, 5 }
  0x47   : > { %1946 = vmatpush1.bf16.msra.mxu0 %v3052_v31  ;;  %1721 = vmatprep.subr.bf16.mxu1 %v3053_v36  ;;  %v427_v31 = vshrl.u32 %v3592_v17, 16  ;;  %v2509_v36 = vrot.slane %v3592_v17, 9  ;;  %v444_v7 = vrot.slane %v443_v60, 4  ;;  %v3085_v51 = vld [vmem:[%s4467_s2 + $0x130] ss:$8 sps:$4 sm:$0xff]  }
  0x48   : > { %1947 = vmatprep.subr.bf16.mxu0 %v3055_v37  ;;  %v420_v27 = vrot.slane %v419_v16, 4  ;;  %v599_v37 = vrot.slane %v332_v26, 5  ;;  %v605_v23 = vrot.slane %v603_v9, 4  ;;  %v3729_v38 = vld [vmem:[%s4467_s2 + $0x344] ss:$8 sps:$4 sm:$0xff]  }
  0x49   : > { %v597_v63 = vsel %vm3488_vm4, %v2509_v36, %v596_v29  ;;  %v3100_v53 = vld [vmem:[%s4467_s2 + $0x154] ss:$8 sps:$4 sm:$0xff]  }
  0x4a   : > { %1722 = vmatpush1.bf16.msra.mxu1 %v3057_v41  ;;  %v429_v41 = vrot.slane %v427_v31, 4  ;;  %v425_v52 = vsel %vm3501_vm5, %v420_v27, %v424_v28  ;;  %v600_v1 = vsel %vm3488_vm4, %v598_v39, %v599_v37  ;;  %v3710_v27 = vld [vmem:[%s4467_s2 + $0x330] ss:$8 sps:$4 sm:$0xff]   ;;  %v3724_v37 = vcombine.low %v3550_v44, %v3553_v45  ;;  %v3092_v44 = vld [vmem:[%s4467_s2 + $0x140] ss:$8 sps:$4 sm:$0xff]  }
  0x4b   : > { %1948 = vmatpush1.bf16.msra.mxu0 %v3058_v42  ;;  %1723 = vmatprep.subr.bf16.mxu1 %v3059_v49  ;;  %v432_v42 = vrot.slane %v430_v32, 5  ;;  %v3637_v49 = vld [vmem:[%s4467_s2 + $0x310] ss:$8 sps:$4 sm:$0xff]   ;;  %v3666_v0 = vcombine.low %v415_v50, %v425_v52  ;;  %v3695_v16 = vcombine.low %v597_v63, %v600_v1  ;;  %v470_v32 = vshll.u32 %v335_v3, 16  ;;  %v3758_v50 = vld [vmem:[%s3442_s23 + $0x40] sm:$0xf] }
  0x4c   : > { %1949 = vmatprep.subr.bf16.mxu0 %v3061_v54  ;;  %v446_v54 = vshll.u32 %v332_v26, 16  ;;  %v338_v52 = vld [vmem:[%s3442_s23 + $0x44] sm:$0x1]  ;;  %v610_v60 = vrot.slane %v3758_v50, 5 }
  0x4d   : > { %v433_v56 = vor.u32 %v432_v42, %v429_v41  ;;  %v3733_v41 = vld [vmem:[%s3442_s23 + $0x3c] sm:$0xf]  ;;  %v3751_v42 = vld [vmem:[%s4467_s2 + $0x340] ss:$8 sps:$4 sm:$0xff]  }
  0x4e   : > { %1724 = vmatpush1.bf16.msra.mxu1 %v3063_v6  ;;  %v448_v8 = vrot.slane %v446_v54, 5  ;;  %v475_v63 = vshrl.u32 %v3733_v41, 16  ;;  %v478_v1 = vshll.u32 %v3733_v41, 16 }
  0x4f   : > { %1950 = vmatpush1.bf16.msra.mxu0 %v3064_v11  ;;  %1806 = vmatprep.subr.bf16.mxu1 %v3068_v13  ;;  %v434_v6 = vrot.slane %v433_v56, 4  ;;  %v451_v11 = vshrl.u32 %v3660_v61, 16  ;;  %v454_v13 = vshll.u32 %v3660_v61, 16  ;;  %v472_v56 = vrot.slane %v470_v32, 5  ;;  %v3818_v32 = vld [vmem:[%s3442_s23 + $0x48] sm:$0xf] }
  0x50   : > { %2032 = vmatprep.subr.bf16.mxu0 %v3588_v15  ;;  %v449_v29 = vsel %vm3501_vm5, %v444_v7, %v448_v8  ;;  %v613_v7 = vrot.slane %v338_v52, 5  ;;  %v488_v8 = vshrl.u32 %v3758_v50, 16 }
  0x51   : > { %1726 = vmatmul.mubr.bf16.vlgmr.msra.gmra.mrb[0].mxu1 %v2516_v18  ;;  %v2510_v18 = vrot.slane %v3660_v61, 9  ;;  %v453_v24 = vrot.slane %v451_v11, 4  ;;  %v456_v26 = vrot.slane %v454_v13, 5  ;;  %v439_v28 = vsel %vm3501_vm5, %v434_v6, %v3629_v43 }
  0x52   : > { %1952 = vmatmul.mubr.bf16.vlgmr.msra.gmra.mrb[0].mxu0 %v2525_v21  ;;  %1807 = vmatpush1.bf16.msra.mxu1 %v3066_v20  ;;  %v606_v20 = vrot.slane %v335_v3, 5  ;;  %v3746_v45 = vcombine.low %v439_v28, %v449_v29  ;;  %v484_v3 = vshll.u32 %v3758_v50, 16  ;;  %v2511_v6 = vrot.slane %v3733_v41, 9  ;;  %v3814_v29 = vld [vmem:[%s4467_s2 + $0x364] ss:$8 sps:$4 sm:$0xff]  }
  0x53   : > { %2033 = vmatpush1.bf16.msra.mxu0 %v3602_v22  ;;  %1808 = vmatprep.subr.bf16.mxu1 %v3074_v48  ;;  %v3699_v48 = vrot.slane %v460_v14, 5  ;;  %v457_v36 = vor.u32 %v456_v26, %v453_v24  ;;  %v604_v43 = vsel %vm3488_vm4, %v2510_v18, %v603_v9  ;;  %v612_v9 = vrot.slane %v610_v60, 4  ;;  %v3098_v18 = vld [vmem:[%s4467_s2 + $0x150] ss:$8 sps:$4 sm:$0xff]  }
  0x54   : > { %2034 = vmatprep.subr.bf16.mxu0 %v3619_v30  ;;  %1735 = vmatprep.mubr.bf16.mxu1 %v2525_v21  ;;  %v464_v21 = vshrl.u32 %v3678_v2, 16  ;;  %v477_v11 = vrot.slane %v475_v63, 4  ;;  %v480_v13 = vrot.slane %v478_v1, 5  ;;  %v3779_v14 = vrot.slane %v484_v3, 5 }
  0x55   : > { %1961 = vmatprep.mubr.bf16.mxu0 %v3625_v35  ;;  %v458_v54 = vrot.slane %v457_v36, 4  ;;  %v490_v24 = vrot.slane %v488_v8, 4  ;;  %v494_v26 = vshll.u32 %v338_v52, 16  ;;  %v611_v36 = vsel %vm3488_vm4, %v2511_v6, %v610_v60 }
  0x56   : > { %1809 = vmatpush1.bf16.msra.mxu1 %v3072_v46  ;;  %v466_v31 = vrot.slane %v464_v21, 4  ;;  %v607_v46 = vsel %vm3488_vm4, %v605_v23, %v606_v20  ;;  %v3795_v20 = vld [vmem:[%s4467_s2 + $0x350] ss:$8 sps:$4 sm:$0xff]   ;;  %v481_v28 = vor.u32 %v480_v13, %v477_v11  ;;  %v499_v60 = vshrl.u32 %v3818_v32, 16 }
  0x57   : > { %2035 = vmatpush1.bf16.msra.mxu0 %v3637_v49  ;;  %1810 = vmatprep.subr.bf16.mxu1 %v3081_v55  ;;  %v463_v21 = vsel %vm3501_vm5, %v458_v54, %v3699_v48  ;;  %v496_v54 = vrot.slane %v494_v26, 5  ;;  %v502_v63 = vshll.u32 %v3818_v32, 16  ;;  %v2512_v6 = vrot.slane %v3818_v32, 9 }
  0x58   : > { %2036 = vmatprep.subr.bf16.mxu0 %v3656_v59  ;;  %v467_v39 = vor.u32 %v466_v31, %v3699_v48  ;;  %v3809_v48 = vcombine.low %v3592_v17, %v3609_v25  ;;  %v491_v31 = vor.u32 %v490_v24, %v3779_v14  ;;  %v3830_v25 = vld [vmem:[%s4467_s2 + $0x360] ss:$8 sps:$4 sm:$0xff]   ;;  %v482_v52 = vrot.slane %v481_v28, 4 }
  0x59   : > { %1736 = vmatmul.mubr.bf16.gmra.mrb[4].mxu1 %v3651_v57  ;;  %v501_v11 = vrot.slane %v499_v60, 4  ;;  %v504_v13 = vrot.slane %v502_v63, 5  ;;  %v344_v60 = vld [vmem:[%s3442_s23 + $0x5c] sm:$0x1] }
  0x5a   : > { %1962 = vmatmul.mubr.bf16.gmra.mrb[4].mxu0 %v3666_v0  ;;  %1811 = vmatpush1.bf16.msra.mxu1 %v3079_v62  ;;  %v468_v55 = vrot.slane %v467_v39, 4  ;;  %v3769_v62 = vld [vmem:[%s4467_s2 + $0x354] ss:$8 sps:$4 sm:$0xff]   ;;  %v614_v39 = vsel %vm3488_vm4, %v612_v9, %v613_v7  ;;  %v487_v24 = vsel %vm3501_vm5, %v482_v52, %v3779_v14  ;;  %v3889_v14 = vcombine.low %v3660_v61, %v3678_v2  ;;  %v3910_v2 = vld [vmem:[%s4467_s2 + $0x380] ss:$8 sps:$4 sm:$0xff]  }
  0x5b   : > { %2037 = vmatpush1.bf16.msra.mxu0 %v3671_v58  ;;  %1812 = vmatprep.subr.bf16.mxu1 %v3087_v5  ;;  %v3775_v5 = vcombine.low %v604_v43, %v607_v46  ;;  %v341_v43 = vld [vmem:[%s3442_s23 + $0x50] sm:$0x1]  ;;  %v3113_v46 = vld [vmem:[%s4467_s2 + $0x174] ss:$8 sps:$4 sm:$0xff]   ;;  %v3855_v3 = vcombine.low %v611_v36, %v614_v39  ;;  %v505_v36 = vor.u32 %v504_v13, %v501_v11 }
  0x5c   : > { %2038 = vmatprep.subr.bf16.mxu0 %v3689_v10  ;;  %1745 = vmatprep.mubr.bf16.mxu1 %v3666_v0  ;;  %v473_v23 = vsel %vm3501_vm5, %v468_v55, %v472_v56  ;;  %v3849_v56 = vld [vmem:[%s4467_s2 + $0x374] ss:$8 sps:$4 sm:$0xff]   ;;  %v620_v7 = vrot.slane %v341_v43, 5  ;;  %v518_v28 = vshll.u32 %v341_v43, 16  ;;  %4490 = vst [vmem:[#allocation5_spill] sm:$0xff] %v3910_v2 }
  0x5d   : > { %1971 = vmatprep.mubr.bf16.mxu0 %v3695_v16  ;;  %4487 = vst [vmem:[#allocation2_spill] sm:$0xff] %v3775_v5  ;;  %v3825_v17 = vcombine.low %v463_v21, %v473_v23  ;;  %4488 = vst [vmem:[#allocation3_spill] sm:$0xff] %v3855_v3  ;;  %v3111_v21 = vld [vmem:[%s4467_s2 + $0x170] ss:$8 sps:$4 sm:$0xff]   ;;  %v3898_v43 = vld [vmem:[%s3442_s23 + $0x54] sm:$0xf] }
  0x5e   : > { %1813 = vmatpush1.bf16.msra.mxu1 %v3085_v51  ;;  %v3107_v51 = vld [vmem:[%s4467_s2 + $0x164] ss:$8 sps:$4 sm:$0xff]   ;;  %v3869_v23 = vld [vmem:[%s4467_s2 + $0x370] ss:$8 sps:$4 sm:$0xff]   ;;  %v3126_v63 = vld [vmem:[%s4467_s2 + $0x194] ss:$8 sps:$4 sm:$0xff]  }
  0x5f   : > { %2039 = vmatpush1.bf16.msra.mxu0 %v3710_v27  ;;  %1814 = vmatprep.subr.bf16.mxu1 %v3094_v34  ;;  %v3105_v34 = vld [vmem:[%s4467_s2 + $0x160] ss:$8 sps:$4 sm:$0xff]   ;;  %v520_v11 = vrot.slane %v518_v28, 5 }
  0x60   : > { %2040 = vmatprep.subr.bf16.mxu0 %v3729_v38 }
  0x61   : > { %1746 = vmatmul.mubr.bf16.gmra.mrb[8].mxu1 %v3724_v37 }
  0x62   : > { %1972 = vmatmul.mubr.bf16.gmra.mrb[8].mxu0 %v3746_v45  ;;  %1815 = vmatpush1.bf16.msra.mxu1 %v3092_v44  ;;  %v3837_v44 = vld [vmem:[%s3442_s23 + $0x4c] sm:$0xf] }
  0x63   : > { %2041 = vmatpush1.bf16.msra.mxu0 %v3751_v42  ;;  %1816 = vmatprep.subr.bf16.mxu1 %v3100_v53  ;;  %v492_v53 = vrot.slane %v491_v31, 4  ;;  %v617_v55 = vrot.slane %v3837_v44, 5  ;;  %v508_v1 = vshll.u32 %v3837_v44, 16  ;;  %v512_v8 = vshrl.u32 %v3837_v44, 16  ;;  %v3120_v31 = vld [vmem:[%s4467_s2 + $0x184] ss:$8 sps:$4 sm:$0xff]  }
  0x64   : > { %2042 = vmatprep.subr.bf16.mxu0 %v3769_v62  ;;  %1755 = vmatprep.mubr.bf16.mxu1 %v3746_v45 }
  0x65   : > { %1981 = vmatprep.mubr.bf16.mxu0 %v3775_v5  ;;  %v619_v9 = vrot.slane %v617_v55, 4  ;;  %v497_v26 = vsel %vm3501_vm5, %v492_v53, %v496_v54  ;;  %v618_v52 = vsel %vm3488_vm4, %v2512_v6, %v617_v55  ;;  %v3917_v54 = vld [vmem:[%s3442_s23 + $0x58] sm:$0xf]  ;;  %v3929_v55 = vld [vmem:[%s4467_s2 + $0x394] ss:$8 sps:$4 sm:$0xff]   ;;  %v523_v6 = vshrl.u32 %v3898_v43, 16 }
  0x66   : > { %1817 = vmatpush1.bf16.msra.mxu1 %v3098_v18  ;;  %v3859_v18 = vrot.slane %v508_v1, 5  ;;  %v3905_v61 = vcombine.low %v487_v24, %v497_v26  ;;  %v506_v1 = vrot.slane %v505_v36, 4  ;;  %v624_v13 = vrot.slane %v3917_v54, 5  ;;  %4491 = vst [vmem:[#allocation6_spill] sm:$0xff] %v3929_v55  ;;  %s2505_s23 = sshll.u32 %s316_s26, 2 }
  0x67   : > { %2043 = vmatpush1.bf16.msra.mxu0 %v3795_v20  ;;  %1818 = vmatprep.subr.bf16.mxu1 %v3107_v51  ;;  %v514_v51 = vrot.slane %v512_v8, 4  ;;  %v621_v53 = vsel %vm3488_vm4, %v619_v9, %v620_v7  ;;  %v526_v7 = vshll.u32 %v3898_v43, 16  ;;  %v532_v9 = vshll.u32 %v3917_v54, 16  ;;  %s4334_s27 = scalar_lea.vmem %s4469_s4, %s2505_s23 }
  0x68   : > { %2044 = vmatprep.subr.bf16.mxu0 %v3814_v29  ;;  %v3935_v24 = vcombine.low %v618_v52, %v621_v53  ;;  %v627_v26 = vrot.slane %v344_v60, 5  ;;  %v626_v28 = vrot.slane %v624_v13, 4  ;;  %v525_v36 = vrot.slane %v523_v6, 4  ;;  %v3954_v52 = vld [vmem:[%s4467_s2 + $0x390] ss:$8 sps:$4 sm:$0xff]  }
  0x69   : > { %1756 = vmatmul.mubr.bf16.gmra.mrb[12].mxu1 %v3809_v48  ;;  %v515_v39 = vor.u32 %v514_v51, %v3859_v18  ;;  %v536_v51 = vshrl.u32 %v3917_v54, 16  ;;  %v3939_v47 = vrot.slane %v532_v9, 5  ;;  %4493 = vst [vmem:[#allocation8_spill] sm:$0xff] %v3954_v52  ;;  %v511_v53 = vsel %vm3501_vm5, %v506_v1, %v3859_v18  ;;  %v345_v1 = vld [vmem:[%s3944_s29] sm:$0xf] }
  0x6a   : > { %1982 = vmatmul.mubr.bf16.gmra.mrb[12].mxu0 %v3825_v17  ;;  %1819 = vmatpush1.bf16.msra.mxu1 %v3105_v34  ;;  %v3894_v34 = vld [vmem:[%s4467_s2 + $0x384] ss:$8 sps:$4 sm:$0xff]   ;;  %4492 = vst [vmem:[#allocation7_spill] sm:$0xff] %v3935_v24  ;;  %v542_v9 = vshll.u32 %v344_v60, 16  ;;  %v3968_v18 = vcombine.low %v3733_v41, %v3758_v50  ;;  %v3987_v41 = vld [vmem:[%s4467_s2 + $0x3a0] ss:$8 sps:$4 sm:$0xff]  }
  0x6b   : > { %2045 = vmatpush1.bf16.msra.mxu0 %v3830_v25  ;;  %1820 = vmatprep.subr.bf16.mxu1 %v3113_v46  ;;  %4489 = vst [vmem:[#allocation4_spill] sm:$0xff] %v3894_v34  ;;  %v3118_v46 = vld [vmem:[%s4467_s2 + $0x180] ss:$8 sps:$4 sm:$0xff]   ;;  %v516_v8 = vrot.slane %v515_v39, 4  ;;  %v528_v39 = vrot.slane %v526_v7, 5  ;;  %v538_v7 = vrot.slane %v536_v51, 4 }
  0x6c   : > { %2046 = vmatprep.subr.bf16.mxu0 %v3849_v56  ;;  %1765 = vmatprep.mubr.bf16.mxu1 %v3825_v17  ;;  %v346_v51 = vld [vmem:[%s3944_s29 + $0x4] sm:$0xf] }
  0x6d   : > { %1991 = vmatprep.mubr.bf16.mxu0 %v3855_v3  ;;  %v521_v6 = vsel %vm3501_vm5, %v516_v8, %v520_v11  ;;  %v3133_v3 = vld [vmem:[%s4467_s2 + $0x1a4] ss:$8 sps:$4 sm:$0xff]   ;;  %v529_v5 = vor.u32 %v528_v39, %v525_v36  ;;  %v539_v60 = vor.u32 %v538_v7, %v3939_v47  ;;  %v628_v11 = vsel %vm3488_vm4, %v626_v28, %v627_v26  ;;  %v3139_v36 = vld [vmem:[%s4467_s2 + $0x1b4] ss:$8 sps:$4 sm:$0xff]   ;;  %v3137_v28 = vld [vmem:[%s4467_s2 + $0x1b0] ss:$8 sps:$4 sm:$0xff]  }
  0x6e   : > { %1821 = vmatpush1.bf16.msra.mxu1 %v3111_v21  ;;  %v2513_v21 = vrot.slane %v3898_v43, 9  ;;  %v3982_v8 = vcombine.low %v511_v53, %v521_v6  ;;  %v544_v7 = vrot.slane %v542_v9, 5  ;;  %v347_v53 = vld [vmem:[%s3944_s29 + $0x8] sm:$0x1]  ;;  %v658_v6 = vrot.slane %v346_v51, 5 }
  0x6f   : > { %2047 = vmatpush1.bf16.msra.mxu0 %v3869_v23  ;;  %1822 = vmatprep.subr.bf16.mxu1 %v3120_v31  ;;  %v3124_v31 = vld [vmem:[%s4467_s2 + $0x190] ss:$8 sps:$4 sm:$0xff]   ;;  %v530_v39 = vrot.slane %v529_v5, 4  ;;  %v4005_v26 = vld [vmem:[%s4467_s2 + $0x3b4] ss:$8 sps:$4 sm:$0xff]   ;;  %v643_v5 = vshrl.u32 %v346_v51, 16 }
  0x70   : > { %2048 = vmatprep.subr.bf16.mxu0 %v3894_v34  ;;  %v625_v50 = vsel %vm3488_vm4, %v2513_v21, %v624_v13  ;;  %v633_v13 = vshll.u32 %v345_v1, 16  ;;  %v639_v21 = vshll.u32 %v346_v51, 16 }
  0x71   : > { %1766 = vmatmul.mubr.bf16.gmra.mrb[16].mxu1 %v3889_v14  ;;  %v645_v34 = vrot.slane %v643_v5, 4 }
  0x72   : > { %1992 = vmatmul.mubr.bf16.gmra.mrb[16].mxu0 %v3905_v61  ;;  %1823 = vmatpush1.bf16.msra.mxu1 %v3118_v46  ;;  %v3973_v46 = vld [vmem:[%s4467_s2 + $0x3a4] ss:$8 sps:$4 sm:$0xff]  }
  0x73   : > { %2049 = vmatpush1.bf16.msra.mxu0 %v3910_v2  ;;  %1824 = vmatprep.subr.bf16.mxu1 %v3126_v63  ;;  %4494 = vst [vmem:[#allocation9_spill] sm:$0xff] %v3973_v46  ;;  %v3131_v63 = vld [vmem:[%s4467_s2 + $0x1a0] ss:$8 sps:$4 sm:$0xff]   ;;  %v630_v2 = vshrl.u32 %v345_v1, 16 }
  0x74   : > { %2050 = vmatprep.subr.bf16.mxu0 %v3929_v55  ;;  %1775 = vmatprep.mubr.bf16.mxu1 %v3905_v61  ;;  %v540_v55 = vrot.slane %v539_v60, 4  ;;  %v635_v60 = vrot.slane %v633_v13, 5 }
  0x75   : > { %2001 = vmatprep.mubr.bf16.mxu0 %v3935_v24  ;;  %v3998_v24 = vcombine.low %v345_v1, %v346_v51  ;;  %v632_v9 = vrot.slane %v630_v2, 4  ;;  %v660_v51 = vrot.slane %v658_v6, 4  ;;  %v3146_v2 = vld [vmem:[%s4467_s2 + $0x1c4] ss:$8 sps:$4 sm:$0xff]  }
  0x76   : > { %1825 = vmatpush1.bf16.msra.mxu1 %v3124_v31  ;;  %v4010_v31 = vcombine.low %v625_v50, %v628_v11  ;;  %v535_v50 = vsel %vm3501_vm5, %v530_v39, %v3939_v47  ;;  %v545_v11 = vsel %vm3501_vm5, %v540_v55, %v544_v7  ;;  %v3144_v47 = vld [vmem:[%s4467_s2 + $0x1c0] ss:$8 sps:$4 sm:$0xff]   ;;  %v4041_v55 = vcombine.low %v3818_v32, %v3837_v44 }
  0x77   : > { %4495 = vst [vmem:[#allocation10_spill] sm:$0xff] %v3998_v24  ;;  %2051 = vmatpush1.bf16.msra.mxu0 %v3954_v52  ;;  %1826 = vmatprep.subr.bf16.mxu1 %v3133_v3  ;;  %v641_v24 = vrot.slane %v639_v21, 5  ;;  %v4017_v3 = vld [vmem:[%s4467_s2 + $0x3b0] ss:$8 sps:$4 sm:$0xff]   ;;  %v661_v52 = vrot.slane %v347_v53, 5  ;;  %v636_v13 = vor.u32 %v635_v60, %v632_v9  ;;  %v649_v21 = vshll.u32 %v347_v53, 16 }
  0x78   : > { %2052 = vmatprep.subr.bf16.mxu0 %v3973_v46  ;;  %v2514_v46 = vrot.slane %v345_v1, 9  ;;  %v4032_v1 = vld [vmem:[%s4467_s2 + $0x3c4] ss:$8 sps:$4 sm:$0xff]   ;;  %v4048_v39 = vld [vmem:[%s4467_s2 + $0x3c0] ss:$8 sps:$4 sm:$0xff]  }
  0x79   : > { %1776 = vmatmul.mubr.bf16.gmra.mrb[20].mxu1 %v3968_v18  ;;  %v662_v53 = vsel %vm3488_vm4, %v660_v51, %v661_v52  ;;  %v637_v32 = vrot.slane %v636_v13, 4  ;;  %v651_v5 = vrot.slane %v649_v21, 5  ;;  %v4062_v9 = vld [vmem:[%s4467_s2 + $0x3d4] ss:$8 sps:$4 sm:$0xff]   ;;  %v3150_v52 = vld [vmem:[%s4467_s2 + $0x1d0] ss:$8 sps:$4 sm:$0xff]  }
  0x7a   : > { %2002 = vmatmul.mubr.bf16.gmra.mrb[20].mxu0 %v3982_v8  ;;  %1827 = vmatpush1.bf16.msra.mxu1 %v3131_v63  ;;  %v646_v63 = vor.u32 %v645_v34, %v641_v24  ;;  %v3152_v34 = vld [vmem:[%s4467_s2 + $0x1d4] ss:$8 sps:$4 sm:$0xff]   ;;  %v659_v7 = vsel %vm3488_vm4, %v2514_v46, %v658_v6  ;;  %v4074_v46 = vld [vmem:[%s4467_s2 + $0x3d0] ss:$8 sps:$4 sm:$0xff]   ;;  %v3159_v6 = vld [vmem:[%s4467_s2 + $0x1e4] ss:$8 sps:$4 sm:$0xff]  }
  0x7b   : > { %2053 = vmatpush1.bf16.msra.mxu0 %v3987_v41  ;;  %1828 = vmatprep.subr.bf16.mxu1 %v3139_v36  ;;  %v4043_v36 = vcombine.low %v535_v50, %v545_v11  ;;  %v4064_v60 = vcombine.low %v659_v7, %v662_v53  ;;  %v4094_v50 = vcombine.low %v3898_v43, %v3917_v54  ;;  %v3157_v11 = vld [vmem:[%s4467_s2 + $0x1e0] ss:$8 sps:$4 sm:$0xff]   ;;  %v3165_v43 = vld [vmem:[%s4467_s2 + $0x1f4] ss:$8 sps:$4 sm:$0xff]   ;;  %v3163_v21 = vld [vmem:[%s4467_s2 + $0x1f0] ss:$8 sps:$4 sm:$0xff]  }
  0x7c   : > { %2054 = vmatprep.subr.bf16.mxu0 %v4005_v26  ;;  %1785 = vmatprep.mubr.bf16.mxu1 %v3982_v8  ;;  %v647_v44 = vrot.slane %v646_v63, 4  ;;  %v4105_v13 = vld [vmem:[%s4467_s2 + $0x3e0] ss:$8 sps:$4 sm:$0xff]   ;;  %v4114_v54 = vld [vmem:[%s4467_s2 + $0x3f4] ss:$8 sps:$4 sm:$0xff]   ;;  %v4496_v53 = vcombine.low %v3540_v40, %v3511_v19 }
  0x7d   : > { %2011 = vmatprep.mubr.bf16.mxu0 %v4010_v31  ;;  %v4125_v63 = vld [vmem:[%s4467_s2 + $0x3f0] ss:$8 sps:$4 sm:$0xff]   ;;  %v3174_v7 = vld [vmem:[%s4467_s2 + $0x414] ss:$8 sps:$4 sm:$0xff]   ;;  %v3175_v19 = vld [vmem:[%s4467_s2 + $0x420] ss:$8 sps:$4 sm:$0xff]  }
  0x7e   : > { %1829 = vmatpush1.bf16.msra.mxu1 %v3137_v28  ;;  %v642_v28 = vsel %vm3501_vm5, %v637_v32, %v641_v24  ;;  %v652_v51 = vsel %vm3501_vm5, %v647_v44, %v651_v5  ;;  %v3180_v40 = vld [vmem:[%s4467_s2 + $0x434] ss:$8 sps:$4 sm:$0xff]  }
  0x7f   : > { %2055 = vmatpush1.bf16.msra.mxu0 %v4017_v3  ;;  %1830 = vmatprep.subr.bf16.mxu1 %v3146_v2  ;;  %v4088_v2 = vld [vmem:[%s4467_s2 + $0x3e4] ss:$8 sps:$4 sm:$0xff]   ;;  %v4096_v24 = vcombine.low %v642_v28, %v652_v51 }
  0x80   : > { %2056 = vmatprep.subr.bf16.mxu0 %v4032_v1 }
  0x81   : > { %1786 = vmatmul.mubr.bf16.gmra.mrb[24].mxu1 %v4041_v55 }
  0x82   : > { %2012 = vmatmul.mubr.bf16.gmra.mrb[24].mxu0 %v4043_v36  ;;  %1831 = vmatpush1.bf16.msra.mxu1 %v3144_v47  ;;  %v3171_v47 = vld [vmem:[%s4467_s2 + $0x404] ss:$8 sps:$4 sm:$0xff]  }
  0x83   : > { %2057 = vmatpush1.bf16.msra.mxu0 %v4048_v39  ;;  %1832 = vmatprep.subr.bf16.mxu1 %v3152_v34  ;;  %v3169_v34 = vld [vmem:[%s4467_s2 + $0x400] ss:$8 sps:$4 sm:$0xff]  }
  0x84   : > { %2058 = vmatprep.subr.bf16.mxu0 %v4062_v9  ;;  %1795 = vmatprep.mubr.bf16.mxu1 %v4043_v36 }
  0x85   : > { %2021 = vmatprep.mubr.bf16.mxu0 %v4064_v60 }
  0x86   : > { %1833 = vmatpush1.bf16.msra.mxu1 %v3150_v52 }
  0x87   : > { %2059 = vmatpush1.bf16.msra.mxu0 %v4074_v46  ;;  %1834 = vmatprep.subr.bf16.mxu1 %v3159_v6 }
  0x88   : > { %2060 = vmatprep.subr.bf16.mxu0 %v4088_v2 }
  0x89   : > { %1796 = vmatmul.mubr.bf16.gmra.mrb[28].mxu1 %v4094_v50 }
  0x8a   : > { %2022 = vmatmul.mubr.bf16.gmra.mrb[28].mxu0 %v4096_v24  ;;  %1835 = vmatpush1.bf16.msra.mxu1 %v3157_v11 }
  0x8b   : > { %2061 = vmatpush1.bf16.msra.mxu0 %v4105_v13  ;;  %1836 = vmatprep.subr.bf16.mxu1 %v3165_v43 }
  0x8c   : > { %2062 = vmatprep.subr.bf16.mxu0 %v4114_v54  ;;  %1838 = vmatprep.mubr.bf16.mxu1 %v3651_v57  ;;  %v3172_v57 = vld [vmem:[%s4467_s2 + $0x410] ss:$8 sps:$4 sm:$0xff]  }
  0x8d   : > { %2064 = vmatprep.mubr.bf16.mxu0 %v3666_v0  ;;  %v3189_v0 = vld [vmem:[%s4467_s2 + $0x464] ss:$8 sps:$4 sm:$0xff]  }
  0x8e   : > { %1837 = vmatpush1.bf16.msra.mxu1 %v3163_v21 }
  0x8f   : > { %2063 = vmatpush1.bf16.msra.mxu0 %v4125_v63  ;;  %2733 = vmatprep.subr.bf16.mxu1 %v3588_v15  ;;  %v3177_v15 = vld [vmem:[%s4467_s2 + $0x424] ss:$8 sps:$4 sm:$0xff]  }
  0x90   : > { %2145 = vmatprep.subr.bf16.mxu0 %v3171_v47 }
  0x91   : > { %1839 = vmatmul.mubr.bf16.vlgmr.msra.gmra.mrb[0].mxu1 %v4496_v53 }
  0x92   : > { %2065 = vmatmul.mubr.bf16.vlgmr.msra.gmra.mrb[0].mxu0 %v3724_v37  ;;  %2749 = vmatpush1.bf16.msra.mxu1 %v3602_v22  ;;  %v3178_v22 = vld [vmem:[%s4467_s2 + $0x430] ss:$8 sps:$4 sm:$0xff]  }
  0x93   : > { %2146 = vmatpush1.bf16.msra.mxu0 %v3169_v34  ;;  %2734 = vmatprep.subr.bf16.mxu1 %v3619_v30  ;;  %v3183_v30 = vld [vmem:[%s4467_s2 + $0x444] ss:$8 sps:$4 sm:$0xff]  }
  0x94   : > { %2147 = vmatprep.subr.bf16.mxu0 %v3174_v7  ;;  %1848 = vmatprep.mubr.bf16.mxu1 %v3724_v37  ;;  %v3235_v37 = vmov 0  }
  0x95   : > { %2074 = vmatprep.mubr.bf16.mxu0 %v3746_v45  ;;  %v4498_v45 = vld [vmem:[#allocation2_spill] sm:$0xff] }
  0x96   : > { %2750 = vmatpush1.bf16.msra.mxu1 %v3637_v49  ;;  %v3186_v49 = vld [vmem:[%s4467_s2 + $0x454] ss:$8 sps:$4 sm:$0xff]  }
  0x97   : > { %2148 = vmatpush1.bf16.msra.mxu0 %v3172_v57  ;;  %2735 = vmatprep.subr.bf16.mxu1 %v3656_v59  ;;  %v3184_v59 = vld [vmem:[%s4467_s2 + $0x450] ss:$8 sps:$4 sm:$0xff]  }
  0x98   : > { %2149 = vmatprep.subr.bf16.mxu0 %v3177_v15 }
  0x99   : > { %1849 = vmatmul.mubr.bf16.gmra.mrb[4].mxu1 %v3530_v33  ;;  %v3181_v33 = vld [vmem:[%s4467_s2 + $0x440] ss:$8 sps:$4 sm:$0xff]  }
  0x9a   : > { %2075 = vmatmul.mubr.bf16.gmra.mrb[4].mxu0 %v3809_v48  ;;  %2751 = vmatpush1.bf16.msra.mxu1 %v3671_v58  ;;  %v3187_v58 = vld [vmem:[%s4467_s2 + $0x460] ss:$8 sps:$4 sm:$0xff]  }
  0x9b   : > { %2150 = vmatpush1.bf16.msra.mxu0 %v3175_v19  ;;  %2736 = vmatprep.subr.bf16.mxu1 %v3689_v10  ;;  %v3192_v10 = vld [vmem:[%s4467_s2 + $0x474] ss:$8 sps:$4 sm:$0xff]  }
  0x9c   : > { %2151 = vmatprep.subr.bf16.mxu0 %v3180_v40  ;;  %1858 = vmatprep.mubr.bf16.mxu1 %v3809_v48  ;;  %v4502_v48 = vld [vmem:[#allocation9_spill] sm:$0xff] }
  0x9d   : > { %2084 = vmatprep.mubr.bf16.mxu0 %v3825_v17  ;;  %v348_v17 = vld [vmem:[%s3944_s29 + $0xc] sm:$0xf] }
  0x9e   : > { %2752 = vmatpush1.bf16.msra.mxu1 %v3710_v27  ;;  %v3190_v27 = vld [vmem:[%s4467_s2 + $0x470] ss:$8 sps:$4 sm:$0xff]   ;;  %v2515_v6 = vrot.slane %v348_v17, 9 }
  0x9f   : > { %2152 = vmatpush1.bf16.msra.mxu0 %v3178_v22  ;;  %2737 = vmatprep.subr.bf16.mxu1 %v3729_v38  ;;  %v4497_v38 = vld [vmem:[#allocation4_spill] sm:$0xff] }
  0xa0   : > { %2153 = vmatprep.subr.bf16.mxu0 %v3183_v30 }
  0xa1   : > { %1859 = vmatmul.mubr.bf16.gmra.mrb[8].mxu1 %v3625_v35 }
  0xa2   : > { %2085 = vmatmul.mubr.bf16.gmra.mrb[8].mxu0 %v3889_v14  ;;  %2753 = vmatpush1.bf16.msra.mxu1 %v3751_v42  ;;  %v4499_v42 = vld [vmem:[#allocation5_spill] sm:$0xff] }
  0xa3   : > { %2154 = vmatpush1.bf16.msra.mxu0 %v3181_v33  ;;  %2738 = vmatprep.subr.bf16.mxu1 %v3769_v62  ;;  %v4500_v62 = vld [vmem:[#allocation6_spill] sm:$0xff] }
  0xa4   : > { %2155 = vmatprep.subr.bf16.mxu0 %v3186_v49  ;;  %1868 = vmatprep.mubr.bf16.mxu1 %v3889_v14 }
  0xa5   : > { %2094 = vmatprep.mubr.bf16.mxu0 %v3905_v61 }
  0xa6   : > { %2754 = vmatpush1.bf16.msra.mxu1 %v3795_v20  ;;  %v4501_v20 = vld [vmem:[#allocation8_spill] sm:$0xff] }
  0xa7   : > { %2156 = vmatpush1.bf16.msra.mxu0 %v3184_v59  ;;  %2739 = vmatprep.subr.bf16.mxu1 %v3814_v29  ;;  %v4503_v29 = vld [vmem:[#allocation3_spill] sm:$0xff] }
  0xa8   : > { %2157 = vmatprep.subr.bf16.mxu0 %v3189_v0 }
  0xa9   : > { %1869 = vmatmul.mubr.bf16.gmra.mrb[12].mxu1 %v3695_v16 }
  0xaa   : > { %2095 = vmatmul.mubr.bf16.gmra.mrb[12].mxu0 %v3968_v18  ;;  %2755 = vmatpush1.bf16.msra.mxu1 %v3830_v25  ;;  %v349_v25 = vld [vmem:[%s3944_s29 + $0x10] sm:$0xf] }
  0xab   : > { %2158 = vmatpush1.bf16.msra.mxu0 %v3187_v58  ;;  %2740 = vmatprep.subr.bf16.mxu1 %v3849_v56  ;;  %v664_v56 = vshrl.u32 %v348_v17, 16  ;;  %v673_v14 = vshll.u32 %v349_v25, 16  ;;  %v677_v61 = vshrl.u32 %v349_v25, 16 }
  0xac   : > { %2159 = vmatprep.subr.bf16.mxu0 %v3192_v10  ;;  %1878 = vmatprep.mubr.bf16.mxu1 %v3968_v18  ;;  %v963_v10 = vlaneseq }
  0xad   : > { %2177 = vmatprep.mubr.bf16.mxu0 %v3235_v37  ;;  %v666_v18 = vrot.slane %v664_v56, 4 }
  0xae   : > { %2756 = vmatpush1.bf16.msra.mxu1 %v3869_v23  ;;  %v667_v23 = vshll.u32 %v348_v17, 16 }
  0xaf   : > { %2160 = vmatpush1.bf16.msra.mxu0 %v3190_v27  ;;  %2741 = vmatprep.subr.bf16.mxu1 %v4497_v38 }
  0xb1   : > { %1879 = vmatmul.mubr.bf16.gmra.mrb[16].mxu1 %v4498_v45 }
  0xb2   : > { %2178 = vmatmul.mubr.bf16.vlgmr.msra.gmra.mrb[0].mxu0 %v3625_v35  ;;  %2757 = vmatpush1.bf16.msra.mxu1 %v4499_v42  ;;  %v4504_v35 = vld [vmem:[#allocation7_spill] sm:$0xff] }
  0xb3   : > { %1888 = vmatprep.mubr.bf16.mxu1 %v4041_v55  ;;  %2742 = vmatprep.subr.bf16.mxu1 %v4500_v62 }
  0xb4   : > { %2187 = vmatprep.mubr.bf16.mxu0 %v3235_v37 }
  0xb6   : > { %2758 = vmatpush1.bf16.msra.mxu1 %v4501_v20  ;;  %v961_v20 = vld [vmem:[%s4468_s3] sm:$0x3] }
  0xb7   : > { %2743 = vmatprep.subr.bf16.mxu1 %v4502_v48 }
  0xb9   : > { %1889 = vmatmul.mubr.bf16.gmra.mrb[20].mxu1 %v4503_v29 }
  0xba   : > { %2188 = vmatmul.mubr.bf16.gmra.mrb[4].mxu0 %v3695_v16  ;;  %2759 = vmatpush1.bf16.msra.mxu1 %v3987_v41  ;;  %v4505_v16 = vld [vmem:[#allocation10_spill] sm:$0xff]  ;;  %v669_v41 = vrot.slane %v667_v23, 5 }
  0xbb   : > { %1898 = vmatprep.mubr.bf16.mxu1 %v4094_v50  ;;  %2744 = vmatprep.subr.bf16.mxu1 %v4005_v26  ;;  %v675_v26 = vrot.slane %v673_v14, 5 }
  0xbc   : > { %2197 = vmatprep.mubr.bf16.mxu0 %v3235_v37 }
  0xbe   : > { %2760 = vmatpush1.bf16.msra.mxu1 %v4017_v3  ;;  %v679_v3 = vrot.slane %v677_v61, 4 }
  0xbf   : > { %2745 = vmatprep.subr.bf16.mxu1 %v4032_v1  ;;  %v350_v1 = vld [vmem:[%s3944_s29 + $0x14] sm:$0x1] }
  0xc0   : > { %v683_v32 = vshll.u32 %v350_v1, 16  ;;  %v695_v51 = vrot.slane %v350_v1, 5 }
  0xc1   : > { %1899 = vmatmul.mubr.bf16.gmra.mrb[24].mxu1 %v4504_v35 }
  0xc2   : > { %2198 = vmatmul.mubr.bf16.gmra.mrb[8].mxu0 %v4498_v45  ;;  %2761 = vmatpush1.bf16.msra.mxu1 %v4048_v39  ;;  %v680_v39 = vor.u32 %v679_v3, %v675_v26  ;;  %v964_v45 = vshrl.u32 %v963_v10, 7 }
  0xc3   : > { %1908 = vmatprep.mubr.bf16.mxu1 %v4505_v16  ;;  %2746 = vmatprep.subr.bf16.mxu1 %v4062_v9  ;;  %v685_v9 = vrot.slane %v683_v32, 5 }
  0xc4   : > { %2207 = vmatprep.mubr.bf16.mxu0 %v3235_v37  ;;  %v681_v5 = vrot.slane %v680_v39, 4  ;;  %v965_v62 = vsub.s32 0, %v964_v45  ;;  %v969_v48 = vsub.s32 1, %v964_v45 }
  0xc6   : > { %2762 = vmatpush1.bf16.msra.mxu1 %v4074_v46  ;;  %v686_v52 = vsel %vm3501_vm5, %v681_v5, %v685_v9  ;;  %v4323_v56 = vrot.slane %v961_v20, %v969_v48 }
  0xc7   : > { %2747 = vmatprep.subr.bf16.mxu1 %v4088_v2 }
  0xc9   : > { %1909 = vmatmul.mubr.bf16.gmra.mrb[28].mxu1 %v4010_v31 }
  0xca   : > { %2208 = vmatmul.mubr.bf16.gmra.mrb[12].mxu0 %v4503_v29  ;;  %2763 = vmatpush1.bf16.msra.mxu1 %v4105_v13 }
  0xcb   : > { %2104 = vmatprep.mubr.bf16.mxu1 %v3982_v8  ;;  %2748 = vmatprep.subr.bf16.mxu1 %v4114_v54  ;;  %v670_v8 = vor.u32 %v669_v41, %v666_v18 }
  0xcc   : > { %2217 = vmatprep.mubr.bf16.mxu0 %v3235_v37 }
  0xcd   : > { %v671_v44 = vrot.slane %v670_v8, 4 }
  0xce   : > { %2764 = vmatpush1.bf16.msra.mxu1 %v4125_v63 }
  0xd1   : > { %2105 = vmatmul.mubr.bf16.vlgmr.msra.gmra.mrb[32].mxu1 %v4041_v55  ;;  %v692_v55 = vrot.slane %v349_v25, 5 }
  0xd2   : > { %2218 = vmatmul.mubr.bf16.gmra.mrb[32].mxu0 %v4504_v35  ;;  %2114 = vmatprep.mubr.bf16.mxu1 %v4043_v36  ;;  %v676_v36 = vsel %vm3501_vm5, %v671_v44, %v675_v26 }
  0xd3   : > { %2227 = vmatprep.mubr.bf16.mxu0 %v3235_v37  ;;  %v2544_v46 = vcombine.low %v676_v36, %v686_v52  ;;  %v694_v28 = vrot.slane %v692_v55, 4 }
  0xd5   : > { %v696_v2 = vsel %vm3488_vm4, %v694_v28, %v695_v51 }
  0xd9   : > { %2115 = vmatmul.mubr.bf16.gmra.mrb[36].mxu1 %v4094_v50  ;;  %v2543_v50 = vcombine.low %v348_v17, %v349_v25  ;;  %v4319_v17 = vrot.slane %v961_v20, %v965_v62 }
  0xda   : > { %2228 = vmatmul.mubr.bf16.gmra.mrb[36].mxu0 %v4010_v31  ;;  %2124 = vmatprep.mubr.bf16.mxu1 %v4096_v24  ;;  %v693_v31 = vsel %vm3488_vm4, %v2515_v6, %v692_v55 }
  0xdb   : > { %2237 = vmatprep.mubr.bf16.mxu0 %v3235_v37  ;;  %v2545_v12 = vcombine.low %v693_v31, %v696_v2 }
  0xe1   : > { %2125 = vmatmul.mubr.bf16.gmra.mrb[40].mxu1 %v4505_v16 }
  0xe2   : > { %2238 = vmatmul.mubr.bf16.gmra.mrb[40].mxu0 %v4064_v60  ;;  %2134 = vmatprep.mubr.bf16.mxu1 %v2544_v46 }
  0xe3   : > { %2247 = vmatprep.mubr.bf16.mxu0 %v3235_v37 }
  0xe9   : > { %2135 = vmatmul.mubr.bf16.gmra.mrb[44].mxu1 %v2543_v50 }
  0xea   : > { %2248 = vmatmul.mubr.bf16.gmra.mrb[44].mxu0 %v2545_v12 }
 0x145   : > { %v4267_v24 = vpop.f32.mrb[16].mxu0 }
 0x146   : > { %v4269_v11 = vpop.f32.mrb[17].mxu0 }
 0x147   : > { %v4271_v13 = vpop.f32.mrb[18].mxu0 }
 0x148   : > { %v4273_v60 = vpop.f32.mrb[19].mxu0 }
 0x14d   : > { %v4275_v43 = vpop.f32.mrb[20].mxu0 }
 0x14e   : > { %v4277_v54 = vpop.f32.mrb[21].mxu0 }
 0x14f   : > { %v4279_v21 = vpop.f32.mrb[22].mxu0 }
 0x150   : > { %v4281_v4 = vpop.f32.mrb[23].mxu0 }
 0x155   : > { %v4283_v63 = vpop.f32.mrb[24].mxu0 }
 0x156   : > { %v4285_v47 = vpop.f32.mrb[25].mxu0 }
 0x157   : > { %v4287_v34 = vpop.f32.mrb[26].mxu0 }
 0x158   : > { %v4289_v7 = vpop.f32.mrb[27].mxu0 }
 0x15d   : > { %v4291_v53 = vpop.f32.mrb[28].mxu0 }
 0x15e   : > { %v4293_v57 = vpop.f32.mrb[29].mxu0 }
 0x15f   : > { %v4295_v15 = vpop.f32.mrb[30].mxu0 }
 0x160   : > { %v4297_v19 = vpop.f32.mrb[31].mxu0 }
 0x164   : > { %v1840_v40 = vpop.f32.mrb[0].mxu1 }
 0x165   : > { %v1842_v22 = vpop.f32.mrb[1].mxu1  ;;  %v2765_v23 = vadd.f32 %v1840_v40, %v4319_v17 }
 0x166   : > { %v1844_v30 = vpop.f32.mrb[2].mxu1  ;;  %v2767_v14 = vadd.f32 %v1842_v22, %v4323_v56 }
 0x167   : > { %v1846_v33 = vpop.f32.mrb[3].mxu1  ;;  %v2769_v41 = vadd.f32 %v1844_v30, %v4319_v17 }
 0x168   : > { %v2771_v39 = vadd.f32 %v1846_v33, %v4323_v56 }
 0x16c   : > { %v1850_v49 = vpop.f32.mrb[4].mxu1 }
 0x16d   : > { %v1852_v59 = vpop.f32.mrb[5].mxu1  ;;  %v2773_v22 = vadd.f32 %v1850_v49, %v4319_v17 }
 0x16e   : > { %v1854_v0 = vpop.f32.mrb[6].mxu1 }
 0x16f   : > { %v1856_v58 = vpop.f32.mrb[7].mxu1  ;;  %v2777_v10 = vadd.f32 %v1854_v0, %v4319_v17 }
 0x170   : > { %v2779_v20 = vadd.f32 %v1856_v58, %v4323_v56 }
 0x174   : > { %v4299_v27 = vpop.f32.mrb[8].mxu1 }
 0x175   : > { %v4301_v37 = vpop.f32.mrb[9].mxu1 }
 0x176   : > { %v4303_v38 = vpop.f32.mrb[10].mxu1 }
 0x177   : > { %v4306_v42 = vpop.f32.mrb[11].mxu1 }
 0x17c   : > { %v4312_v29 = vpop.f32.mrb[12].mxu1 }
 0x17d   : > { %v4314_v35 = vpop.f32.mrb[13].mxu1 }
 0x17e   : > { %v4316_v16 = vpop.f32.mrb[14].mxu1 }
 0x17f   : > { %v4321_v25 = vpop.f32.mrb[15].mxu1 }
 0x184   : > { %v1880_v61 = vpop.f32.mrb[16].mxu1 }
 0x185   : > { %v2179_v18 = vpop.f32.mrb[0].mxu0  ;;  %v2797_v26 = vadd.f32 %v1880_v61, %v4319_v17  ;;  %v1882_v1 = vpop.f32.mrb[17].mxu1 }
 0x186   : > { %v2766_v3 = vadd.f32 %v2765_v23, %v2179_v18  ;;  %v2181_v8 = vpop.f32.mrb[1].mxu0  ;;  %v2801_v32 = vadd.f32 %v1882_v1, %v4323_v56  ;;  %v1884_v5 = vpop.f32.mrb[18].mxu1 }
 0x187   : > { %v2768_v44 = vadd.f32 %v2767_v14, %v2181_v8  ;;  %v2183_v9 = vpop.f32.mrb[2].mxu0  ;;  %v2805_v55 = vadd.f32 %v1884_v5, %v4319_v17  ;;  %v1886_v52 = vpop.f32.mrb[19].mxu1  ;;  %v4338_v6 = vadd.f32 %v2797_v26, %v4267_v24  ;;  %v2775_v24 = vadd.f32 %v1852_v59, %v4323_v56 }
 0x188   : > { %v2770_v36 = vadd.f32 %v2769_v41, %v2183_v9  ;;  %v2185_v46 = vpop.f32.mrb[3].mxu0  ;;  %v2809_v51 = vadd.f32 %v1886_v52, %v4323_v56  ;;  %v4342_v2 = vadd.f32 %v2801_v32, %v4269_v11  ;;  %v2781_v32 = vadd.f32 %v4299_v27, %v4319_v17 }
 0x189   : > { %v2715_v28 = vpack.c.bf16 %v2768_v44, %v2766_v3  ;;  %v2772_v31 = vadd.f32 %v2771_v39, %v2185_v46  ;;  %v4345_v50 = vadd.f32 %v2805_v55, %v4271_v13 }
 0x18a   : > { %v4349_v40 = vadd.f32 %v2809_v51, %v4273_v60 }
 0x18b   : > { %2354 = vst [vmem:[%s4334_s27] sm:$0xff] %v2715_v28  ;;  %v2716_v12 = vpack.c.bf16 %v2772_v31, %v2770_v36 }
 0x18c   : > { %v1890_v30 = vpop.f32.mrb[20].mxu1 }
 0x18d   : > { %2355 = vst [vmem:[%s4334_s27 + $0x8] sm:$0xff] %v2716_v12  ;;  %v2189_v33 = vpop.f32.mrb[4].mxu0  ;;  %v2813_v11 = vadd.f32 %v1890_v30, %v4319_v17  ;;  %v1892_v62 = vpop.f32.mrb[21].mxu1 }
 0x18e   : > { %v2774_v45 = vadd.f32 %v2773_v22, %v2189_v33  ;;  %v2191_v13 = vpop.f32.mrb[5].mxu0  ;;  %v2817_v60 = vadd.f32 %v1892_v62, %v4323_v56  ;;  %v1894_v23 = vpop.f32.mrb[22].mxu1 }
 0x18f   : > { %v2776_v48 = vadd.f32 %v2775_v24, %v2191_v13  ;;  %v2193_v49 = vpop.f32.mrb[6].mxu0  ;;  %v2821_v59 = vadd.f32 %v1894_v23, %v4319_v17  ;;  %v1896_v61 = vpop.f32.mrb[23].mxu1  ;;  %v4360_v0 = vadd.f32 %v2813_v11, %v4275_v43  ;;  %v2783_v43 = vadd.f32 %v4301_v37, %v4323_v56 }
 0x190   : > { %v2778_v14 = vadd.f32 %v2777_v10, %v2193_v49  ;;  %v2195_v18 = vpop.f32.mrb[7].mxu0  ;;  %v2825_v26 = vadd.f32 %v1896_v61, %v4323_v56  ;;  %v4364_v58 = vadd.f32 %v2817_v60, %v4277_v54  ;;  %v2785_v54 = vadd.f32 %v4303_v38, %v4319_v17 }
 0x191   : > { %v2717_v41 = vpack.c.bf16 %v2776_v48, %v2774_v45  ;;  %v2780_v3 = vadd.f32 %v2779_v20, %v2195_v18  ;;  %v4367_v1 = vadd.f32 %v2821_v59, %v4279_v21  ;;  %v2789_v45 = vadd.f32 %v4312_v29, %v4319_v17 }
 0x192   : > { %v4371_v39 = vadd.f32 %v2825_v26, %v4281_v4  ;;  %v2787_v4 = vadd.f32 %v4306_v42, %v4323_v56 }
 0x193   : > { %2356 = vst [vmem:[%s4334_s27 + $0x10] sm:$0xff] %v2717_v41  ;;  %v2718_v8 = vpack.c.bf16 %v2780_v3, %v2778_v14 }
 0x194   : > { %v1900_v44 = vpop.f32.mrb[24].mxu1 }
 0x195   : > { %2357 = vst [vmem:[%s4334_s27 + $0x18] sm:$0xff] %v2718_v8  ;;  %v2199_v5 = vpop.f32.mrb[8].mxu0  ;;  %v2829_v21 = vadd.f32 %v1900_v44, %v4319_v17  ;;  %v1902_v55 = vpop.f32.mrb[25].mxu1 }
 0x196   : > { %v2782_v9 = vadd.f32 %v2781_v32, %v2199_v5  ;;  %v2201_v36 = vpop.f32.mrb[9].mxu0  ;;  %v2833_v27 = vadd.f32 %v1902_v55, %v4323_v56  ;;  %v1904_v46 = vpop.f32.mrb[26].mxu1 }
 0x197   : > { %v2784_v52 = vadd.f32 %v2783_v43, %v2201_v36  ;;  %v2203_v37 = vpop.f32.mrb[10].mxu0  ;;  %v2837_v28 = vadd.f32 %v1904_v46, %v4319_v17  ;;  %v1906_v31 = vpop.f32.mrb[27].mxu1  ;;  %v4386_v12 = vadd.f32 %v2829_v21, %v4283_v63  ;;  %v2791_v63 = vadd.f32 %v4314_v35, %v4323_v56 }
 0x198   : > { %v2786_v51 = vadd.f32 %v2785_v54, %v2203_v37  ;;  %v2205_v38 = vpop.f32.mrb[11].mxu0  ;;  %v2841_v24 = vadd.f32 %v1906_v31, %v4323_v56  ;;  %v4390_v42 = vadd.f32 %v2833_v27, %v4285_v47  ;;  %v2793_v47 = vadd.f32 %v4316_v16, %v4319_v17 }
 0x199   : > { %v2719_v22 = vpack.c.bf16 %v2784_v52, %v2782_v9  ;;  %v2788_v30 = vadd.f32 %v2787_v4, %v2205_v38  ;;  %v4393_v33 = vadd.f32 %v2837_v28, %v4287_v34 }
 0x19a   : > { %v4397_v11 = vadd.f32 %v2841_v24, %v4289_v7  ;;  %v2795_v7 = vadd.f32 %v4321_v25, %v4323_v56 }
 0x19b   : > { %2358 = vst [vmem:[%s4334_s27 + $0x20] sm:$0xff] %v2719_v22  ;;  %v2720_v10 = vpack.c.bf16 %v2788_v30, %v2786_v51 }
 0x19c   : > { %v1910_v62 = vpop.f32.mrb[28].mxu1 }
 0x19d   : > { %2359 = vst [vmem:[%s4334_s27 + $0x28] sm:$0xff] %v2720_v10  ;;  %v2209_v13 = vpop.f32.mrb[12].mxu0  ;;  %v2845_v34 = vadd.f32 %v1910_v62, %v4319_v17  ;;  %v1912_v60 = vpop.f32.mrb[29].mxu1 }
 0x19e   : > { %v2790_v20 = vadd.f32 %v2789_v45, %v2209_v13  ;;  %v2211_v48 = vpop.f32.mrb[13].mxu0  ;;  %v2849_v29 = vadd.f32 %v1912_v60, %v4323_v56  ;;  %v1914_v35 = vpop.f32.mrb[30].mxu1 }
 0x19f   : > { %v2792_v23 = vadd.f32 %v2791_v63, %v2211_v48  ;;  %v2213_v49 = vpop.f32.mrb[14].mxu0  ;;  %v2853_v59 = vadd.f32 %v1914_v35, %v4319_v17  ;;  %v1916_v61 = vpop.f32.mrb[31].mxu1  ;;  %v4412_v18 = vadd.f32 %v2845_v34, %v4291_v53 }
 0x1a0   : > { %v2794_v14 = vadd.f32 %v2793_v47, %v2213_v49  ;;  %v2215_v16 = vpop.f32.mrb[15].mxu0  ;;  %v2857_v26 = vadd.f32 %v1916_v61, %v4323_v56  ;;  %v4416_v25 = vadd.f32 %v2849_v29, %v4293_v57 }
 0x1a1   : > { %v2721_v41 = vpack.c.bf16 %v2792_v23, %v2790_v20  ;;  %v2796_v3 = vadd.f32 %v2795_v7, %v2215_v16  ;;  %v4419_v8 = vadd.f32 %v2853_v59, %v4295_v15 }
 0x1a2   : > { %v4423_v17 = vadd.f32 %v2857_v26, %v4297_v19 }
 0x1a3   : > { %2360 = vst [vmem:[%s4334_s27 + $0x30] sm:$0xff] %v2721_v41  ;;  %v2722_v32 = vpack.c.bf16 %v2796_v3, %v2794_v14 }
 0x1a4   : > { %v2106_v43 = vpop.f32.mrb[32].mxu1 }
 0x1a5   : > { %2361 = vst [vmem:[%s4334_s27 + $0x38] sm:$0xff] %v2722_v32  ;;  %v2219_v44 = vpop.f32.mrb[32].mxu0  ;;  %v2799_v53 = vadd.f32 %v4338_v6, %v2106_v43  ;;  %v2108_v5 = vpop.f32.mrb[33].mxu1 }
 0x1a6   : > { %v2221_v56 = vpop.f32.mrb[33].mxu0  ;;  %v2803_v54 = vadd.f32 %v4342_v2, %v2108_v5  ;;  %v2110_v57 = vpop.f32.mrb[34].mxu1 }
 0x1a7   : > { %v2223_v21 = vpop.f32.mrb[34].mxu0  ;;  %v2800_v9 = vadd.f32 %v2799_v53, %v2219_v44  ;;  %v2807_v15 = vadd.f32 %v4345_v50, %v2110_v57  ;;  %v2112_v55 = vpop.f32.mrb[35].mxu1 }
 0x1a8   : > { %v2225_v36 = vpop.f32.mrb[35].mxu0  ;;  %v2804_v19 = vadd.f32 %v2803_v54, %v2221_v56  ;;  %v2811_v4 = vadd.f32 %v4349_v40, %v2112_v55 }
 0x1a9   : > { %v2808_v27 = vadd.f32 %v2807_v15, %v2223_v21 }
 0x1aa   : > { %v2723_v52 = vpack.c.bf16 %v2804_v19, %v2800_v9  ;;  %v2812_v46 = vadd.f32 %v2811_v4, %v2225_v36 }
 0x1ac   : > { %2362 = vst [vmem:[%s4334_s27 + $0x40] sm:$0xff] %v2723_v52  ;;  %v2724_v6 = vpack.c.bf16 %v2812_v46, %v2808_v27  ;;  %v2116_v37 = vpop.f32.mrb[36].mxu1 }
 0x1ad   : > { %v2229_v28 = vpop.f32.mrb[36].mxu0  ;;  %v2815_v2 = vadd.f32 %v4360_v0, %v2116_v37  ;;  %v2118_v51 = vpop.f32.mrb[37].mxu1 }
 0x1ae   : > { %v2231_v31 = vpop.f32.mrb[37].mxu0  ;;  %2363 = vst [vmem:[%s4334_s27 + $0x48] sm:$0xff] %v2724_v6  ;;  %v2819_v50 = vadd.f32 %v4364_v58, %v2118_v51  ;;  %v2120_v38 = vpop.f32.mrb[38].mxu1 }
 0x1af   : > { %v2233_v22 = vpop.f32.mrb[38].mxu0  ;;  %v2816_v24 = vadd.f32 %v2815_v2, %v2229_v28  ;;  %v2823_v40 = vadd.f32 %v4367_v1, %v2120_v38  ;;  %v2122_v30 = vpop.f32.mrb[39].mxu1 }
 0x1b0   : > { %v2235_v10 = vpop.f32.mrb[39].mxu0  ;;  %v2820_v45 = vadd.f32 %v2819_v50, %v2231_v31  ;;  %v2827_v63 = vadd.f32 %v4371_v39, %v2122_v30 }
 0x1b1   : > { %v2824_v62 = vadd.f32 %v2823_v40, %v2233_v22 }
 0x1b2   : > { %v2725_v13 = vpack.c.bf16 %v2820_v45, %v2816_v24  ;;  %v2828_v0 = vadd.f32 %v2827_v63, %v2235_v10 }
 0x1b4   : > { %2364 = vst [vmem:[%s4334_s27 + $0x50] sm:$0xff] %v2725_v13  ;;  %v2726_v47 = vpack.c.bf16 %v2828_v0, %v2824_v62  ;;  %v2126_v34 = vpop.f32.mrb[40].mxu1 }
 0x1b5   : > { %v2239_v20 = vpop.f32.mrb[40].mxu0  ;;  %v2831_v58 = vadd.f32 %v4386_v12, %v2126_v34  ;;  %v2128_v60 = vpop.f32.mrb[41].mxu1 }
 0x1b6   : > { %v2241_v48 = vpop.f32.mrb[41].mxu0  ;;  %2365 = vst [vmem:[%s4334_s27 + $0x58] sm:$0xff] %v2726_v47  ;;  %v2835_v1 = vadd.f32 %v4390_v42, %v2128_v60  ;;  %v2130_v7 = vpop.f32.mrb[42].mxu1 }
 0x1b7   : > { %v2243_v29 = vpop.f32.mrb[42].mxu0  ;;  %v2832_v23 = vadd.f32 %v2831_v58, %v2239_v20  ;;  %v2839_v39 = vadd.f32 %v4393_v33, %v2130_v7  ;;  %v2132_v35 = vpop.f32.mrb[43].mxu1 }
 0x1b8   : > { %v2245_v49 = vpop.f32.mrb[43].mxu0  ;;  %v2836_v59 = vadd.f32 %v2835_v1, %v2241_v48  ;;  %v2843_v14 = vadd.f32 %v4397_v11, %v2132_v35 }
 0x1b9   : > { %v2840_v61 = vadd.f32 %v2839_v39, %v2243_v29 }
 0x1ba   : > { %v2727_v16 = vpack.c.bf16 %v2836_v59, %v2832_v23  ;;  %v2844_v12 = vadd.f32 %v2843_v14, %v2245_v49 }
 0x1bc   : > { %2366 = vst [vmem:[%s4334_s27 + $0x60] sm:$0xff] %v2727_v16  ;;  %v2728_v41 = vpack.c.bf16 %v2844_v12, %v2840_v61  ;;  %v2136_v26 = vpop.f32.mrb[44].mxu1 }
 0x1bd   : > { %v2249_v3 = vpop.f32.mrb[44].mxu0  ;;  %v2847_v42 = vadd.f32 %v4412_v18, %v2136_v26  ;;  %v2138_v32 = vpop.f32.mrb[45].mxu1 }
 0x1be   : > { %v2251_v43 = vpop.f32.mrb[45].mxu0  ;;  %2367 = vst [vmem:[%s4334_s27 + $0x68] sm:$0xff] %v2728_v41  ;;  %v2851_v33 = vadd.f32 %v4416_v25, %v2138_v32  ;;  %v2140_v44 = vpop.f32.mrb[46].mxu1 }
 0x1bf   : > { %v2253_v53 = vpop.f32.mrb[46].mxu0  ;;  %v2848_v5 = vadd.f32 %v2847_v42, %v2249_v3  ;;  %v2855_v11 = vadd.f32 %v4419_v8, %v2140_v44  ;;  %v2142_v56 = vpop.f32.mrb[47].mxu1 }
 0x1c0   : > { %v2255_v54 = vpop.f32.mrb[47].mxu0  ;;  %v2852_v57 = vadd.f32 %v2851_v33, %v2251_v43  ;;  %v2859_v21 = vadd.f32 %v4423_v17, %v2142_v56 }
 0x1c1   : > { %v2856_v9 = vadd.f32 %v2855_v11, %v2253_v53 }
 0x1c2   : > { %v2729_v15 = vpack.c.bf16 %v2852_v57, %v2848_v5  ;;  %v2860_v18 = vadd.f32 %v2859_v21, %v2255_v54 }
 0x1c4   : > { %2368 = vst [vmem:[%s4334_s27 + $0x70] sm:$0xff] %v2729_v15  ;;  %v2730_v55 = vpack.c.bf16 %v2860_v18, %v2856_v9 }
 0x1c6   : > { %2369 = vst [vmem:[%s4334_s27 + $0x78] sm:$0xff] %v2730_v55 }
 0x1c7 PF: > { %s14_s19 = sadd.s32 1, %s3233_s19   ;;  %s4506_s15 = smov %s3225_s17 }
 0x1c8   : > { %p11_p9 = scmp.ge.s32.totalorder %s14_s19, 6   ;;  %s4507_s16 = smov %s3229_s18 }
 0x1c9   : > { %s4508_s17 = smov %s4511_s20  ;;  %s4509_s18 = smov %s4515_s21 }
 0x1ca   :  { %13 = sbr.rel (!%p11_p9) target bundleno = 3 (0x3), region = 69 }

// kernel: spade_resnet_block.11
= control target key start
LH: loop header
LB: loop body
LE: loop exit
PB: predicated region body
PF: predicated region fallthrough
CT: control target
= control target key end

     0   :  { %s3289_s24 = smov 0   ;;  %s3291_s25 = smov 0   ;;  %s4550_s0 = inlined_call_operand.vmem [shape: f32[2,18,18,128], index: 0, kind: input, shape index: {}, may-alias: {0,1}]   ;;  %s4551_s1 = inlined_call_operand.vmem [shape: f32[2,18,18,128], index: 1, kind: input, shape index: {}, may-alias: {0,1}]   ;;  %s4552_s2 = inlined_call_operand.vmem [shape: bf16[2,18,18,256], index: 2, kind: input, shape index: {}, may-alias: {2,3}]   ;;  %s4553_s3 = inlined_call_operand.vmem [shape: bf16[2,18,18,256], index: 3, kind: input, shape index: {}, may-alias: {2,3}]   ;;  %s4554_s4 = inlined_call_operand.vmem [shape: f32[2,2,128], index: 4, kind: input, shape index: {}]   ;;  %s4555_s5 = inlined_call_operand.vmem [shape: bf16[1152,128], index: 5, kind: input, shape index: {}]   ;;  %s4556_s6 = inlined_call_operand.vmem [shape: f32[1,128], index: 6, kind: input, shape index: {}]   ;;  %s4557_s7 = inlined_call_operand.vmem [shape: f32[2,16,16,128], index: 7, kind: output, shape index: {}]  }
   0x1   :  { %s3293_s26 = smov 0   ;;  %s3295_s27 = smov 0  }
   0x2   :  { %s3297_s28 = smov 0  }
   0x3 LB: > { %s26_s29 = sadd.s32 1, %s3239_s26  ;;  %s29_s30 = sadd.s32 1, %s3243_s27  ;;  %s3247_s28 = sphi %s3297_s28, %s17_s28   ;;  %s3243_s27 = sphi %s3295_s27, %s4634_s27   ;;  %s3239_s26 = sphi %s3293_s26, %s4633_s26   ;;  %s3235_s25 = sphi %s3291_s25, %s4632_s25   ;;  %s3231_s24 = sphi %s3289_s24, %s4631_s24  }
   0x4   : > { %p27_p0 = scmp.ge.s32.totalorder %s26_s29, 2  ;;  %p2589_p1 = scmp.ge.s32.totalorder %s3247_s28, 1 }
   0x5   : > { %p360_p2 = scmp.lt.s32.totalorder %s3247_s28, 5 }
   0x6   : > { %s4636_s29 = smov (%p27_p0, %s26_s29), 0  ;;  %s4638_s30 = smov (!%p27_p0, %s29_s30), %s3243_s27 }
   0x7   : > { %p361_p3 = pnand %p2589_p1, %p360_p2  ;;  %p31_p4 = scmp.ge.s32.totalorder %s4638_s30, 2 }
   0x8   : > { %v3137_v0 = vld [vmem:[%s4555_s5 + $0x40] sm:$0xff] (!%p361_p3)   ;;  %s3333_s16 = sshll.u32 (!%p361_p3), %s3231_s24, 3  ;;  %v3141_v4 = vld [vmem:[%s4555_s5 + $0x48] sm:$0xff] (!%p361_p3)   ;;  %p457_p5 = scmp.lt.s32.totalorder (!%p361_p3), %s3235_s25, 1  ;;  %v3145_v8 = vld [vmem:[%s4555_s5 + $0x50] sm:$0xff] (!%p361_p3)   ;;  %v662_v21 = vlaneseq (!%p361_p3)  ;;  %vm4562_vm8 = vcmask (!%p361_p3), 1046528  }
   0x9   : > { %s4640_s30 = smov (%p31_p4, %s4638_s30), 0  ;;  %364 = sbr.rel (%p361_p3) target bundleno = 434 (0x1b2), region = 48 }
   0xa   : > { %v3138_v1 = vld [vmem:[%s4555_s5 + $0xc0] sm:$0xff] (!%p361_p3)   ;;  %2771 = vmatprep.subr.bf16.mxu0 (!%p361_p3), %v3137_v0  ;;  %v3142_v5 = vld [vmem:[%s4555_s5 + $0xc8] sm:$0xff] (!%p361_p3)   ;;  %p459_p6 = scmp.lt.s32.totalorder (!%p361_p3), %s3333_s16, 17  ;;  %v3146_v9 = vld [vmem:[%s4555_s5 + $0xd0] sm:$0xff] (!%p361_p3)   ;;  %p532_p7 = scmp.lt.s32.totalorder (!%p361_p3), %s3333_s16, 15  ;;  %v3419_v26 = vshrl.u32 (!%p361_p3), %v662_v21, 7  ;;  %v3436_v32 = vstv (!%p361_p3), %s3333_s16 }
   0xb   : > { %v3139_v2 = vld [vmem:[%s4555_s5] sm:$0xff] (!%p361_p3)   ;;  %2835 = vmatprep.subr.bf16.mxu1 (!%p361_p3), %v3138_v1  ;;  %v3143_v6 = vld [vmem:[%s4555_s5 + $0x8] sm:$0xff] (!%p361_p3)   ;;  %v3147_v10 = vld [vmem:[%s4555_s5 + $0x10] sm:$0xff] (!%p361_p3)   ;;  %v3447_v34 = vadd.s32 (!%p361_p3), 1, %v3436_v32  ;;  %vm925_vm0 = vcmp.ge.s32.totalorder (!%p361_p3), %v3436_v32, 1  ;;  %vm935_vm1 = vcmp.le.s32.totalorder (!%p361_p3), %v3436_v32, 16 }
   0xc   : > { %v3140_v3 = vld [vmem:[%s4555_s5 + $0x80] sm:$0xff] (!%p361_p3)   ;;  %2772 = vmatpush3.bf16.msra.mxu0 (!%p361_p3), %v3139_v2  ;;  %v3144_v7 = vld [vmem:[%s4555_s5 + $0x88] sm:$0xff] (!%p361_p3)   ;;  %v3148_v11 = vld [vmem:[%s4555_s5 + $0x90] sm:$0xff] (!%p361_p3)   ;;  %v664_v31 = vsub.s32 (!%p361_p3), 0, %v3419_v26  ;;  %v698_v36 = vsub.s32 (!%p361_p3), 1, %v3419_v26  ;;  %v3465_v38 = vadd.s32 (!%p361_p3), 16, %v3419_v26 }
   0xd   : > { %2836 = vmatpush3.bf16.msra.mxu1 (!%p361_p3), %v3140_v3  ;;  %2773 = vmatprep.subr.bf16.mxu0 (!%p361_p3), %v3141_v4  ;;  %v3149_v12 = vld [vmem:[%s4555_s5 + $0x58] sm:$0xff] (!%p361_p3)   ;;  %v3153_v16 = vld [vmem:[%s4555_s5 + $0x60] sm:$0xff] (!%p361_p3)   ;;  %v3157_v20 = vld [vmem:[%s4555_s5 + $0x68] sm:$0xff] (!%p361_p3)   ;;  %vm926_vm2 = vcmp.ge.s32.totalorder (!%p361_p3), %v3447_v34, 1  ;;  %vm936_vm3 = vcmp.le.s32.totalorder (!%p361_p3), %v3447_v34, 16  ;;  %v3482_v43 = vadd.s32 (!%p361_p3), 2, %v3436_v32 }
   0xe   : > { %2837 = vmatprep.subr.bf16.mxu1 (!%p361_p3), %v3142_v5  ;;  %v3150_v13 = vld [vmem:[%s4555_s5 + $0xd8] sm:$0xff] (!%p361_p3)   ;;  %v3154_v17 = vld [vmem:[%s4555_s5 + $0xe0] sm:$0xff] (!%p361_p3)   ;;  %v3158_v22 = vld [vmem:[%s4555_s5 + $0xe8] sm:$0xff] (!%p361_p3)   ;;  %vm955_vm4 = vcmp.ge.s32.totalorder (!%p361_p3), %v3419_v26, 1  ;;  %vm4559_vm5 = vcmp.le.s32.totalorder (!%p361_p3), %v3465_v38, 16 }
   0xf   : > { %v3151_v14 = vld [vmem:[%s4555_s5 + $0x18] sm:$0xff] (!%p361_p3)   ;;  %v3155_v18 = vld [vmem:[%s4555_s5 + $0x20] sm:$0xff] (!%p361_p3)   ;;  %v3159_v23 = vld [vmem:[%s4555_s5 + $0x28] sm:$0xff] (!%p361_p3)  }
  0x10   : > { %2774 = vmatpush3.bf16.msra.mxu0 %v3143_v6  ;;  %s4642_s25 = smov (!%p457_p5, %s3235_s25), 1  ;;  %v3152_v15 = vld [vmem:[%s4555_s5 + $0x98] sm:$0xff]   ;;  %v3156_v19 = vld [vmem:[%s4555_s5 + $0xa0] sm:$0xff]   ;;  %v3160_v24 = vld [vmem:[%s4555_s5 + $0xa8] sm:$0xff]  }
  0x11   : > { %2838 = vmatpush3.bf16.msra.mxu1 %v3144_v7  ;;  %2775 = vmatprep.subr.bf16.mxu0 %v3145_v8  ;;  %s3365_s17 = scalar_select %p459_p6, %s3333_s16, 17  ;;  %v3161_v25 = vld [vmem:[%s4555_s5 + $0x70] sm:$0xff]   ;;  %v3165_v30 = vld [vmem:[%s4555_s5 + $0x78] sm:$0xff]   ;;  %v3169_v2 = vld [vmem:[%s4555_s5 + $0x140] sm:$0xff]  }
  0x12   : > { %2839 = vmatprep.subr.bf16.mxu1 %v3146_v9  ;;  %s3092_s20 = smul.u32 54, %s4642_s25  ;;  %s2603_s8 = sshll.u32 %s4642_s25, 5  ;;  %v3162_v27 = vld [vmem:[%s4555_s5 + $0xf0] sm:$0xff]   ;;  %v3166_v33 = vld [vmem:[%s4555_s5 + $0xf8] sm:$0xff]   ;;  %vm3534_vm6 = vmand %vm925_vm0, %vm935_vm1  ;;  %vm4560_vm0 = vsmask.f32 7424 }
  0x13   : > { %s533_s11 = scalar_select %p532_p7, %s3333_s16, 15  ;;  %v3163_v28 = vld [vmem:[%s4555_s5 + $0x30] sm:$0xff]   ;;  %v3167_v35 = vld [vmem:[%s4555_s5 + $0x38] sm:$0xff]   ;;  %vm3554_vm7 = vmand %vm926_vm2, %vm936_vm3  ;;  %vm927_vm2 = vcmp.ge.s32.totalorder %v3482_v43, 1  ;;  %vm937_vm3 = vcmp.le.s32.totalorder %v3482_v43, 16 }
  0x14   : > { %2776 = vmatpush3.bf16.msra.mxu0 %v3147_v10  ;;  %s3091_s14 = smul.u32 3, %s3365_s17  ;;  %v3164_v29 = vld [vmem:[%s4555_s5 + $0xb0] sm:$0xff]   ;;  %s2600_s22 = sshll.u32 %s4642_s25, 1  ;;  %v3168_v37 = vld [vmem:[%s4555_s5 + $0xb8] sm:$0xff]   ;;  %vm3563_vm12 = vmand %vm3534_vm6, %vm955_vm4 }
  0x15   : > { %2840 = vmatpush3.bf16.msra.mxu1 %v3148_v11  ;;  %2777 = vmatprep.subr.bf16.mxu0 %v3149_v12  ;;  %s2602_s19 = sshll.u32 %s533_s11, 1  ;;  %s3094_s23 = smul.u32 6, %s3365_s17  ;;  %v3170_v11 = vld [vmem:[%s4555_s5 + $0x1c0] sm:$0xff]   ;;  %vm3571_vm13 = vmand %vm3534_vm6, %vm4559_vm5  ;;  %v3203_v26 = vld [vmem:[%s4555_s5 + $0x210] sm:$0xff]  }
  0x16   : > { %2841 = vmatprep.subr.bf16.mxu1 %v3150_v13  ;;  %s3394_s24 = sadd.s32 %s2603_s8, %s2602_s19  ;;  %s3095_s12 = smul.u32 108, %s4642_s25  ;;  %vm3581_vm1 = vmand %vm3554_vm7, %vm955_vm4 }
  0x17   : > { %s463_s19 = sadd.s32 %s3092_s20, %s3091_s14  ;;  %s528_s11 = scalar_lea.vmem %s4554_s4, %s2600_s22 }
  0x18   : > { %2778 = vmatpush3.bf16.msra.mxu0 %v3151_v14  ;;  %s500_s9 = sadd.s32 %s3095_s12, %s3094_s23  ;;  %s2591_s14 = sshll.u32 %s463_s19, 3  ;;  %v661_v49 = vld [vmem:[%s528_s11] sm:$0x3] }
  0x19   : > { %2842 = vmatpush3.bf16.msra.mxu1 %v3152_v15  ;;  %2779 = vmatprep.subr.bf16.mxu0 %v3153_v16  ;;  %s2596_s23 = sshll.u32 %s500_s9, 2  ;;  %s3444_s18 = scalar_lea.vmem %s4550_s0, %s2591_s14  ;;  %v3493_v52 = vrot.slane %v661_v49, %v664_v31  ;;  %v3495_v53 = vrot.slane %v661_v49, %v698_v36  ;;  %v3185_v36 = vld [vmem:[%s4555_s5 + $0x160] sm:$0xff]  }
  0x1a   : > { %2843 = vmatprep.subr.bf16.mxu1 %v3154_v17  ;;  %s3455_s13 = scalar_lea.vmem %s4552_s2, %s2596_s23  ;;  %v541_v39 = vld [vmem:[%s3444_s18] sm:$0xff]  ;;  %v542_v44 = vld [vmem:[%s3444_s18 + $0x8] sm:$0xff]  ;;  %v543_v45 = vld [vmem:[%s3444_s18 + $0x10] sm:$0x3]  ;;  %s2768_s23 = sadd.s32 8, %s3333_s16 }
  0x1b   : > { %v3471_v40 = vld [vmem:[%s3455_s13] sm:$0xff]  ;;  %v3474_v41 = vld [vmem:[%s3455_s13 + $0x8] sm:$0xff]  ;;  %v3477_v42 = vld [vmem:[%s3455_s13 + $0x10] sm:$0x11]  ;;  %p477_p8 = scmp.lt.s32.totalorder %s2768_s23, 17  ;;  %v666_v62 = vsub.f32 %v541_v39, %v3493_v52  ;;  %v667_v63 = vsub.f32 %v542_v44, %v3493_v52  ;;  %v668_v0 = vsub.f32 %v543_v45, %v3493_v52 }
  0x1c   : > { %2780 = vmatpush3.bf16.msra.mxu0 %v3155_v18  ;;  %v601_v46 = vunpack.c.l.bf16 %v3471_v40  ;;  %v602_v47 = vunpack.c.h.bf16 %v3471_v40  ;;  %v603_v48 = vunpack.c.l.bf16 %v3474_v41  ;;  %v604_v50 = vunpack.c.h.bf16 %v3474_v41  ;;  %v544_v54 = vld [vmem:[%s3444_s18 + $0x18] sm:$0xff]  ;;  %v545_v55 = vld [vmem:[%s3444_s18 + $0x20] sm:$0xff]  ;;  %v3173_v44 = vld [vmem:[%s4555_s5 + $0x148] sm:$0xff]  }
  0x1d   : > { %2844 = vmatpush3.bf16.msra.mxu1 %v3156_v19  ;;  %2781 = vmatprep.subr.bf16.mxu0 %v3157_v20  ;;  %v605_v51 = vunpack.c.l.bf16 %v3477_v42  ;;  %v574_v56 = vld [vmem:[%s3455_s13 + $0x18] sm:$0xff]  ;;  %v606_v57 = vunpack.c.h.bf16 %v3477_v42  ;;  %v575_v60 = vld [vmem:[%s3455_s13 + $0x20] sm:$0xff]  ;;  %s4644_s23 = smov (!%p477_p8, %s2768_s23), 17  ;;  %v669_v5 = vsub.f32 %v544_v54, %v3493_v52  ;;  %v670_v6 = vsub.f32 %v545_v55, %v3493_v52 }
  0x1e   : > { %2845 = vmatprep.subr.bf16.mxu1 %v3158_v22  ;;  %v730_v58 = vadd.f32 1.0, %v601_v46  ;;  %v731_v59 = vadd.f32 1.0, %v603_v48  ;;  %v607_v61 = vunpack.c.l.bf16 %v574_v56  ;;  %v608_v3 = vunpack.c.h.bf16 %v574_v56  ;;  %s3093_s21 = smul.u32 3, %s4644_s23 }
  0x1f   : > { %v732_v1 = vadd.f32 1.0, %v605_v51  ;;  %v609_v4 = vunpack.c.l.bf16 %v575_v60  ;;  %v700_v7 = vmul.f32 %v3495_v53, %v666_v62  ;;  %v701_v8 = vmul.f32 %v3495_v53, %v667_v63  ;;  %s3096_s10 = smul.u32 6, %s4644_s23 }
  0x20   : > { %2782 = vmatpush3.bf16.msra.mxu0 %v3159_v23  ;;  %v702_v9 = vmul.f32 %v3495_v53, %v668_v0  ;;  %v733_v10 = vadd.f32 1.0, %v607_v61  ;;  %v610_v12 = vunpack.c.h.bf16 %v575_v60  ;;  %v703_v13 = vmul.f32 %v3495_v53, %v669_v5  ;;  %s3528_s14 = sadd.s32 %s3093_s21, %s3092_s20  ;;  %v546_v23 = vld [vmem:[%s3444_s18 + $0x28] sm:$0x3] }
  0x21   : > { %2846 = vmatpush3.bf16.msra.mxu1 %v3160_v24  ;;  %2783 = vmatprep.subr.bf16.mxu0 %v3161_v25  ;;  %v704_v14 = vmul.f32 %v3495_v53, %v670_v6  ;;  %v734_v15 = vadd.f32 1.0, %v609_v4  ;;  %v760_v16 = vmul.f32 %v730_v58, %v700_v7  ;;  %v761_v17 = vmul.f32 %v731_v59, %v701_v8  ;;  %v576_v24 = vld [vmem:[%s3455_s13 + $0x28] sm:$0x11]  ;;  %s3548_s20 = sadd.s32 %s3096_s10, %s3095_s12  ;;  %v3617_v4 = vld [vmem:[%s3455_s13 + $0x30] sm:$0xff] }
  0x22   : > { %2847 = vmatprep.subr.bf16.mxu1 %v3162_v27  ;;  %v762_v18 = vmul.f32 %v732_v1, %v702_v9  ;;  %v3524_v19 = vadd.s32 3, %v3436_v32  ;;  %v763_v21 = vmul.f32 %v733_v10, %v703_v13  ;;  %v3541_v25 = vadd.s32 4, %v3436_v32  ;;  %v3172_v9 = vld [vmem:[%s4555_s5 + $0x180] sm:$0xff]   ;;  %v547_v10 = vld [vmem:[%s3444_s18 + $0x30] sm:$0xff]  ;;  %s2599_s8 = sshll.u32 %s3548_s20, 2 }
  0x23   : > { %v764_v22 = vmul.f32 %v734_v15, %v704_v14  ;;  %v3544_v27 = vadd.s32 5, %v3436_v32  ;;  %v611_v31 = vunpack.c.l.bf16 %v576_v24  ;;  %v671_v39 = vsub.f32 %v546_v23, %v3493_v52  ;;  %v548_v15 = vld [vmem:[%s3444_s18 + $0x38] sm:$0xff]  ;;  %s4139_s10 = scalar_lea.vmem %s4553_s3, %s2599_s8 }
  0x24   : > { %2784 = vmatpush3.bf16.msra.mxu0 %v3163_v28  ;;  %v790_v28 = vadd.f32 %v760_v16, %v602_v47  ;;  %v3633_v16 = vld [vmem:[%s3455_s13 + $0x38] sm:$0xff]  ;;  %v613_v23 = vunpack.c.l.bf16 %v3617_v4 }
  0x25   : > { %2848 = vmatpush3.bf16.msra.mxu1 %v3164_v29  ;;  %2785 = vmatprep.subr.bf16.mxu0 %v3165_v30  ;;  %v791_v29 = vadd.f32 %v761_v17, %v604_v50  ;;  %v792_v30 = vadd.f32 %v762_v18, %v606_v57  ;;  %v705_v49 = vmul.f32 %v3495_v53, %v671_v39  ;;  %v735_v55 = vadd.f32 1.0, %v611_v31  ;;  %v3174_v17 = vld [vmem:[%s4555_s5 + $0x1c8] sm:$0xff]  }
  0x26   : > { %2849 = vmatprep.subr.bf16.mxu1 %v3166_v33  ;;  %v793_v33 = vadd.f32 %v763_v21, %v608_v3  ;;  %vm820_vm9 = vcmp.ge.f32.partialorder %v790_v28, 0.0  ;;  %v850_v40 = vmul.f32 0.2, %v790_v28 }
  0x27   : > { %vm821_vm10 = vcmp.ge.f32.partialorder %v791_v29, 0.0  ;;  %vm822_vm11 = vcmp.ge.f32.partialorder %v792_v30, 0.0  ;;  %v851_v34 = vmul.f32 0.2, %v791_v29  ;;  %v852_v42 = vmul.f32 0.2, %v792_v30 }
  0x28   : > { %2786 = vmatpush3.bf16.msra.mxu0 %v3167_v35  ;;  %v794_v35 = vadd.f32 %v764_v22, %v610_v12  ;;  %vm823_vm14 = vcmp.ge.f32.partialorder %v793_v33, 0.0  ;;  %v3575_v45 = vsel %vm820_vm9, %v790_v28, %v850_v40  ;;  %v853_v46 = vmul.f32 0.2, %v793_v33  ;;  %vm2682_vm9 = vmpackc.low %vm3554_vm7, %vm3581_vm1  ;;  %v3649_v28 = vld [vmem:[%s3455_s13 + $0x40] sm:$0x11]  ;;  %v3182_v22 = vld [vmem:[%s4555_s5 + $0x1d8] sm:$0xff]  }
  0x29   : > { %2850 = vmatpush3.bf16.msra.mxu1 %v3168_v37  ;;  %2899 = vmatprep.subr.bf16.mxu0 %v3169_v2  ;;  %v612_v37 = vunpack.c.h.bf16 %v576_v24  ;;  %v3589_v50 = vsel %vm821_vm10, %v791_v29, %v851_v34  ;;  %v882_v51 = vsel %vm822_vm11, %v792_v30, %v852_v42  ;;  %v1081_v54 = vsel %vm3563_vm12, %v3575_v45, 0.0  ;;  %vm3642_vm10 = vmand %vm3554_vm7, %vm4559_vm5  ;;  %v3171_v30 = vld [vmem:[%s4555_s5 + $0x100] sm:$0xff]  }
  0x2a   : > { %2963 = vmatprep.subr.bf16.mxu1 %v3170_v11  ;;  %vm824_vm15 = vcmp.ge.f32.partialorder %v794_v35, 0.0  ;;  %v854_v47 = vmul.f32 0.2, %v794_v35  ;;  %v1082_v56 = vsel %vm3534_vm6, %v3589_v50, 0.0  ;;  %v1083_v57 = vsel %vm3571_vm13, %v882_v51, 0.0  ;;  %vm2679_vm11 = vmpackc.low %vm3534_vm6, %vm3563_vm12  ;;  %v3178_v51 = vld [vmem:[%s4555_s5 + $0x1d0] sm:$0xff]  }
  0x2b   : > { %v883_v58 = vsel %vm823_vm14, %v793_v33, %v853_v46  ;;  %v1111_v60 = vpack.c.bf16 %v1082_v56, %v1081_v54  ;;  %v1112_v61 = vpack.c.bf16 %v1083_v57, %v1083_v57  ;;  %v2680_v2 = vpack.c.bf16 %v3589_v50, %v3575_v45  ;;  %v3670_v45 = vld [vmem:[%s3455_s13 + $0x48] sm:$0xff] }
  0x2c   : > { %v884_v59 = vsel %vm824_vm15, %v794_v35, %v854_v47  ;;  %v1084_v62 = vsel %vm3581_vm1, %v883_v58, 0.0  ;;  %v765_v3 = vmul.f32 %v735_v55, %v705_v49  ;;  %v614_v24 = vunpack.c.h.bf16 %v3617_v4  ;;  %v3176_v35 = vld [vmem:[%s4555_s5 + $0x188] sm:$0xff]  }
  0x2d   : > { %v1085_v63 = vsel %vm3554_vm7, %v884_v59, 0.0  ;;  %v3612_v1 = vpack.c.bf16 %v884_v59, %v883_v58  ;;  %v1133_v5 = vshrl.u32 %v1111_v60, 16  ;;  %v1135_v6 = vshll.u32 %v1111_v60, 16  ;;  %v3183_v58 = vld [vmem:[%s4555_s5 + $0x118] sm:$0xff]  }
  0x2e   : > { %v3610_v0 = vpack.c.bf16 %v1085_v63, %v1084_v62  ;;  %v1140_v7 = vshll.u32 %v1112_v61, 16  ;;  %v1253_v8 = vrot.slane %v1111_v60, 1  ;;  %v1254_v13 = vrot.slane %v1112_v61, 1  ;;  %v3694_v63 = vld [vmem:[%s3455_s13 + $0x50] sm:$0xff] }
  0x2f   : > { %2705 = vmatprep.mubr.msk.bf16.mxu1 %vm2682_vm9, %v3612_v1  ;;  %v795_v14 = vadd.f32 %v765_v3, %v612_v37  ;;  %v1137_v18 = vrot.slane %v1135_v6, 1  ;;  %v549_v37 = vld [vmem:[%s3444_s18 + $0x40] sm:$0x3]  ;;  %v615_v40 = vunpack.c.l.bf16 %v3633_v16  ;;  %v616_v34 = vunpack.c.h.bf16 %v3633_v16  ;;  %v3175_v3 = vld [vmem:[%s4555_s5 + $0x108] sm:$0xff]   ;;  %v551_v6 = vld [vmem:[%s3444_s18 + $0x50] sm:$0xff] }
  0x30   : > { %v1145_v11 = vshrl.u32 %v3610_v0, 16  ;;  %v1147_v12 = vshll.u32 %v3610_v0, 16  ;;  %v1142_v21 = vrot.slane %v1140_v7, 1  ;;  %v1255_v29 = vsel %vm4562_vm8, %v1253_v8, %v1254_v13 }
  0x31   : > { %vm825_vm13 = vcmp.ge.f32.partialorder %v795_v14, 0.0  ;;  %v855_v31 = vmul.f32 0.2, %v795_v14  ;;  %v1138_v39 = vor.u32 %v1137_v18, %v1133_v5  ;;  %2036 = vmatmul.mubr.bf16.vlgmr.msra.gmra.mrb[0].mxu1 %v1255_v29  ;;  %v672_v42 = vsub.f32 %v547_v10, %v3493_v52  ;;  %v3180_v10 = vld [vmem:[%s4555_s5 + $0x190] sm:$0xff]  }
  0x32   : > { %v1149_v33 = vrot.slane %v1147_v12, 1  ;;  %2964 = vmatpush3.bf16.msra.mxu1 %v3172_v9  ;;  %v673_v49 = vsub.f32 %v548_v15, %v3493_v52  ;;  %v736_v50 = vadd.f32 1.0, %v613_v23  ;;  %vm928_vm14 = vcmp.ge.s32.totalorder %v3524_v19, 1  ;;  %v3177_v15 = vld [vmem:[%s4555_s5 + $0x150] sm:$0xff]  }
  0x33   : > { %v885_v46 = vsel %vm825_vm13, %v795_v14, %v855_v31  ;;  %vm938_vm15 = vcmp.le.s32.totalorder %v3524_v19, 16  ;;  %v1143_v54 = vsel %vm4560_vm0, %v1138_v39, %v1142_v21  ;;  %v706_v56 = vmul.f32 %v3495_v53, %v672_v42  ;;  %vm3686_vm13 = vmand %vm927_vm2, %vm937_vm3  ;;  %2965 = vmatprep.subr.bf16.mxu1 %v3174_v17  ;;  %v3179_v29 = vld [vmem:[%s4555_s5 + $0x110] sm:$0xff]  }
  0x34   : > { %v1150_v47 = vor.u32 %v1149_v33, %v1145_v11  ;;  %v1086_v55 = vsel %vm3642_vm10, %v885_v46, 0.0  ;;  %v737_v57 = vadd.f32 1.0, %v615_v40  ;;  %1938 = vmatprep.mubr.bf16.mxu0 %v1143_v54  ;;  %v707_v60 = vmul.f32 %v3495_v53, %v673_v49  ;;  %vm3713_vm6 = vmand %vm3686_vm13, %vm955_vm4  ;;  %v3181_v46 = vld [vmem:[%s4555_s5 + $0x158] sm:$0xff]  }
  0x35   : > { %v1114_v59 = vpack.c.bf16 %v1086_v55, %v1086_v55  ;;  %v1256_v61 = vrot.slane %v3610_v0, 1  ;;  %v617_v62 = vunpack.c.l.bf16 %v3649_v28  ;;  %2681 = vmatmul.mubr.msk.bf16.vlgmr.msra.gmra.mrb[0].mxu0 %vm2679_vm11, %v2680_v2  ;;  %v766_v43 = vmul.f32 %v736_v50, %v706_v56  ;;  %v550_v0 = vld [vmem:[%s3444_s18 + $0x48] sm:$0xff]  ;;  %vm3744_vm3 = vmpackc.low %vm3686_vm13, %vm3713_vm6  ;;  %v552_v55 = vld [vmem:[%s3444_s18 + $0x58] sm:$0x3] }
  0x36   : > { %v618_v4 = vunpack.c.h.bf16 %v3649_v28  ;;  %v674_v5 = vsub.f32 %v549_v37, %v3493_v52  ;;  %v619_v7 = vunpack.c.l.bf16 %v3670_v45  ;;  %2900 = vmatpush3.bf16.msra.mxu0 %v3171_v30  ;;  %v767_v20 = vmul.f32 %v737_v57, %v707_v60  ;;  %2966 = vmatpush3.bf16.msra.mxu1 %v3176_v35  ;;  %v3184_v37 = vld [vmem:[%s4555_s5 + $0x198] sm:$0xff]   ;;  %vm3766_vm10 = vmand %vm3686_vm13, %vm4559_vm5  ;;  %v3773_v56 = vld [vmem:[%s3455_s13 + $0x60] sm:$0xff] }
  0x37   : > { %v1152_v8 = vshll.u32 %v1114_v59, 16  ;;  %v1257_v2 = vrot.slane %v1114_v59, 1  ;;  %v738_v9 = vadd.f32 1.0, %v617_v62  ;;  %v796_v11 = vadd.f32 %v766_v43, %v614_v24  ;;  %2901 = vmatprep.subr.bf16.mxu0 %v3173_v44  ;;  %2967 = vmatprep.subr.bf16.mxu1 %v3178_v51  ;;  %v3755_v44 = vld [vmem:[%s3455_s13 + $0x58] sm:$0x11]  ;;  %v3190_v50 = vld [vmem:[%s4555_s5 + $0x1e8] sm:$0xff]  }
  0x38   : > { %v708_v12 = vmul.f32 %v3495_v53, %v674_v5  ;;  %v620_v13 = vunpack.c.h.bf16 %v3670_v45  ;;  %v621_v14 = vunpack.c.l.bf16 %v3694_v63  ;;  %v797_v17 = vadd.f32 %v767_v20, %v616_v34  ;;  %v3186_v5 = vld [vmem:[%s4555_s5 + $0x1e0] sm:$0xff]  }
  0x39   : > { %v1154_v16 = vrot.slane %v1152_v8, 1  ;;  %v3727_v18 = vsel %vm4562_vm8, %v1256_v61, %v1257_v2  ;;  %v622_v21 = vunpack.c.h.bf16 %v3694_v63  ;;  %vm826_vm12 = vcmp.ge.f32.partialorder %v796_v11, 0.0  ;;  %v3188_v45 = vld [vmem:[%s4555_s5 + $0x1a0] sm:$0xff]  }
  0x3a   : > { %v856_v23 = vmul.f32 0.2, %v796_v11  ;;  %v768_v24 = vmul.f32 %v738_v9, %v708_v12  ;;  %v675_v28 = vsub.f32 %v550_v0, %v3493_v52  ;;  %vm827_vm2 = vcmp.ge.f32.partialorder %v797_v17, 0.0  ;;  %2902 = vmatpush3.bf16.msra.mxu0 %v3175_v3  ;;  %2968 = vmatpush3.bf16.msra.mxu1 %v3180_v10 }
  0x3b   : > { %v3738_v30 = vsel %vm4560_vm0, %v1150_v47, %v1154_v16  ;;  %v857_v31 = vmul.f32 0.2, %v797_v17  ;;  %v676_v35 = vsub.f32 %v551_v6, %v3493_v52  ;;  %v739_v42 = vadd.f32 1.0, %v619_v7  ;;  %2903 = vmatprep.subr.bf16.mxu0 %v3177_v15  ;;  %2969 = vmatprep.subr.bf16.mxu1 %v3182_v22 }
  0x3c   : > { %1946 = vmatprep.mubr.bf16.mxu0 %v3738_v30  ;;  %v886_v39 = vsel %vm826_vm12, %v796_v11, %v856_v23  ;;  %v798_v40 = vadd.f32 %v768_v24, %v618_v4  ;;  %v709_v34 = vmul.f32 %v3495_v53, %v675_v28  ;;  %v740_v54 = vadd.f32 1.0, %v621_v14  ;;  %v3187_v14 = vld [vmem:[%s4555_s5 + $0x120] sm:$0xff]   ;;  %v3206_v24 = vld [vmem:[%s4555_s5 + $0x228] sm:$0xff]  }
  0x3d   : > { %v887_v47 = vsel %vm827_vm2, %v797_v17, %v857_v31  ;;  %v1087_v49 = vsel %vm3713_vm6, %v886_v39, 0.0  ;;  %v710_v51 = vmul.f32 %v3495_v53, %v676_v35  ;;  %2684 = vmatmul.mubr.msk.bf16.gmra.mrb[4].mxu0 %vm2682_vm9, %v3612_v1  ;;  %vm3789_vm6 = vmand %vm928_vm14, %vm938_vm15  ;;  %v623_v63 = vunpack.c.l.bf16 %v3755_v44 }
  0x3e   : > { %v1088_v57 = vsel %vm3686_vm13, %v887_v47, 0.0  ;;  %v3777_v59 = vpack.c.bf16 %v887_v47, %v886_v39  ;;  %vm828_vm11 = vcmp.ge.f32.partialorder %v798_v40, 0.0  ;;  %v858_v60 = vmul.f32 0.2, %v798_v40  ;;  %2904 = vmatpush3.bf16.msra.mxu0 %v3179_v29  ;;  %2970 = vmatpush3.bf16.msra.mxu1 %v3184_v37  ;;  %vm3818_vm7 = vmand %vm3789_vm6, %vm955_vm4  ;;  %v553_v29 = vld [vmem:[%s3444_s18 + $0x60] sm:$0xff] }
  0x3f   : > { %v1115_v48 = vpack.c.bf16 %v1088_v57, %v1087_v49  ;;  %v769_v1 = vmul.f32 %v739_v42, %v709_v34  ;;  %v770_v62 = vmul.f32 %v740_v54, %v710_v51  ;;  %v624_v43 = vunpack.c.h.bf16 %v3755_v44  ;;  %2905 = vmatprep.subr.bf16.mxu0 %v3181_v46  ;;  %2971 = vmatprep.subr.bf16.mxu1 %v3186_v5  ;;  %vm3836_vm14 = vmpackc.low %vm3789_vm6, %vm3818_vm7  ;;  %v554_v34 = vld [vmem:[%s3444_s18 + $0x68] sm:$0xff]  ;;  %v3865_v57 = vld [vmem:[%s3455_s13 + $0x70] sm:$0x11] }
  0x40   : > { %2708 = vmatprep.mubr.msk.bf16.mxu1 %vm3744_vm3, %v3777_v59  ;;  %v888_v19 = vsel %vm828_vm11, %v798_v40, %v858_v60  ;;  %v677_v3 = vsub.f32 %v552_v55, %v3493_v52  ;;  %v625_v4 = vunpack.c.l.bf16 %v3773_v56  ;;  %v626_v31 = vunpack.c.h.bf16 %v3773_v56  ;;  %v3189_v42 = vld [vmem:[%s4555_s5 + $0x168] sm:$0xff]   ;;  %vm3875_vm13 = vmand %vm3789_vm6, %vm4559_vm5 }
  0x41   : > { %2044 = vmatmul.mubr.bf16.gmra.mrb[4].mxu1 %v3727_v18  ;;  %v1089_v0 = vsel %vm3766_vm10, %v888_v19, 0.0  ;;  %v1157_v6 = vshrl.u32 %v1115_v48, 16  ;;  %v1159_v7 = vshll.u32 %v1115_v48, 16  ;;  %v799_v8 = vadd.f32 %v769_v1, %v620_v13  ;;  %v555_v1 = vld [vmem:[%s3444_s18 + $0x70] sm:$0x3] }
  0x42   : > { %v1116_v41 = vpack.c.bf16 %v1089_v0, %v1089_v0  ;;  %v800_v2 = vadd.f32 %v770_v62, %v622_v21  ;;  %v1259_v9 = vrot.slane %v1115_v48, 1  ;;  %v711_v10 = vmul.f32 %v3495_v53, %v677_v3  ;;  %2906 = vmatpush3.bf16.msra.mxu0 %v3183_v58  ;;  %v3830_v21 = vld [vmem:[%s3455_s13 + $0x68] sm:$0xff]  ;;  %2972 = vmatpush3.bf16.msra.mxu1 %v3188_v45  ;;  %v3896_v0 = vld [vmem:[%s3455_s13 + $0x78] sm:$0xff] }
  0x43   : > { %v1161_v11 = vrot.slane %v1159_v7, 1  ;;  %vm829_vm1 = vcmp.ge.f32.partialorder %v799_v8, 0.0  ;;  %v859_v12 = vmul.f32 0.2, %v799_v8  ;;  %v741_v13 = vadd.f32 1.0, %v623_v63  ;;  %2907 = vmatprep.subr.bf16.mxu0 %v3185_v36  ;;  %v3191_v62 = vld [vmem:[%s4555_s5 + $0x128] sm:$0xff]   ;;  %2973 = vmatprep.subr.bf16.mxu1 %v3190_v50 }
  0x44   : > { %v1164_v15 = vshll.u32 %v1116_v41, 16  ;;  %vm830_vm9 = vcmp.ge.f32.partialorder %v800_v2, 0.0  ;;  %v860_v16 = vmul.f32 0.2, %v800_v2  ;;  %v1260_v17 = vrot.slane %v1116_v41, 1  ;;  %v3192_v63 = vld [vmem:[%s4555_s5 + $0x1a8] sm:$0xff]  }
  0x45   : > { %v1162_v22 = vor.u32 %v1161_v11, %v1157_v6  ;;  %v889_v23 = vsel %vm829_vm1, %v799_v8, %v859_v12  ;;  %v771_v28 = vmul.f32 %v741_v13, %v711_v10  ;;  %v627_v49 = vunpack.c.l.bf16 %v3830_v21  ;;  %v556_v13 = vld [vmem:[%s3444_s18 + $0x78] sm:$0xff] }
  0x46   : > { %v1166_v35 = vrot.slane %v1164_v15, 1  ;;  %v890_v37 = vsel %vm830_vm9, %v800_v2, %v860_v16  ;;  %v1090_v39 = vsel %vm3818_vm7, %v889_v23, 0.0  ;;  %v3845_v40 = vsel %vm4562_vm8, %v1259_v9, %v1260_v17  ;;  %2908 = vmatpush3.bf16.msra.mxu0 %v3187_v14  ;;  %2974 = vmatpush3.bf16.msra.mxu1 %v3192_v63  ;;  %v3909_v14 = vld [vmem:[%s3455_s13 + $0x80] sm:$0xff]  ;;  %v3197_v9 = vld [vmem:[%s4555_s5 + $0x178] sm:$0xff]  }
  0x47   : > { %v1091_v44 = vsel %vm3789_vm6, %v890_v37, 0.0  ;;  %v3853_v46 = vpack.c.bf16 %v890_v37, %v889_v23  ;;  %v801_v47 = vadd.f32 %v771_v28, %v624_v43  ;;  %v628_v55 = vunpack.c.h.bf16 %v3830_v21  ;;  %2909 = vmatprep.subr.bf16.mxu0 %v3189_v42  ;;  %v557_v23 = vld [vmem:[%s3444_s18 + $0x80] sm:$0xff]  ;;  %v3193_v28 = vld [vmem:[%s4555_s5 + $0x170] sm:$0xff]  }
  0x48   : > { %v3860_v51 = vsel %vm4560_vm0, %v1162_v22, %v1166_v35  ;;  %v1117_v54 = vpack.c.bf16 %v1091_v44, %v1090_v39  ;;  %v678_v56 = vsub.f32 %v553_v29, %v3493_v52  ;;  %v679_v36 = vsub.f32 %v554_v34, %v3493_v52  ;;  %v3194_v39 = vld [vmem:[%s4555_s5 + $0x1f0] sm:$0xff]  }
  0x49   : > { %1954 = vmatprep.mubr.bf16.mxu0 %v3860_v51  ;;  %2711 = vmatprep.mubr.msk.bf16.mxu1 %vm3836_vm14, %v3853_v46  ;;  %vm831_vm15 = vcmp.ge.f32.partialorder %v801_v47, 0.0  ;;  %v861_v60 = vmul.f32 0.2, %v801_v47  ;;  %v742_v48 = vadd.f32 1.0, %v625_v4  ;;  %v743_v3 = vadd.f32 1.0, %v627_v49 }
  0x4a   : > { %2687 = vmatmul.mubr.msk.bf16.gmra.mrb[8].mxu0 %vm3744_vm3, %v3777_v59  ;;  %2052 = vmatmul.mubr.bf16.gmra.mrb[8].mxu1 %v3845_v40  ;;  %v1169_v61 = vshrl.u32 %v1117_v54, 16  ;;  %v1171_v19 = vshll.u32 %v1117_v54, 16  ;;  %v712_v43 = vmul.f32 %v3495_v53, %v678_v56  ;;  %v713_v5 = vmul.f32 %v3495_v53, %v679_v36 }
  0x4b   : > { %v891_v4 = vsel %vm831_vm15, %v801_v47, %v861_v60  ;;  %vm929_vm12 = vcmp.ge.s32.totalorder %v3541_v25, 1  ;;  %vm939_vm2 = vcmp.le.s32.totalorder %v3541_v25, 16  ;;  %2910 = vmatpush3.bf16.msra.mxu0 %v3191_v62  ;;  %v1262_v20 = vrot.slane %v1117_v54, 1  ;;  %2975 = vmatprep.subr.bf16.mxu1 %v3194_v39 }
  0x4c   : > { %v1092_v6 = vsel %vm3875_vm13, %v891_v4, 0.0  ;;  %v1173_v7 = vrot.slane %v1171_v19, 1  ;;  %v772_v8 = vmul.f32 %v742_v48, %v712_v43  ;;  %v773_v2 = vmul.f32 %v743_v3, %v713_v5  ;;  %vm3900_vm10 = vmand %vm929_vm12, %vm939_vm2  ;;  %2911 = vmatprep.subr.bf16.mxu0 %v3193_v28  ;;  %v3196_v48 = vld [vmem:[%s4555_s5 + $0x1b0] sm:$0xff]   ;;  %v558_v5 = vld [vmem:[%s3444_s18 + $0x88] sm:$0x3] }
  0x4d   : > { %v1118_v41 = vpack.c.bf16 %v1092_v6, %v1092_v6  ;;  %v629_v25 = vunpack.c.l.bf16 %v3865_v57  ;;  %v630_v10 = vunpack.c.h.bf16 %v3865_v57  ;;  %v680_v12 = vsub.f32 %v555_v1, %v3493_v52  ;;  %vm3920_vm6 = vmand %vm3900_vm10, %vm955_vm4  ;;  %2976 = vmatpush3.bf16.msra.mxu1 %v3196_v48 }
  0x4e   : > { %v1174_v45 = vor.u32 %v1173_v7, %v1169_v61  ;;  %v802_v11 = vadd.f32 %v772_v8, %v626_v31  ;;  %v631_v15 = vunpack.c.l.bf16 %v3896_v0  ;;  %v803_v17 = vadd.f32 %v773_v2, %v628_v55  ;;  %v3195_v55 = vld [vmem:[%s4555_s5 + $0x130] sm:$0xff]   ;;  %vm3946_vm1 = vmpackc.low %vm3900_vm10, %vm3920_vm6  ;;  %v3199_v31 = vld [vmem:[%s4555_s5 + $0x138] sm:$0xff]  }
  0x4f   : > { %v1176_v16 = vshll.u32 %v1118_v41, 16  ;;  %v1263_v21 = vrot.slane %v1118_v41, 1  ;;  %v744_v22 = vadd.f32 1.0, %v629_v25  ;;  %v714_v35 = vmul.f32 %v3495_v53, %v680_v12  ;;  %2912 = vmatpush3.bf16.msra.mxu0 %v3195_v55  ;;  %vm3977_vm15 = vmand %vm3900_vm10, %vm4559_vm5 }
  0x50   : > { %vm832_vm11 = vcmp.ge.f32.partialorder %v802_v11, 0.0  ;;  %v862_v29 = vmul.f32 0.2, %v802_v11  ;;  %v632_v37 = vunpack.c.h.bf16 %v3896_v0  ;;  %vm833_vm7 = vcmp.ge.f32.partialorder %v803_v17, 0.0  ;;  %v3968_v0 = vld [vmem:[%s3455_s13 + $0x88] sm:$0x11]  ;;  %2913 = vmatprep.subr.bf16.mxu0 %v3197_v9 }
  0x51   : > { %v1178_v34 = vrot.slane %v1176_v16, 1  ;;  %v863_v42 = vmul.f32 0.2, %v803_v17  ;;  %v3930_v44 = vsel %vm4562_vm8, %v1262_v20, %v1263_v21  ;;  %v774_v49 = vmul.f32 %v744_v22, %v714_v35  ;;  %v3984_v20 = vld [vmem:[%s3455_s13 + $0x90] sm:$0xff] }
  0x52   : > { %v892_v47 = vsel %vm832_vm11, %v802_v11, %v862_v29  ;;  %v633_v50 = vunpack.c.l.bf16 %v3909_v14  ;;  %v634_v54 = vunpack.c.h.bf16 %v3909_v14  ;;  %v681_v36 = vsub.f32 %v556_v13, %v3493_v52  ;;  %v3198_v14 = vld [vmem:[%s4555_s5 + $0x1f8] sm:$0xff]  }
  0x53   : > { %v3938_v56 = vsel %vm4560_vm0, %v1174_v45, %v1178_v34  ;;  %v893_v57 = vsel %vm833_vm7, %v803_v17, %v863_v42  ;;  %v1093_v60 = vsel %vm3920_vm6, %v892_v47, 0.0  ;;  %v804_v63 = vadd.f32 %v774_v49, %v630_v10  ;;  %v4007_v29 = vld [vmem:[%s3455_s13 + $0x98] sm:$0xff]  ;;  %2977 = vmatprep.subr.bf16.mxu1 %v3198_v14  ;;  %v559_v34 = vld [vmem:[%s3444_s18 + $0x90] sm:$0xff]  ;;  %2914 = vmatpush3.bf16.msra.mxu0 %v3199_v31 }
  0x54   : > { %1962 = vmatprep.mubr.bf16.mxu0 %v3938_v56  ;;  %v1094_v1 = vsel %vm3900_vm10, %v893_v57, 0.0  ;;  %v3957_v62 = vpack.c.bf16 %v893_v57, %v892_v47  ;;  %v682_v61 = vsub.f32 %v557_v23, %v3493_v52  ;;  %v715_v43 = vmul.f32 %v3495_v53, %v681_v36  ;;  %v560_v42 = vld [vmem:[%s3444_s18 + $0x98] sm:$0xff]  ;;  %v4029_v57 = vld [vmem:[%s4555_s5 + $0x200] sm:$0xff]  }
  0x55   : > { %v3960_v19 = vpack.c.bf16 %v1094_v1, %v1093_v60  ;;  %2690 = vmatmul.mubr.msk.bf16.gmra.mrb[12].mxu0 %vm3836_vm14, %v3853_v46  ;;  %v745_v3 = vadd.f32 1.0, %v631_v15  ;;  %v746_v4 = vadd.f32 1.0, %v633_v50  ;;  %vm834_vm9 = vcmp.ge.f32.partialorder %v804_v63, 0.0  ;;  %v3200_v49 = vld [vmem:[%s4555_s5 + $0x1b8] sm:$0xff]   ;;  %3043 = vmatprep.subr.bf16.mxu0 %v4029_v57 }
  0x56   : > { %2714 = vmatprep.mubr.msk.bf16.mxu1 %vm3946_vm1, %v3957_v62  ;;  %v864_v6 = vmul.f32 0.2, %v804_v63  ;;  %v716_v8 = vmul.f32 %v3495_v53, %v682_v61  ;;  %vm930_vm13 = vcmp.ge.s32.totalorder %v3544_v27, 1  ;;  %vm940_vm12 = vcmp.le.s32.totalorder %v3544_v27, 16  ;;  %2978 = vmatpush3.bf16.msra.mxu1 %v3200_v49 }
  0x57   : > { %2060 = vmatmul.mubr.bf16.gmra.mrb[12].mxu1 %v3930_v44  ;;  %v1181_v41 = vshrl.u32 %v3960_v19, 16  ;;  %v1183_v2 = vshll.u32 %v3960_v19, 16  ;;  %v775_v25 = vmul.f32 %v745_v3, %v715_v43  ;;  %vm3993_vm2 = vmand %vm930_vm13, %vm940_vm12  ;;  %v1265_v12 = vrot.slane %v3960_v19, 1  ;;  %3075 = vmatprep.subr.bf16.mxu1 %v4029_v57 }
  0x58   : > { %v894_v10 = vsel %vm834_vm9, %v804_v63, %v864_v6  ;;  %v776_v45 = vmul.f32 %v746_v4, %v716_v8  ;;  %v635_v13 = vunpack.c.l.bf16 %v3968_v0  ;;  %v636_v17 = vunpack.c.h.bf16 %v3968_v0  ;;  %vm4016_vm11 = vmand %vm3993_vm2, %vm955_vm4 }
  0x59   : > { %v1095_v27 = vsel %vm3977_vm15, %v894_v10, 0.0  ;;  %v1185_v15 = vrot.slane %v1183_v2, 1  ;;  %v805_v16 = vadd.f32 %v775_v25, %v632_v37  ;;  %v683_v23 = vsub.f32 %v558_v5, %v3493_v52  ;;  %vm4040_vm7 = vmpackc.low %vm3993_vm2, %vm4016_vm11  ;;  %v561_v2 = vld [vmem:[%s3444_s18 + $0xa0] sm:$0x3] }
  0x5a   : > { %v1120_v21 = vpack.c.bf16 %v1095_v27, %v1095_v27  ;;  %v806_v22 = vadd.f32 %v776_v45, %v634_v54  ;;  %v747_v28 = vadd.f32 1.0, %v635_v13  ;;  %v637_v47 = vunpack.c.l.bf16 %v3984_v20  ;;  %v591_v25 = vld [vmem:[%s3455_s13 + $0xa0] sm:$0x11]  ;;  %vm1008_vm15 = vmand %vm3993_vm2, %vm4559_vm5 }
  0x5b   : > { %v1186_v35 = vor.u32 %v1185_v15, %v1181_v41  ;;  %vm835_vm10 = vcmp.ge.f32.partialorder %v805_v16, 0.0  ;;  %v865_v39 = vmul.f32 0.2, %v805_v16  ;;  %v717_v36 = vmul.f32 %v3495_v53, %v683_v23 }
  0x5c   : > { %v1188_v50 = vshll.u32 %v1120_v21, 16  ;;  %vm836_vm6 = vcmp.ge.f32.partialorder %v806_v22, 0.0  ;;  %v866_v54 = vmul.f32 0.2, %v806_v22  ;;  %v1266_v55 = vrot.slane %v1120_v21, 1 }
  0x5d   : > { %v895_v60 = vsel %vm835_vm10, %v805_v16, %v865_v39  ;;  %v638_v48 = vunpack.c.h.bf16 %v3984_v20  ;;  %v639_v1 = vunpack.c.l.bf16 %v4007_v29  ;;  %v777_v0 = vmul.f32 %v747_v28, %v717_v36 }
  0x5e   : > { %v1190_v63 = vrot.slane %v1188_v50, 1  ;;  %v896_v61 = vsel %vm836_vm6, %v806_v22, %v866_v54  ;;  %v1096_v19 = vsel %vm4016_vm11, %v895_v60, 0.0  ;;  %v4045_v3 = vsel %vm4562_vm8, %v1265_v12, %v1266_v55 }
  0x5f   : > { %v1097_v4 = vsel %vm3993_vm2, %v896_v61, 0.0  ;;  %v4051_v5 = vpack.c.bf16 %v896_v61, %v895_v60  ;;  %v640_v6 = vunpack.c.h.bf16 %v4007_v29  ;;  %v684_v20 = vsub.f32 %v559_v34, %v3493_v52  ;;  %v4086_v29 = vld [vmem:[%s3455_s13 + $0xa8] sm:$0xff]  ;;  %v4099_v60 = vld [vmem:[%s3455_s13 + $0xb0] sm:$0xff] }
  0x60   : > { %v4055_v7 = vsel %vm4560_vm0, %v1186_v35, %v1190_v63  ;;  %v4057_v8 = vpack.c.bf16 %v1097_v4, %v1096_v19  ;;  %v685_v41 = vsub.f32 %v560_v42, %v3493_v52  ;;  %v807_v9 = vadd.f32 %v777_v0, %v636_v17  ;;  %v562_v4 = vld [vmem:[%s3444_s18 + $0xa8] sm:$0xff]  ;;  %v563_v0 = vld [vmem:[%s3444_s18 + $0xb0] sm:$0xff] }
  0x61   : > { %1970 = vmatprep.mubr.bf16.mxu0 %v4055_v7  ;;  %2717 = vmatprep.mubr.msk.bf16.mxu1 %vm4040_vm7, %v4051_v5  ;;  %v748_v10 = vadd.f32 1.0, %v637_v47  ;;  %v749_v45 = vadd.f32 1.0, %v639_v1  ;;  %v917_v12 = vadd.s32 6, %v3436_v32  ;;  %v718_v27 = vmul.f32 %v3495_v53, %v684_v20 }
  0x62   : > { %2693 = vmatmul.mubr.msk.bf16.gmra.mrb[16].mxu0 %vm3946_vm1, %v3957_v62  ;;  %2068 = vmatmul.mubr.bf16.gmra.mrb[16].mxu1 %v4045_v3  ;;  %v1193_v13 = vshrl.u32 %v4057_v8, 16  ;;  %v1195_v14 = vshll.u32 %v4057_v8, 16  ;;  %v719_v15 = vmul.f32 %v3495_v53, %v685_v41  ;;  %vm837_vm9 = vcmp.ge.f32.partialorder %v807_v9, 0.0 }
  0x63   : > { %v867_v16 = vmul.f32 0.2, %v807_v9  ;;  %vm931_vm13 = vcmp.ge.s32.totalorder %v917_v12, 1  ;;  %vm941_vm12 = vcmp.le.s32.totalorder %v917_v12, 16  ;;  %v778_v21 = vmul.f32 %v748_v10, %v718_v27 }
  0x64   : > { %v1197_v17 = vrot.slane %v1195_v14, 1  ;;  %v779_v22 = vmul.f32 %v749_v45, %v719_v15  ;;  %vm4080_vm10 = vmand %vm931_vm13, %vm941_vm12  ;;  %v1268_v28 = vrot.slane %v4057_v8, 1  ;;  %v641_v35 = vunpack.c.l.bf16 %v591_v25 }
  0x65   : > { %v897_v31 = vsel %vm837_vm9, %v807_v9, %v867_v16  ;;  %v642_v39 = vunpack.c.h.bf16 %v591_v25  ;;  %v686_v11 = vsub.f32 %v561_v2, %v3493_v52  ;;  %v808_v42 = vadd.f32 %v778_v21, %v638_v48  ;;  %vm4093_vm2 = vmand %vm4080_vm10, %vm955_vm4 }
  0x66   : > { %v1098_v37 = vsel %vm1008_vm15, %v897_v31, 0.0  ;;  %v1198_v34 = vor.u32 %v1197_v17, %v1193_v13  ;;  %v809_v47 = vadd.f32 %v779_v22, %v640_v6  ;;  %v750_v55 = vadd.f32 1.0, %v641_v35  ;;  %vm4109_vm9 = vmpackc.low %vm4080_vm10, %vm4093_vm2 }
  0x67   : > { %v1122_v49 = vpack.c.bf16 %v1098_v37, %v1098_v37  ;;  %v720_v54 = vmul.f32 %v3495_v53, %v686_v11  ;;  %v643_v36 = vunpack.c.l.bf16 %v4086_v29  ;;  %vm838_vm11 = vcmp.ge.f32.partialorder %v808_v42, 0.0  ;;  %vm1011_vm13 = vmand %vm4080_vm10, %vm4559_vm5 }
  0x68   : > { %vm839_vm6 = vcmp.ge.f32.partialorder %v809_v47, 0.0  ;;  %v868_v48 = vmul.f32 0.2, %v808_v42  ;;  %v869_v1 = vmul.f32 0.2, %v809_v47  ;;  %v644_v6 = vunpack.c.h.bf16 %v4086_v29 }
  0x69   : > { %v1200_v63 = vshll.u32 %v1122_v49, 16  ;;  %v1269_v61 = vrot.slane %v1122_v49, 1  ;;  %v780_v19 = vmul.f32 %v750_v55, %v720_v54  ;;  %v645_v2 = vunpack.c.l.bf16 %v4099_v60  ;;  %v4134_v29 = vld [vmem:[%s3455_s13 + $0xb8] sm:$0x11]  ;;  %s2594_s13 = sshll.u32 %s3528_s14, 3  ;;  %v4158_v54 = vld [vmem:[%s4139_s10] sm:$0xff] }
  0x6a   : > { %v898_v8 = vsel %vm838_vm11, %v808_v42, %v868_v48  ;;  %v899_v20 = vsel %vm839_vm6, %v809_v47, %v869_v1  ;;  %v646_v25 = vunpack.c.h.bf16 %v4099_v60  ;;  %v687_v15 = vsub.f32 %v562_v4, %v3493_v52  ;;  %v564_v42 = vld [vmem:[%s3444_s18 + $0xb8] sm:$0x3]  ;;  %s4163_s12 = scalar_lea.vmem %s4551_s1, %s2594_s13 }
  0x6b   : > { %v1202_v9 = vrot.slane %v1200_v63, 1  ;;  %v1099_v10 = vsel %vm4093_vm2, %v898_v8, 0.0  ;;  %v1100_v45 = vsel %vm4080_vm10, %v899_v20, 0.0  ;;  %v4120_v12 = vpack.c.bf16 %v899_v20, %v898_v8  ;;  %v4171_v8 = vld [vmem:[%s4139_s10 + $0x8] sm:$0xff] }
  0x6c   : > { %v1123_v13 = vpack.c.bf16 %v1100_v45, %v1099_v10  ;;  %v4123_v14 = vsel %vm4562_vm8, %v1268_v28, %v1269_v61  ;;  %v810_v27 = vadd.f32 %v780_v19, %v642_v39  ;;  %v688_v17 = vsub.f32 %v563_v0, %v3493_v52  ;;  %v565_v10 = vld [vmem:[%s4163_s12] sm:$0xff] }
  0x6d   : > { %v4127_v16 = vsel %vm4560_vm0, %v1198_v34, %v1202_v9  ;;  %2720 = vmatprep.mubr.msk.bf16.mxu1 %vm4109_vm9, %v4120_v12  ;;  %v751_v21 = vadd.f32 1.0, %v643_v36  ;;  %v752_v22 = vadd.f32 1.0, %v645_v2  ;;  %v721_v39 = vmul.f32 %v3495_v53, %v687_v15 }
  0x6e   : > { %1978 = vmatprep.mubr.bf16.mxu0 %v4127_v16  ;;  %2076 = vmatmul.mubr.bf16.gmra.mrb[20].mxu1 %v4123_v14  ;;  %vm840_vm15 = vcmp.ge.f32.partialorder %v810_v27, 0.0  ;;  %v870_v28 = vmul.f32 0.2, %v810_v27  ;;  %v1205_v31 = vshrl.u32 %v1123_v13, 16  ;;  %v1207_v35 = vshll.u32 %v1123_v13, 16 }
  0x6f   : > { %2696 = vmatmul.mubr.msk.bf16.gmra.mrb[20].mxu0 %vm4040_vm7, %v4051_v5  ;;  %v722_v11 = vmul.f32 %v3495_v53, %v688_v17  ;;  %v918_v37 = vadd.s32 7, %v3436_v32  ;;  %v1271_v34 = vrot.slane %v1123_v13, 1  ;;  %v647_v23 = vunpack.c.l.bf16 %v4134_v29 }
  0x70   : > { %v900_v47 = vsel %vm840_vm15, %v810_v27, %v870_v28  ;;  %v1209_v49 = vrot.slane %v1207_v35, 1  ;;  %v648_v50 = vunpack.c.h.bf16 %v4134_v29  ;;  %v781_v60 = vmul.f32 %v751_v21, %v721_v39 }
  0x71   : > { %v1101_v55 = vsel %vm1011_vm13, %v900_v47, 0.0  ;;  %v782_v36 = vmul.f32 %v752_v22, %v722_v11  ;;  %vm932_vm12 = vcmp.ge.s32.totalorder %v918_v37, 1  ;;  %vm942_vm10 = vcmp.le.s32.totalorder %v918_v37, 16  ;;  %v566_v22 = vld [vmem:[%s4163_s12 + $0x8] sm:$0xff]  ;;  %v4201_v37 = vld [vmem:[%s4139_s10 + $0x10] sm:$0x11] }
  0x72   : > { %v1124_v48 = vpack.c.bf16 %v1101_v55, %v1101_v55  ;;  %v1210_v1 = vor.u32 %v1209_v49, %v1205_v31  ;;  %v689_v63 = vsub.f32 %v564_v42, %v3493_v52  ;;  %v811_v61 = vadd.f32 %v781_v60, %v644_v6  ;;  %vm4166_vm2 = vmand %vm932_vm12, %vm942_vm10 }
  0x73   : > { %v812_v19 = vadd.f32 %v782_v36, %v646_v25  ;;  %v753_v0 = vadd.f32 1.0, %v647_v23  ;;  %v649_v20 = vunpack.c.l.bf16 %v4158_v54  ;;  %vm4178_vm11 = vmand %vm4166_vm2, %vm955_vm4  ;;  %v650_v45 = vunpack.c.h.bf16 %v4158_v54 }
  0x74   : > { %v1212_v2 = vshll.u32 %v1124_v48, 16  ;;  %v1272_v6 = vrot.slane %v1124_v48, 1  ;;  %v723_v25 = vmul.f32 %v3495_v53, %v689_v63  ;;  %vm841_vm6 = vcmp.ge.f32.partialorder %v811_v61, 0.0  ;;  %vm4194_vm13 = vmpackc.low %vm4166_vm2, %vm4178_vm11  ;;  %v567_v63 = vld [vmem:[%s4163_s12 + $0x10] sm:$0x3] }
  0x75   : > { %vm842_vm15 = vcmp.ge.f32.partialorder %v812_v19, 0.0  ;;  %v871_v13 = vmul.f32 0.2, %v811_v61  ;;  %v872_v27 = vmul.f32 0.2, %v812_v19  ;;  %v651_v29 = vunpack.c.l.bf16 %v4171_v8  ;;  %vm1014_vm10 = vmand %vm4166_vm2, %vm4559_vm5 }
  0x76   : > { %v1214_v15 = vrot.slane %v1212_v2, 1  ;;  %v4186_v17 = vsel %vm4562_vm8, %v1271_v34, %v1272_v6  ;;  %v783_v21 = vmul.f32 %v753_v0, %v723_v25  ;;  %v652_v39 = vunpack.c.h.bf16 %v4171_v8  ;;  %v4231_v2 = vld [vmem:[%s4139_s10 + $0x18] sm:$0xff] }
  0x77   : > { %v901_v28 = vsel %vm841_vm6, %v811_v61, %v871_v13  ;;  %v902_v31 = vsel %vm842_vm15, %v812_v19, %v872_v27  ;;  %v690_v11 = vsub.f32 %v565_v10, %v3493_v52  ;;  %v691_v55 = vsub.f32 %v566_v22, %v3493_v52  ;;  %v4240_v22 = vld [vmem:[%s4139_s10 + $0x20] sm:$0xff] }
  0x78   : > { %v4204_v34 = vsel %vm4560_vm0, %v1210_v1, %v1214_v15  ;;  %v1102_v42 = vsel %vm4178_vm11, %v901_v28, 0.0  ;;  %v1103_v47 = vsel %vm4166_vm2, %v902_v31, 0.0  ;;  %v4210_v49 = vpack.c.bf16 %v902_v31, %v901_v28 }
  0x79   : > { %1986 = vmatprep.mubr.bf16.mxu0 %v4204_v34  ;;  %v1125_v23 = vpack.c.bf16 %v1103_v47, %v1102_v42  ;;  %v813_v54 = vadd.f32 %v783_v21, %v648_v50  ;;  %v724_v60 = vmul.f32 %v3495_v53, %v690_v11  ;;  %v754_v36 = vadd.f32 1.0, %v649_v20 }
  0x7a   : > { %2723 = vmatprep.mubr.msk.bf16.mxu1 %vm4194_vm13, %v4210_v49  ;;  %2699 = vmatmul.mubr.msk.bf16.gmra.mrb[24].mxu0 %vm4109_vm9, %v4120_v12  ;;  %v755_v48 = vadd.f32 1.0, %v651_v29  ;;  %v919_v1 = vadd.s32 8, %v3436_v32  ;;  %v653_v50 = vunpack.c.l.bf16 %v4201_v37  ;;  %v725_v8 = vmul.f32 %v3495_v53, %v691_v55  ;;  %v600_v55 = vld [vmem:[%s4139_s10 + $0x28] sm:$0x11] }
  0x7b   : > { %2084 = vmatmul.mubr.bf16.gmra.mrb[24].mxu1 %v4186_v17  ;;  %vm843_vm12 = vcmp.ge.f32.partialorder %v813_v54, 0.0  ;;  %v873_v61 = vmul.f32 0.2, %v813_v54  ;;  %v1217_v19 = vshrl.u32 %v1125_v23, 16  ;;  %v1219_v0 = vshll.u32 %v1125_v23, 16 }
  0x7c   : > { %v784_v20 = vmul.f32 %v754_v36, %v724_v60  ;;  %vm933_vm11 = vcmp.ge.s32.totalorder %v919_v1, 1  ;;  %vm943_vm6 = vcmp.le.s32.totalorder %v919_v1, 16  ;;  %v1274_v25 = vrot.slane %v1125_v23, 1 }
  0x7d   : > { %v903_v9 = vsel %vm843_vm12, %v813_v54, %v873_v61  ;;  %v1221_v6 = vrot.slane %v1219_v0, 1  ;;  %v654_v10 = vunpack.c.h.bf16 %v4201_v37  ;;  %v785_v27 = vmul.f32 %v755_v48, %v725_v8  ;;  %vm4234_vm2 = vmand %vm933_vm11, %vm943_vm6  ;;  %v569_v0 = vld [vmem:[%s4163_s12 + $0x20] sm:$0xff] }
  0x7e   : > { %v1104_v13 = vsel %vm1014_vm10, %v903_v9, 0.0  ;;  %v814_v4 = vadd.f32 %v784_v20, %v650_v45  ;;  %v692_v21 = vsub.f32 %v567_v63, %v3493_v52  ;;  %v756_v31 = vadd.f32 1.0, %v653_v50  ;;  %vm4248_vm12 = vmand %vm4234_vm2, %vm955_vm4  ;;  %v568_v63 = vld [vmem:[%s4163_s12 + $0x18] sm:$0xff]  ;;  %v570_v9 = vld [vmem:[%s4163_s12 + $0x28] sm:$0x3]  ;;  %s2604_s12 = sshll.u32 %s3394_s24, 3 }
  0x7f   : > { %v1126_v29 = vpack.c.bf16 %v1104_v13, %v1104_v13  ;;  %v1222_v28 = vor.u32 %v1221_v6, %v1217_v19  ;;  %v655_v11 = vunpack.c.l.bf16 %v4231_v2  ;;  %v815_v42 = vadd.f32 %v785_v27, %v652_v39  ;;  %vm4558_vm11 = vmpackc.low %vm4234_vm2, %vm4248_vm12  ;;  %s4508_s15 = scalar_lea.vmem %s4557_s7, %s2604_s12 }
  0x80   : > { %vm844_vm15 = vcmp.ge.f32.partialorder %v814_v4, 0.0  ;;  %v874_v37 = vmul.f32 0.2, %v814_v4  ;;  %v726_v45 = vmul.f32 %v3495_v53, %v692_v21  ;;  %v4619_v23 = vmov 0 }
  0x81   : > { %v1224_v47 = vshll.u32 %v1126_v29, 16  ;;  %v4620_v23 = vsel %vm4248_vm12, 4294967295, %v4619_v23  ;;  %v1275_v54 = vrot.slane %v1126_v29, 1  ;;  %v656_v60 = vunpack.c.h.bf16 %v4231_v2 }
  0x82   : > { %v657_v39 = vunpack.c.l.bf16 %v4240_v22  ;;  %vm845_vm10 = vcmp.ge.f32.partialorder %v815_v42, 0.0  ;;  %v875_v36 = vmul.f32 0.2, %v815_v42  ;;  %v904_v48 = vsel %vm844_vm15, %v814_v4, %v874_v37  ;;  %vm1017_vm15 = vmand %vm4234_vm2, %vm4559_vm5 }
  0x83   : > { %v786_v1 = vmul.f32 %v756_v31, %v726_v45  ;;  %v1226_v50 = vrot.slane %v1224_v47, 1  ;;  %v1105_v61 = vsel %vm4248_vm12, %v904_v48, 0.0  ;;  %v4259_v19 = vsel %vm4562_vm8, %v1274_v25, %v1275_v54 }
  0x84   : > { %v658_v8 = vunpack.c.h.bf16 %v4240_v22  ;;  %v905_v20 = vsel %vm845_vm10, %v815_v42, %v875_v36  ;;  %v659_v6 = vunpack.c.l.bf16 %v600_v55  ;;  %v660_v13 = vunpack.c.h.bf16 %v600_v55 }
  0x85   : > { %v816_v2 = vadd.f32 %v786_v1, %v654_v10  ;;  %v4269_v27 = vsel %vm4560_vm0, %v1222_v28, %v1226_v50  ;;  %v1106_v25 = vsel %vm4234_vm2, %v905_v20, 0.0  ;;  %v4273_v4 = vpack.c.bf16 %v905_v20, %v904_v48 }
  0x86   : > { %v693_v21 = vsub.f32 %v568_v63, %v3493_v52  ;;  %1994 = vmatprep.mubr.bf16.mxu0 %v4269_v27  ;;  %v1127_v22 = vpack.c.bf16 %v1106_v25, %v1105_v61  ;;  %v694_v10 = vsub.f32 %v569_v0, %v3493_v52  ;;  %v695_v28 = vsub.f32 %v570_v9, %v3493_v52 }
  0x87   : > { %vm846_vm6 = vcmp.ge.f32.partialorder %v816_v2, 0.0  ;;  %v876_v29 = vmul.f32 0.2, %v816_v2  ;;  %2726 = vmatprep.mubr.msk.bf16.mxu1 %vm4558_vm11, %v4273_v4  ;;  %2702 = vmatmul.mubr.msk.bf16.gmra.mrb[28].mxu0 %vm4194_vm13, %v4210_v49  ;;  %v757_v42 = vadd.f32 1.0, %v655_v11  ;;  %v758_v37 = vadd.f32 1.0, %v657_v39 }
  0x88   : > { %v727_v31 = vmul.f32 %v3495_v53, %v693_v21  ;;  %2092 = vmatmul.mubr.bf16.gmra.mrb[28].mxu1 %v4259_v19  ;;  %2132 = vmatprep.mubr.bf16.mxu0 %v3727_v18  ;;  %v1286_v47 = vshrl.u32 %v1127_v22, 16  ;;  %v1288_v54 = vshll.u32 %v1127_v22, 16  ;;  %v1300_v55 = vrot.slane %v1127_v22, 1 }
  0x89   : > { %v906_v45 = vsel %vm846_vm6, %v816_v2, %v876_v29  ;;  %2229 = vmatprep.mubr.bf16.mxu1 %v3860_v51  ;;  %v728_v48 = vmul.f32 %v3495_v53, %v694_v10  ;;  %v729_v1 = vmul.f32 %v3495_v53, %v695_v28  ;;  %v759_v52 = vadd.f32 1.0, %v659_v6  ;;  %v3202_v53 = vld [vmem:[%s4555_s5 + $0x208] sm:$0xff]  }
  0x8a   : > { %v1107_v36 = vsel %vm1017_vm15, %v906_v45, 0.0  ;;  %v1290_v50 = vrot.slane %v1288_v54, 1  ;;  %v787_v11 = vmul.f32 %v757_v42, %v727_v31  ;;  %v920_v39 = vadd.s32 9, %v3436_v32 }
  0x8b   : > { %v1128_v63 = vpack.c.bf16 %v1107_v36, %v1107_v36  ;;  %v788_v61 = vmul.f32 %v758_v37, %v728_v48  ;;  %v789_v0 = vmul.f32 %v759_v52, %v729_v1  ;;  %v3204_v36 = vld [vmem:[%s4555_s5 + $0x218] sm:$0xff]  }
  0x8c   : > { %v1291_v18 = vor.u32 %v1290_v50, %v1286_v47  ;;  %v817_v9 = vadd.f32 %v787_v11, %v656_v60  ;;  %vm934_vm10 = vcmp.ge.s32.totalorder %v920_v39, 1  ;;  %vm944_vm6 = vcmp.le.s32.totalorder %v920_v39, 16 }
  0x8d   : > { %v1293_v20 = vshll.u32 %v1128_v63, 16  ;;  %v1301_v2 = vrot.slane %v1128_v63, 1  ;;  %v818_v25 = vadd.f32 %v788_v61, %v658_v8  ;;  %v819_v21 = vadd.f32 %v789_v0, %v660_v13  ;;  %vm4305_vm11 = vmand %vm934_vm10, %vm944_vm6 }
  0x8e   : > { %vm847_vm15 = vcmp.ge.f32.partialorder %v817_v9, 0.0  ;;  %v877_v32 = vmul.f32 0.2, %v817_v9  ;;  %vm4314_vm12 = vmand %vm4305_vm11, %vm955_vm4  ;;  %vm4625_vm10 = vsmask.f32 7424  ;;  %vm4626_vm6 = vcmp.le.s32.totalorder %v3465_v38, 16 }
  0x8f   : > { %v1295_v6 = vrot.slane %v1293_v20, 1  ;;  %v4303_v22 = vsel %vm4562_vm8, %v1300_v55, %v1301_v2  ;;  %2133 = vmatmul.mubr.bf16.vlgmr.msra.gmra.mrb[32].mxu0 %v3738_v30  ;;  %vm848_vm5 = vcmp.ge.f32.partialorder %v818_v25, 0.0  ;;  %vm849_vm0 = vcmp.ge.f32.partialorder %v819_v21, 0.0  ;;  %vm1020_vm8 = vmand %vm4305_vm11, %vm4626_vm6 }
  0x90   : > { %v878_v60 = vmul.f32 0.2, %v818_v25  ;;  %v879_v8 = vmul.f32 0.2, %v819_v21  ;;  %2729 = vmatmul.mubr.msk.bf16.vlgmr.msra.gmra.mrb[32].mxu1 %vm3744_vm3, %v3777_v59  ;;  %3044 = vmatpush3.bf16.msra.mxu0 %v4029_v57  ;;  %v4325_v10 = vsel %vm847_vm15, %v817_v9, %v877_v32  ;;  %vm4627_vm4 = vcmask 1046528   ;;  %vm2748_vm3 = vmpackc.low %vm4305_vm11, %vm4314_vm12 }
  0x91   : > { %v4323_v30 = vsel %vm4625_vm10, %v1291_v18, %v1295_v6  ;;  %3083 = vmatpush3.bf16.msra.mxu1 %v4029_v57  ;;  %2140 = vmatprep.mubr.bf16.mxu0 %v3845_v40  ;;  %v1108_v28 = vsel %vm4314_vm12, %v4325_v10, 0.0 }
  0x92   : > { %v4336_v33 = vsel %vm848_vm5, %v818_v25, %v878_v60  ;;  %v909_v59 = vsel %vm849_vm0, %v819_v21, %v879_v8  ;;  %2237 = vmatprep.mubr.bf16.mxu1 %v3938_v56  ;;  %3045 = vmatprep.subr.bf16.mxu0 %v3202_v53  ;;  %vm4628_vm5 = vmmov %vm4625_vm10 }
  0x93   : > { %v1109_v38 = vsel %vm4305_vm11, %v4336_v33, 0.0  ;;  %v1110_v57 = vsel %vm1020_vm8, %v909_v59, 0.0  ;;  %v2749_v31 = vpack.c.bf16 %v4336_v33, %v4325_v10  ;;  %3076 = vmatprep.subr.bf16.mxu1 %v3202_v53  ;;  %vm4629_vm8 = vnez %v4620_v23 }
  0x94   : > { %v1129_v42 = vpack.c.bf16 %v1109_v38, %v1108_v28  ;;  %v1130_v37 = vpack.c.bf16 %v1110_v57, %v1110_v57  ;;  %3046 = vmatpush3.bf16.msra.mxu0 %v3202_v53  ;;  %vm4630_vm0 = vmpackc.low %vm4234_vm2, %vm4629_vm8 }
  0x95   : > { %3084 = vmatpush3.bf16.msra.mxu1 %v3202_v53  ;;  %3047 = vmatprep.subr.bf16.mxu0 %v3203_v26 }
  0x96   : > { %v1305_v45 = vshrl.u32 %v1129_v42, 16  ;;  %v1307_v47 = vshll.u32 %v1129_v42, 16  ;;  %v1312_v54 = vshll.u32 %v1130_v37, 16  ;;  %v1319_v55 = vrot.slane %v1129_v42, 1  ;;  %3077 = vmatprep.subr.bf16.mxu1 %v3203_v26 }
  0x97   : > { %v1320_v48 = vrot.slane %v1130_v37, 1  ;;  %2141 = vmatmul.mubr.bf16.gmra.mrb[36].mxu0 %v3860_v51  ;;  %v3205_v51 = vld [vmem:[%s4555_s5 + $0x220] sm:$0xff]  }
  0x98   : > { %v1309_v1 = vrot.slane %v1307_v47, 1  ;;  %v1314_v52 = vrot.slane %v1312_v54, 1  ;;  %2732 = vmatmul.mubr.msk.bf16.gmra.mrb[36].mxu1 %vm3836_vm14, %v3853_v46  ;;  %2148 = vmatprep.mubr.bf16.mxu0 %v3930_v44  ;;  %v3207_v46 = vld [vmem:[%s4555_s5 + $0x230] sm:$0xff]  }
  0x99   : > { %v1321_v63 = vsel %vm4627_vm4, %v1319_v55, %v1320_v48  ;;  %2245 = vmatprep.mubr.bf16.mxu1 %v4055_v7  ;;  %3048 = vmatpush3.bf16.msra.mxu0 %v3203_v26 }
  0x9a   : > { %v1310_v50 = vor.u32 %v1309_v1, %v1305_v45  ;;  %3085 = vmatpush3.bf16.msra.mxu1 %v3203_v26  ;;  %3049 = vmatprep.subr.bf16.mxu0 %v3204_v36 }
  0x9b   : > { %3078 = vmatprep.subr.bf16.mxu1 %v3204_v36 }
  0x9c   : > { %v1315_v11 = vsel %vm4628_vm5, %v1310_v50, %v1314_v52 }
  0x9d   : > { %3050 = vmatpush3.bf16.msra.mxu0 %v3204_v36 }
  0x9e   : > { %3086 = vmatpush3.bf16.msra.mxu1 %v3204_v36  ;;  %3051 = vmatprep.subr.bf16.mxu0 %v3205_v51 }
  0x9f   : > { %2149 = vmatmul.mubr.bf16.gmra.mrb[40].mxu0 %v3938_v56  ;;  %3079 = vmatprep.subr.bf16.mxu1 %v3205_v51  ;;  %v3208_v56 = vld [vmem:[%s4555_s5 + $0x238] sm:$0xff]  }
  0xa0   : > { %2735 = vmatmul.mubr.msk.bf16.gmra.mrb[40].mxu1 %vm3946_vm1, %v3957_v62  ;;  %2156 = vmatprep.mubr.bf16.mxu0 %v4045_v3 }
  0xa1   : > { %2253 = vmatprep.mubr.bf16.mxu1 %v4127_v16  ;;  %3052 = vmatpush3.bf16.msra.mxu0 %v3205_v51 }
  0xa2   : > { %3087 = vmatpush3.bf16.msra.mxu1 %v3205_v51  ;;  %3053 = vmatprep.subr.bf16.mxu0 %v3206_v24 }
  0xa3   : > { %3080 = vmatprep.subr.bf16.mxu1 %v3206_v24 }
  0xa5   : > { %3054 = vmatpush3.bf16.msra.mxu0 %v3206_v24 }
  0xa6   : > { %3088 = vmatpush3.bf16.msra.mxu1 %v3206_v24  ;;  %3055 = vmatprep.subr.bf16.mxu0 %v3207_v46 }
  0xa7   : > { %2157 = vmatmul.mubr.bf16.gmra.mrb[44].mxu0 %v4055_v7  ;;  %3081 = vmatprep.subr.bf16.mxu1 %v3207_v46 }
  0xa8   : > { %2738 = vmatmul.mubr.msk.bf16.gmra.mrb[44].mxu1 %vm4040_vm7, %v4051_v5  ;;  %2164 = vmatprep.mubr.bf16.mxu0 %v4123_v14 }
  0xa9   : > { %2261 = vmatprep.mubr.bf16.mxu1 %v4204_v34  ;;  %3056 = vmatpush3.bf16.msra.mxu0 %v3207_v46 }
  0xaa   : > { %3089 = vmatpush3.bf16.msra.mxu1 %v3207_v46  ;;  %3057 = vmatprep.subr.bf16.mxu0 %v3208_v56 }
  0xab   : > { %3082 = vmatprep.subr.bf16.mxu1 %v3208_v56 }
  0xad   : > { %3058 = vmatpush3.bf16.msra.mxu0 %v3208_v56 }
  0xae   : > { %3090 = vmatpush3.bf16.msra.mxu1 %v3208_v56 }
  0xaf   : > { %2165 = vmatmul.mubr.bf16.gmra.mrb[48].mxu0 %v4127_v16 }
  0xb0   : > { %2741 = vmatmul.mubr.msk.bf16.gmra.mrb[48].mxu1 %vm4109_vm9, %v4120_v12  ;;  %2172 = vmatprep.mubr.bf16.mxu0 %v4186_v17 }
  0xb1   : > { %2269 = vmatprep.mubr.bf16.mxu1 %v4269_v27 }
  0xb7   : > { %2173 = vmatmul.mubr.bf16.gmra.mrb[52].mxu0 %v4204_v34 }
  0xb8   : > { %2744 = vmatmul.mubr.msk.bf16.gmra.mrb[52].mxu1 %vm4194_vm13, %v4210_v49  ;;  %2180 = vmatprep.mubr.bf16.mxu0 %v4259_v19 }
  0xb9   : > { %2277 = vmatprep.mubr.bf16.mxu1 %v4323_v30 }
  0xbf   : > { %2181 = vmatmul.mubr.bf16.gmra.mrb[56].mxu0 %v4269_v27 }
  0xc0   : > { %2747 = vmatmul.mubr.msk.bf16.gmra.mrb[56].mxu1 %vm4630_vm0, %v4273_v4  ;;  %2188 = vmatprep.mubr.bf16.mxu0 %v4303_v22 }
  0xc1   : > { %2285 = vmatprep.mubr.bf16.mxu1 %v1315_v11 }
  0xc7   : > { %2189 = vmatmul.mubr.bf16.gmra.mrb[60].mxu0 %v4323_v30 }
  0xc8   : > { %2750 = vmatmul.mubr.msk.bf16.gmra.mrb[60].mxu1 %vm2748_vm3, %v2749_v31  ;;  %3059 = vmatprep.mubr.bf16.mxu0 %v3845_v40 }
  0xc9   : > { %3067 = vmatprep.mubr.bf16.mxu1 %v4186_v17 }
  0xcf   : > { %3060 = vmatmul.mubr.bf16.vlgmr.msra.gmra.mrb[64].mxu0 %v3930_v44  ;;  %v4420_v44 = vld [vmem:[%s4556_s6] ss:$0 sm:$0xff] }
  0xd0   : > { %3068 = vmatmul.mubr.bf16.vlgmr.msra.gmra.mrb[64].mxu1 %v4259_v19  ;;  %3063 = vmatprep.mubr.bf16.mxu0 %v4045_v3 }
  0xd1   : > { %3071 = vmatprep.mubr.bf16.mxu1 %v4303_v22 }
  0xd7   : > { %3064 = vmatmul.mubr.bf16.gmra.mrb[68].mxu0 %v4123_v14 }
  0xd8   : > { %3072 = vmatmul.mubr.bf16.gmra.mrb[68].mxu1 %v1321_v63 }
 0x104   : > { %v2851_v58 = vpop.f32.mrb[0].mxu1 }
 0x105   : > { %v2852_v62 = vpop.f32.mrb[1].mxu1 }
 0x106   : > { %v2853_v43 = vadd.f32 %v2852_v62, %v2851_v58  ;;  %v2854_v5 = vpop.f32.mrb[2].mxu1 }
 0x107   : > { %v2855_v7 = vpop.f32.mrb[3].mxu1 }
 0x108   : > { %v2787_v41 = vpop.f32.mrb[0].mxu0  ;;  %v2856_v40 = vadd.f32 %v2855_v7, %v2854_v5 }
 0x109   : > { %v2788_v12 = vpop.f32.mrb[1].mxu0 }
 0x10a   : > { %v2789_v16 = vadd.f32 %v2788_v12, %v2787_v41  ;;  %v2790_v3 = vpop.f32.mrb[2].mxu0 }
 0x10b   : > { %v2791_v17 = vpop.f32.mrb[3].mxu0 }
 0x10c   : > { %v1941_v35 = vadd.f32 %v2789_v16, %v4420_v44  ;;  %v2792_v14 = vadd.f32 %v2791_v17, %v2790_v3 }
 0x10e   : > { %v4423_v34 = vadd.f32 %v2853_v43, %v1941_v35  ;;  %v1944_v49 = vadd.f32 %v2792_v14, %v4420_v44 }
 0x110   : > { %v4426_v15 = vadd.f32 %v2856_v40, %v1944_v49  ;;  %v2793_v23 = vpop.f32.mrb[4].mxu0 }
 0x111   : > { %v2794_v19 = vpop.f32.mrb[5].mxu0 }
 0x112   : > { %v2795_v27 = vadd.f32 %v2794_v19, %v2793_v23  ;;  %v2796_v4 = vpop.f32.mrb[6].mxu0 }
 0x113   : > { %v2797_v61 = vpop.f32.mrb[7].mxu0 }
 0x114   : > { %v2857_v39 = vpop.f32.mrb[4].mxu1  ;;  %v1949_v0 = vadd.f32 %v2795_v27, %v4420_v44  ;;  %v2798_v20 = vadd.f32 %v2797_v61, %v2796_v4 }
 0x115   : > { %v2858_v18 = vpop.f32.mrb[5].mxu1 }
 0x116   : > { %v2859_v2 = vadd.f32 %v2858_v18, %v2857_v39  ;;  %v2860_v9 = vpop.f32.mrb[6].mxu1  ;;  %v1952_v25 = vadd.f32 %v2798_v20, %v4420_v44 }
 0x117   : > { %v2861_v21 = vpop.f32.mrb[7].mxu1 }
 0x118   : > { %v4430_v53 = vadd.f32 %v2859_v2, %v1949_v0  ;;  %v2862_v6 = vadd.f32 %v2861_v21, %v2860_v9 }
 0x11a   : > { %v4432_v22 = vadd.f32 %v2862_v6, %v1952_v25 }
 0x11d   : > { %v2799_v32 = vpop.f32.mrb[8].mxu0  ;;  %v2863_v29 = vpop.f32.mrb[8].mxu1 }
 0x11e   : > { %v2800_v60 = vpop.f32.mrb[9].mxu0  ;;  %v2864_v8 = vpop.f32.mrb[9].mxu1 }
 0x11f   : > { %v2801_v13 = vadd.f32 %v2800_v60, %v2799_v32  ;;  %v2865_v30 = vadd.f32 %v2864_v8, %v2863_v29  ;;  %v2802_v10 = vpop.f32.mrb[10].mxu0  ;;  %v2866_v26 = vpop.f32.mrb[10].mxu1 }
 0x120   : > { %v2803_v33 = vpop.f32.mrb[11].mxu0  ;;  %v2867_v59 = vpop.f32.mrb[11].mxu1 }
 0x121   : > { %v1957_v28 = vadd.f32 %v2801_v13, %v4420_v44  ;;  %v2804_v38 = vadd.f32 %v2803_v33, %v2802_v10  ;;  %v2868_v57 = vadd.f32 %v2867_v59, %v2866_v26 }
 0x123   : > { %v4435_v31 = vadd.f32 %v2865_v30, %v1957_v28  ;;  %v1960_v42 = vadd.f32 %v2804_v38, %v4420_v44 }
 0x125   : > { %v4438_v37 = vadd.f32 %v2868_v57, %v1960_v42 }
 0x128   : > { %v2805_v45 = vpop.f32.mrb[12].mxu0 }
 0x129   : > { %v2806_v47 = vpop.f32.mrb[13].mxu0 }
 0x12a   : > { %v2869_v54 = vpop.f32.mrb[12].mxu1  ;;  %v2807_v55 = vadd.f32 %v2806_v47, %v2805_v45  ;;  %v2808_v36 = vpop.f32.mrb[14].mxu0 }
 0x12b   : > { %v2870_v48 = vpop.f32.mrb[13].mxu1  ;;  %v2809_v1 = vpop.f32.mrb[15].mxu0 }
 0x12c   : > { %v1965_v52 = vadd.f32 %v2807_v55, %v4420_v44  ;;  %v2871_v63 = vadd.f32 %v2870_v48, %v2869_v54  ;;  %v2872_v50 = vpop.f32.mrb[14].mxu1  ;;  %v2810_v51 = vadd.f32 %v2809_v1, %v2808_v36 }
 0x12d   : > { %v2873_v11 = vpop.f32.mrb[15].mxu1 }
 0x12e   : > { %v4441_v24 = vadd.f32 %v2871_v63, %v1965_v52  ;;  %v1968_v46 = vadd.f32 %v2810_v51, %v4420_v44  ;;  %v2874_v56 = vadd.f32 %v2873_v11, %v2872_v50 }
 0x130   : > { %v4444_v58 = vadd.f32 %v2874_v56, %v1968_v46 }
 0x135   : > { %v2811_v62 = vpop.f32.mrb[16].mxu0  ;;  %v2875_v43 = vpop.f32.mrb[16].mxu1 }
 0x136   : > { %v2812_v5 = vpop.f32.mrb[17].mxu0  ;;  %v2876_v7 = vpop.f32.mrb[17].mxu1 }
 0x137   : > { %v2813_v41 = vadd.f32 %v2812_v5, %v2811_v62  ;;  %v2877_v40 = vadd.f32 %v2876_v7, %v2875_v43  ;;  %v2814_v12 = vpop.f32.mrb[18].mxu0  ;;  %v2878_v16 = vpop.f32.mrb[18].mxu1 }
 0x138   : > { %v2815_v3 = vpop.f32.mrb[19].mxu0  ;;  %v2879_v17 = vpop.f32.mrb[19].mxu1 }
 0x139   : > { %v1973_v35 = vadd.f32 %v2813_v41, %v4420_v44  ;;  %v2816_v14 = vadd.f32 %v2815_v3, %v2814_v12  ;;  %v2880_v49 = vadd.f32 %v2879_v17, %v2878_v16 }
 0x13b   : > { %v4447_v23 = vadd.f32 %v2877_v40, %v1973_v35  ;;  %v1976_v19 = vadd.f32 %v2816_v14, %v4420_v44 }
 0x13d   : > { %v4450_v27 = vadd.f32 %v2880_v49, %v1976_v19 }
 0x141   : > { %v2881_v4 = vpop.f32.mrb[20].mxu1 }
 0x142   : > { %v2817_v39 = vpop.f32.mrb[20].mxu0  ;;  %v2882_v61 = vpop.f32.mrb[21].mxu1 }
 0x143   : > { %v2818_v0 = vpop.f32.mrb[21].mxu0  ;;  %v2883_v18 = vadd.f32 %v2882_v61, %v2881_v4  ;;  %v2884_v20 = vpop.f32.mrb[22].mxu1 }
 0x144   : > { %v2819_v2 = vadd.f32 %v2818_v0, %v2817_v39  ;;  %v2820_v9 = vpop.f32.mrb[22].mxu0  ;;  %v2885_v25 = vpop.f32.mrb[23].mxu1 }
 0x145   : > { %v2821_v21 = vpop.f32.mrb[23].mxu0  ;;  %v2886_v6 = vadd.f32 %v2885_v25, %v2884_v20 }
 0x146   : > { %v1981_v32 = vadd.f32 %v2819_v2, %v4420_v44  ;;  %v2822_v29 = vadd.f32 %v2821_v21, %v2820_v9 }
 0x148   : > { %v4453_v60 = vadd.f32 %v2883_v18, %v1981_v32  ;;  %v1984_v8 = vadd.f32 %v2822_v29, %v4420_v44 }
 0x14a   : > { %v4456_v13 = vadd.f32 %v2886_v6, %v1984_v8 }
 0x14d   : > { %v2823_v30 = vpop.f32.mrb[24].mxu0 }
 0x14e   : > { %v2887_v10 = vpop.f32.mrb[24].mxu1  ;;  %v2824_v26 = vpop.f32.mrb[25].mxu0 }
 0x14f   : > { %v2825_v33 = vadd.f32 %v2824_v26, %v2823_v30  ;;  %v2888_v59 = vpop.f32.mrb[25].mxu1  ;;  %v2826_v28 = vpop.f32.mrb[26].mxu0 }
 0x150   : > { %v2889_v38 = vadd.f32 %v2888_v59, %v2887_v10  ;;  %v2890_v57 = vpop.f32.mrb[26].mxu1  ;;  %v2827_v42 = vpop.f32.mrb[27].mxu0 }
 0x151   : > { %v1989_v45 = vadd.f32 %v2825_v33, %v4420_v44  ;;  %v2828_v47 = vadd.f32 %v2827_v42, %v2826_v28  ;;  %v2891_v54 = vpop.f32.mrb[27].mxu1 }
 0x152   : > { %v2892_v55 = vadd.f32 %v2891_v54, %v2890_v57 }
 0x153   : > { %v4459_v36 = vadd.f32 %v2889_v38, %v1989_v45  ;;  %v1992_v48 = vadd.f32 %v2828_v47, %v4420_v44 }
 0x155   : > { %v4462_v1 = vadd.f32 %v2892_v55, %v1992_v48 }
 0x15a   : > { %v2829_v52 = vpop.f32.mrb[28].mxu0 }
 0x15b   : > { %v2893_v63 = vpop.f32.mrb[28].mxu1  ;;  %v2830_v50 = vpop.f32.mrb[29].mxu0 }
 0x15c   : > { %v2831_v51 = vadd.f32 %v2830_v50, %v2829_v52  ;;  %v2894_v11 = vpop.f32.mrb[29].mxu1  ;;  %v2832_v46 = vpop.f32.mrb[30].mxu0 }
 0x15d   : > { %v2895_v56 = vadd.f32 %v2894_v11, %v2893_v63  ;;  %v2896_v62 = vpop.f32.mrb[30].mxu1  ;;  %v2833_v43 = vpop.f32.mrb[31].mxu0 }
 0x15e   : > { %v1997_v5 = vadd.f32 %v2831_v51, %v4420_v44  ;;  %v2834_v7 = vadd.f32 %v2833_v43, %v2832_v46  ;;  %v2897_v41 = vpop.f32.mrb[31].mxu1 }
 0x15f   : > { %v2898_v40 = vadd.f32 %v2897_v41, %v2896_v62 }
 0x160   : > { %v4465_v12 = vadd.f32 %v2895_v56, %v1997_v5  ;;  %v2000_v16 = vadd.f32 %v2834_v7, %v4420_v44 }
 0x162   : > { %v4468_v3 = vadd.f32 %v2898_v40, %v2000_v16  ;;  %v2915_v17 = vpop.f32.mrb[32].mxu0 }
 0x163   : > { %v2979_v35 = vpop.f32.mrb[32].mxu1  ;;  %v2916_v14 = vpop.f32.mrb[33].mxu0 }
 0x164   : > { %v2917_v49 = vadd.f32 %v2916_v14, %v2915_v17  ;;  %v2980_v19 = vpop.f32.mrb[33].mxu1  ;;  %v2918_v4 = vpop.f32.mrb[34].mxu0 }
 0x165   : > { %v2981_v39 = vadd.f32 %v2980_v19, %v2979_v35  ;;  %v2982_v61 = vpop.f32.mrb[34].mxu1  ;;  %v2919_v0 = vpop.f32.mrb[35].mxu0 }
 0x166   : > { %v2135_v18 = vadd.f32 %v2917_v49, %v4423_v34  ;;  %v2920_v20 = vadd.f32 %v2919_v0, %v2918_v4  ;;  %v2983_v2 = vpop.f32.mrb[35].mxu1 }
 0x167   : > { %v2984_v9 = vadd.f32 %v2983_v2, %v2982_v61 }
 0x168   : > { %v2138_v25 = vadd.f32 %v2920_v20, %v4426_v15  ;;  %v4472_v21 = vadd.f32 %v2981_v39, %v2135_v18 }
 0x16a   : > { %v2921_v44 = vpop.f32.mrb[36].mxu0  ;;  %v4474_v6 = vadd.f32 %v2984_v9, %v2138_v25 }
 0x16b   : > { %v2985_v32 = vpop.f32.mrb[36].mxu1  ;;  %v2922_v29 = vpop.f32.mrb[37].mxu0 }
 0x16c   : > { %v2923_v8 = vadd.f32 %v2922_v29, %v2921_v44  ;;  %v2986_v30 = vpop.f32.mrb[37].mxu1  ;;  %v2924_v10 = vpop.f32.mrb[38].mxu0 }
 0x16d   : > { %v2987_v26 = vadd.f32 %v2986_v30, %v2985_v32  ;;  %v2988_v33 = vpop.f32.mrb[38].mxu1  ;;  %v2925_v59 = vpop.f32.mrb[39].mxu0 }
 0x16e   : > { %v2143_v34 = vadd.f32 %v2923_v8, %v4430_v53  ;;  %v2926_v28 = vadd.f32 %v2925_v59, %v2924_v10  ;;  %v2989_v38 = vpop.f32.mrb[39].mxu1 }
 0x16f   : > { %v2990_v57 = vadd.f32 %v2989_v38, %v2988_v33 }
 0x170   : > { %v2146_v15 = vadd.f32 %v2926_v28, %v4432_v22  ;;  %v4478_v42 = vadd.f32 %v2987_v26, %v2143_v34 }
 0x172   : > { %v2927_v45 = vpop.f32.mrb[40].mxu0  ;;  %v4480_v47 = vadd.f32 %v2990_v57, %v2146_v15 }
 0x173   : > { %v2991_v54 = vpop.f32.mrb[40].mxu1  ;;  %v2928_v55 = vpop.f32.mrb[41].mxu0 }
 0x174   : > { %v2929_v48 = vadd.f32 %v2928_v55, %v2927_v45  ;;  %v2992_v52 = vpop.f32.mrb[41].mxu1  ;;  %v2930_v63 = vpop.f32.mrb[42].mxu0 }
 0x175   : > { %v2993_v50 = vadd.f32 %v2992_v52, %v2991_v54  ;;  %v2994_v51 = vpop.f32.mrb[42].mxu1  ;;  %v2931_v11 = vpop.f32.mrb[43].mxu0 }
 0x176   : > { %v2151_v53 = vadd.f32 %v2929_v48, %v4435_v31  ;;  %v2932_v46 = vadd.f32 %v2931_v11, %v2930_v63  ;;  %v2995_v56 = vpop.f32.mrb[43].mxu1 }
 0x177   : > { %v2996_v62 = vadd.f32 %v2995_v56, %v2994_v51 }
 0x178   : > { %v2154_v22 = vadd.f32 %v2932_v46, %v4438_v37  ;;  %v4484_v43 = vadd.f32 %v2993_v50, %v2151_v53 }
 0x17a   : > { %v2933_v5 = vpop.f32.mrb[44].mxu0  ;;  %v4486_v7 = vadd.f32 %v2996_v62, %v2154_v22 }
 0x17b   : > { %v2997_v41 = vpop.f32.mrb[44].mxu1  ;;  %v2934_v40 = vpop.f32.mrb[45].mxu0 }
 0x17c   : > { %v2935_v16 = vadd.f32 %v2934_v40, %v2933_v5  ;;  %v2998_v17 = vpop.f32.mrb[45].mxu1  ;;  %v2936_v35 = vpop.f32.mrb[46].mxu0 }
 0x17d   : > { %v2999_v14 = vadd.f32 %v2998_v17, %v2997_v41  ;;  %v3000_v49 = vpop.f32.mrb[46].mxu1  ;;  %v2937_v19 = vpop.f32.mrb[47].mxu0 }
 0x17e   : > { %v2159_v31 = vadd.f32 %v2935_v16, %v4441_v24  ;;  %v2938_v4 = vadd.f32 %v2937_v19, %v2936_v35  ;;  %v3001_v39 = vpop.f32.mrb[47].mxu1 }
 0x17f   : > { %v3002_v61 = vadd.f32 %v3001_v39, %v3000_v49 }
 0x180   : > { %v2162_v37 = vadd.f32 %v2938_v4, %v4444_v58  ;;  %v4490_v0 = vadd.f32 %v2999_v14, %v2159_v31 }
 0x182   : > { %v2939_v18 = vpop.f32.mrb[48].mxu0  ;;  %v4492_v20 = vadd.f32 %v3002_v61, %v2162_v37 }
 0x183   : > { %v3003_v2 = vpop.f32.mrb[48].mxu1  ;;  %v2940_v9 = vpop.f32.mrb[49].mxu0 }
 0x184   : > { %v2941_v25 = vadd.f32 %v2940_v9, %v2939_v18  ;;  %v3004_v44 = vpop.f32.mrb[49].mxu1  ;;  %v2942_v32 = vpop.f32.mrb[50].mxu0 }
 0x185   : > { %v3005_v29 = vadd.f32 %v3004_v44, %v3003_v2  ;;  %v3006_v8 = vpop.f32.mrb[50].mxu1  ;;  %v2943_v30 = vpop.f32.mrb[51].mxu0 }
 0x186   : > { %v2167_v24 = vadd.f32 %v2941_v25, %v4447_v23  ;;  %v2944_v10 = vadd.f32 %v2943_v30, %v2942_v32  ;;  %v3007_v26 = vpop.f32.mrb[51].mxu1 }
 0x187   : > { %v3008_v33 = vadd.f32 %v3007_v26, %v3006_v8 }
 0x188   : > { %v2170_v58 = vadd.f32 %v2944_v10, %v4450_v27  ;;  %v2264_v59 = vadd.f32 %v3005_v29, %v2167_v24 }
 0x18a   : > { %v2945_v34 = vpop.f32.mrb[52].mxu0  ;;  %v4496_v28 = vadd.f32 %v3008_v33, %v2170_v58 }
 0x18b   : > { %v3009_v38 = vpop.f32.mrb[52].mxu1  ;;  %v2946_v57 = vpop.f32.mrb[53].mxu0 }
 0x18c   : > { %v2947_v15 = vadd.f32 %v2946_v57, %v2945_v34  ;;  %v3010_v45 = vpop.f32.mrb[53].mxu1  ;;  %v2948_v54 = vpop.f32.mrb[54].mxu0 }
 0x18d   : > { %v3011_v55 = vadd.f32 %v3010_v45, %v3009_v38  ;;  %v3012_v48 = vpop.f32.mrb[54].mxu1  ;;  %v2949_v52 = vpop.f32.mrb[55].mxu0 }
 0x18e   : > { %v2175_v63 = vadd.f32 %v2947_v15, %v4453_v60  ;;  %v2950_v23 = vadd.f32 %v2949_v52, %v2948_v54  ;;  %v3013_v50 = vpop.f32.mrb[55].mxu1 }
 0x18f   : > { %v3014_v51 = vadd.f32 %v3013_v50, %v3012_v48 }
 0x190   : > { %v2178_v11 = vadd.f32 %v2950_v23, %v4456_v13  ;;  %v2272_v27 = vadd.f32 %v3011_v55, %v2175_v63 }
 0x192   : > { %v2951_v53 = vpop.f32.mrb[56].mxu0  ;;  %v2275_v46 = vadd.f32 %v3014_v51, %v2178_v11 }
 0x193   : > { %v3015_v56 = vpop.f32.mrb[56].mxu1  ;;  %v2952_v62 = vpop.f32.mrb[57].mxu0 }
 0x194   : > { %v2953_v22 = vadd.f32 %v2952_v62, %v2951_v53  ;;  %v3016_v5 = vpop.f32.mrb[57].mxu1  ;;  %v2954_v41 = vpop.f32.mrb[58].mxu0 }
 0x195   : > { %v3017_v40 = vadd.f32 %v3016_v5, %v3015_v56  ;;  %v3018_v16 = vpop.f32.mrb[58].mxu1  ;;  %v2955_v17 = vpop.f32.mrb[59].mxu0 }
 0x196   : > { %v2183_v35 = vadd.f32 %v2953_v22, %v4459_v36  ;;  %v2956_v14 = vadd.f32 %v2955_v17, %v2954_v41  ;;  %v3019_v60 = vpop.f32.mrb[59].mxu1 }
 0x197   : > { %v3020_v49 = vadd.f32 %v3019_v60, %v3018_v16 }
 0x198   : > { %v2186_v19 = vadd.f32 %v2956_v14, %v4462_v1  ;;  %v2280_v13 = vadd.f32 %v3017_v40, %v2183_v35 }
 0x19a   : > { %v2957_v31 = vpop.f32.mrb[60].mxu0  ;;  %v2283_v4 = vadd.f32 %v3020_v49, %v2186_v19 }
 0x19b   : > { %v3021_v39 = vpop.f32.mrb[60].mxu1  ;;  %v2958_v61 = vpop.f32.mrb[61].mxu0 }
 0x19c   : > { %v2959_v37 = vadd.f32 %v2958_v61, %v2957_v31  ;;  %v3022_v18 = vpop.f32.mrb[61].mxu1  ;;  %v2960_v2 = vpop.f32.mrb[62].mxu0 }
 0x19d   : > { %v3023_v9 = vadd.f32 %v3022_v18, %v3021_v39  ;;  %v3024_v25 = vpop.f32.mrb[62].mxu1  ;;  %v2961_v44 = vpop.f32.mrb[63].mxu0 }
 0x19e   : > { %v2191_v32 = vadd.f32 %v2959_v37, %v4465_v12  ;;  %v2962_v36 = vadd.f32 %v2961_v44, %v2960_v2  ;;  %v3025_v29 = vpop.f32.mrb[63].mxu1 }
 0x19f   : > { %v3026_v8 = vadd.f32 %v3025_v29, %v3024_v25 }
 0x1a0   : > { %v2194_v30 = vadd.f32 %v2962_v36, %v4468_v3  ;;  %v2288_v1 = vadd.f32 %v3023_v9, %v2191_v32 }
 0x1a2   : > { %v3061_v24 = vpop.f32.mrb[64].mxu0  ;;  %v2291_v10 = vadd.f32 %v3026_v8, %v2194_v30 }
 0x1a3   : > { %v2337_v26 = vadd.f32 %v3061_v24, %v4478_v42  ;;  %v3069_v12 = vpop.f32.mrb[64].mxu1  ;;  %v2328_v33 = vpop.f32.mrb[65].mxu0 }
 0x1a4   : > { %v2369_v58 = vadd.f32 %v3069_v12, %v2272_v27  ;;  %v2329_v3 = vadd.f32 %v2328_v33, %v4472_v21  ;;  %v2360_v34 = vpop.f32.mrb[65].mxu1  ;;  %v3062_v38 = vpop.f32.mrb[66].mxu0 }
 0x1a5   : > { %2393 = vst [vmem:[%s4508_s15 + $0x10] sm:$0xff] %v2337_v26  ;;  %v2361_v57 = vadd.f32 %v2360_v34, %v2264_v59  ;;  %v2340_v15 = vadd.f32 %v3062_v38, %v4480_v47  ;;  %v3070_v45 = vpop.f32.mrb[66].mxu1  ;;  %v2331_v54 = vpop.f32.mrb[67].mxu0 }
 0x1a6   : > { %2401 = vst [vmem:[%s4508_s15 + $0x50] sm:$0xff] %v2369_v58  ;;  %2391 = vst [vmem:[%s4508_s15] sm:$0xff] %v2329_v3  ;;  %v2372_v42 = vadd.f32 %v3070_v45, %v2275_v46  ;;  %v2332_v55 = vadd.f32 %v2331_v54, %v4474_v6  ;;  %v2363_v48 = vpop.f32.mrb[67].mxu1 }
 0x1a7   : > { %2399 = vst [vmem:[%s4508_s15 + $0x40] sm:$0xff] %v2361_v57  ;;  %2394 = vst [vmem:[%s4508_s15 + $0x18] sm:$0xff] %v2340_v15  ;;  %v2364_v21 = vadd.f32 %v2363_v48, %v4496_v28 }
 0x1a8   : > { %2402 = vst [vmem:[%s4508_s15 + $0x58] sm:$0xff] %v2372_v42  ;;  %2392 = vst [vmem:[%s4508_s15 + $0x8] sm:$0xff] %v2332_v55 }
 0x1a9   : > { %2400 = vst [vmem:[%s4508_s15 + $0x48] sm:$0xff] %v2364_v21 }
 0x1aa   : > { %v3065_v59 = vpop.f32.mrb[68].mxu0 }
 0x1ab   : > { %v2353_v47 = vadd.f32 %v3065_v59, %v4490_v0  ;;  %v3073_v52 = vpop.f32.mrb[68].mxu1  ;;  %v2344_v63 = vpop.f32.mrb[69].mxu0 }
 0x1ac   : > { %v2385_v23 = vadd.f32 %v3073_v52, %v2288_v1  ;;  %v2345_v6 = vadd.f32 %v2344_v63, %v4484_v43  ;;  %v2376_v50 = vpop.f32.mrb[69].mxu1  ;;  %v3066_v51 = vpop.f32.mrb[70].mxu0 }
 0x1ad   : > { %2397 = vst [vmem:[%s4508_s15 + $0x30] sm:$0xff] %v2353_v47  ;;  %v2377_v28 = vadd.f32 %v2376_v50, %v2280_v13  ;;  %v2356_v11 = vadd.f32 %v3066_v51, %v4492_v20  ;;  %v3074_v27 = vpop.f32.mrb[70].mxu1  ;;  %v2347_v53 = vpop.f32.mrb[71].mxu0 }
 0x1ae   : > { %2405 = vst [vmem:[%s4508_s15 + $0x70] sm:$0xff] %v2385_v23  ;;  %2395 = vst [vmem:[%s4508_s15 + $0x20] sm:$0xff] %v2345_v6  ;;  %v2388_v0 = vadd.f32 %v3074_v27, %v2291_v10  ;;  %v2348_v46 = vadd.f32 %v2347_v53, %v4486_v7  ;;  %v2379_v56 = vpop.f32.mrb[71].mxu1 }
 0x1af   : > { %2403 = vst [vmem:[%s4508_s15 + $0x60] sm:$0xff] %v2377_v28  ;;  %2398 = vst [vmem:[%s4508_s15 + $0x38] sm:$0xff] %v2356_v11  ;;  %v2380_v43 = vadd.f32 %v2379_v56, %v2283_v4 }
 0x1b0   : > { %2406 = vst [vmem:[%s4508_s15 + $0x78] sm:$0xff] %v2388_v0  ;;  %2396 = vst [vmem:[%s4508_s15 + $0x28] sm:$0xff] %v2348_v46 }
 0x1b1   : > { %2404 = vst [vmem:[%s4508_s15 + $0x68] sm:$0xff] %v2380_v43 }
 0x1b2 PF: > { %s17_s28 = sadd.s32 1, %s3247_s28   ;;  %s4631_s24 = smov %s3239_s26 }
 0x1b3   : > { %p14_p9 = scmp.ge.s32.totalorder %s17_s28, 6   ;;  %s4632_s25 = smov %s3243_s27 }
 0x1b4   : > { %s4633_s26 = smov %s4636_s29  ;;  %s4634_s27 = smov %s4640_s30 }
 0x1b5   :  { %16 = sbr.rel (!%p14_p9) target bundleno = 3 (0x3), region = 90 }

// kernel: spade_resnet_block.15
= control target key start
LH: loop header
LB: loop body
LE: loop exit
PB: predicated region body
PF: predicated region fallthrough
CT: control target
= control target key end

     0   :  { %s3417_s27 = smov 0   ;;  %s3419_s28 = smov 0   ;;  %s4708_s0 = inlined_call_operand.vmem [shape: f32[2,18,18,128], index: 0, kind: input, shape index: {}, may-alias: {0,1}]   ;;  %s4709_s1 = inlined_call_operand.vmem [shape: f32[2,18,18,128], index: 1, kind: input, shape index: {}, may-alias: {0,1}]   ;;  %s4710_s2 = inlined_call_operand.vmem [shape: bf16[2,18,18,256], index: 2, kind: input, shape index: {}, may-alias: {2,3}]   ;;  %s4711_s3 = inlined_call_operand.vmem [shape: bf16[2,18,18,256], index: 3, kind: input, shape index: {}, may-alias: {2,3}]   ;;  %s4712_s4 = inlined_call_operand.vmem [shape: f32[2,2,128], index: 4, kind: input, shape index: {}]   ;;  %s4713_s5 = inlined_call_operand.vmem [shape: bf16[1152,128], index: 5, kind: input, shape index: {}]   ;;  %s4714_s6 = inlined_call_operand.vmem [shape: f32[1,128], index: 6, kind: input, shape index: {}]   ;;  %s4715_s7 = inlined_call_operand.vmem [shape: f32[2,16,16,128], index: 7, kind: input, shape index: {}]   ;;  %s4716_s8 = inlined_call_operand.vmem [shape: f32[2,16,16,128], index: 8, kind: output, shape index: {}]  }
   0x1   :  { %s3421_s29 = smov 0   ;;  %s3423_s30 = smov 0  }
   0x2   :  { %s3425_s9 = smov 0  }
   0x3 LB: > { %s27_s10 = sadd.s32 1, %s3362_s29  ;;  %s30_s11 = sadd.s32 1, %s3366_s30  ;;  %s3370_s9 = sphi %s3425_s9, %s18_s9   ;;  %s3366_s30 = sphi %s3423_s30, %s4795_s30   ;;  %s3362_s29 = sphi %s3421_s29, %s4794_s29   ;;  %s3358_s28 = sphi %s3419_s28, %s4793_s28   ;;  %s3354_s27 = sphi %s3417_s27, %s4792_s27  }
   0x4   : > { %p28_p0 = scmp.ge.s32.totalorder %s27_s10, 2  ;;  %p2708_p1 = scmp.ge.s32.totalorder %s3370_s9, 1 }
   0x5   : > { %p403_p2 = scmp.lt.s32.totalorder %s3370_s9, 5 }
   0x6   : > { %s4797_s10 = smov (%p28_p0, %s27_s10), 0  ;;  %s4799_s11 = smov (!%p28_p0, %s30_s11), %s3366_s30 }
   0x7   : > { %p404_p3 = pnand %p2708_p1, %p403_p2  ;;  %p32_p4 = scmp.ge.s32.totalorder %s4799_s11, 2 }
   0x8   : > { %v3260_v0 = vld [vmem:[%s4713_s5 + $0x40] sm:$0xff] (!%p404_p3)   ;;  %s3461_s20 = sshll.u32 (!%p404_p3), %s3354_s27, 3  ;;  %v3264_v4 = vld [vmem:[%s4713_s5 + $0x48] sm:$0xff] (!%p404_p3)   ;;  %p512_p5 = scmp.lt.s32.totalorder (!%p404_p3), %s3358_s28, 1  ;;  %v3268_v8 = vld [vmem:[%s4713_s5 + $0x50] sm:$0xff] (!%p404_p3)   ;;  %v728_v21 = vlaneseq (!%p404_p3)  ;;  %vm4722_vm8 = vcmask (!%p404_p3), 1046528  }
   0x9   : > { %s4801_s11 = smov (%p32_p4, %s4799_s11), 0  ;;  %407 = sbr.rel (%p404_p3) target bundleno = 436 (0x1b4), region = 52 }
   0xa   : > { %v3261_v1 = vld [vmem:[%s4713_s5 + $0xc0] sm:$0xff] (!%p404_p3)   ;;  %2894 = vmatprep.subr.bf16.mxu0 (!%p404_p3), %v3260_v0  ;;  %v3265_v5 = vld [vmem:[%s4713_s5 + $0xc8] sm:$0xff] (!%p404_p3)   ;;  %p514_p6 = scmp.lt.s32.totalorder (!%p404_p3), %s3461_s20, 17  ;;  %v3269_v9 = vld [vmem:[%s4713_s5 + $0xd0] sm:$0xff] (!%p404_p3)   ;;  %p587_p7 = scmp.lt.s32.totalorder (!%p404_p3), %s3461_s20, 15  ;;  %v3547_v26 = vshrl.u32 (!%p404_p3), %v728_v21, 7  ;;  %v3564_v32 = vstv (!%p404_p3), %s3461_s20 }
   0xb   : > { %v3262_v2 = vld [vmem:[%s4713_s5] sm:$0xff] (!%p404_p3)   ;;  %2958 = vmatprep.subr.bf16.mxu1 (!%p404_p3), %v3261_v1  ;;  %v3266_v6 = vld [vmem:[%s4713_s5 + $0x8] sm:$0xff] (!%p404_p3)   ;;  %v3270_v10 = vld [vmem:[%s4713_s5 + $0x10] sm:$0xff] (!%p404_p3)   ;;  %v3575_v34 = vadd.s32 (!%p404_p3), 1, %v3564_v32  ;;  %vm991_vm0 = vcmp.ge.s32.totalorder (!%p404_p3), %v3564_v32, 1  ;;  %vm1001_vm1 = vcmp.le.s32.totalorder (!%p404_p3), %v3564_v32, 16 }
   0xc   : > { %v3263_v3 = vld [vmem:[%s4713_s5 + $0x80] sm:$0xff] (!%p404_p3)   ;;  %2895 = vmatpush3.bf16.msra.mxu0 (!%p404_p3), %v3262_v2  ;;  %v3267_v7 = vld [vmem:[%s4713_s5 + $0x88] sm:$0xff] (!%p404_p3)   ;;  %v3271_v11 = vld [vmem:[%s4713_s5 + $0x90] sm:$0xff] (!%p404_p3)   ;;  %v730_v31 = vsub.s32 (!%p404_p3), 0, %v3547_v26  ;;  %v764_v36 = vsub.s32 (!%p404_p3), 1, %v3547_v26  ;;  %v3593_v38 = vadd.s32 (!%p404_p3), 16, %v3547_v26 }
   0xd   : > { %2959 = vmatpush3.bf16.msra.mxu1 (!%p404_p3), %v3263_v3  ;;  %2896 = vmatprep.subr.bf16.mxu0 (!%p404_p3), %v3264_v4  ;;  %v3272_v12 = vld [vmem:[%s4713_s5 + $0x58] sm:$0xff] (!%p404_p3)   ;;  %v3276_v16 = vld [vmem:[%s4713_s5 + $0x60] sm:$0xff] (!%p404_p3)   ;;  %v3280_v20 = vld [vmem:[%s4713_s5 + $0x68] sm:$0xff] (!%p404_p3)   ;;  %vm992_vm2 = vcmp.ge.s32.totalorder (!%p404_p3), %v3575_v34, 1  ;;  %vm1002_vm3 = vcmp.le.s32.totalorder (!%p404_p3), %v3575_v34, 16  ;;  %v3610_v43 = vadd.s32 (!%p404_p3), 2, %v3564_v32 }
   0xe   : > { %2960 = vmatprep.subr.bf16.mxu1 (!%p404_p3), %v3265_v5  ;;  %v3273_v13 = vld [vmem:[%s4713_s5 + $0xd8] sm:$0xff] (!%p404_p3)   ;;  %v3277_v17 = vld [vmem:[%s4713_s5 + $0xe0] sm:$0xff] (!%p404_p3)   ;;  %v3281_v22 = vld [vmem:[%s4713_s5 + $0xe8] sm:$0xff] (!%p404_p3)   ;;  %vm1021_vm4 = vcmp.ge.s32.totalorder (!%p404_p3), %v3547_v26, 1  ;;  %vm4719_vm5 = vcmp.le.s32.totalorder (!%p404_p3), %v3593_v38, 16 }
   0xf   : > { %v3274_v14 = vld [vmem:[%s4713_s5 + $0x18] sm:$0xff] (!%p404_p3)   ;;  %v3278_v18 = vld [vmem:[%s4713_s5 + $0x20] sm:$0xff] (!%p404_p3)   ;;  %v3282_v23 = vld [vmem:[%s4713_s5 + $0x28] sm:$0xff] (!%p404_p3)  }
  0x10   : > { %2897 = vmatpush3.bf16.msra.mxu0 %v3266_v6  ;;  %s4803_s28 = smov (!%p512_p5, %s3358_s28), 1  ;;  %v3275_v15 = vld [vmem:[%s4713_s5 + $0x98] sm:$0xff]   ;;  %v3279_v19 = vld [vmem:[%s4713_s5 + $0xa0] sm:$0xff]   ;;  %v3283_v24 = vld [vmem:[%s4713_s5 + $0xa8] sm:$0xff]  }
  0x11   : > { %2961 = vmatpush3.bf16.msra.mxu1 %v3267_v7  ;;  %2898 = vmatprep.subr.bf16.mxu0 %v3268_v8  ;;  %s3493_s22 = scalar_select %p514_p6, %s3461_s20, 17  ;;  %v3284_v25 = vld [vmem:[%s4713_s5 + $0x70] sm:$0xff]   ;;  %v3288_v30 = vld [vmem:[%s4713_s5 + $0x78] sm:$0xff]   ;;  %v3292_v2 = vld [vmem:[%s4713_s5 + $0x140] sm:$0xff]  }
  0x12   : > { %2962 = vmatprep.subr.bf16.mxu1 %v3269_v9  ;;  %s3215_s25 = smul.u32 54, %s4803_s28  ;;  %s2722_s14 = sshll.u32 %s4803_s28, 5  ;;  %v3285_v27 = vld [vmem:[%s4713_s5 + $0xf0] sm:$0xff]   ;;  %v3289_v33 = vld [vmem:[%s4713_s5 + $0xf8] sm:$0xff]   ;;  %vm3662_vm6 = vmand %vm991_vm0, %vm1001_vm1  ;;  %vm4720_vm0 = vsmask.f32 7424 }
  0x13   : > { %s588_s17 = scalar_select %p587_p7, %s3461_s20, 15  ;;  %v3286_v28 = vld [vmem:[%s4713_s5 + $0x30] sm:$0xff]   ;;  %v3290_v35 = vld [vmem:[%s4713_s5 + $0x38] sm:$0xff]   ;;  %vm3682_vm7 = vmand %vm992_vm2, %vm1002_vm3  ;;  %vm993_vm2 = vcmp.ge.s32.totalorder %v3610_v43, 1  ;;  %vm1003_vm3 = vcmp.le.s32.totalorder %v3610_v43, 16 }
  0x14   : > { %2899 = vmatpush3.bf16.msra.mxu0 %v3270_v10  ;;  %s3214_s21 = smul.u32 3, %s3493_s22  ;;  %v3287_v29 = vld [vmem:[%s4713_s5 + $0xb0] sm:$0xff]   ;;  %s2719_s23 = sshll.u32 %s4803_s28, 1  ;;  %v3291_v37 = vld [vmem:[%s4713_s5 + $0xb8] sm:$0xff]   ;;  %vm3691_vm12 = vmand %vm3662_vm6, %vm1021_vm4 }
  0x15   : > { %2963 = vmatpush3.bf16.msra.mxu1 %v3271_v11  ;;  %2900 = vmatprep.subr.bf16.mxu0 %v3272_v12  ;;  %s2721_s26 = sshll.u32 %s588_s17, 1  ;;  %s3217_s13 = smul.u32 6, %s3493_s22  ;;  %v3293_v11 = vld [vmem:[%s4713_s5 + $0x1c0] sm:$0xff]   ;;  %vm3699_vm13 = vmand %vm3662_vm6, %vm4719_vm5  ;;  %v3326_v26 = vld [vmem:[%s4713_s5 + $0x210] sm:$0xff]  }
  0x16   : > { %2964 = vmatprep.subr.bf16.mxu1 %v3273_v13  ;;  %s3522_s15 = sadd.s32 %s2722_s14, %s2721_s26  ;;  %s4717_s19 = smul.u32 108, %s4803_s28  ;;  %vm3709_vm1 = vmand %vm3682_vm7, %vm1021_vm4 }
  0x17   : > { %s518_s26 = sadd.s32 %s3215_s25, %s3214_s21  ;;  %s583_s27 = scalar_lea.vmem %s4712_s4, %s2719_s23 }
  0x18   : > { %2901 = vmatpush3.bf16.msra.mxu0 %v3274_v14  ;;  %s555_s18 = sadd.s32 %s4717_s19, %s3217_s13  ;;  %s2710_s21 = sshll.u32 %s518_s26, 3  ;;  %v727_v49 = vld [vmem:[%s583_s27] sm:$0x3] }
  0x19   : > { %2965 = vmatpush3.bf16.msra.mxu1 %v3275_v15  ;;  %2902 = vmatprep.subr.bf16.mxu0 %v3276_v16  ;;  %s2715_s13 = sshll.u32 %s555_s18, 2  ;;  %s3572_s22 = scalar_lea.vmem %s4708_s0, %s2710_s21  ;;  %v3621_v52 = vrot.slane %v727_v49, %v730_v31  ;;  %v3623_v53 = vrot.slane %v727_v49, %v764_v36  ;;  %v3308_v36 = vld [vmem:[%s4713_s5 + $0x160] sm:$0xff]  }
  0x1a   : > { %2966 = vmatprep.subr.bf16.mxu1 %v3277_v17  ;;  %s3583_s24 = scalar_lea.vmem %s4710_s2, %s2715_s13  ;;  %v607_v39 = vld [vmem:[%s3572_s22] sm:$0xff]  ;;  %v608_v44 = vld [vmem:[%s3572_s22 + $0x8] sm:$0xff]  ;;  %v609_v45 = vld [vmem:[%s3572_s22 + $0x10] sm:$0x3]  ;;  %s2891_s13 = sadd.s32 8, %s3461_s20 }
  0x1b   : > { %v3599_v40 = vld [vmem:[%s3583_s24] sm:$0xff]  ;;  %v3602_v41 = vld [vmem:[%s3583_s24 + $0x8] sm:$0xff]  ;;  %v3605_v42 = vld [vmem:[%s3583_s24 + $0x10] sm:$0x11]  ;;  %p532_p8 = scmp.lt.s32.totalorder %s2891_s13, 17  ;;  %v732_v62 = vsub.f32 %v607_v39, %v3621_v52  ;;  %v733_v63 = vsub.f32 %v608_v44, %v3621_v52  ;;  %v734_v0 = vsub.f32 %v609_v45, %v3621_v52 }
  0x1c   : > { %2903 = vmatpush3.bf16.msra.mxu0 %v3278_v18  ;;  %v667_v46 = vunpack.c.l.bf16 %v3599_v40  ;;  %v668_v47 = vunpack.c.h.bf16 %v3599_v40  ;;  %v669_v48 = vunpack.c.l.bf16 %v3602_v41  ;;  %v670_v50 = vunpack.c.h.bf16 %v3602_v41  ;;  %v610_v54 = vld [vmem:[%s3572_s22 + $0x18] sm:$0xff]  ;;  %v611_v55 = vld [vmem:[%s3572_s22 + $0x20] sm:$0xff]  ;;  %v3296_v44 = vld [vmem:[%s4713_s5 + $0x148] sm:$0xff]  }
  0x1d   : > { %2967 = vmatpush3.bf16.msra.mxu1 %v3279_v19  ;;  %2904 = vmatprep.subr.bf16.mxu0 %v3280_v20  ;;  %v671_v51 = vunpack.c.l.bf16 %v3605_v42  ;;  %v640_v56 = vld [vmem:[%s3583_s24 + $0x18] sm:$0xff]  ;;  %v672_v57 = vunpack.c.h.bf16 %v3605_v42  ;;  %v641_v60 = vld [vmem:[%s3583_s24 + $0x20] sm:$0xff]  ;;  %s4805_s13 = smov (!%p532_p8, %s2891_s13), 17  ;;  %v735_v5 = vsub.f32 %v610_v54, %v3621_v52  ;;  %v736_v6 = vsub.f32 %v611_v55, %v3621_v52 }
  0x1e   : > { %2968 = vmatprep.subr.bf16.mxu1 %v3281_v22  ;;  %v796_v58 = vadd.f32 1.0, %v667_v46  ;;  %v797_v59 = vadd.f32 1.0, %v669_v48  ;;  %v673_v61 = vunpack.c.l.bf16 %v640_v56  ;;  %v674_v3 = vunpack.c.h.bf16 %v640_v56  ;;  %s3216_s12 = smul.u32 3, %s4805_s13 }
  0x1f   : > { %v798_v1 = vadd.f32 1.0, %v671_v51  ;;  %v675_v4 = vunpack.c.l.bf16 %v641_v60  ;;  %v766_v7 = vmul.f32 %v3623_v53, %v732_v62  ;;  %v767_v8 = vmul.f32 %v3623_v53, %v733_v63  ;;  %s3219_s16 = smul.u32 6, %s4805_s13 }
  0x20   : > { %2905 = vmatpush3.bf16.msra.mxu0 %v3282_v23  ;;  %v768_v9 = vmul.f32 %v3623_v53, %v734_v0  ;;  %v799_v10 = vadd.f32 1.0, %v673_v61  ;;  %v676_v12 = vunpack.c.h.bf16 %v641_v60  ;;  %v769_v13 = vmul.f32 %v3623_v53, %v735_v5  ;;  %s3656_s21 = sadd.s32 %s3216_s12, %s3215_s25  ;;  %v612_v23 = vld [vmem:[%s3572_s22 + $0x28] sm:$0x3]  ;;  %s4725_s25 = smul.u32 108, %s4803_s28 }
  0x21   : > { %2969 = vmatpush3.bf16.msra.mxu1 %v3283_v24  ;;  %2906 = vmatprep.subr.bf16.mxu0 %v3284_v25  ;;  %v770_v14 = vmul.f32 %v3623_v53, %v736_v6  ;;  %v800_v15 = vadd.f32 1.0, %v675_v4  ;;  %v826_v16 = vmul.f32 %v796_v58, %v766_v7  ;;  %v827_v17 = vmul.f32 %v797_v59, %v767_v8  ;;  %v642_v24 = vld [vmem:[%s3583_s24 + $0x28] sm:$0x11]  ;;  %v3745_v4 = vld [vmem:[%s3583_s24 + $0x30] sm:$0xff] }
  0x22   : > { %2970 = vmatprep.subr.bf16.mxu1 %v3285_v27  ;;  %v828_v18 = vmul.f32 %v798_v1, %v768_v9  ;;  %v3652_v19 = vadd.s32 3, %v3564_v32  ;;  %v829_v21 = vmul.f32 %v799_v10, %v769_v13  ;;  %v3669_v25 = vadd.s32 4, %v3564_v32  ;;  %s3676_s26 = sadd.s32 %s3219_s16, %s4725_s25  ;;  %v3295_v9 = vld [vmem:[%s4713_s5 + $0x180] sm:$0xff]   ;;  %v613_v10 = vld [vmem:[%s3572_s22 + $0x30] sm:$0xff] }
  0x23   : > { %v830_v22 = vmul.f32 %v800_v15, %v770_v14  ;;  %v3672_v27 = vadd.s32 5, %v3564_v32  ;;  %v677_v31 = vunpack.c.l.bf16 %v642_v24  ;;  %v737_v39 = vsub.f32 %v612_v23, %v3621_v52  ;;  %v614_v15 = vld [vmem:[%s3572_s22 + $0x38] sm:$0xff]  ;;  %s2718_s18 = sshll.u32 %s3676_s26, 2 }
  0x24   : > { %2907 = vmatpush3.bf16.msra.mxu0 %v3286_v28  ;;  %v856_v28 = vadd.f32 %v826_v16, %v668_v47  ;;  %v3761_v16 = vld [vmem:[%s3583_s24 + $0x38] sm:$0xff]  ;;  %v679_v23 = vunpack.c.l.bf16 %v3745_v4  ;;  %s4267_s13 = scalar_lea.vmem %s4711_s3, %s2718_s18 }
  0x25   : > { %2971 = vmatpush3.bf16.msra.mxu1 %v3287_v29  ;;  %2908 = vmatprep.subr.bf16.mxu0 %v3288_v30  ;;  %v857_v29 = vadd.f32 %v827_v17, %v670_v50  ;;  %v858_v30 = vadd.f32 %v828_v18, %v672_v57  ;;  %v771_v49 = vmul.f32 %v3623_v53, %v737_v39  ;;  %v801_v55 = vadd.f32 1.0, %v677_v31  ;;  %v3297_v17 = vld [vmem:[%s4713_s5 + $0x1c8] sm:$0xff]  }
  0x26   : > { %2972 = vmatprep.subr.bf16.mxu1 %v3289_v33  ;;  %v859_v33 = vadd.f32 %v829_v21, %v674_v3  ;;  %vm886_vm9 = vcmp.ge.f32.partialorder %v856_v28, 0.0  ;;  %v916_v40 = vmul.f32 0.2, %v856_v28 }
  0x27   : > { %vm887_vm10 = vcmp.ge.f32.partialorder %v857_v29, 0.0  ;;  %vm888_vm11 = vcmp.ge.f32.partialorder %v858_v30, 0.0  ;;  %v917_v34 = vmul.f32 0.2, %v857_v29  ;;  %v918_v42 = vmul.f32 0.2, %v858_v30 }
  0x28   : > { %2909 = vmatpush3.bf16.msra.mxu0 %v3290_v35  ;;  %v860_v35 = vadd.f32 %v830_v22, %v676_v12  ;;  %vm889_vm14 = vcmp.ge.f32.partialorder %v859_v33, 0.0  ;;  %v3703_v45 = vsel %vm886_vm9, %v856_v28, %v916_v40  ;;  %v919_v46 = vmul.f32 0.2, %v859_v33  ;;  %vm2805_vm9 = vmpackc.low %vm3682_vm7, %vm3709_vm1  ;;  %v3777_v28 = vld [vmem:[%s3583_s24 + $0x40] sm:$0x11]  ;;  %v3305_v22 = vld [vmem:[%s4713_s5 + $0x1d8] sm:$0xff]  }
  0x29   : > { %2973 = vmatpush3.bf16.msra.mxu1 %v3291_v37  ;;  %3022 = vmatprep.subr.bf16.mxu0 %v3292_v2  ;;  %v678_v37 = vunpack.c.h.bf16 %v642_v24  ;;  %v3717_v50 = vsel %vm887_vm10, %v857_v29, %v917_v34  ;;  %v948_v51 = vsel %vm888_vm11, %v858_v30, %v918_v42  ;;  %v1147_v54 = vsel %vm3691_vm12, %v3703_v45, 0.0  ;;  %vm3770_vm10 = vmand %vm3682_vm7, %vm4719_vm5  ;;  %v3294_v30 = vld [vmem:[%s4713_s5 + $0x100] sm:$0xff]  }
  0x2a   : > { %3086 = vmatprep.subr.bf16.mxu1 %v3293_v11  ;;  %vm890_vm15 = vcmp.ge.f32.partialorder %v860_v35, 0.0  ;;  %v920_v47 = vmul.f32 0.2, %v860_v35  ;;  %v1148_v56 = vsel %vm3662_vm6, %v3717_v50, 0.0  ;;  %v1149_v57 = vsel %vm3699_vm13, %v948_v51, 0.0  ;;  %vm2802_vm11 = vmpackc.low %vm3662_vm6, %vm3691_vm12  ;;  %v3301_v51 = vld [vmem:[%s4713_s5 + $0x1d0] sm:$0xff]  }
  0x2b   : > { %v949_v58 = vsel %vm889_vm14, %v859_v33, %v919_v46  ;;  %v1177_v60 = vpack.c.bf16 %v1148_v56, %v1147_v54  ;;  %v1178_v61 = vpack.c.bf16 %v1149_v57, %v1149_v57  ;;  %v2803_v2 = vpack.c.bf16 %v3717_v50, %v3703_v45  ;;  %v3798_v45 = vld [vmem:[%s3583_s24 + $0x48] sm:$0xff] }
  0x2c   : > { %v950_v59 = vsel %vm890_vm15, %v860_v35, %v920_v47  ;;  %v1150_v62 = vsel %vm3709_vm1, %v949_v58, 0.0  ;;  %v831_v3 = vmul.f32 %v801_v55, %v771_v49  ;;  %v680_v24 = vunpack.c.h.bf16 %v3745_v4  ;;  %v3299_v35 = vld [vmem:[%s4713_s5 + $0x188] sm:$0xff]  }
  0x2d   : > { %v1151_v63 = vsel %vm3682_vm7, %v950_v59, 0.0  ;;  %v3740_v1 = vpack.c.bf16 %v950_v59, %v949_v58  ;;  %v1199_v5 = vshrl.u32 %v1177_v60, 16  ;;  %v1201_v6 = vshll.u32 %v1177_v60, 16  ;;  %v3306_v58 = vld [vmem:[%s4713_s5 + $0x118] sm:$0xff]  }
  0x2e   : > { %v3738_v0 = vpack.c.bf16 %v1151_v63, %v1150_v62  ;;  %v1206_v7 = vshll.u32 %v1178_v61, 16  ;;  %v1319_v8 = vrot.slane %v1177_v60, 1  ;;  %v1320_v13 = vrot.slane %v1178_v61, 1  ;;  %v3822_v63 = vld [vmem:[%s3583_s24 + $0x50] sm:$0xff] }
  0x2f   : > { %2828 = vmatprep.mubr.msk.bf16.mxu1 %vm2805_vm9, %v3740_v1  ;;  %v861_v14 = vadd.f32 %v831_v3, %v678_v37  ;;  %v1203_v18 = vrot.slane %v1201_v6, 1  ;;  %v615_v37 = vld [vmem:[%s3572_s22 + $0x40] sm:$0x3]  ;;  %v681_v40 = vunpack.c.l.bf16 %v3761_v16  ;;  %v682_v34 = vunpack.c.h.bf16 %v3761_v16  ;;  %v3298_v3 = vld [vmem:[%s4713_s5 + $0x108] sm:$0xff]   ;;  %v617_v6 = vld [vmem:[%s3572_s22 + $0x50] sm:$0xff] }
  0x30   : > { %v1211_v11 = vshrl.u32 %v3738_v0, 16  ;;  %v1213_v12 = vshll.u32 %v3738_v0, 16  ;;  %v1208_v21 = vrot.slane %v1206_v7, 1  ;;  %v1321_v29 = vsel %vm4722_vm8, %v1319_v8, %v1320_v13 }
  0x31   : > { %vm891_vm13 = vcmp.ge.f32.partialorder %v861_v14, 0.0  ;;  %v921_v31 = vmul.f32 0.2, %v861_v14  ;;  %v1204_v39 = vor.u32 %v1203_v18, %v1199_v5  ;;  %2102 = vmatmul.mubr.bf16.vlgmr.msra.gmra.mrb[0].mxu1 %v1321_v29  ;;  %v738_v42 = vsub.f32 %v613_v10, %v3621_v52  ;;  %v3303_v10 = vld [vmem:[%s4713_s5 + $0x190] sm:$0xff]  }
  0x32   : > { %v1215_v33 = vrot.slane %v1213_v12, 1  ;;  %3087 = vmatpush3.bf16.msra.mxu1 %v3295_v9  ;;  %v739_v49 = vsub.f32 %v614_v15, %v3621_v52  ;;  %v802_v50 = vadd.f32 1.0, %v679_v23  ;;  %vm994_vm14 = vcmp.ge.s32.totalorder %v3652_v19, 1  ;;  %v3300_v15 = vld [vmem:[%s4713_s5 + $0x150] sm:$0xff]  }
  0x33   : > { %v951_v46 = vsel %vm891_vm13, %v861_v14, %v921_v31  ;;  %vm1004_vm15 = vcmp.le.s32.totalorder %v3652_v19, 16  ;;  %v1209_v54 = vsel %vm4720_vm0, %v1204_v39, %v1208_v21  ;;  %v772_v56 = vmul.f32 %v3623_v53, %v738_v42  ;;  %vm3814_vm13 = vmand %vm993_vm2, %vm1003_vm3  ;;  %3088 = vmatprep.subr.bf16.mxu1 %v3297_v17  ;;  %v3302_v29 = vld [vmem:[%s4713_s5 + $0x110] sm:$0xff]  }
  0x34   : > { %v1216_v47 = vor.u32 %v1215_v33, %v1211_v11  ;;  %v1152_v55 = vsel %vm3770_vm10, %v951_v46, 0.0  ;;  %v803_v57 = vadd.f32 1.0, %v681_v40  ;;  %2004 = vmatprep.mubr.bf16.mxu0 %v1209_v54  ;;  %v773_v60 = vmul.f32 %v3623_v53, %v739_v49  ;;  %vm3841_vm6 = vmand %vm3814_vm13, %vm1021_vm4  ;;  %v3304_v46 = vld [vmem:[%s4713_s5 + $0x158] sm:$0xff]  }
  0x35   : > { %v1180_v59 = vpack.c.bf16 %v1152_v55, %v1152_v55  ;;  %v1322_v61 = vrot.slane %v3738_v0, 1  ;;  %v683_v62 = vunpack.c.l.bf16 %v3777_v28  ;;  %2804 = vmatmul.mubr.msk.bf16.vlgmr.msra.gmra.mrb[0].mxu0 %vm2802_vm11, %v2803_v2  ;;  %v832_v43 = vmul.f32 %v802_v50, %v772_v56  ;;  %v616_v0 = vld [vmem:[%s3572_s22 + $0x48] sm:$0xff]  ;;  %vm3872_vm3 = vmpackc.low %vm3814_vm13, %vm3841_vm6  ;;  %v618_v55 = vld [vmem:[%s3572_s22 + $0x58] sm:$0x3] }
  0x36   : > { %v684_v4 = vunpack.c.h.bf16 %v3777_v28  ;;  %v740_v5 = vsub.f32 %v615_v37, %v3621_v52  ;;  %v685_v7 = vunpack.c.l.bf16 %v3798_v45  ;;  %3023 = vmatpush3.bf16.msra.mxu0 %v3294_v30  ;;  %v833_v20 = vmul.f32 %v803_v57, %v773_v60  ;;  %3089 = vmatpush3.bf16.msra.mxu1 %v3299_v35  ;;  %v3307_v37 = vld [vmem:[%s4713_s5 + $0x198] sm:$0xff]   ;;  %vm3894_vm10 = vmand %vm3814_vm13, %vm4719_vm5  ;;  %v3901_v56 = vld [vmem:[%s3583_s24 + $0x60] sm:$0xff] }
  0x37   : > { %v1218_v8 = vshll.u32 %v1180_v59, 16  ;;  %v1323_v2 = vrot.slane %v1180_v59, 1  ;;  %v804_v9 = vadd.f32 1.0, %v683_v62  ;;  %v862_v11 = vadd.f32 %v832_v43, %v680_v24  ;;  %3024 = vmatprep.subr.bf16.mxu0 %v3296_v44  ;;  %3090 = vmatprep.subr.bf16.mxu1 %v3301_v51  ;;  %v3883_v44 = vld [vmem:[%s3583_s24 + $0x58] sm:$0x11]  ;;  %v3313_v50 = vld [vmem:[%s4713_s5 + $0x1e8] sm:$0xff]  }
  0x38   : > { %v774_v12 = vmul.f32 %v3623_v53, %v740_v5  ;;  %v686_v13 = vunpack.c.h.bf16 %v3798_v45  ;;  %v687_v14 = vunpack.c.l.bf16 %v3822_v63  ;;  %v863_v17 = vadd.f32 %v833_v20, %v682_v34  ;;  %v3309_v5 = vld [vmem:[%s4713_s5 + $0x1e0] sm:$0xff]  }
  0x39   : > { %v1220_v16 = vrot.slane %v1218_v8, 1  ;;  %v3855_v18 = vsel %vm4722_vm8, %v1322_v61, %v1323_v2  ;;  %v688_v21 = vunpack.c.h.bf16 %v3822_v63  ;;  %vm892_vm12 = vcmp.ge.f32.partialorder %v862_v11, 0.0  ;;  %v3311_v45 = vld [vmem:[%s4713_s5 + $0x1a0] sm:$0xff]  }
  0x3a   : > { %v922_v23 = vmul.f32 0.2, %v862_v11  ;;  %v834_v24 = vmul.f32 %v804_v9, %v774_v12  ;;  %v741_v28 = vsub.f32 %v616_v0, %v3621_v52  ;;  %vm893_vm2 = vcmp.ge.f32.partialorder %v863_v17, 0.0  ;;  %3025 = vmatpush3.bf16.msra.mxu0 %v3298_v3  ;;  %3091 = vmatpush3.bf16.msra.mxu1 %v3303_v10 }
  0x3b   : > { %v3866_v30 = vsel %vm4720_vm0, %v1216_v47, %v1220_v16  ;;  %v923_v31 = vmul.f32 0.2, %v863_v17  ;;  %v742_v35 = vsub.f32 %v617_v6, %v3621_v52  ;;  %v805_v42 = vadd.f32 1.0, %v685_v7  ;;  %3026 = vmatprep.subr.bf16.mxu0 %v3300_v15  ;;  %3092 = vmatprep.subr.bf16.mxu1 %v3305_v22 }
  0x3c   : > { %2012 = vmatprep.mubr.bf16.mxu0 %v3866_v30  ;;  %v952_v39 = vsel %vm892_vm12, %v862_v11, %v922_v23  ;;  %v864_v40 = vadd.f32 %v834_v24, %v684_v4  ;;  %v775_v34 = vmul.f32 %v3623_v53, %v741_v28  ;;  %v806_v54 = vadd.f32 1.0, %v687_v14  ;;  %v3310_v14 = vld [vmem:[%s4713_s5 + $0x120] sm:$0xff]   ;;  %v3329_v24 = vld [vmem:[%s4713_s5 + $0x228] sm:$0xff]  }
  0x3d   : > { %v953_v47 = vsel %vm893_vm2, %v863_v17, %v923_v31  ;;  %v1153_v49 = vsel %vm3841_vm6, %v952_v39, 0.0  ;;  %v776_v51 = vmul.f32 %v3623_v53, %v742_v35  ;;  %2807 = vmatmul.mubr.msk.bf16.gmra.mrb[4].mxu0 %vm2805_vm9, %v3740_v1  ;;  %vm3917_vm6 = vmand %vm994_vm14, %vm1004_vm15  ;;  %v689_v63 = vunpack.c.l.bf16 %v3883_v44 }
  0x3e   : > { %v1154_v57 = vsel %vm3814_vm13, %v953_v47, 0.0  ;;  %v3905_v59 = vpack.c.bf16 %v953_v47, %v952_v39  ;;  %vm894_vm11 = vcmp.ge.f32.partialorder %v864_v40, 0.0  ;;  %v924_v60 = vmul.f32 0.2, %v864_v40  ;;  %3027 = vmatpush3.bf16.msra.mxu0 %v3302_v29  ;;  %3093 = vmatpush3.bf16.msra.mxu1 %v3307_v37  ;;  %vm3946_vm7 = vmand %vm3917_vm6, %vm1021_vm4  ;;  %v619_v29 = vld [vmem:[%s3572_s22 + $0x60] sm:$0xff] }
  0x3f   : > { %v1181_v48 = vpack.c.bf16 %v1154_v57, %v1153_v49  ;;  %v835_v1 = vmul.f32 %v805_v42, %v775_v34  ;;  %v836_v62 = vmul.f32 %v806_v54, %v776_v51  ;;  %v690_v43 = vunpack.c.h.bf16 %v3883_v44  ;;  %3028 = vmatprep.subr.bf16.mxu0 %v3304_v46  ;;  %3094 = vmatprep.subr.bf16.mxu1 %v3309_v5  ;;  %vm3964_vm14 = vmpackc.low %vm3917_vm6, %vm3946_vm7  ;;  %v620_v34 = vld [vmem:[%s3572_s22 + $0x68] sm:$0xff]  ;;  %v3993_v57 = vld [vmem:[%s3583_s24 + $0x70] sm:$0x11] }
  0x40   : > { %2831 = vmatprep.mubr.msk.bf16.mxu1 %vm3872_vm3, %v3905_v59  ;;  %v954_v19 = vsel %vm894_vm11, %v864_v40, %v924_v60  ;;  %v743_v3 = vsub.f32 %v618_v55, %v3621_v52  ;;  %v691_v4 = vunpack.c.l.bf16 %v3901_v56  ;;  %v692_v31 = vunpack.c.h.bf16 %v3901_v56  ;;  %v3312_v42 = vld [vmem:[%s4713_s5 + $0x168] sm:$0xff]   ;;  %vm4003_vm13 = vmand %vm3917_vm6, %vm4719_vm5 }
  0x41   : > { %2110 = vmatmul.mubr.bf16.gmra.mrb[4].mxu1 %v3855_v18  ;;  %v1155_v0 = vsel %vm3894_vm10, %v954_v19, 0.0  ;;  %v1223_v6 = vshrl.u32 %v1181_v48, 16  ;;  %v1225_v7 = vshll.u32 %v1181_v48, 16  ;;  %v865_v8 = vadd.f32 %v835_v1, %v686_v13  ;;  %v621_v1 = vld [vmem:[%s3572_s22 + $0x70] sm:$0x3] }
  0x42   : > { %v1182_v41 = vpack.c.bf16 %v1155_v0, %v1155_v0  ;;  %v866_v2 = vadd.f32 %v836_v62, %v688_v21  ;;  %v1325_v9 = vrot.slane %v1181_v48, 1  ;;  %v777_v10 = vmul.f32 %v3623_v53, %v743_v3  ;;  %3029 = vmatpush3.bf16.msra.mxu0 %v3306_v58  ;;  %v3958_v21 = vld [vmem:[%s3583_s24 + $0x68] sm:$0xff]  ;;  %3095 = vmatpush3.bf16.msra.mxu1 %v3311_v45  ;;  %v4024_v0 = vld [vmem:[%s3583_s24 + $0x78] sm:$0xff] }
  0x43   : > { %v1227_v11 = vrot.slane %v1225_v7, 1  ;;  %vm895_vm1 = vcmp.ge.f32.partialorder %v865_v8, 0.0  ;;  %v925_v12 = vmul.f32 0.2, %v865_v8  ;;  %v807_v13 = vadd.f32 1.0, %v689_v63  ;;  %3030 = vmatprep.subr.bf16.mxu0 %v3308_v36  ;;  %v3314_v62 = vld [vmem:[%s4713_s5 + $0x128] sm:$0xff]   ;;  %3096 = vmatprep.subr.bf16.mxu1 %v3313_v50 }
  0x44   : > { %v1230_v15 = vshll.u32 %v1182_v41, 16  ;;  %vm896_vm9 = vcmp.ge.f32.partialorder %v866_v2, 0.0  ;;  %v926_v16 = vmul.f32 0.2, %v866_v2  ;;  %v1326_v17 = vrot.slane %v1182_v41, 1  ;;  %v3315_v63 = vld [vmem:[%s4713_s5 + $0x1a8] sm:$0xff]  }
  0x45   : > { %v1228_v22 = vor.u32 %v1227_v11, %v1223_v6  ;;  %v955_v23 = vsel %vm895_vm1, %v865_v8, %v925_v12  ;;  %v837_v28 = vmul.f32 %v807_v13, %v777_v10  ;;  %v693_v49 = vunpack.c.l.bf16 %v3958_v21  ;;  %v622_v13 = vld [vmem:[%s3572_s22 + $0x78] sm:$0xff] }
  0x46   : > { %v1232_v35 = vrot.slane %v1230_v15, 1  ;;  %v956_v37 = vsel %vm896_vm9, %v866_v2, %v926_v16  ;;  %v1156_v39 = vsel %vm3946_vm7, %v955_v23, 0.0  ;;  %v3973_v40 = vsel %vm4722_vm8, %v1325_v9, %v1326_v17  ;;  %3031 = vmatpush3.bf16.msra.mxu0 %v3310_v14  ;;  %3097 = vmatpush3.bf16.msra.mxu1 %v3315_v63  ;;  %v4037_v14 = vld [vmem:[%s3583_s24 + $0x80] sm:$0xff]  ;;  %v3320_v9 = vld [vmem:[%s4713_s5 + $0x178] sm:$0xff]  }
  0x47   : > { %v1157_v44 = vsel %vm3917_vm6, %v956_v37, 0.0  ;;  %v3981_v46 = vpack.c.bf16 %v956_v37, %v955_v23  ;;  %v867_v47 = vadd.f32 %v837_v28, %v690_v43  ;;  %v694_v55 = vunpack.c.h.bf16 %v3958_v21  ;;  %3032 = vmatprep.subr.bf16.mxu0 %v3312_v42  ;;  %v623_v23 = vld [vmem:[%s3572_s22 + $0x80] sm:$0xff]  ;;  %v3316_v28 = vld [vmem:[%s4713_s5 + $0x170] sm:$0xff]  }
  0x48   : > { %v3988_v51 = vsel %vm4720_vm0, %v1228_v22, %v1232_v35  ;;  %v1183_v54 = vpack.c.bf16 %v1157_v44, %v1156_v39  ;;  %v744_v56 = vsub.f32 %v619_v29, %v3621_v52  ;;  %v745_v36 = vsub.f32 %v620_v34, %v3621_v52  ;;  %v3317_v39 = vld [vmem:[%s4713_s5 + $0x1f0] sm:$0xff]  }
  0x49   : > { %2020 = vmatprep.mubr.bf16.mxu0 %v3988_v51  ;;  %2834 = vmatprep.mubr.msk.bf16.mxu1 %vm3964_vm14, %v3981_v46  ;;  %vm897_vm15 = vcmp.ge.f32.partialorder %v867_v47, 0.0  ;;  %v927_v60 = vmul.f32 0.2, %v867_v47  ;;  %v808_v48 = vadd.f32 1.0, %v691_v4  ;;  %v809_v3 = vadd.f32 1.0, %v693_v49 }
  0x4a   : > { %2810 = vmatmul.mubr.msk.bf16.gmra.mrb[8].mxu0 %vm3872_vm3, %v3905_v59  ;;  %2118 = vmatmul.mubr.bf16.gmra.mrb[8].mxu1 %v3973_v40  ;;  %v1235_v61 = vshrl.u32 %v1183_v54, 16  ;;  %v1237_v19 = vshll.u32 %v1183_v54, 16  ;;  %v778_v43 = vmul.f32 %v3623_v53, %v744_v56  ;;  %v779_v5 = vmul.f32 %v3623_v53, %v745_v36 }
  0x4b   : > { %v957_v4 = vsel %vm897_vm15, %v867_v47, %v927_v60  ;;  %vm995_vm12 = vcmp.ge.s32.totalorder %v3669_v25, 1  ;;  %vm1005_vm2 = vcmp.le.s32.totalorder %v3669_v25, 16  ;;  %3033 = vmatpush3.bf16.msra.mxu0 %v3314_v62  ;;  %v1328_v20 = vrot.slane %v1183_v54, 1  ;;  %3098 = vmatprep.subr.bf16.mxu1 %v3317_v39 }
  0x4c   : > { %v1158_v6 = vsel %vm4003_vm13, %v957_v4, 0.0  ;;  %v1239_v7 = vrot.slane %v1237_v19, 1  ;;  %v838_v8 = vmul.f32 %v808_v48, %v778_v43  ;;  %v839_v2 = vmul.f32 %v809_v3, %v779_v5  ;;  %vm4028_vm10 = vmand %vm995_vm12, %vm1005_vm2  ;;  %3034 = vmatprep.subr.bf16.mxu0 %v3316_v28  ;;  %v3319_v48 = vld [vmem:[%s4713_s5 + $0x1b0] sm:$0xff]   ;;  %v624_v5 = vld [vmem:[%s3572_s22 + $0x88] sm:$0x3] }
  0x4d   : > { %v1184_v41 = vpack.c.bf16 %v1158_v6, %v1158_v6  ;;  %v695_v25 = vunpack.c.l.bf16 %v3993_v57  ;;  %v696_v10 = vunpack.c.h.bf16 %v3993_v57  ;;  %v746_v12 = vsub.f32 %v621_v1, %v3621_v52  ;;  %vm4048_vm6 = vmand %vm4028_vm10, %vm1021_vm4  ;;  %3099 = vmatpush3.bf16.msra.mxu1 %v3319_v48 }
  0x4e   : > { %v1240_v45 = vor.u32 %v1239_v7, %v1235_v61  ;;  %v868_v11 = vadd.f32 %v838_v8, %v692_v31  ;;  %v697_v15 = vunpack.c.l.bf16 %v4024_v0  ;;  %v869_v17 = vadd.f32 %v839_v2, %v694_v55  ;;  %v3318_v55 = vld [vmem:[%s4713_s5 + $0x130] sm:$0xff]   ;;  %vm4074_vm1 = vmpackc.low %vm4028_vm10, %vm4048_vm6  ;;  %v3322_v31 = vld [vmem:[%s4713_s5 + $0x138] sm:$0xff]  }
  0x4f   : > { %v1242_v16 = vshll.u32 %v1184_v41, 16  ;;  %v1329_v21 = vrot.slane %v1184_v41, 1  ;;  %v810_v22 = vadd.f32 1.0, %v695_v25  ;;  %v780_v35 = vmul.f32 %v3623_v53, %v746_v12  ;;  %3035 = vmatpush3.bf16.msra.mxu0 %v3318_v55  ;;  %vm4105_vm15 = vmand %vm4028_vm10, %vm4719_vm5 }
  0x50   : > { %vm898_vm11 = vcmp.ge.f32.partialorder %v868_v11, 0.0  ;;  %v928_v29 = vmul.f32 0.2, %v868_v11  ;;  %v698_v37 = vunpack.c.h.bf16 %v4024_v0  ;;  %vm899_vm7 = vcmp.ge.f32.partialorder %v869_v17, 0.0  ;;  %v4096_v0 = vld [vmem:[%s3583_s24 + $0x88] sm:$0x11]  ;;  %3036 = vmatprep.subr.bf16.mxu0 %v3320_v9 }
  0x51   : > { %v1244_v34 = vrot.slane %v1242_v16, 1  ;;  %v929_v42 = vmul.f32 0.2, %v869_v17  ;;  %v4058_v44 = vsel %vm4722_vm8, %v1328_v20, %v1329_v21  ;;  %v840_v49 = vmul.f32 %v810_v22, %v780_v35  ;;  %v4112_v20 = vld [vmem:[%s3583_s24 + $0x90] sm:$0xff] }
  0x52   : > { %v958_v47 = vsel %vm898_vm11, %v868_v11, %v928_v29  ;;  %v699_v50 = vunpack.c.l.bf16 %v4037_v14  ;;  %v700_v54 = vunpack.c.h.bf16 %v4037_v14  ;;  %v747_v36 = vsub.f32 %v622_v13, %v3621_v52  ;;  %v3321_v14 = vld [vmem:[%s4713_s5 + $0x1f8] sm:$0xff]  }
  0x53   : > { %v4066_v56 = vsel %vm4720_vm0, %v1240_v45, %v1244_v34  ;;  %v959_v57 = vsel %vm899_vm7, %v869_v17, %v929_v42  ;;  %v1159_v60 = vsel %vm4048_vm6, %v958_v47, 0.0  ;;  %v870_v63 = vadd.f32 %v840_v49, %v696_v10  ;;  %v4135_v29 = vld [vmem:[%s3583_s24 + $0x98] sm:$0xff]  ;;  %3100 = vmatprep.subr.bf16.mxu1 %v3321_v14  ;;  %v625_v34 = vld [vmem:[%s3572_s22 + $0x90] sm:$0xff]  ;;  %3037 = vmatpush3.bf16.msra.mxu0 %v3322_v31 }
  0x54   : > { %2028 = vmatprep.mubr.bf16.mxu0 %v4066_v56  ;;  %v1160_v1 = vsel %vm4028_vm10, %v959_v57, 0.0  ;;  %v4085_v62 = vpack.c.bf16 %v959_v57, %v958_v47  ;;  %v748_v61 = vsub.f32 %v623_v23, %v3621_v52  ;;  %v781_v43 = vmul.f32 %v3623_v53, %v747_v36  ;;  %v626_v42 = vld [vmem:[%s3572_s22 + $0x98] sm:$0xff]  ;;  %v4157_v57 = vld [vmem:[%s4713_s5 + $0x200] sm:$0xff]  }
  0x55   : > { %v4088_v19 = vpack.c.bf16 %v1160_v1, %v1159_v60  ;;  %2813 = vmatmul.mubr.msk.bf16.gmra.mrb[12].mxu0 %vm3964_vm14, %v3981_v46  ;;  %v811_v3 = vadd.f32 1.0, %v697_v15  ;;  %v812_v4 = vadd.f32 1.0, %v699_v50  ;;  %vm900_vm9 = vcmp.ge.f32.partialorder %v870_v63, 0.0  ;;  %v3323_v49 = vld [vmem:[%s4713_s5 + $0x1b8] sm:$0xff]   ;;  %3166 = vmatprep.subr.bf16.mxu0 %v4157_v57 }
  0x56   : > { %2837 = vmatprep.mubr.msk.bf16.mxu1 %vm4074_vm1, %v4085_v62  ;;  %v930_v6 = vmul.f32 0.2, %v870_v63  ;;  %v782_v8 = vmul.f32 %v3623_v53, %v748_v61  ;;  %vm996_vm13 = vcmp.ge.s32.totalorder %v3672_v27, 1  ;;  %vm1006_vm12 = vcmp.le.s32.totalorder %v3672_v27, 16  ;;  %3101 = vmatpush3.bf16.msra.mxu1 %v3323_v49 }
  0x57   : > { %2126 = vmatmul.mubr.bf16.gmra.mrb[12].mxu1 %v4058_v44  ;;  %v1247_v41 = vshrl.u32 %v4088_v19, 16  ;;  %v1249_v2 = vshll.u32 %v4088_v19, 16  ;;  %v841_v25 = vmul.f32 %v811_v3, %v781_v43  ;;  %vm4121_vm2 = vmand %vm996_vm13, %vm1006_vm12  ;;  %v1331_v12 = vrot.slane %v4088_v19, 1  ;;  %3198 = vmatprep.subr.bf16.mxu1 %v4157_v57 }
  0x58   : > { %v960_v10 = vsel %vm900_vm9, %v870_v63, %v930_v6  ;;  %v842_v45 = vmul.f32 %v812_v4, %v782_v8  ;;  %v701_v13 = vunpack.c.l.bf16 %v4096_v0  ;;  %v702_v17 = vunpack.c.h.bf16 %v4096_v0  ;;  %vm4144_vm11 = vmand %vm4121_vm2, %vm1021_vm4 }
  0x59   : > { %v1161_v27 = vsel %vm4105_vm15, %v960_v10, 0.0  ;;  %v1251_v15 = vrot.slane %v1249_v2, 1  ;;  %v871_v16 = vadd.f32 %v841_v25, %v698_v37  ;;  %v749_v23 = vsub.f32 %v624_v5, %v3621_v52  ;;  %vm4168_vm7 = vmpackc.low %vm4121_vm2, %vm4144_vm11  ;;  %v627_v2 = vld [vmem:[%s3572_s22 + $0xa0] sm:$0x3] }
  0x5a   : > { %v1186_v21 = vpack.c.bf16 %v1161_v27, %v1161_v27  ;;  %v872_v22 = vadd.f32 %v842_v45, %v700_v54  ;;  %v813_v28 = vadd.f32 1.0, %v701_v13  ;;  %v703_v47 = vunpack.c.l.bf16 %v4112_v20  ;;  %v657_v25 = vld [vmem:[%s3583_s24 + $0xa0] sm:$0x11]  ;;  %vm1074_vm15 = vmand %vm4121_vm2, %vm4719_vm5 }
  0x5b   : > { %v1252_v35 = vor.u32 %v1251_v15, %v1247_v41  ;;  %vm901_vm10 = vcmp.ge.f32.partialorder %v871_v16, 0.0  ;;  %v931_v39 = vmul.f32 0.2, %v871_v16  ;;  %v783_v36 = vmul.f32 %v3623_v53, %v749_v23 }
  0x5c   : > { %v1254_v50 = vshll.u32 %v1186_v21, 16  ;;  %vm902_vm6 = vcmp.ge.f32.partialorder %v872_v22, 0.0  ;;  %v932_v54 = vmul.f32 0.2, %v872_v22  ;;  %v1332_v55 = vrot.slane %v1186_v21, 1 }
  0x5d   : > { %v961_v60 = vsel %vm901_vm10, %v871_v16, %v931_v39  ;;  %v704_v48 = vunpack.c.h.bf16 %v4112_v20  ;;  %v705_v1 = vunpack.c.l.bf16 %v4135_v29  ;;  %v843_v0 = vmul.f32 %v813_v28, %v783_v36 }
  0x5e   : > { %v1256_v63 = vrot.slane %v1254_v50, 1  ;;  %v962_v61 = vsel %vm902_vm6, %v872_v22, %v932_v54  ;;  %v1162_v19 = vsel %vm4144_vm11, %v961_v60, 0.0  ;;  %v4173_v3 = vsel %vm4722_vm8, %v1331_v12, %v1332_v55 }
  0x5f   : > { %v1163_v4 = vsel %vm4121_vm2, %v962_v61, 0.0  ;;  %v4179_v5 = vpack.c.bf16 %v962_v61, %v961_v60  ;;  %v706_v6 = vunpack.c.h.bf16 %v4135_v29  ;;  %v750_v20 = vsub.f32 %v625_v34, %v3621_v52  ;;  %v4214_v29 = vld [vmem:[%s3583_s24 + $0xa8] sm:$0xff]  ;;  %v4227_v60 = vld [vmem:[%s3583_s24 + $0xb0] sm:$0xff] }
  0x60   : > { %v4183_v7 = vsel %vm4720_vm0, %v1252_v35, %v1256_v63  ;;  %v4185_v8 = vpack.c.bf16 %v1163_v4, %v1162_v19  ;;  %v751_v41 = vsub.f32 %v626_v42, %v3621_v52  ;;  %v873_v9 = vadd.f32 %v843_v0, %v702_v17  ;;  %v628_v4 = vld [vmem:[%s3572_s22 + $0xa8] sm:$0xff]  ;;  %v629_v0 = vld [vmem:[%s3572_s22 + $0xb0] sm:$0xff] }
  0x61   : > { %2036 = vmatprep.mubr.bf16.mxu0 %v4183_v7  ;;  %2840 = vmatprep.mubr.msk.bf16.mxu1 %vm4168_vm7, %v4179_v5  ;;  %v814_v10 = vadd.f32 1.0, %v703_v47  ;;  %v815_v45 = vadd.f32 1.0, %v705_v1  ;;  %v983_v12 = vadd.s32 6, %v3564_v32  ;;  %v784_v27 = vmul.f32 %v3623_v53, %v750_v20 }
  0x62   : > { %2816 = vmatmul.mubr.msk.bf16.gmra.mrb[16].mxu0 %vm4074_vm1, %v4085_v62  ;;  %2134 = vmatmul.mubr.bf16.gmra.mrb[16].mxu1 %v4173_v3  ;;  %v1259_v13 = vshrl.u32 %v4185_v8, 16  ;;  %v1261_v14 = vshll.u32 %v4185_v8, 16  ;;  %v785_v15 = vmul.f32 %v3623_v53, %v751_v41  ;;  %vm903_vm9 = vcmp.ge.f32.partialorder %v873_v9, 0.0 }
  0x63   : > { %v933_v16 = vmul.f32 0.2, %v873_v9  ;;  %vm997_vm13 = vcmp.ge.s32.totalorder %v983_v12, 1  ;;  %vm1007_vm12 = vcmp.le.s32.totalorder %v983_v12, 16  ;;  %v844_v21 = vmul.f32 %v814_v10, %v784_v27 }
  0x64   : > { %v1263_v17 = vrot.slane %v1261_v14, 1  ;;  %v845_v22 = vmul.f32 %v815_v45, %v785_v15  ;;  %vm4208_vm10 = vmand %vm997_vm13, %vm1007_vm12  ;;  %v1334_v28 = vrot.slane %v4185_v8, 1  ;;  %v707_v35 = vunpack.c.l.bf16 %v657_v25 }
  0x65   : > { %v963_v31 = vsel %vm903_vm9, %v873_v9, %v933_v16  ;;  %v708_v39 = vunpack.c.h.bf16 %v657_v25  ;;  %v752_v11 = vsub.f32 %v627_v2, %v3621_v52  ;;  %v874_v42 = vadd.f32 %v844_v21, %v704_v48  ;;  %vm4221_vm2 = vmand %vm4208_vm10, %vm1021_vm4 }
  0x66   : > { %v1164_v37 = vsel %vm1074_vm15, %v963_v31, 0.0  ;;  %v1264_v34 = vor.u32 %v1263_v17, %v1259_v13  ;;  %v875_v47 = vadd.f32 %v845_v22, %v706_v6  ;;  %v816_v55 = vadd.f32 1.0, %v707_v35  ;;  %vm4237_vm9 = vmpackc.low %vm4208_vm10, %vm4221_vm2 }
  0x67   : > { %v1188_v49 = vpack.c.bf16 %v1164_v37, %v1164_v37  ;;  %v786_v54 = vmul.f32 %v3623_v53, %v752_v11  ;;  %v709_v36 = vunpack.c.l.bf16 %v4214_v29  ;;  %vm904_vm11 = vcmp.ge.f32.partialorder %v874_v42, 0.0  ;;  %vm1077_vm13 = vmand %vm4208_vm10, %vm4719_vm5 }
  0x68   : > { %vm905_vm6 = vcmp.ge.f32.partialorder %v875_v47, 0.0  ;;  %v934_v48 = vmul.f32 0.2, %v874_v42  ;;  %v935_v1 = vmul.f32 0.2, %v875_v47  ;;  %v710_v6 = vunpack.c.h.bf16 %v4214_v29 }
  0x69   : > { %v1266_v63 = vshll.u32 %v1188_v49, 16  ;;  %v1335_v61 = vrot.slane %v1188_v49, 1  ;;  %v846_v19 = vmul.f32 %v816_v55, %v786_v54  ;;  %v711_v2 = vunpack.c.l.bf16 %v4227_v60  ;;  %v4262_v29 = vld [vmem:[%s3583_s24 + $0xb8] sm:$0x11]  ;;  %s2713_s24 = sshll.u32 %s3656_s21, 3  ;;  %v4286_v54 = vld [vmem:[%s4267_s13] sm:$0xff] }
  0x6a   : > { %v964_v8 = vsel %vm904_vm11, %v874_v42, %v934_v48  ;;  %v965_v20 = vsel %vm905_vm6, %v875_v47, %v935_v1  ;;  %v712_v25 = vunpack.c.h.bf16 %v4227_v60  ;;  %v753_v15 = vsub.f32 %v628_v4, %v3621_v52  ;;  %v630_v42 = vld [vmem:[%s3572_s22 + $0xb8] sm:$0x3]  ;;  %s4291_s23 = scalar_lea.vmem %s4709_s1, %s2713_s24  ;;  %s2723_s22 = sshll.u32 %s3522_s15, 3 }
  0x6b   : > { %v1268_v9 = vrot.slane %v1266_v63, 1  ;;  %v1165_v10 = vsel %vm4221_vm2, %v964_v8, 0.0  ;;  %v1166_v45 = vsel %vm4208_vm10, %v965_v20, 0.0  ;;  %v4248_v12 = vpack.c.bf16 %v965_v20, %v964_v8  ;;  %v4299_v8 = vld [vmem:[%s4267_s13 + $0x8] sm:$0xff]  ;;  %s4641_s12 = scalar_lea.vmem %s4715_s7, %s2723_s22  ;;  %s4651_s25 = scalar_lea.vmem %s4716_s8, %s2723_s22 }
  0x6c   : > { %v1189_v13 = vpack.c.bf16 %v1166_v45, %v1165_v10  ;;  %v4251_v14 = vsel %vm4722_vm8, %v1334_v28, %v1335_v61  ;;  %v876_v27 = vadd.f32 %v846_v19, %v708_v39  ;;  %v754_v17 = vsub.f32 %v629_v0, %v3621_v52  ;;  %v631_v10 = vld [vmem:[%s4291_s23] sm:$0xff] }
  0x6d   : > { %v4255_v16 = vsel %vm4720_vm0, %v1264_v34, %v1268_v9  ;;  %2843 = vmatprep.mubr.msk.bf16.mxu1 %vm4237_vm9, %v4248_v12  ;;  %v817_v21 = vadd.f32 1.0, %v709_v36  ;;  %v818_v22 = vadd.f32 1.0, %v711_v2  ;;  %v787_v39 = vmul.f32 %v3623_v53, %v753_v15 }
  0x6e   : > { %2044 = vmatprep.mubr.bf16.mxu0 %v4255_v16  ;;  %2142 = vmatmul.mubr.bf16.gmra.mrb[20].mxu1 %v4251_v14  ;;  %vm906_vm15 = vcmp.ge.f32.partialorder %v876_v27, 0.0  ;;  %v936_v28 = vmul.f32 0.2, %v876_v27  ;;  %v1271_v31 = vshrl.u32 %v1189_v13, 16  ;;  %v1273_v35 = vshll.u32 %v1189_v13, 16 }
  0x6f   : > { %2819 = vmatmul.mubr.msk.bf16.gmra.mrb[20].mxu0 %vm4168_vm7, %v4179_v5  ;;  %v788_v11 = vmul.f32 %v3623_v53, %v754_v17  ;;  %v984_v37 = vadd.s32 7, %v3564_v32  ;;  %v1337_v34 = vrot.slane %v1189_v13, 1  ;;  %v713_v23 = vunpack.c.l.bf16 %v4262_v29 }
  0x70   : > { %v966_v47 = vsel %vm906_vm15, %v876_v27, %v936_v28  ;;  %v1275_v49 = vrot.slane %v1273_v35, 1  ;;  %v714_v50 = vunpack.c.h.bf16 %v4262_v29  ;;  %v847_v60 = vmul.f32 %v817_v21, %v787_v39 }
  0x71   : > { %v1167_v55 = vsel %vm1077_vm13, %v966_v47, 0.0  ;;  %v848_v36 = vmul.f32 %v818_v22, %v788_v11  ;;  %vm998_vm12 = vcmp.ge.s32.totalorder %v984_v37, 1  ;;  %vm1008_vm10 = vcmp.le.s32.totalorder %v984_v37, 16  ;;  %v632_v22 = vld [vmem:[%s4291_s23 + $0x8] sm:$0xff]  ;;  %v4329_v37 = vld [vmem:[%s4267_s13 + $0x10] sm:$0x11] }
  0x72   : > { %v1190_v48 = vpack.c.bf16 %v1167_v55, %v1167_v55  ;;  %v1276_v1 = vor.u32 %v1275_v49, %v1271_v31  ;;  %v755_v63 = vsub.f32 %v630_v42, %v3621_v52  ;;  %v877_v61 = vadd.f32 %v847_v60, %v710_v6  ;;  %vm4294_vm2 = vmand %vm998_vm12, %vm1008_vm10 }
  0x73   : > { %v878_v19 = vadd.f32 %v848_v36, %v712_v25  ;;  %v819_v0 = vadd.f32 1.0, %v713_v23  ;;  %v715_v20 = vunpack.c.l.bf16 %v4286_v54  ;;  %vm4306_vm11 = vmand %vm4294_vm2, %vm1021_vm4  ;;  %v716_v45 = vunpack.c.h.bf16 %v4286_v54 }
  0x74   : > { %v1278_v2 = vshll.u32 %v1190_v48, 16  ;;  %v1338_v6 = vrot.slane %v1190_v48, 1  ;;  %v789_v25 = vmul.f32 %v3623_v53, %v755_v63  ;;  %vm907_vm6 = vcmp.ge.f32.partialorder %v877_v61, 0.0  ;;  %vm4322_vm13 = vmpackc.low %vm4294_vm2, %vm4306_vm11  ;;  %v633_v63 = vld [vmem:[%s4291_s23 + $0x10] sm:$0x3] }
  0x75   : > { %vm908_vm15 = vcmp.ge.f32.partialorder %v878_v19, 0.0  ;;  %v937_v13 = vmul.f32 0.2, %v877_v61  ;;  %v938_v27 = vmul.f32 0.2, %v878_v19  ;;  %v717_v29 = vunpack.c.l.bf16 %v4299_v8  ;;  %vm1080_vm10 = vmand %vm4294_vm2, %vm4719_vm5 }
  0x76   : > { %v1280_v15 = vrot.slane %v1278_v2, 1  ;;  %v4314_v17 = vsel %vm4722_vm8, %v1337_v34, %v1338_v6  ;;  %v849_v21 = vmul.f32 %v819_v0, %v789_v25  ;;  %v718_v39 = vunpack.c.h.bf16 %v4299_v8  ;;  %v4359_v2 = vld [vmem:[%s4267_s13 + $0x18] sm:$0xff] }
  0x77   : > { %v967_v28 = vsel %vm907_vm6, %v877_v61, %v937_v13  ;;  %v968_v31 = vsel %vm908_vm15, %v878_v19, %v938_v27  ;;  %v756_v11 = vsub.f32 %v631_v10, %v3621_v52  ;;  %v757_v55 = vsub.f32 %v632_v22, %v3621_v52  ;;  %v4368_v22 = vld [vmem:[%s4267_s13 + $0x20] sm:$0xff] }
  0x78   : > { %v4332_v34 = vsel %vm4720_vm0, %v1276_v1, %v1280_v15  ;;  %v1168_v42 = vsel %vm4306_vm11, %v967_v28, 0.0  ;;  %v1169_v47 = vsel %vm4294_vm2, %v968_v31, 0.0  ;;  %v4338_v49 = vpack.c.bf16 %v968_v31, %v967_v28 }
  0x79   : > { %2052 = vmatprep.mubr.bf16.mxu0 %v4332_v34  ;;  %v1191_v23 = vpack.c.bf16 %v1169_v47, %v1168_v42  ;;  %v879_v54 = vadd.f32 %v849_v21, %v714_v50  ;;  %v790_v60 = vmul.f32 %v3623_v53, %v756_v11  ;;  %v820_v36 = vadd.f32 1.0, %v715_v20 }
  0x7a   : > { %2846 = vmatprep.mubr.msk.bf16.mxu1 %vm4322_vm13, %v4338_v49  ;;  %2822 = vmatmul.mubr.msk.bf16.gmra.mrb[24].mxu0 %vm4237_vm9, %v4248_v12  ;;  %v821_v48 = vadd.f32 1.0, %v717_v29  ;;  %v985_v1 = vadd.s32 8, %v3564_v32  ;;  %v719_v50 = vunpack.c.l.bf16 %v4329_v37  ;;  %v791_v8 = vmul.f32 %v3623_v53, %v757_v55  ;;  %v666_v55 = vld [vmem:[%s4267_s13 + $0x28] sm:$0x11] }
  0x7b   : > { %2150 = vmatmul.mubr.bf16.gmra.mrb[24].mxu1 %v4314_v17  ;;  %vm909_vm12 = vcmp.ge.f32.partialorder %v879_v54, 0.0  ;;  %v939_v61 = vmul.f32 0.2, %v879_v54  ;;  %v1283_v19 = vshrl.u32 %v1191_v23, 16  ;;  %v1285_v0 = vshll.u32 %v1191_v23, 16 }
  0x7c   : > { %v850_v20 = vmul.f32 %v820_v36, %v790_v60  ;;  %vm999_vm11 = vcmp.ge.s32.totalorder %v985_v1, 1  ;;  %vm1009_vm6 = vcmp.le.s32.totalorder %v985_v1, 16  ;;  %v1340_v25 = vrot.slane %v1191_v23, 1 }
  0x7d   : > { %v969_v9 = vsel %vm909_vm12, %v879_v54, %v939_v61  ;;  %v1287_v6 = vrot.slane %v1285_v0, 1  ;;  %v720_v10 = vunpack.c.h.bf16 %v4329_v37  ;;  %v851_v27 = vmul.f32 %v821_v48, %v791_v8  ;;  %vm4362_vm2 = vmand %vm999_vm11, %vm1009_vm6  ;;  %v635_v0 = vld [vmem:[%s4291_s23 + $0x20] sm:$0xff] }
  0x7e   : > { %v1170_v13 = vsel %vm1080_vm10, %v969_v9, 0.0  ;;  %v880_v4 = vadd.f32 %v850_v20, %v716_v45  ;;  %v758_v21 = vsub.f32 %v633_v63, %v3621_v52  ;;  %v822_v31 = vadd.f32 1.0, %v719_v50  ;;  %vm4376_vm12 = vmand %vm4362_vm2, %vm1021_vm4  ;;  %v634_v63 = vld [vmem:[%s4291_s23 + $0x18] sm:$0xff]  ;;  %v636_v9 = vld [vmem:[%s4291_s23 + $0x28] sm:$0x3] }
  0x7f   : > { %v1192_v29 = vpack.c.bf16 %v1170_v13, %v1170_v13  ;;  %v1288_v28 = vor.u32 %v1287_v6, %v1283_v19  ;;  %v721_v11 = vunpack.c.l.bf16 %v4359_v2  ;;  %v881_v42 = vadd.f32 %v851_v27, %v718_v39  ;;  %vm4718_vm11 = vmpackc.low %vm4362_vm2, %vm4376_vm12 }
  0x80   : > { %vm910_vm15 = vcmp.ge.f32.partialorder %v880_v4, 0.0  ;;  %v940_v37 = vmul.f32 0.2, %v880_v4  ;;  %v792_v45 = vmul.f32 %v3623_v53, %v758_v21  ;;  %v4780_v23 = vmov 0 }
  0x81   : > { %v1290_v47 = vshll.u32 %v1192_v29, 16  ;;  %v4781_v23 = vsel %vm4376_vm12, 4294967295, %v4780_v23  ;;  %v1341_v54 = vrot.slane %v1192_v29, 1  ;;  %v722_v60 = vunpack.c.h.bf16 %v4359_v2 }
  0x82   : > { %v723_v39 = vunpack.c.l.bf16 %v4368_v22  ;;  %vm911_vm10 = vcmp.ge.f32.partialorder %v881_v42, 0.0  ;;  %v941_v36 = vmul.f32 0.2, %v881_v42  ;;  %v970_v48 = vsel %vm910_vm15, %v880_v4, %v940_v37  ;;  %vm1083_vm15 = vmand %vm4362_vm2, %vm4719_vm5 }
  0x83   : > { %v852_v1 = vmul.f32 %v822_v31, %v792_v45  ;;  %v1292_v50 = vrot.slane %v1290_v47, 1  ;;  %v1171_v61 = vsel %vm4376_vm12, %v970_v48, 0.0  ;;  %v4387_v19 = vsel %vm4722_vm8, %v1340_v25, %v1341_v54 }
  0x84   : > { %v724_v8 = vunpack.c.h.bf16 %v4368_v22  ;;  %v971_v20 = vsel %vm911_vm10, %v881_v42, %v941_v36  ;;  %v725_v6 = vunpack.c.l.bf16 %v666_v55  ;;  %v726_v13 = vunpack.c.h.bf16 %v666_v55 }
  0x85   : > { %v882_v2 = vadd.f32 %v852_v1, %v720_v10  ;;  %v4397_v27 = vsel %vm4720_vm0, %v1288_v28, %v1292_v50  ;;  %v1172_v25 = vsel %vm4362_vm2, %v971_v20, 0.0  ;;  %v4401_v4 = vpack.c.bf16 %v971_v20, %v970_v48 }
  0x86   : > { %v759_v21 = vsub.f32 %v634_v63, %v3621_v52  ;;  %2060 = vmatprep.mubr.bf16.mxu0 %v4397_v27  ;;  %v1193_v22 = vpack.c.bf16 %v1172_v25, %v1171_v61  ;;  %v760_v10 = vsub.f32 %v635_v0, %v3621_v52  ;;  %v761_v28 = vsub.f32 %v636_v9, %v3621_v52 }
  0x87   : > { %vm912_vm6 = vcmp.ge.f32.partialorder %v882_v2, 0.0  ;;  %v942_v29 = vmul.f32 0.2, %v882_v2  ;;  %2849 = vmatprep.mubr.msk.bf16.mxu1 %vm4718_vm11, %v4401_v4  ;;  %2825 = vmatmul.mubr.msk.bf16.gmra.mrb[28].mxu0 %vm4322_vm13, %v4338_v49  ;;  %v823_v42 = vadd.f32 1.0, %v721_v11  ;;  %v824_v37 = vadd.f32 1.0, %v723_v39 }
  0x88   : > { %v793_v31 = vmul.f32 %v3623_v53, %v759_v21  ;;  %2158 = vmatmul.mubr.bf16.gmra.mrb[28].mxu1 %v4387_v19  ;;  %2198 = vmatprep.mubr.bf16.mxu0 %v3855_v18  ;;  %v1352_v47 = vshrl.u32 %v1193_v22, 16  ;;  %v1354_v54 = vshll.u32 %v1193_v22, 16  ;;  %v1366_v55 = vrot.slane %v1193_v22, 1 }
  0x89   : > { %v972_v45 = vsel %vm912_vm6, %v882_v2, %v942_v29  ;;  %2295 = vmatprep.mubr.bf16.mxu1 %v3988_v51  ;;  %v794_v48 = vmul.f32 %v3623_v53, %v760_v10  ;;  %v795_v1 = vmul.f32 %v3623_v53, %v761_v28  ;;  %v825_v52 = vadd.f32 1.0, %v725_v6  ;;  %v3325_v53 = vld [vmem:[%s4713_s5 + $0x208] sm:$0xff]  }
  0x8a   : > { %v1173_v36 = vsel %vm1083_vm15, %v972_v45, 0.0  ;;  %v1356_v50 = vrot.slane %v1354_v54, 1  ;;  %v853_v11 = vmul.f32 %v823_v42, %v793_v31  ;;  %v986_v39 = vadd.s32 9, %v3564_v32 }
  0x8b   : > { %v1194_v63 = vpack.c.bf16 %v1173_v36, %v1173_v36  ;;  %v854_v61 = vmul.f32 %v824_v37, %v794_v48  ;;  %v855_v0 = vmul.f32 %v825_v52, %v795_v1  ;;  %v3327_v36 = vld [vmem:[%s4713_s5 + $0x218] sm:$0xff]  }
  0x8c   : > { %v1357_v18 = vor.u32 %v1356_v50, %v1352_v47  ;;  %v883_v9 = vadd.f32 %v853_v11, %v722_v60  ;;  %vm1000_vm10 = vcmp.ge.s32.totalorder %v986_v39, 1  ;;  %vm1010_vm6 = vcmp.le.s32.totalorder %v986_v39, 16 }
  0x8d   : > { %v1359_v20 = vshll.u32 %v1194_v63, 16  ;;  %v1367_v2 = vrot.slane %v1194_v63, 1  ;;  %v884_v25 = vadd.f32 %v854_v61, %v724_v8  ;;  %v885_v21 = vadd.f32 %v855_v0, %v726_v13  ;;  %vm4433_vm11 = vmand %vm1000_vm10, %vm1010_vm6 }
  0x8e   : > { %vm913_vm15 = vcmp.ge.f32.partialorder %v883_v9, 0.0  ;;  %v943_v32 = vmul.f32 0.2, %v883_v9  ;;  %vm4442_vm12 = vmand %vm4433_vm11, %vm1021_vm4  ;;  %vm4786_vm10 = vsmask.f32 7424  ;;  %vm4787_vm6 = vcmp.le.s32.totalorder %v3593_v38, 16 }
  0x8f   : > { %v1361_v6 = vrot.slane %v1359_v20, 1  ;;  %v4431_v22 = vsel %vm4722_vm8, %v1366_v55, %v1367_v2  ;;  %2199 = vmatmul.mubr.bf16.vlgmr.msra.gmra.mrb[32].mxu0 %v3866_v30  ;;  %vm914_vm5 = vcmp.ge.f32.partialorder %v884_v25, 0.0  ;;  %vm915_vm0 = vcmp.ge.f32.partialorder %v885_v21, 0.0  ;;  %vm1086_vm8 = vmand %vm4433_vm11, %vm4787_vm6 }
  0x90   : > { %v944_v60 = vmul.f32 0.2, %v884_v25  ;;  %v945_v8 = vmul.f32 0.2, %v885_v21  ;;  %2852 = vmatmul.mubr.msk.bf16.vlgmr.msra.gmra.mrb[32].mxu1 %vm3872_vm3, %v3905_v59  ;;  %3167 = vmatpush3.bf16.msra.mxu0 %v4157_v57  ;;  %v4453_v10 = vsel %vm913_vm15, %v883_v9, %v943_v32  ;;  %vm4788_vm4 = vcmask 1046528   ;;  %vm2871_vm3 = vmpackc.low %vm4433_vm11, %vm4442_vm12 }
  0x91   : > { %v4451_v30 = vsel %vm4786_vm10, %v1357_v18, %v1361_v6  ;;  %3206 = vmatpush3.bf16.msra.mxu1 %v4157_v57  ;;  %2206 = vmatprep.mubr.bf16.mxu0 %v3973_v40  ;;  %v1174_v28 = vsel %vm4442_vm12, %v4453_v10, 0.0 }
  0x92   : > { %v4464_v33 = vsel %vm914_vm5, %v884_v25, %v944_v60  ;;  %v975_v59 = vsel %vm915_vm0, %v885_v21, %v945_v8  ;;  %2303 = vmatprep.mubr.bf16.mxu1 %v4066_v56  ;;  %3168 = vmatprep.subr.bf16.mxu0 %v3325_v53  ;;  %vm4789_vm5 = vmmov %vm4786_vm10 }
  0x93   : > { %v1175_v38 = vsel %vm4433_vm11, %v4464_v33, 0.0  ;;  %v1176_v57 = vsel %vm1086_vm8, %v975_v59, 0.0  ;;  %v2872_v31 = vpack.c.bf16 %v4464_v33, %v4453_v10  ;;  %3199 = vmatprep.subr.bf16.mxu1 %v3325_v53  ;;  %vm4790_vm8 = vnez %v4781_v23 }
  0x94   : > { %v1195_v42 = vpack.c.bf16 %v1175_v38, %v1174_v28  ;;  %v1196_v37 = vpack.c.bf16 %v1176_v57, %v1176_v57  ;;  %3169 = vmatpush3.bf16.msra.mxu0 %v3325_v53  ;;  %vm4791_vm0 = vmpackc.low %vm4362_vm2, %vm4790_vm8 }
  0x95   : > { %3207 = vmatpush3.bf16.msra.mxu1 %v3325_v53  ;;  %3170 = vmatprep.subr.bf16.mxu0 %v3326_v26 }
  0x96   : > { %v1371_v45 = vshrl.u32 %v1195_v42, 16  ;;  %v1373_v47 = vshll.u32 %v1195_v42, 16  ;;  %v1378_v54 = vshll.u32 %v1196_v37, 16  ;;  %v1385_v55 = vrot.slane %v1195_v42, 1  ;;  %3200 = vmatprep.subr.bf16.mxu1 %v3326_v26 }
  0x97   : > { %v1386_v48 = vrot.slane %v1196_v37, 1  ;;  %2207 = vmatmul.mubr.bf16.gmra.mrb[36].mxu0 %v3988_v51  ;;  %v3328_v51 = vld [vmem:[%s4713_s5 + $0x220] sm:$0xff]  }
  0x98   : > { %v1375_v1 = vrot.slane %v1373_v47, 1  ;;  %v1380_v52 = vrot.slane %v1378_v54, 1  ;;  %2855 = vmatmul.mubr.msk.bf16.gmra.mrb[36].mxu1 %vm3964_vm14, %v3981_v46  ;;  %2214 = vmatprep.mubr.bf16.mxu0 %v4058_v44  ;;  %v3330_v46 = vld [vmem:[%s4713_s5 + $0x230] sm:$0xff]  }
  0x99   : > { %v1387_v63 = vsel %vm4788_vm4, %v1385_v55, %v1386_v48  ;;  %2311 = vmatprep.mubr.bf16.mxu1 %v4183_v7  ;;  %3171 = vmatpush3.bf16.msra.mxu0 %v3326_v26 }
  0x9a   : > { %v1376_v50 = vor.u32 %v1375_v1, %v1371_v45  ;;  %3208 = vmatpush3.bf16.msra.mxu1 %v3326_v26  ;;  %3172 = vmatprep.subr.bf16.mxu0 %v3327_v36 }
  0x9b   : > { %3201 = vmatprep.subr.bf16.mxu1 %v3327_v36 }
  0x9c   : > { %v1381_v11 = vsel %vm4789_vm5, %v1376_v50, %v1380_v52 }
  0x9d   : > { %3173 = vmatpush3.bf16.msra.mxu0 %v3327_v36 }
  0x9e   : > { %3209 = vmatpush3.bf16.msra.mxu1 %v3327_v36  ;;  %3174 = vmatprep.subr.bf16.mxu0 %v3328_v51 }
  0x9f   : > { %2215 = vmatmul.mubr.bf16.gmra.mrb[40].mxu0 %v4066_v56  ;;  %3202 = vmatprep.subr.bf16.mxu1 %v3328_v51  ;;  %v3331_v56 = vld [vmem:[%s4713_s5 + $0x238] sm:$0xff]  }
  0xa0   : > { %2858 = vmatmul.mubr.msk.bf16.gmra.mrb[40].mxu1 %vm4074_vm1, %v4085_v62  ;;  %2222 = vmatprep.mubr.bf16.mxu0 %v4173_v3 }
  0xa1   : > { %2319 = vmatprep.mubr.bf16.mxu1 %v4255_v16  ;;  %3175 = vmatpush3.bf16.msra.mxu0 %v3328_v51 }
  0xa2   : > { %3210 = vmatpush3.bf16.msra.mxu1 %v3328_v51  ;;  %3176 = vmatprep.subr.bf16.mxu0 %v3329_v24 }
  0xa3   : > { %3203 = vmatprep.subr.bf16.mxu1 %v3329_v24 }
  0xa5   : > { %3177 = vmatpush3.bf16.msra.mxu0 %v3329_v24 }
  0xa6   : > { %3211 = vmatpush3.bf16.msra.mxu1 %v3329_v24  ;;  %3178 = vmatprep.subr.bf16.mxu0 %v3330_v46 }
  0xa7   : > { %2223 = vmatmul.mubr.bf16.gmra.mrb[44].mxu0 %v4183_v7  ;;  %3204 = vmatprep.subr.bf16.mxu1 %v3330_v46 }
  0xa8   : > { %2861 = vmatmul.mubr.msk.bf16.gmra.mrb[44].mxu1 %vm4168_vm7, %v4179_v5  ;;  %2230 = vmatprep.mubr.bf16.mxu0 %v4251_v14 }
  0xa9   : > { %2327 = vmatprep.mubr.bf16.mxu1 %v4332_v34  ;;  %3179 = vmatpush3.bf16.msra.mxu0 %v3330_v46 }
  0xaa   : > { %3212 = vmatpush3.bf16.msra.mxu1 %v3330_v46  ;;  %3180 = vmatprep.subr.bf16.mxu0 %v3331_v56 }
  0xab   : > { %3205 = vmatprep.subr.bf16.mxu1 %v3331_v56 }
  0xad   : > { %3181 = vmatpush3.bf16.msra.mxu0 %v3331_v56 }
  0xae   : > { %3213 = vmatpush3.bf16.msra.mxu1 %v3331_v56 }
  0xaf   : > { %2231 = vmatmul.mubr.bf16.gmra.mrb[48].mxu0 %v4255_v16 }
  0xb0   : > { %2864 = vmatmul.mubr.msk.bf16.gmra.mrb[48].mxu1 %vm4237_vm9, %v4248_v12  ;;  %2238 = vmatprep.mubr.bf16.mxu0 %v4314_v17 }
  0xb1   : > { %2335 = vmatprep.mubr.bf16.mxu1 %v4397_v27 }
  0xb7   : > { %2239 = vmatmul.mubr.bf16.gmra.mrb[52].mxu0 %v4332_v34 }
  0xb8   : > { %2867 = vmatmul.mubr.msk.bf16.gmra.mrb[52].mxu1 %vm4322_vm13, %v4338_v49  ;;  %2246 = vmatprep.mubr.bf16.mxu0 %v4387_v19 }
  0xb9   : > { %2343 = vmatprep.mubr.bf16.mxu1 %v4451_v30 }
  0xbf   : > { %2247 = vmatmul.mubr.bf16.gmra.mrb[56].mxu0 %v4397_v27 }
  0xc0   : > { %2870 = vmatmul.mubr.msk.bf16.gmra.mrb[56].mxu1 %vm4791_vm0, %v4401_v4  ;;  %2254 = vmatprep.mubr.bf16.mxu0 %v4431_v22 }
  0xc1   : > { %2351 = vmatprep.mubr.bf16.mxu1 %v1381_v11 }
  0xc7   : > { %2255 = vmatmul.mubr.bf16.gmra.mrb[60].mxu0 %v4451_v30 }
  0xc8   : > { %2873 = vmatmul.mubr.msk.bf16.gmra.mrb[60].mxu1 %vm2871_vm3, %v2872_v31  ;;  %3182 = vmatprep.mubr.bf16.mxu0 %v3973_v40 }
  0xc9   : > { %3190 = vmatprep.mubr.bf16.mxu1 %v4314_v17 }
  0xcf   : > { %3183 = vmatmul.mubr.bf16.vlgmr.msra.gmra.mrb[64].mxu0 %v4058_v44  ;;  %v4548_v44 = vld [vmem:[%s4714_s6] ss:$0 sm:$0xff] }
  0xd0   : > { %3191 = vmatmul.mubr.bf16.vlgmr.msra.gmra.mrb[64].mxu1 %v4387_v19  ;;  %3186 = vmatprep.mubr.bf16.mxu0 %v4173_v3 }
  0xd1   : > { %3194 = vmatprep.mubr.bf16.mxu1 %v4431_v22 }
  0xd7   : > { %3187 = vmatmul.mubr.bf16.gmra.mrb[68].mxu0 %v4251_v14 }
  0xd8   : > { %3195 = vmatmul.mubr.bf16.gmra.mrb[68].mxu1 %v1387_v63 }
 0x104   : > { %v2974_v58 = vpop.f32.mrb[0].mxu1 }
 0x105   : > { %v2975_v62 = vpop.f32.mrb[1].mxu1 }
 0x106   : > { %v2976_v43 = vadd.f32 %v2975_v62, %v2974_v58  ;;  %v2977_v5 = vpop.f32.mrb[2].mxu1 }
 0x107   : > { %v2978_v7 = vpop.f32.mrb[3].mxu1 }
 0x108   : > { %v2910_v41 = vpop.f32.mrb[0].mxu0  ;;  %v2979_v40 = vadd.f32 %v2978_v7, %v2977_v5 }
 0x109   : > { %v2911_v12 = vpop.f32.mrb[1].mxu0 }
 0x10a   : > { %v2912_v16 = vadd.f32 %v2911_v12, %v2910_v41  ;;  %v2913_v3 = vpop.f32.mrb[2].mxu0 }
 0x10b   : > { %v2914_v17 = vpop.f32.mrb[3].mxu0 }
 0x10c   : > { %v2007_v35 = vadd.f32 %v2912_v16, %v4548_v44  ;;  %v2915_v14 = vadd.f32 %v2914_v17, %v2913_v3 }
 0x10e   : > { %v4551_v34 = vadd.f32 %v2976_v43, %v2007_v35  ;;  %v2010_v49 = vadd.f32 %v2915_v14, %v4548_v44 }
 0x110   : > { %v4554_v15 = vadd.f32 %v2979_v40, %v2010_v49  ;;  %v2916_v23 = vpop.f32.mrb[4].mxu0 }
 0x111   : > { %v2917_v19 = vpop.f32.mrb[5].mxu0 }
 0x112   : > { %v2918_v27 = vadd.f32 %v2917_v19, %v2916_v23  ;;  %v2919_v4 = vpop.f32.mrb[6].mxu0 }
 0x113   : > { %v2920_v61 = vpop.f32.mrb[7].mxu0 }
 0x114   : > { %v2980_v39 = vpop.f32.mrb[4].mxu1  ;;  %v2015_v0 = vadd.f32 %v2918_v27, %v4548_v44  ;;  %v2921_v20 = vadd.f32 %v2920_v61, %v2919_v4 }
 0x115   : > { %v2981_v18 = vpop.f32.mrb[5].mxu1 }
 0x116   : > { %v2982_v2 = vadd.f32 %v2981_v18, %v2980_v39  ;;  %v2983_v9 = vpop.f32.mrb[6].mxu1  ;;  %v2018_v25 = vadd.f32 %v2921_v20, %v4548_v44 }
 0x117   : > { %v2984_v21 = vpop.f32.mrb[7].mxu1 }
 0x118   : > { %v4558_v53 = vadd.f32 %v2982_v2, %v2015_v0  ;;  %v2985_v6 = vadd.f32 %v2984_v21, %v2983_v9 }
 0x11a   : > { %v4560_v22 = vadd.f32 %v2985_v6, %v2018_v25 }
 0x11d   : > { %v2922_v32 = vpop.f32.mrb[8].mxu0  ;;  %v2986_v29 = vpop.f32.mrb[8].mxu1 }
 0x11e   : > { %v2923_v60 = vpop.f32.mrb[9].mxu0  ;;  %v2987_v8 = vpop.f32.mrb[9].mxu1 }
 0x11f   : > { %v2924_v13 = vadd.f32 %v2923_v60, %v2922_v32  ;;  %v2988_v30 = vadd.f32 %v2987_v8, %v2986_v29  ;;  %v2925_v10 = vpop.f32.mrb[10].mxu0  ;;  %v2989_v26 = vpop.f32.mrb[10].mxu1 }
 0x120   : > { %v2926_v33 = vpop.f32.mrb[11].mxu0  ;;  %v2990_v59 = vpop.f32.mrb[11].mxu1 }
 0x121   : > { %v2023_v28 = vadd.f32 %v2924_v13, %v4548_v44  ;;  %v2927_v38 = vadd.f32 %v2926_v33, %v2925_v10  ;;  %v2991_v57 = vadd.f32 %v2990_v59, %v2989_v26 }
 0x123   : > { %v4563_v31 = vadd.f32 %v2988_v30, %v2023_v28  ;;  %v2026_v42 = vadd.f32 %v2927_v38, %v4548_v44 }
 0x125   : > { %v4566_v37 = vadd.f32 %v2991_v57, %v2026_v42 }
 0x128   : > { %v2928_v45 = vpop.f32.mrb[12].mxu0 }
 0x129   : > { %v2929_v47 = vpop.f32.mrb[13].mxu0 }
 0x12a   : > { %v2992_v54 = vpop.f32.mrb[12].mxu1  ;;  %v2930_v55 = vadd.f32 %v2929_v47, %v2928_v45  ;;  %v2931_v36 = vpop.f32.mrb[14].mxu0 }
 0x12b   : > { %v2993_v48 = vpop.f32.mrb[13].mxu1  ;;  %v2932_v1 = vpop.f32.mrb[15].mxu0 }
 0x12c   : > { %v2031_v52 = vadd.f32 %v2930_v55, %v4548_v44  ;;  %v2994_v63 = vadd.f32 %v2993_v48, %v2992_v54  ;;  %v2995_v50 = vpop.f32.mrb[14].mxu1  ;;  %v2933_v51 = vadd.f32 %v2932_v1, %v2931_v36 }
 0x12d   : > { %v2996_v11 = vpop.f32.mrb[15].mxu1 }
 0x12e   : > { %v4569_v24 = vadd.f32 %v2994_v63, %v2031_v52  ;;  %v2034_v46 = vadd.f32 %v2933_v51, %v4548_v44  ;;  %v2997_v56 = vadd.f32 %v2996_v11, %v2995_v50 }
 0x130   : > { %v4572_v58 = vadd.f32 %v2997_v56, %v2034_v46 }
 0x135   : > { %v2934_v62 = vpop.f32.mrb[16].mxu0  ;;  %v2998_v43 = vpop.f32.mrb[16].mxu1 }
 0x136   : > { %v2935_v5 = vpop.f32.mrb[17].mxu0  ;;  %v2999_v7 = vpop.f32.mrb[17].mxu1 }
 0x137   : > { %v2936_v41 = vadd.f32 %v2935_v5, %v2934_v62  ;;  %v3000_v40 = vadd.f32 %v2999_v7, %v2998_v43  ;;  %v2937_v12 = vpop.f32.mrb[18].mxu0  ;;  %v3001_v16 = vpop.f32.mrb[18].mxu1 }
 0x138   : > { %v2938_v3 = vpop.f32.mrb[19].mxu0  ;;  %v3002_v17 = vpop.f32.mrb[19].mxu1 }
 0x139   : > { %v2039_v35 = vadd.f32 %v2936_v41, %v4548_v44  ;;  %v2939_v14 = vadd.f32 %v2938_v3, %v2937_v12  ;;  %v3003_v49 = vadd.f32 %v3002_v17, %v3001_v16 }
 0x13b   : > { %v4575_v23 = vadd.f32 %v3000_v40, %v2039_v35  ;;  %v2042_v19 = vadd.f32 %v2939_v14, %v4548_v44 }
 0x13d   : > { %v4578_v27 = vadd.f32 %v3003_v49, %v2042_v19 }
 0x141   : > { %v3004_v4 = vpop.f32.mrb[20].mxu1 }
 0x142   : > { %v2940_v39 = vpop.f32.mrb[20].mxu0  ;;  %v3005_v61 = vpop.f32.mrb[21].mxu1 }
 0x143   : > { %v2941_v0 = vpop.f32.mrb[21].mxu0  ;;  %v3006_v18 = vadd.f32 %v3005_v61, %v3004_v4  ;;  %v3007_v20 = vpop.f32.mrb[22].mxu1 }
 0x144   : > { %v2942_v2 = vadd.f32 %v2941_v0, %v2940_v39  ;;  %v2943_v9 = vpop.f32.mrb[22].mxu0  ;;  %v3008_v25 = vpop.f32.mrb[23].mxu1 }
 0x145   : > { %v2944_v21 = vpop.f32.mrb[23].mxu0  ;;  %v3009_v6 = vadd.f32 %v3008_v25, %v3007_v20 }
 0x146   : > { %v2047_v32 = vadd.f32 %v2942_v2, %v4548_v44  ;;  %v2945_v29 = vadd.f32 %v2944_v21, %v2943_v9 }
 0x148   : > { %v4581_v60 = vadd.f32 %v3006_v18, %v2047_v32  ;;  %v2050_v8 = vadd.f32 %v2945_v29, %v4548_v44 }
 0x14a   : > { %v4584_v13 = vadd.f32 %v3009_v6, %v2050_v8 }
 0x14d   : > { %v2946_v30 = vpop.f32.mrb[24].mxu0 }
 0x14e   : > { %v3010_v10 = vpop.f32.mrb[24].mxu1  ;;  %v2947_v26 = vpop.f32.mrb[25].mxu0 }
 0x14f   : > { %v2948_v33 = vadd.f32 %v2947_v26, %v2946_v30  ;;  %v3011_v59 = vpop.f32.mrb[25].mxu1  ;;  %v2949_v28 = vpop.f32.mrb[26].mxu0 }
 0x150   : > { %v3012_v38 = vadd.f32 %v3011_v59, %v3010_v10  ;;  %v3013_v57 = vpop.f32.mrb[26].mxu1  ;;  %v2950_v42 = vpop.f32.mrb[27].mxu0 }
 0x151   : > { %v2055_v45 = vadd.f32 %v2948_v33, %v4548_v44  ;;  %v2951_v47 = vadd.f32 %v2950_v42, %v2949_v28  ;;  %v3014_v54 = vpop.f32.mrb[27].mxu1 }
 0x152   : > { %v3015_v55 = vadd.f32 %v3014_v54, %v3013_v57 }
 0x153   : > { %v4587_v36 = vadd.f32 %v3012_v38, %v2055_v45  ;;  %v2058_v48 = vadd.f32 %v2951_v47, %v4548_v44 }
 0x155   : > { %v4590_v1 = vadd.f32 %v3015_v55, %v2058_v48 }
 0x15a   : > { %v2952_v52 = vpop.f32.mrb[28].mxu0 }
 0x15b   : > { %v3016_v63 = vpop.f32.mrb[28].mxu1  ;;  %v2953_v50 = vpop.f32.mrb[29].mxu0 }
 0x15c   : > { %v2954_v51 = vadd.f32 %v2953_v50, %v2952_v52  ;;  %v3017_v11 = vpop.f32.mrb[29].mxu1  ;;  %v2955_v46 = vpop.f32.mrb[30].mxu0 }
 0x15d   : > { %v3018_v56 = vadd.f32 %v3017_v11, %v3016_v63  ;;  %v3019_v62 = vpop.f32.mrb[30].mxu1  ;;  %v2956_v43 = vpop.f32.mrb[31].mxu0 }
 0x15e   : > { %v2063_v5 = vadd.f32 %v2954_v51, %v4548_v44  ;;  %v2957_v7 = vadd.f32 %v2956_v43, %v2955_v46  ;;  %v3020_v41 = vpop.f32.mrb[31].mxu1 }
 0x15f   : > { %v3021_v40 = vadd.f32 %v3020_v41, %v3019_v62 }
 0x160   : > { %v4593_v12 = vadd.f32 %v3018_v56, %v2063_v5  ;;  %v2066_v16 = vadd.f32 %v2957_v7, %v4548_v44 }
 0x162   : > { %v4596_v3 = vadd.f32 %v3021_v40, %v2066_v16  ;;  %v3038_v17 = vpop.f32.mrb[32].mxu0 }
 0x163   : > { %v3102_v35 = vpop.f32.mrb[32].mxu1  ;;  %v3039_v14 = vpop.f32.mrb[33].mxu0 }
 0x164   : > { %v3040_v49 = vadd.f32 %v3039_v14, %v3038_v17  ;;  %v3103_v19 = vpop.f32.mrb[33].mxu1  ;;  %v3041_v4 = vpop.f32.mrb[34].mxu0 }
 0x165   : > { %v3104_v39 = vadd.f32 %v3103_v19, %v3102_v35  ;;  %v3105_v61 = vpop.f32.mrb[34].mxu1  ;;  %v3042_v0 = vpop.f32.mrb[35].mxu0 }
 0x166   : > { %v2201_v18 = vadd.f32 %v3040_v49, %v4551_v34  ;;  %v3043_v20 = vadd.f32 %v3042_v0, %v3041_v4  ;;  %v3106_v2 = vpop.f32.mrb[35].mxu1 }
 0x167   : > { %v3107_v9 = vadd.f32 %v3106_v2, %v3105_v61 }
 0x168   : > { %v2204_v25 = vadd.f32 %v3043_v20, %v4554_v15  ;;  %v4600_v21 = vadd.f32 %v3104_v39, %v2201_v18 }
 0x16a   : > { %v3044_v44 = vpop.f32.mrb[36].mxu0  ;;  %v4602_v6 = vadd.f32 %v3107_v9, %v2204_v25 }
 0x16b   : > { %v3108_v32 = vpop.f32.mrb[36].mxu1  ;;  %v3045_v29 = vpop.f32.mrb[37].mxu0 }
 0x16c   : > { %v3046_v8 = vadd.f32 %v3045_v29, %v3044_v44  ;;  %v3109_v30 = vpop.f32.mrb[37].mxu1  ;;  %v3047_v10 = vpop.f32.mrb[38].mxu0 }
 0x16d   : > { %v3110_v26 = vadd.f32 %v3109_v30, %v3108_v32  ;;  %v3111_v33 = vpop.f32.mrb[38].mxu1  ;;  %v3048_v59 = vpop.f32.mrb[39].mxu0 }
 0x16e   : > { %v2209_v34 = vadd.f32 %v3046_v8, %v4558_v53  ;;  %v3049_v28 = vadd.f32 %v3048_v59, %v3047_v10  ;;  %v3112_v38 = vpop.f32.mrb[39].mxu1 }
 0x16f   : > { %v3113_v57 = vadd.f32 %v3112_v38, %v3111_v33 }
 0x170   : > { %v2212_v15 = vadd.f32 %v3049_v28, %v4560_v22  ;;  %v4606_v42 = vadd.f32 %v3110_v26, %v2209_v34 }
 0x172   : > { %v3050_v45 = vpop.f32.mrb[40].mxu0  ;;  %v4608_v47 = vadd.f32 %v3113_v57, %v2212_v15 }
 0x173   : > { %v3114_v54 = vpop.f32.mrb[40].mxu1  ;;  %v3051_v55 = vpop.f32.mrb[41].mxu0 }
 0x174   : > { %v3052_v48 = vadd.f32 %v3051_v55, %v3050_v45  ;;  %v3115_v52 = vpop.f32.mrb[41].mxu1  ;;  %v3053_v63 = vpop.f32.mrb[42].mxu0 }
 0x175   : > { %v3116_v50 = vadd.f32 %v3115_v52, %v3114_v54  ;;  %v3117_v51 = vpop.f32.mrb[42].mxu1  ;;  %v3054_v11 = vpop.f32.mrb[43].mxu0 }
 0x176   : > { %v2217_v53 = vadd.f32 %v3052_v48, %v4563_v31  ;;  %v3055_v46 = vadd.f32 %v3054_v11, %v3053_v63  ;;  %v3118_v56 = vpop.f32.mrb[43].mxu1 }
 0x177   : > { %v3119_v62 = vadd.f32 %v3118_v56, %v3117_v51 }
 0x178   : > { %v2220_v22 = vadd.f32 %v3055_v46, %v4566_v37  ;;  %v4612_v43 = vadd.f32 %v3116_v50, %v2217_v53 }
 0x17a   : > { %v3056_v5 = vpop.f32.mrb[44].mxu0  ;;  %v4614_v7 = vadd.f32 %v3119_v62, %v2220_v22 }
 0x17b   : > { %v3120_v41 = vpop.f32.mrb[44].mxu1  ;;  %v3057_v40 = vpop.f32.mrb[45].mxu0 }
 0x17c   : > { %v3058_v16 = vadd.f32 %v3057_v40, %v3056_v5  ;;  %v3121_v17 = vpop.f32.mrb[45].mxu1  ;;  %v3059_v35 = vpop.f32.mrb[46].mxu0 }
 0x17d   : > { %v3122_v14 = vadd.f32 %v3121_v17, %v3120_v41  ;;  %v3123_v49 = vpop.f32.mrb[46].mxu1  ;;  %v3060_v19 = vpop.f32.mrb[47].mxu0 }
 0x17e   : > { %v2225_v31 = vadd.f32 %v3058_v16, %v4569_v24  ;;  %v3061_v4 = vadd.f32 %v3060_v19, %v3059_v35  ;;  %v3124_v39 = vpop.f32.mrb[47].mxu1 }
 0x17f   : > { %v3125_v61 = vadd.f32 %v3124_v39, %v3123_v49 }
 0x180   : > { %v2228_v37 = vadd.f32 %v3061_v4, %v4572_v58  ;;  %v4618_v0 = vadd.f32 %v3122_v14, %v2225_v31 }
 0x182   : > { %v3062_v18 = vpop.f32.mrb[48].mxu0  ;;  %v4620_v20 = vadd.f32 %v3125_v61, %v2228_v37 }
 0x183   : > { %v3126_v2 = vpop.f32.mrb[48].mxu1  ;;  %v3063_v9 = vpop.f32.mrb[49].mxu0 }
 0x184   : > { %v3064_v25 = vadd.f32 %v3063_v9, %v3062_v18  ;;  %v3127_v44 = vpop.f32.mrb[49].mxu1  ;;  %v3065_v32 = vpop.f32.mrb[50].mxu0 }
 0x185   : > { %v3128_v29 = vadd.f32 %v3127_v44, %v3126_v2  ;;  %v3129_v8 = vpop.f32.mrb[50].mxu1  ;;  %v3066_v30 = vpop.f32.mrb[51].mxu0 }
 0x186   : > { %v2233_v24 = vadd.f32 %v3064_v25, %v4575_v23  ;;  %v3067_v10 = vadd.f32 %v3066_v30, %v3065_v32  ;;  %v3130_v26 = vpop.f32.mrb[51].mxu1 }
 0x187   : > { %v3131_v33 = vadd.f32 %v3130_v26, %v3129_v8 }
 0x188   : > { %v2236_v58 = vadd.f32 %v3067_v10, %v4578_v27  ;;  %v4624_v59 = vadd.f32 %v3128_v29, %v2233_v24  ;;  %v2459_v10 = vld [vmem:[%s4641_s12 + $0x10] sm:$0xff] }
 0x18a   : > { %v3068_v34 = vpop.f32.mrb[52].mxu0  ;;  %v4626_v28 = vadd.f32 %v3131_v33, %v2236_v58  ;;  %v2467_v58 = vld [vmem:[%s4641_s12 + $0x50] sm:$0xff] }
 0x18b   : > { %v3132_v38 = vpop.f32.mrb[52].mxu1  ;;  %v3069_v57 = vpop.f32.mrb[53].mxu0 }
 0x18c   : > { %v3070_v15 = vadd.f32 %v3069_v57, %v3068_v34  ;;  %v3133_v45 = vpop.f32.mrb[53].mxu1  ;;  %v3071_v54 = vpop.f32.mrb[54].mxu0 }
 0x18d   : > { %v3134_v55 = vadd.f32 %v3133_v45, %v3132_v38  ;;  %v3135_v48 = vpop.f32.mrb[54].mxu1  ;;  %v3072_v52 = vpop.f32.mrb[55].mxu0  ;;  %v2457_v38 = vld [vmem:[%s4641_s12] sm:$0xff] }
 0x18e   : > { %v2241_v23 = vadd.f32 %v3070_v15, %v4581_v60  ;;  %v3073_v63 = vadd.f32 %v3072_v52, %v3071_v54  ;;  %v3136_v50 = vpop.f32.mrb[55].mxu1  ;;  %v2465_v45 = vld [vmem:[%s4641_s12 + $0x40] sm:$0xff] }
 0x18f   : > { %v3137_v51 = vadd.f32 %v3136_v50, %v3135_v48 }
 0x190   : > { %v2244_v27 = vadd.f32 %v3073_v63, %v4584_v13  ;;  %v2338_v11 = vadd.f32 %v3134_v55, %v2241_v23  ;;  %v2468_v63 = vld [vmem:[%s4641_s12 + $0x58] sm:$0xff] }
 0x192   : > { %v3074_v53 = vpop.f32.mrb[56].mxu0  ;;  %v2341_v46 = vadd.f32 %v3137_v51, %v2244_v27  ;;  %v2458_v51 = vld [vmem:[%s4641_s12 + $0x8] sm:$0xff] }
 0x193   : > { %v3138_v56 = vpop.f32.mrb[56].mxu1  ;;  %v3075_v62 = vpop.f32.mrb[57].mxu0 }
 0x194   : > { %v3076_v22 = vadd.f32 %v3075_v62, %v3074_v53  ;;  %v3139_v5 = vpop.f32.mrb[57].mxu1  ;;  %v3077_v41 = vpop.f32.mrb[58].mxu0 }
 0x195   : > { %v3140_v40 = vadd.f32 %v3139_v5, %v3138_v56  ;;  %v3141_v16 = vpop.f32.mrb[58].mxu1  ;;  %v3078_v17 = vpop.f32.mrb[59].mxu0 }
 0x196   : > { %v2249_v35 = vadd.f32 %v3076_v22, %v4587_v36  ;;  %v3079_v60 = vadd.f32 %v3078_v17, %v3077_v41  ;;  %v3142_v14 = vpop.f32.mrb[59].mxu1 }
 0x197   : > { %v3143_v49 = vadd.f32 %v3142_v14, %v3141_v16 }
 0x198   : > { %v2252_v19 = vadd.f32 %v3079_v60, %v4590_v1  ;;  %v4632_v13 = vadd.f32 %v3140_v40, %v2249_v35  ;;  %v2463_v40 = vld [vmem:[%s4641_s12 + $0x30] sm:$0xff]  ;;  %v2461_v60 = vld [vmem:[%s4641_s12 + $0x20] sm:$0xff] }
 0x19a   : > { %v3080_v31 = vpop.f32.mrb[60].mxu0  ;;  %v4634_v4 = vadd.f32 %v3143_v49, %v2252_v19 }
 0x19b   : > { %v3144_v39 = vpop.f32.mrb[60].mxu1  ;;  %v3081_v61 = vpop.f32.mrb[61].mxu0 }
 0x19c   : > { %v3082_v37 = vadd.f32 %v3081_v61, %v3080_v31  ;;  %v3145_v18 = vpop.f32.mrb[61].mxu1  ;;  %v3083_v2 = vpop.f32.mrb[62].mxu0  ;;  %v2469_v31 = vld [vmem:[%s4641_s12 + $0x60] sm:$0xff]  ;;  %v2464_v61 = vld [vmem:[%s4641_s12 + $0x38] sm:$0xff] }
 0x19d   : > { %v3146_v9 = vadd.f32 %v3145_v18, %v3144_v39  ;;  %v3147_v25 = vpop.f32.mrb[62].mxu1  ;;  %v3084_v44 = vpop.f32.mrb[63].mxu0 }
 0x19e   : > { %v2257_v36 = vadd.f32 %v3082_v37, %v4593_v12  ;;  %v3085_v32 = vadd.f32 %v3084_v44, %v3083_v2  ;;  %v3148_v29 = vpop.f32.mrb[63].mxu1  ;;  %v2462_v44 = vld [vmem:[%s4641_s12 + $0x28] sm:$0xff] }
 0x19f   : > { %v3149_v1 = vadd.f32 %v3148_v29, %v3147_v25 }
 0x1a0   : > { %v2260_v8 = vadd.f32 %v3085_v32, %v4596_v3  ;;  %v2354_v30 = vadd.f32 %v3146_v9, %v2257_v36  ;;  %v2472_v9 = vld [vmem:[%s4641_s12 + $0x78] sm:$0xff] }
 0x1a2   : > { %v3184_v24 = vpop.f32.mrb[64].mxu0  ;;  %v2357_v26 = vadd.f32 %v3149_v1, %v2260_v8 }
 0x1a3   : > { %v2403_v12 = vadd.f32 %v3184_v24, %v4606_v42  ;;  %v3192_v33 = vpop.f32.mrb[64].mxu1  ;;  %v2394_v34 = vpop.f32.mrb[65].mxu0  ;;  %v2460_v42 = vld [vmem:[%s4641_s12 + $0x18] sm:$0xff] }
 0x1a4   : > { %v2435_v57 = vadd.f32 %v3192_v33, %v2338_v11  ;;  %v2395_v3 = vadd.f32 %v2394_v34, %v4600_v21  ;;  %v2426_v15 = vpop.f32.mrb[65].mxu1  ;;  %v3185_v54 = vpop.f32.mrb[66].mxu0 }
 0x1a5   : > { %v2475_v55 = vadd.f32 %v2459_v10, %v2403_v12  ;;  %v2427_v48 = vadd.f32 %v2426_v15, %v4624_v59  ;;  %v2406_v52 = vadd.f32 %v3185_v54, %v4608_v47  ;;  %v3193_v23 = vpop.f32.mrb[66].mxu1  ;;  %v2397_v50 = vpop.f32.mrb[67].mxu0  ;;  %v2466_v59 = vld [vmem:[%s4641_s12 + $0x48] sm:$0xff] }
 0x1a6   : > { %v2483_v21 = vadd.f32 %v2467_v58, %v2435_v57  ;;  %v2473_v27 = vadd.f32 %v2457_v38, %v2395_v3  ;;  %v2438_v11 = vadd.f32 %v3193_v23, %v2341_v46  ;;  %v2398_v53 = vadd.f32 %v2397_v50, %v4602_v6  ;;  %v2429_v56 = vpop.f32.mrb[67].mxu1 }
 0x1a7   : > { %2491 = vst [vmem:[%s4651_s25 + $0x10] sm:$0xff] %v2475_v55  ;;  %v2481_v47 = vadd.f32 %v2465_v45, %v2427_v48  ;;  %v2476_v62 = vadd.f32 %v2460_v42, %v2406_v52  ;;  %v2430_v22 = vadd.f32 %v2429_v56, %v4626_v28  ;;  %v2471_v28 = vld [vmem:[%s4641_s12 + $0x70] sm:$0xff] }
 0x1a8   : > { %2499 = vst [vmem:[%s4651_s25 + $0x50] sm:$0xff] %v2483_v21  ;;  %2489 = vst [vmem:[%s4651_s25] sm:$0xff] %v2473_v27  ;;  %v2484_v5 = vadd.f32 %v2468_v63, %v2438_v11  ;;  %v2474_v41 = vadd.f32 %v2458_v51, %v2398_v53 }
 0x1a9   : > { %2497 = vst [vmem:[%s4651_s25 + $0x40] sm:$0xff] %v2481_v47  ;;  %2492 = vst [vmem:[%s4651_s25 + $0x18] sm:$0xff] %v2476_v62  ;;  %v2482_v46 = vadd.f32 %v2466_v59, %v2430_v22 }
 0x1aa   : > { %2500 = vst [vmem:[%s4651_s25 + $0x58] sm:$0xff] %v2484_v5  ;;  %2490 = vst [vmem:[%s4651_s25 + $0x8] sm:$0xff] %v2474_v41  ;;  %v3188_v6 = vpop.f32.mrb[68].mxu0 }
 0x1ab   : > { %2498 = vst [vmem:[%s4651_s25 + $0x48] sm:$0xff] %v2482_v46  ;;  %v2419_v16 = vadd.f32 %v3188_v6, %v4618_v0  ;;  %v3196_v17 = vpop.f32.mrb[68].mxu1  ;;  %v2410_v35 = vpop.f32.mrb[69].mxu0 }
 0x1ac   : > { %v2451_v14 = vadd.f32 %v3196_v17, %v2354_v30  ;;  %v2411_v49 = vadd.f32 %v2410_v35, %v4612_v43  ;;  %v2442_v19 = vpop.f32.mrb[69].mxu1  ;;  %v3189_v39 = vpop.f32.mrb[70].mxu0 }
 0x1ad   : > { %v2479_v37 = vadd.f32 %v2463_v40, %v2419_v16  ;;  %v2443_v18 = vadd.f32 %v2442_v19, %v4632_v13  ;;  %v2422_v0 = vadd.f32 %v3189_v39, %v4620_v20  ;;  %v3197_v2 = vpop.f32.mrb[70].mxu1  ;;  %v2413_v25 = vpop.f32.mrb[71].mxu0  ;;  %v2470_v13 = vld [vmem:[%s4641_s12 + $0x68] sm:$0xff] }
 0x1ae   : > { %v2487_v43 = vadd.f32 %v2471_v28, %v2451_v14  ;;  %v2477_v36 = vadd.f32 %v2461_v60, %v2411_v49  ;;  %v2454_v32 = vadd.f32 %v3197_v2, %v2357_v26  ;;  %v2414_v29 = vadd.f32 %v2413_v25, %v4614_v7  ;;  %v2445_v1 = vpop.f32.mrb[71].mxu1 }
 0x1af   : > { %2495 = vst [vmem:[%s4651_s25 + $0x30] sm:$0xff] %v2479_v37  ;;  %v2485_v8 = vadd.f32 %v2469_v31, %v2443_v18  ;;  %v2480_v20 = vadd.f32 %v2464_v61, %v2422_v0  ;;  %v2446_v30 = vadd.f32 %v2445_v1, %v4634_v4 }
 0x1b0   : > { %2503 = vst [vmem:[%s4651_s25 + $0x70] sm:$0xff] %v2487_v43  ;;  %2493 = vst [vmem:[%s4651_s25 + $0x20] sm:$0xff] %v2477_v36  ;;  %v2488_v24 = vadd.f32 %v2472_v9, %v2454_v32  ;;  %v2478_v10 = vadd.f32 %v2462_v44, %v2414_v29 }
 0x1b1   : > { %2501 = vst [vmem:[%s4651_s25 + $0x60] sm:$0xff] %v2485_v8  ;;  %2496 = vst [vmem:[%s4651_s25 + $0x38] sm:$0xff] %v2480_v20  ;;  %v2486_v12 = vadd.f32 %v2470_v13, %v2446_v30 }
 0x1b2   : > { %2504 = vst [vmem:[%s4651_s25 + $0x78] sm:$0xff] %v2488_v24  ;;  %2494 = vst [vmem:[%s4651_s25 + $0x28] sm:$0xff] %v2478_v10 }
 0x1b3   : > { %2502 = vst [vmem:[%s4651_s25 + $0x68] sm:$0xff] %v2486_v12 }
 0x1b4 PF: > { %s18_s9 = sadd.s32 1, %s3370_s9   ;;  %s4792_s27 = smov %s3362_s29 }
 0x1b5   : > { %p15_p9 = scmp.ge.s32.totalorder %s18_s9, 6   ;;  %s4793_s28 = smov %s3366_s30 }
 0x1b6   : > { %s4794_s29 = smov %s4797_s10  ;;  %s4795_s30 = smov %s4801_s11 }
 0x1b7   :  { %17 = sbr.rel (!%p15_p9) target bundleno = 3 (0x3), region = 97 }

</bundles_post_ra>
